<compile_context>
chip_gen: v6e
topology: v6e:2x2x1
jax: 0.10.0
libtpu: 0.0.40
codegen_flags: <defaults>
</compile_context>

<pallas_src>
import functools

import jax
import jax.numpy as jnp
import numpy as np
from jax.experimental import pallas as pl
from jax.experimental.pallas import tpu as pltpu

D_INPUT = 3
N_LAYERS = 8
D_FILTER = 256
SKIP = (4,)          # concat happens after enumerate-index 4 -> feeds layer 5
D_OUT = 4            # d_viewdirs is None -> output = Linear(d_filter, 4)

PARAM_DTYPE = jnp.bfloat16   # weights/biases stored in HBM as bf16
ACT_DTYPE = jnp.bfloat16     # hidden activations fed to the MXU


def nerf_kernel(x_ref,
                w0, b0, w1, b1, w2, b2, w3, b3, w4, b4,
                w5h, w5x, b5, w6, b6, w7, b7, wo, bo,
                o_ref):
    f32 = jnp.float32
    relu = lambda v: jnp.maximum(v, 0.0)
    dot = functools.partial(jnp.dot, preferred_element_type=f32)

    x = x_ref[...]                                   # (bn, 3) f32

    def small_in(w_ref):
        # (bn,3) @ (3,256) done as 3 rank-1 updates on the VPU: keeps the
        # K=3 contraction off the MXU and avoids a padded MXU pass.
        w = w_ref[...].astype(f32)                   # (3, d_filter)
        acc = x[:, 0:1] * w[0:1, :]
        for k in range(1, D_INPUT):
            acc = acc + x[:, k:k + 1] * w[k:k + 1, :]
        return acc                                   # (bn, d_filter) f32

    # layer 0: d_input -> d_filter (VPU rank-1 path)
    h = relu(small_in(w0) + b0[...].astype(f32)).astype(ACT_DTYPE)

    # layers 1..4: dense 256x256 on the MXU (bf16 in, f32 accumulate)
    for w, b in ((w1, b1), (w2, b2), (w3, b3), (w4, b4)):
        h = relu(dot(h, w[...]) + b[...].astype(f32)).astype(ACT_DTYPE)

    # layer 5 consumes cat([relu(L4), x_input]); exact algebraic split:
    #   relu(h4 @ W5h + x @ W5x + b5)
    h = relu(dot(h, w5h[...]) + small_in(w5x) + b5[...].astype(f32)).astype(ACT_DTYPE)

    # layers 6, 7
    for w, b in ((w6, b6), (w7, b7)):
        h = relu(dot(h, w[...]) + b[...].astype(f32)).astype(ACT_DTYPE)

    # output layer (d_filter -> 4), no activation
    o_ref[...] = (dot(h, wo[...]) + bo[...].astype(f32)).astype(o_ref.dtype)


def make_params(key):
    """Deterministic params; weights stored as (in, out) bf16, biases (1, out) bf16.

    Flat order matches the kernel signature:
      w0,b0, w1,b1, w2,b2, w3,b3, w4,b4, w5h,w5x,b5, w6,b6, w7,b7, wo,bo
    """
    keys = jax.random.split(key, 2 * (N_LAYERS + 1))

    def lin(kw, kb, d_in, d_out):
        w = (jax.random.normal(kw, (d_in, d_out), jnp.float32) * 0.05).astype(PARAM_DTYPE)
        b = (jax.random.normal(kb, (1, d_out), jnp.float32) * 0.01).astype(PARAM_DTYPE)
        return w, b

    params = []
    w, b = lin(keys[0], keys[1], D_INPUT, D_FILTER)
    params += [w, b]
    for i in range(1, N_LAYERS):
        if i == SKIP[0] + 1:
            w, b = lin(keys[2 * i], keys[2 * i + 1], D_FILTER + D_INPUT, D_FILTER)
            params += [w[:D_FILTER], w[D_FILTER:], b]   # split (h-part, x-part)
        else:
            w, b = lin(keys[2 * i], keys[2 * i + 1], D_FILTER, D_FILTER)
            params += [w, b]
    w, b = lin(keys[2 * N_LAYERS], keys[2 * N_LAYERS + 1], D_FILTER, D_OUT)
    params += [w, b]
    return params


def _pick_block_n(n, target=2048):
    """Largest 256-aligned block that divides n, capped so grid has >=2 steps."""
    cap = min(target, n)
    if n >= 512:
        cap = min(cap, n // 2)        # keep >=2 grid steps for v7x megacore
    for bn in range(cap - cap % 256, 0, -256):
        if n % bn == 0:
            return bn
    for bn in range(cap - cap % 8, 0, -8):
        if n % bn == 0:
            return bn
    return n


def nerf_forward(x, params, *, block_n=None):
    N = x.shape[0]
    if block_n is None:
        block_n = _pick_block_n(N)
    assert N % block_n == 0, (N, block_n)

    x_spec = pl.BlockSpec((block_n, D_INPUT), lambda i: (i, 0))
    # weights/biases: whole array resident for every grid step
    # (bind ndim explicitly to avoid the late-binding-lambda footgun)
    param_specs = [
        pl.BlockSpec(p.shape, lambda i, _nd=p.ndim: (0,) * _nd) for p in params
    ]
    out_spec = pl.BlockSpec((block_n, D_OUT), lambda i: (i, 0))

    return pl.pallas_call(
        nerf_kernel,
        out_shape=jax.ShapeDtypeStruct((N, D_OUT), jnp.float32),
        grid_spec=pltpu.PrefetchScalarGridSpec(
            num_scalar_prefetch=0,
            grid=(N // block_n,),
            in_specs=[x_spec] + param_specs,
            out_specs=out_spec,
        ),
        compiler_params=pltpu.CompilerParams(
            dimension_semantics=("parallel",),
            vmem_limit_bytes=48 * 1024 * 1024,   # headroom on v5e/v6e/v7x
        ),
    )(x, *params)


def nerf_reference(x, params):
    """Pure-JAX f32 mirror of the PyTorch forward (for verification)."""
    p = [jnp.asarray(a, jnp.float32) for a in params]
    (w0, b0, w1, b1, w2, b2, w3, b3, w4, b4,
     w5h, w5x, b5, w6, b6, w7, b7, wo, bo) = p
    layers = [(w0, b0), (w1, b1), (w2, b2), (w3, b3), (w4, b4),
              (jnp.concatenate([w5h, w5x], axis=0), b5), (w6, b6), (w7, b7)]
    x_input = x
    h = x
    for i, (w, b) in enumerate(layers):
        h = jax.nn.relu(h @ w + b)
        if i in SKIP:
            h = jnp.concatenate([h, x_input], axis=-1)
    return h @ wo + bo


if __name__ == "__main__":
    key = jax.random.PRNGKey(0)
    k_params, k_x = jax.random.split(key)

    params = make_params(k_params)
    N = 1024                                  # small demo batch of points
    x = jax.random.normal(k_x, (N, D_INPUT), jnp.float32)

    out = nerf_forward(x, params)             # auto-picks block_n=512, grid=2
    out = jax.block_until_ready(out)

    ref = nerf_reference(x, params)
    # bf16 activations with f32 accumulation vs. pure-f32 reference.
    np.testing.assert_allclose(np.asarray(out), np.asarray(ref),
                               rtol=1e-2, atol=1e-2)
    print("KERNEL_OK")
</pallas_src>

<mosaic_0001>
module attributes {stable_mosaic.version = 11 : i64} {
  func.func @nerf_kernel(%arg0: i32, %arg1: memref<512x3xf32, #tpu.memory_space<vmem>>, %arg2: memref<3x256xbf16, #tpu.memory_space<vmem>>, %arg3: memref<1x256xbf16, #tpu.memory_space<vmem>>, %arg4: memref<256x256xbf16, #tpu.memory_space<vmem>>, %arg5: memref<1x256xbf16, #tpu.memory_space<vmem>>, %arg6: memref<256x256xbf16, #tpu.memory_space<vmem>>, %arg7: memref<1x256xbf16, #tpu.memory_space<vmem>>, %arg8: memref<256x256xbf16, #tpu.memory_space<vmem>>, %arg9: memref<1x256xbf16, #tpu.memory_space<vmem>>, %arg10: memref<256x256xbf16, #tpu.memory_space<vmem>>, %arg11: memref<1x256xbf16, #tpu.memory_space<vmem>>, %arg12: memref<256x256xbf16, #tpu.memory_space<vmem>>, %arg13: memref<3x256xbf16, #tpu.memory_space<vmem>>, %arg14: memref<1x256xbf16, #tpu.memory_space<vmem>>, %arg15: memref<256x256xbf16, #tpu.memory_space<vmem>>, %arg16: memref<1x256xbf16, #tpu.memory_space<vmem>>, %arg17: memref<256x256xbf16, #tpu.memory_space<vmem>>, %arg18: memref<1x256xbf16, #tpu.memory_space<vmem>>, %arg19: memref<256x4xbf16, #tpu.memory_space<vmem>>, %arg20: memref<1x4xbf16, #tpu.memory_space<vmem>>, %arg21: memref<512x4xf32, #tpu.memory_space<vmem>>) attributes {dimension_semantics = [#tpu.dimension_semantics<parallel>], iteration_bounds = array<i64: 2>, scalar_prefetch = 0 : i64, scratch_operands = 0 : i64, tpu.core_type = #tpu.core_type<tc>, window_params = [{transform_indices = @transform_0, window_bounds = array<i64: 512, 3>}, {pipeline_mode = #tpu.pipeline_mode<synchronous>, transform_indices = @transform_1, window_bounds = array<i64: 3, 256>}, {pipeline_mode = #tpu.pipeline_mode<synchronous>, transform_indices = @transform_2, window_bounds = array<i64: 1, 256>}, {pipeline_mode = #tpu.pipeline_mode<synchronous>, transform_indices = @transform_3, window_bounds = array<i64: 256, 256>}, {pipeline_mode = #tpu.pipeline_mode<synchronous>, transform_indices = @transform_4, window_bounds = array<i64: 1, 256>}, {pipeline_mode = #tpu.pipeline_mode<synchronous>, transform_indices = @transform_5, window_bounds = array<i64: 256, 256>}, {pipeline_mode = #tpu.pipeline_mode<synchronous>, transform_indices = @transform_6, window_bounds = array<i64: 1, 256>}, {pipeline_mode = #tpu.pipeline_mode<synchronous>, transform_indices = @transform_7, window_bounds = array<i64: 256, 256>}, {pipeline_mode = #tpu.pipeline_mode<synchronous>, transform_indices = @transform_8, window_bounds = array<i64: 1, 256>}, {pipeline_mode = #tpu.pipeline_mode<synchronous>, transform_indices = @transform_9, window_bounds = array<i64: 256, 256>}, {pipeline_mode = #tpu.pipeline_mode<synchronous>, transform_indices = @transform_10, window_bounds = array<i64: 1, 256>}, {pipeline_mode = #tpu.pipeline_mode<synchronous>, transform_indices = @transform_11, window_bounds = array<i64: 256, 256>}, {pipeline_mode = #tpu.pipeline_mode<synchronous>, transform_indices = @transform_12, window_bounds = array<i64: 3, 256>}, {pipeline_mode = #tpu.pipeline_mode<synchronous>, transform_indices = @transform_13, window_bounds = array<i64: 1, 256>}, {pipeline_mode = #tpu.pipeline_mode<synchronous>, transform_indices = @transform_14, window_bounds = array<i64: 256, 256>}, {pipeline_mode = #tpu.pipeline_mode<synchronous>, transform_indices = @transform_15, window_bounds = array<i64: 1, 256>}, {pipeline_mode = #tpu.pipeline_mode<synchronous>, transform_indices = @transform_16, window_bounds = array<i64: 256, 256>}, {pipeline_mode = #tpu.pipeline_mode<synchronous>, transform_indices = @transform_17, window_bounds = array<i64: 1, 256>}, {pipeline_mode = #tpu.pipeline_mode<synchronous>, transform_indices = @transform_18, window_bounds = array<i64: 256, 4>}, {pipeline_mode = #tpu.pipeline_mode<synchronous>, transform_indices = @transform_19, window_bounds = array<i64: 1, 4>}, {transform_indices = @transform_20, window_bounds = array<i64: 512, 4>}]} {
    %c0 = arith.constant 0 : index
    %c0_0 = arith.constant 0 : index
    %0 = vector.load %arg1[%c0, %c0_0] : memref<512x3xf32, #tpu.memory_space<vmem>>, vector<512x3xf32>
    %c0_1 = arith.constant 0 : index
    %c0_2 = arith.constant 0 : index
    %1 = vector.load %arg2[%c0_1, %c0_2] : memref<3x256xbf16, #tpu.memory_space<vmem>>, vector<3x256xbf16>
    %2 = arith.extf %1 : vector<3x256xbf16> to vector<3x256xf32>
    %3 = vector.extract_strided_slice %0 {offsets = [0, 0], sizes = [512, 1], strides = [1, 1]} : vector<512x3xf32> to vector<512x1xf32>
    %4 = vector.extract_strided_slice %2 {offsets = [0, 0], sizes = [1, 256], strides = [1, 1]} : vector<3x256xf32> to vector<1x256xf32>
    %5 = vector.broadcast %3 : vector<512x1xf32> to vector<512x256xf32>
    %6 = vector.broadcast %4 : vector<1x256xf32> to vector<512x256xf32>
    %7 = arith.mulf %5, %6 : vector<512x256xf32>
    %8 = vector.extract_strided_slice %0 {offsets = [0, 1], sizes = [512, 1], strides = [1, 1]} : vector<512x3xf32> to vector<512x1xf32>
    %9 = vector.extract_strided_slice %2 {offsets = [1, 0], sizes = [1, 256], strides = [1, 1]} : vector<3x256xf32> to vector<1x256xf32>
    %10 = vector.broadcast %8 : vector<512x1xf32> to vector<512x256xf32>
    %11 = vector.broadcast %9 : vector<1x256xf32> to vector<512x256xf32>
    %12 = arith.mulf %10, %11 : vector<512x256xf32>
    %13 = arith.addf %7, %12 : vector<512x256xf32>
    %14 = vector.extract_strided_slice %0 {offsets = [0, 2], sizes = [512, 1], strides = [1, 1]} : vector<512x3xf32> to vector<512x1xf32>
    %15 = vector.extract_strided_slice %2 {offsets = [2, 0], sizes = [1, 256], strides = [1, 1]} : vector<3x256xf32> to vector<1x256xf32>
    %16 = vector.broadcast %14 : vector<512x1xf32> to vector<512x256xf32>
    %17 = vector.broadcast %15 : vector<1x256xf32> to vector<512x256xf32>
    %18 = arith.mulf %16, %17 : vector<512x256xf32>
    %19 = arith.addf %13, %18 : vector<512x256xf32>
    %c0_3 = arith.constant 0 : index
    %c0_4 = arith.constant 0 : index
    %20 = vector.load %arg3[%c0_3, %c0_4] : memref<1x256xbf16, #tpu.memory_space<vmem>>, vector<1x256xbf16>
    %21 = arith.extf %20 : vector<1x256xbf16> to vector<1x256xf32>
    %22 = vector.broadcast %21 : vector<1x256xf32> to vector<512x256xf32>
    %23 = arith.addf %19, %22 : vector<512x256xf32>
    %cst = arith.constant 0.000000e+00 : f32
    %24 = vector.broadcast %cst : f32 to vector<512x256xf32>
    %25 = arith.maximumf %23, %24 : vector<512x256xf32>
    %26 = arith.truncf %25 : vector<512x256xf32> to vector<512x256xbf16>
    %c0_5 = arith.constant 0 : index
    %c0_6 = arith.constant 0 : index
    %27 = vector.load %arg4[%c0_5, %c0_6] : memref<256x256xbf16, #tpu.memory_space<vmem>>, vector<256x256xbf16>
    %cst_7 = arith.constant dense<0.000000e+00> : vector<512x256xf32>
    %28 = tpu.matmul %26, %27, %cst_7 {dimension_numbers = #tpu.dot_dimension_numbers<[1], [0], [0], [1], [0, 0, 1, 1], [], []>} : vector<512x256xbf16>, vector<256x256xbf16>, vector<512x256xf32> -> vector<512x256xf32>
    %c0_8 = arith.constant 0 : index
    %c0_9 = arith.constant 0 : index
    %29 = vector.load %arg5[%c0_8, %c0_9] : memref<1x256xbf16, #tpu.memory_space<vmem>>, vector<1x256xbf16>
    %30 = arith.extf %29 : vector<1x256xbf16> to vector<1x256xf32>
    %31 = vector.broadcast %30 : vector<1x256xf32> to vector<512x256xf32>
    %32 = arith.addf %28, %31 : vector<512x256xf32>
    %cst_10 = arith.constant 0.000000e+00 : f32
    %33 = vector.broadcast %cst_10 : f32 to vector<512x256xf32>
    %34 = arith.maximumf %32, %33 : vector<512x256xf32>
    %35 = arith.truncf %34 : vector<512x256xf32> to vector<512x256xbf16>
    %c0_11 = arith.constant 0 : index
    %c0_12 = arith.constant 0 : index
    %36 = vector.load %arg6[%c0_11, %c0_12] : memref<256x256xbf16, #tpu.memory_space<vmem>>, vector<256x256xbf16>
    %cst_13 = arith.constant dense<0.000000e+00> : vector<512x256xf32>
    %37 = tpu.matmul %35, %36, %cst_13 {dimension_numbers = #tpu.dot_dimension_numbers<[1], [0], [0], [1], [0, 0, 1, 1], [], []>} : vector<512x256xbf16>, vector<256x256xbf16>, vector<512x256xf32> -> vector<512x256xf32>
    %c0_14 = arith.constant 0 : index
    %c0_15 = arith.constant 0 : index
    %38 = vector.load %arg7[%c0_14, %c0_15] : memref<1x256xbf16, #tpu.memory_space<vmem>>, vector<1x256xbf16>
    %39 = arith.extf %38 : vector<1x256xbf16> to vector<1x256xf32>
    %40 = vector.broadcast %39 : vector<1x256xf32> to vector<512x256xf32>
    %41 = arith.addf %37, %40 : vector<512x256xf32>
    %cst_16 = arith.constant 0.000000e+00 : f32
    %42 = vector.broadcast %cst_16 : f32 to vector<512x256xf32>
    %43 = arith.maximumf %41, %42 : vector<512x256xf32>
    %44 = arith.truncf %43 : vector<512x256xf32> to vector<512x256xbf16>
    %c0_17 = arith.constant 0 : index
    %c0_18 = arith.constant 0 : index
    %45 = vector.load %arg8[%c0_17, %c0_18] : memref<256x256xbf16, #tpu.memory_space<vmem>>, vector<256x256xbf16>
    %cst_19 = arith.constant dense<0.000000e+00> : vector<512x256xf32>
    %46 = tpu.matmul %44, %45, %cst_19 {dimension_numbers = #tpu.dot_dimension_numbers<[1], [0], [0], [1], [0, 0, 1, 1], [], []>} : vector<512x256xbf16>, vector<256x256xbf16>, vector<512x256xf32> -> vector<512x256xf32>
    %c0_20 = arith.constant 0 : index
    %c0_21 = arith.constant 0 : index
    %47 = vector.load %arg9[%c0_20, %c0_21] : memref<1x256xbf16, #tpu.memory_space<vmem>>, vector<1x256xbf16>
    %48 = arith.extf %47 : vector<1x256xbf16> to vector<1x256xf32>
    %49 = vector.broadcast %48 : vector<1x256xf32> to vector<512x256xf32>
    %50 = arith.addf %46, %49 : vector<512x256xf32>
    %cst_22 = arith.constant 0.000000e+00 : f32
    %51 = vector.broadcast %cst_22 : f32 to vector<512x256xf32>
    %52 = arith.maximumf %50, %51 : vector<512x256xf32>
    %53 = arith.truncf %52 : vector<512x256xf32> to vector<512x256xbf16>
    %c0_23 = arith.constant 0 : index
    %c0_24 = arith.constant 0 : index
    %54 = vector.load %arg10[%c0_23, %c0_24] : memref<256x256xbf16, #tpu.memory_space<vmem>>, vector<256x256xbf16>
    %cst_25 = arith.constant dense<0.000000e+00> : vector<512x256xf32>
    %55 = tpu.matmul %53, %54, %cst_25 {dimension_numbers = #tpu.dot_dimension_numbers<[1], [0], [0], [1], [0, 0, 1, 1], [], []>} : vector<512x256xbf16>, vector<256x256xbf16>, vector<512x256xf32> -> vector<512x256xf32>
    %c0_26 = arith.constant 0 : index
    %c0_27 = arith.constant 0 : index
    %56 = vector.load %arg11[%c0_26, %c0_27] : memref<1x256xbf16, #tpu.memory_space<vmem>>, vector<1x256xbf16>
    %57 = arith.extf %56 : vector<1x256xbf16> to vector<1x256xf32>
    %58 = vector.broadcast %57 : vector<1x256xf32> to vector<512x256xf32>
    %59 = arith.addf %55, %58 : vector<512x256xf32>
    %cst_28 = arith.constant 0.000000e+00 : f32
    %60 = vector.broadcast %cst_28 : f32 to vector<512x256xf32>
    %61 = arith.maximumf %59, %60 : vector<512x256xf32>
    %62 = arith.truncf %61 : vector<512x256xf32> to vector<512x256xbf16>
    %c0_29 = arith.constant 0 : index
    %c0_30 = arith.constant 0 : index
    %63 = vector.load %arg12[%c0_29, %c0_30] : memref<256x256xbf16, #tpu.memory_space<vmem>>, vector<256x256xbf16>
    %cst_31 = arith.constant dense<0.000000e+00> : vector<512x256xf32>
    %64 = tpu.matmul %62, %63, %cst_31 {dimension_numbers = #tpu.dot_dimension_numbers<[1], [0], [0], [1], [0, 0, 1, 1], [], []>} : vector<512x256xbf16>, vector<256x256xbf16>, vector<512x256xf32> -> vector<512x256xf32>
    %c0_32 = arith.constant 0 : index
    %c0_33 = arith.constant 0 : index
    %65 = vector.load %arg13[%c0_32, %c0_33] : memref<3x256xbf16, #tpu.memory_space<vmem>>, vector<3x256xbf16>
    %66 = arith.extf %65 : vector<3x256xbf16> to vector<3x256xf32>
    %67 = vector.extract_strided_slice %0 {offsets = [0, 0], sizes = [512, 1], strides = [1, 1]} : vector<512x3xf32> to vector<512x1xf32>
    %68 = vector.extract_strided_slice %66 {offsets = [0, 0], sizes = [1, 256], strides = [1, 1]} : vector<3x256xf32> to vector<1x256xf32>
    %69 = vector.broadcast %67 : vector<512x1xf32> to vector<512x256xf32>
    %70 = vector.broadcast %68 : vector<1x256xf32> to vector<512x256xf32>
    %71 = arith.mulf %69, %70 : vector<512x256xf32>
    %72 = vector.extract_strided_slice %0 {offsets = [0, 1], sizes = [512, 1], strides = [1, 1]} : vector<512x3xf32> to vector<512x1xf32>
    %73 = vector.extract_strided_slice %66 {offsets = [1, 0], sizes = [1, 256], strides = [1, 1]} : vector<3x256xf32> to vector<1x256xf32>
    %74 = vector.broadcast %72 : vector<512x1xf32> to vector<512x256xf32>
    %75 = vector.broadcast %73 : vector<1x256xf32> to vector<512x256xf32>
    %76 = arith.mulf %74, %75 : vector<512x256xf32>
    %77 = arith.addf %71, %76 : vector<512x256xf32>
    %78 = vector.extract_strided_slice %0 {offsets = [0, 2], sizes = [512, 1], strides = [1, 1]} : vector<512x3xf32> to vector<512x1xf32>
    %79 = vector.extract_strided_slice %66 {offsets = [2, 0], sizes = [1, 256], strides = [1, 1]} : vector<3x256xf32> to vector<1x256xf32>
    %80 = vector.broadcast %78 : vector<512x1xf32> to vector<512x256xf32>
    %81 = vector.broadcast %79 : vector<1x256xf32> to vector<512x256xf32>
    %82 = arith.mulf %80, %81 : vector<512x256xf32>
    %83 = arith.addf %77, %82 : vector<512x256xf32>
    %84 = arith.addf %64, %83 : vector<512x256xf32>
    %c0_34 = arith.constant 0 : index
    %c0_35 = arith.constant 0 : index
    %85 = vector.load %arg14[%c0_34, %c0_35] : memref<1x256xbf16, #tpu.memory_space<vmem>>, vector<1x256xbf16>
    %86 = arith.extf %85 : vector<1x256xbf16> to vector<1x256xf32>
    %87 = vector.broadcast %86 : vector<1x256xf32> to vector<512x256xf32>
    %88 = arith.addf %84, %87 : vector<512x256xf32>
    %cst_36 = arith.constant 0.000000e+00 : f32
    %89 = vector.broadcast %cst_36 : f32 to vector<512x256xf32>
    %90 = arith.maximumf %88, %89 : vector<512x256xf32>
    %91 = arith.truncf %90 : vector<512x256xf32> to vector<512x256xbf16>
    %c0_37 = arith.constant 0 : index
    %c0_38 = arith.constant 0 : index
    %92 = vector.load %arg15[%c0_37, %c0_38] : memref<256x256xbf16, #tpu.memory_space<vmem>>, vector<256x256xbf16>
    %cst_39 = arith.constant dense<0.000000e+00> : vector<512x256xf32>
    %93 = tpu.matmul %91, %92, %cst_39 {dimension_numbers = #tpu.dot_dimension_numbers<[1], [0], [0], [1], [0, 0, 1, 1], [], []>} : vector<512x256xbf16>, vector<256x256xbf16>, vector<512x256xf32> -> vector<512x256xf32>
    %c0_40 = arith.constant 0 : index
    %c0_41 = arith.constant 0 : index
    %94 = vector.load %arg16[%c0_40, %c0_41] : memref<1x256xbf16, #tpu.memory_space<vmem>>, vector<1x256xbf16>
    %95 = arith.extf %94 : vector<1x256xbf16> to vector<1x256xf32>
    %96 = vector.broadcast %95 : vector<1x256xf32> to vector<512x256xf32>
    %97 = arith.addf %93, %96 : vector<512x256xf32>
    %cst_42 = arith.constant 0.000000e+00 : f32
    %98 = vector.broadcast %cst_42 : f32 to vector<512x256xf32>
    %99 = arith.maximumf %97, %98 : vector<512x256xf32>
    %100 = arith.truncf %99 : vector<512x256xf32> to vector<512x256xbf16>
    %c0_43 = arith.constant 0 : index
    %c0_44 = arith.constant 0 : index
    %101 = vector.load %arg17[%c0_43, %c0_44] : memref<256x256xbf16, #tpu.memory_space<vmem>>, vector<256x256xbf16>
    %cst_45 = arith.constant dense<0.000000e+00> : vector<512x256xf32>
    %102 = tpu.matmul %100, %101, %cst_45 {dimension_numbers = #tpu.dot_dimension_numbers<[1], [0], [0], [1], [0, 0, 1, 1], [], []>} : vector<512x256xbf16>, vector<256x256xbf16>, vector<512x256xf32> -> vector<512x256xf32>
    %c0_46 = arith.constant 0 : index
    %c0_47 = arith.constant 0 : index
    %103 = vector.load %arg18[%c0_46, %c0_47] : memref<1x256xbf16, #tpu.memory_space<vmem>>, vector<1x256xbf16>
    %104 = arith.extf %103 : vector<1x256xbf16> to vector<1x256xf32>
    %105 = vector.broadcast %104 : vector<1x256xf32> to vector<512x256xf32>
    %106 = arith.addf %102, %105 : vector<512x256xf32>
    %cst_48 = arith.constant 0.000000e+00 : f32
    %107 = vector.broadcast %cst_48 : f32 to vector<512x256xf32>
    %108 = arith.maximumf %106, %107 : vector<512x256xf32>
    %109 = arith.truncf %108 : vector<512x256xf32> to vector<512x256xbf16>
    %c0_49 = arith.constant 0 : index
    %c0_50 = arith.constant 0 : index
    %110 = vector.load %arg19[%c0_49, %c0_50] : memref<256x4xbf16, #tpu.memory_space<vmem>>, vector<256x4xbf16>
    %cst_51 = arith.constant dense<0.000000e+00> : vector<512x4xf32>
    %111 = tpu.matmul %109, %110, %cst_51 {dimension_numbers = #tpu.dot_dimension_numbers<[1], [0], [0], [1], [0, 0, 1, 1], [], []>} : vector<512x256xbf16>, vector<256x4xbf16>, vector<512x4xf32> -> vector<512x4xf32>
    %c0_52 = arith.constant 0 : index
    %c0_53 = arith.constant 0 : index
    %112 = vector.load %arg20[%c0_52, %c0_53] : memref<1x4xbf16, #tpu.memory_space<vmem>>, vector<1x4xbf16>
    %113 = arith.extf %112 : vector<1x4xbf16> to vector<1x4xf32>
    %114 = vector.broadcast %113 : vector<1x4xf32> to vector<512x4xf32>
    %115 = arith.addf %111, %114 : vector<512x4xf32>
    %c0_54 = arith.constant 0 : index
    %c0_55 = arith.constant 0 : index
    %116 = vector.load %arg21[%c0_54, %c0_55] : memref<512x4xf32, #tpu.memory_space<vmem>>, vector<512x4xf32>
    tpu.vector_store %arg21[%c0_54, %c0_55], %115 {strides = array<i32>} : memref<512x4xf32, #tpu.memory_space<vmem>>, vector<512x4xf32>,
    return
  }
  func.func @transform_0(%arg0: i32) -> (i32, i32) {
    %c0_i32 = arith.constant 0 : i32
    %c0_i32_0 = arith.constant 0 : i32
    return %arg0, %c0_i32 : i32, i32
  }
  func.func @transform_1(%arg0: i32) -> (i32, i32) {
    %c0_i32 = arith.constant 0 : i32
    %c0_i32_0 = arith.constant 0 : i32
    %c0_i32_1 = arith.constant 0 : i32
    return %c0_i32, %c0_i32_0 : i32, i32
  }
  func.func @transform_2(%arg0: i32) -> (i32, i32) {
    %c0_i32 = arith.constant 0 : i32
    %c0_i32_0 = arith.constant 0 : i32
    %c0_i32_1 = arith.constant 0 : i32
    return %c0_i32, %c0_i32_0 : i32, i32
  }
  func.func @transform_3(%arg0: i32) -> (i32, i32) {
    %c0_i32 = arith.constant 0 : i32
    %c0_i32_0 = arith.constant 0 : i32
    %c0_i32_1 = arith.constant 0 : i32
    return %c0_i32, %c0_i32_0 : i32, i32
  }
  func.func @transform_4(%arg0: i32) -> (i32, i32) {
    %c0_i32 = arith.constant 0 : i32
    %c0_i32_0 = arith.constant 0 : i32
    %c0_i32_1 = arith.constant 0 : i32
    return %c0_i32, %c0_i32_0 : i32, i32
  }
  func.func @transform_5(%arg0: i32) -> (i32, i32) {
    %c0_i32 = arith.constant 0 : i32
    %c0_i32_0 = arith.constant 0 : i32
    %c0_i32_1 = arith.constant 0 : i32
    return %c0_i32, %c0_i32_0 : i32, i32
  }
  func.func @transform_6(%arg0: i32) -> (i32, i32) {
    %c0_i32 = arith.constant 0 : i32
    %c0_i32_0 = arith.constant 0 : i32
    %c0_i32_1 = arith.constant 0 : i32
    return %c0_i32, %c0_i32_0 : i32, i32
  }
  func.func @transform_7(%arg0: i32) -> (i32, i32) {
    %c0_i32 = arith.constant 0 : i32
    %c0_i32_0 = arith.constant 0 : i32
    %c0_i32_1 = arith.constant 0 : i32
    return %c0_i32, %c0_i32_0 : i32, i32
  }
  func.func @transform_8(%arg0: i32) -> (i32, i32) {
    %c0_i32 = arith.constant 0 : i32
    %c0_i32_0 = arith.constant 0 : i32
    %c0_i32_1 = arith.constant 0 : i32
    return %c0_i32, %c0_i32_0 : i32, i32
  }
  func.func @transform_9(%arg0: i32) -> (i32, i32) {
    %c0_i32 = arith.constant 0 : i32
    %c0_i32_0 = arith.constant 0 : i32
    %c0_i32_1 = arith.constant 0 : i32
    return %c0_i32, %c0_i32_0 : i32, i32
  }
  func.func @transform_10(%arg0: i32) -> (i32, i32) {
    %c0_i32 = arith.constant 0 : i32
    %c0_i32_0 = arith.constant 0 : i32
    %c0_i32_1 = arith.constant 0 : i32
    return %c0_i32, %c0_i32_0 : i32, i32
  }
  func.func @transform_11(%arg0: i32) -> (i32, i32) {
    %c0_i32 = arith.constant 0 : i32
    %c0_i32_0 = arith.constant 0 : i32
    %c0_i32_1 = arith.constant 0 : i32
    return %c0_i32, %c0_i32_0 : i32, i32
  }
  func.func @transform_12(%arg0: i32) -> (i32, i32) {
    %c0_i32 = arith.constant 0 : i32
    %c0_i32_0 = arith.constant 0 : i32
    %c0_i32_1 = arith.constant 0 : i32
    return %c0_i32, %c0_i32_0 : i32, i32
  }
  func.func @transform_13(%arg0: i32) -> (i32, i32) {
    %c0_i32 = arith.constant 0 : i32
    %c0_i32_0 = arith.constant 0 : i32
    %c0_i32_1 = arith.constant 0 : i32
    return %c0_i32, %c0_i32_0 : i32, i32
  }
  func.func @transform_14(%arg0: i32) -> (i32, i32) {
    %c0_i32 = arith.constant 0 : i32
    %c0_i32_0 = arith.constant 0 : i32
    %c0_i32_1 = arith.constant 0 : i32
    return %c0_i32, %c0_i32_0 : i32, i32
  }
  func.func @transform_15(%arg0: i32) -> (i32, i32) {
    %c0_i32 = arith.constant 0 : i32
    %c0_i32_0 = arith.constant 0 : i32
    %c0_i32_1 = arith.constant 0 : i32
    return %c0_i32, %c0_i32_0 : i32, i32
  }
  func.func @transform_16(%arg0: i32) -> (i32, i32) {
    %c0_i32 = arith.constant 0 : i32
    %c0_i32_0 = arith.constant 0 : i32
    %c0_i32_1 = arith.constant 0 : i32
    return %c0_i32, %c0_i32_0 : i32, i32
  }
  func.func @transform_17(%arg0: i32) -> (i32, i32) {
    %c0_i32 = arith.constant 0 : i32
    %c0_i32_0 = arith.constant 0 : i32
    %c0_i32_1 = arith.constant 0 : i32
    return %c0_i32, %c0_i32_0 : i32, i32
  }
  func.func @transform_18(%arg0: i32) -> (i32, i32) {
    %c0_i32 = arith.constant 0 : i32
    %c0_i32_0 = arith.constant 0 : i32
    %c0_i32_1 = arith.constant 0 : i32
    return %c0_i32, %c0_i32_0 : i32, i32
  }
  func.func @transform_19(%arg0: i32) -> (i32, i32) {
    %c0_i32 = arith.constant 0 : i32
    %c0_i32_0 = arith.constant 0 : i32
    %c0_i32_1 = arith.constant 0 : i32
    return %c0_i32, %c0_i32_0 : i32, i32
  }
  func.func @transform_20(%arg0: i32) -> (i32, i32) {
    %c0_i32 = arith.constant 0 : i32
    %c0_i32_0 = arith.constant 0 : i32
    return %arg0, %c0_i32 : i32, i32
  }
}

</mosaic_0001>

<bundles_post_ra>
// kernel: tpu_custom_call.1
= control target key start
LH: loop header
LB: loop body
LE: loop exit
PB: predicated region body
PF: predicated region fallthrough
CT: control target
= control target key end

     0   :  { %s14842_s0 = inlined_call_operand.vmem [shape: f32[1024,3], index: 0, kind: input, shape index: {}]   ;;  %s14843_s1 = inlined_call_operand.vmem [shape: bf16[3,256], index: 1, kind: input, shape index: {}]   ;;  %s14844_s2 = inlined_call_operand.vmem [shape: bf16[1,256], index: 2, kind: input, shape index: {}]   ;;  %s14845_s3 = inlined_call_operand.vmem [shape: bf16[256,256], index: 3, kind: input, shape index: {}]   ;;  %s14846_s4 = inlined_call_operand.vmem [shape: bf16[1,256], index: 4, kind: input, shape index: {}]   ;;  %s14847_s5 = inlined_call_operand.vmem [shape: bf16[256,256], index: 5, kind: input, shape index: {}]   ;;  %s14848_s6 = inlined_call_operand.vmem [shape: bf16[1,256], index: 6, kind: input, shape index: {}]   ;;  %s14849_s7 = inlined_call_operand.vmem [shape: bf16[256,256], index: 7, kind: input, shape index: {}]   ;;  %s14850_s8 = inlined_call_operand.vmem [shape: bf16[1,256], index: 8, kind: input, shape index: {}]   ;;  %s14851_s9 = inlined_call_operand.vmem [shape: bf16[256,256], index: 9, kind: input, shape index: {}]   ;;  %s14852_s10 = inlined_call_operand.vmem [shape: bf16[1,256], index: 10, kind: input, shape index: {}]   ;;  %s14853_s11 = inlined_call_operand.hbm [shape: bf16[256,256], index: 11, kind: input, shape index: {}]   ;;  %s14854_s12 = inlined_call_operand.vmem [shape: bf16[3,256], index: 12, kind: input, shape index: {}]   ;;  %s14855_s13 = inlined_call_operand.vmem [shape: bf16[1,256], index: 13, kind: input, shape index: {}]   ;;  %s14856_s14 = inlined_call_operand.hbm [shape: bf16[256,256], index: 14, kind: input, shape index: {}]   ;;  %s14857_s15 = inlined_call_operand.vmem [shape: bf16[1,256], index: 15, kind: input, shape index: {}]   ;;  %s14858_s16 = inlined_call_operand.hbm [shape: bf16[256,256], index: 16, kind: input, shape index: {}]   ;;  %s14859_s17 = inlined_call_operand.vmem [shape: bf16[1,256], index: 17, kind: input, shape index: {}]   ;;  %s14860_s18 = inlined_call_operand.vmem [shape: bf16[256,4], index: 18, kind: input, shape index: {}]   ;;  %s14861_s19 = inlined_call_operand.vmem [shape: bf16[1,4], index: 19, kind: input, shape index: {}]   ;;  %s14862_s20 = inlined_call_operand.vmem [shape: f32[1024,4], index: 20, kind: output, shape index: {}]  }
   0x1   :  { %15117 = sst [smem:[#allocation194_spill]] %s14842_s0 }
   0x2   :  { %15118 = sst [smem:[#allocation195_spill]] %s14843_s1 }
   0x3   :  { %15119 = sst [smem:[#allocation196_spill]] %s14844_s2 }
   0x4   :  { %15120 = sst [smem:[#allocation197_spill]] %s14845_s3 }
   0x5   :  { %15121 = sst [smem:[#allocation198_spill]] %s14846_s4 }
   0x6   :  { %25 = vsyncpa [#allocation3], 0 }
   0x7   :  { %26 = vsyncpa [#allocation5], 0  ;;  %s10301_s1 = smov 0  }
   0x8 LB: > { %s9318_s22 = sadd.s32 4294967295, %s10186_s1   ;;  %p9320_p0 = scmp.ge.s32.totalorder %s10186_s1, 1  ;;  %s10186_s1 = sphi %s10301_s1, %s32_s1  }
   0x9   : > { %p488_p1 = scmp.lt.s32.totalorder %s10186_s1, 3  ;;  %p10311_p2 = scmp.eq.s32.totalorder %s9318_s22, 0 }
   0xa   : > { %s10188_s2 = smov [#allocation4]   ;;  %s10189_s3 = smov [#allocation2]  }
   0xb   : > { %p10315_p3 = pnand %p9320_p0, %p488_p1  ;;  %s549_s25 = sshll.u32 %s10188_s2, 4  ;;  %s550_s25 = int_to_ptr.vmem [resolvable:$true] %s549_s25 }
   0xc   : > { %s530_s26 = sshll.u32 %s10189_s3, 4  ;;  %s10190_s28 = smov [#allocation6]   ;;  %s531_s26 = int_to_ptr.vmem [resolvable:$true] %s530_s26 }
   0xd   : > { %p9587_p4 = pneg %p10315_p3  ;;  %s565_s4 = sshll.u32 %s10190_s28, 4  ;;  %s10327_s4 = int_to_ptr.vmem [resolvable:$true] %s565_s4 }
   0xe   : > { %s10105_s29 = scalar_lea.vmem %s550_s25, 4096  ;;  %p10113_p10 = scmp.lt.s32.totalorder %s550_s25, %s550_s25 }
   0xf   : > { %p10323_p5 = pnand %p10311_p2, %p9587_p4  ;;  %p10106_p7 = scmp.ne.s32.totalorder %s550_s25, %s10105_s29 }
  0x10   : > { %p10114_p11 = scmp.lt.s32.totalorder %s10105_s29, %s10105_s29 }
  0x11   : > { %p10096_p6 = pneg %p10323_p5 }
  0x12   : > { %p10115_p12 = por %p10114_p11, %p10113_p10 }
  0x13   : > { %p10108_p8 = pnand %p10106_p7, %p10096_p6 }
  0x15   : > { %p10109_p9 = pneg %p10108_p8 }
  0x17   : > { %p10116_p13 = pnand %p10115_p12, %p10109_p9 }
  0x19   : > { %10119 = shalt.err (!%p10116_p13)
}
  0x1a   : > { %s10191_s30 = smov 128   ;;  %s10192_s0 = smov 8  }
  0x1b   : > { %9593 = dma.hbm_to_vmem [thread:$0]  (!%p10323_p5), %s14856_s14, 4096, %s550_s25, [#allocation5], %s10191_s30, %s10191_s30, %s10192_s0  }
  0x1c   : > { %s10131_s3 = scalar_lea.vmem %s531_s26, 4096  ;;  %p10139_p7 = scmp.lt.s32.totalorder %s531_s26, %s531_s26 }
  0x1d   : > { %p10132_p0 = scmp.ne.s32.totalorder %s531_s26, %s10131_s3  ;;  %p10140_p8 = scmp.lt.s32.totalorder %s10131_s3, %s10131_s3 }
  0x1f   : > { %p10134_p1 = pnand %p10132_p0, %p10096_p6  ;;  %p10141_p10 = por %p10140_p8, %p10139_p7 }
  0x21   : > { %p10135_p4 = pneg %p10134_p1 }
  0x23   : > { %p10142_p9 = pnand %p10141_p10, %p10135_p4 }
  0x25   : > { %10145 = shalt.err (!%p10142_p9)
}
  0x26   : > { %9590 = dma.hbm_to_vmem [thread:$0]  (!%p10323_p5), %s14853_s11, 4096, %s531_s26, [#allocation3], %s10191_s30, %s10191_s30, %s10192_s0  }
  0x27   : > { %s10157_s25 = scalar_lea.vmem %s10327_s4, 4096  ;;  %p10165_p0 = scmp.lt.s32.totalorder %s10327_s4, %s10327_s4 }
  0x28   : > { %p10158_p11 = scmp.ne.s32.totalorder %s10327_s4, %s10157_s25  ;;  %p10166_p1 = scmp.lt.s32.totalorder %s10157_s25, %s10157_s25 }
  0x2a   : > { %p10160_p12 = pnand %p10158_p11, %p10096_p6  ;;  %p10167_p4 = por %p10166_p1, %p10165_p0 }
  0x2c   : > { %p10161_p13 = pneg %p10160_p12 }
  0x2e   : > { %p10168_p7 = pnand %p10167_p4, %p10161_p13 }
  0x30   : > { %10171 = shalt.err (!%p10168_p7)
}
  0x31   : > { %9596 = dma.hbm_to_vmem [thread:$0]  (!%p10323_p5), %s14858_s16, 4096, %s10327_s4, [#allocation5], %s10191_s30, %s10191_s30, %s10192_s0  }
  0x32   : > { %599 = sbr.rel (%p10315_p3) target bundleno = 2443 (0x98b), region = 100 }
  0x37   : > { %10177 = dma.done.wait (%p10311_p2), [#allocation3], 4096  }
  0x38   : > { %10179 = vsyncadd (%p10311_p2), [#allocation3], 4294963200 }
  0x39   : > { %10181 = dma.done.wait (%p10311_p2), [#allocation5], 8192  }
  0x3a   : > { %10183 = vsyncadd (%p10311_p2), [#allocation5], 4294959104  ;;  %s9329_s26 = sshll.u32 %s9318_s22, 6  ;;  %v14870_v0 = vmov 2   ;;  %v14866_v1 = vmov 1   ;;  %s15125_s23 = sld [smem:[#allocation194_spill]]  ;;  %v1065_v19 = vlaneseq }
  0x3b   : > { %9620 = vset.pattern.permute.xlu0 %v14870_v0  ;;  %9619 = vset.pattern.permute.xlu1 %v14866_v1  ;;  %p666_p3 = scmp.lt.s32.totalorder %s9329_s26, 127  ;;  %s15126_s3 = sld [smem:[#allocation197_spill]]  ;;  %v14868_v14 = vmov 0   ;;  %v5676_v29 = vld [vmem:[%s14854_s12] sm:$0xf]  ;;  %vm9166_vm0 = vcmask 31744  }
  0x3c   : > { %v10447_v24 = vshrl.u32 %v1065_v19, 7  ;;  %v10464_v30 = vunpack.c.l.bf16 %v5676_v29  ;;  %s15134_s4 = sld [smem:[#allocation195_spill]] }
  0x3d   : > { %s15553_s26 = smov (!%p666_p3, %s9329_s26), 127  ;;  %s15141_s0 = sld [smem:[#allocation196_spill]] }
  0x3e   : > { %s9330_s24 = sshll.u32 %s15553_s26, 3  ;;  %v1473_v27 = vsub.s32 5, %v10447_v24  ;;  %v10471_v32 = vsub.s32 1, %v10447_v24 }
  0x3f   : > { %s14601_s28 = scalar_lea.vmem %s14862_s20, %s9330_s24 }
  0x40   : > { %s10382_s30 = scalar_lea.vmem %s15125_s23, %s9330_s24  ;;  %v5832_v34 = vrot.slane %v10464_v30, %v1473_v27 }
  0x41   : > { %v678_v2 = vld [vmem:[%s10382_s30] sm:$0xff]  ;;  %v680_v3 = vld [vmem:[%s10382_s30 + $0x10] sm:$0xff]  ;;  %v10387_v4 = vld [vmem:[%s10382_s30 + $0x8] sm:$0xff] }
  0x42   : > { %1742 = vperm.xlu0 %9620, %v678_v2   ;;  %1212 = vperm.xlu1 %9619, %v678_v2   ;;  %v10391_v5 = vld [vmem:[%s10382_s30 + $0x20] sm:$0xff]  ;;  %v9723_v6 = vld [vmem:[%s15126_s3 + $0x74] ss:$8 sps:$4 sm:$0xff]   ;;  %v9725_v7 = vld [vmem:[%s15126_s3 + $0x70] ss:$8 sps:$4 sm:$0xff]   ;;  %v10480_v35 = vrot.slane %v5832_v34, %v10471_v32  ;;  %v10670_v34 = vsub.s32 0, %v10447_v24 }
  0x43   : > { %2825 = vmatprep.subr.bf16.mxu0 %v9723_v6  ;;  %v9726_v8 = vld [vmem:[%s15126_s3 + $0x64] ss:$8 sps:$4 sm:$0xff]   ;;  %v9728_v9 = vld [vmem:[%s15126_s3 + $0x60] ss:$8 sps:$4 sm:$0xff]   ;;  %v9729_v10 = vld [vmem:[%s15126_s3 + $0x54] ss:$8 sps:$4 sm:$0xff]  }
  0x44   : > { %2826 = vmatpush1.bf16.msra.mxu0 %v9725_v7  ;;  %v10412_v11 = vld [vmem:[%s10382_s30 + $0x30] sm:$0xff]  ;;  %v9732_v13 = vld [vmem:[%s15126_s3 + $0x44] ss:$8 sps:$4 sm:$0xff]   ;;  %v9734_v16 = vld [vmem:[%s15126_s3 + $0x40] ss:$8 sps:$4 sm:$0xff]   ;;  %15139 = vst [vmem:[#allocation20_spill] sm:$0xff] %v10670_v34 }
  0x45   : > { %2827 = vmatprep.subr.bf16.mxu0 %v9726_v8  ;;  %v9731_v12 = vld [vmem:[%s15126_s3 + $0x50] ss:$8 sps:$4 sm:$0xff]   ;;  %v10423_v15 = vld [vmem:[%s10382_s30 + $0x40] sm:$0xff]  ;;  %v9735_v17 = vld [vmem:[%s15126_s3 + $0x34] ss:$8 sps:$4 sm:$0xff]  }
  0x46   : > { %1750 = vperm.xlu0 %9620, %v680_v3   ;;  %1216 = vperm.xlu1 %9619, %v10387_v4   ;;  %v10433_v18 = vld [vmem:[%s10382_s30 + $0x50] sm:$0xff]  ;;  %v681_v20 = vld [vmem:[%s10382_s30 + $0x18] sm:$0xff]  ;;  %v9738_v22 = vld [vmem:[%s15126_s3 + $0x24] ss:$8 sps:$4 sm:$0xff]  }
  0x47   : > { %v9737_v21 = vld [vmem:[%s15126_s3 + $0x30] ss:$8 sps:$4 sm:$0xff]   ;;  %v10445_v23 = vld [vmem:[%s10382_s30 + $0x60] sm:$0xff]  ;;  %v9741_v26 = vld [vmem:[%s15126_s3 + $0x14] ss:$8 sps:$4 sm:$0xff]  }
  0x48   : > { %2828 = vmatpush1.bf16.msra.mxu0 %v9728_v9  ;;  %v9740_v25 = vld [vmem:[%s15126_s3 + $0x20] ss:$8 sps:$4 sm:$0xff]   ;;  %v9743_v28 = vld [vmem:[%s15126_s3 + $0x10] ss:$8 sps:$4 sm:$0xff]   ;;  %v9744_v31 = vld [vmem:[%s15126_s3 + $0x4] ss:$8 sps:$4 sm:$0xff]  }
  0x49   : > { %2829 = vmatprep.subr.bf16.mxu0 %v9729_v10  ;;  %v9746_v33 = vld [vmem:[%s15126_s3] ss:$8 sps:$4 sm:$0xff]   ;;  %v9747_v36 = vld [vmem:[%s15126_s3 + $0xf4] ss:$8 sps:$4 sm:$0xff]   ;;  %v9749_v37 = vld [vmem:[%s15126_s3 + $0xf0] ss:$8 sps:$4 sm:$0xff]  }
  0x4a   : > { %1758 = vperm.xlu0 %9620, %v10391_v5   ;;  %9621 = vset.pattern.permute.xlu1 %v14870_v0  ;;  %v9750_v38 = vld [vmem:[%s15126_s3 + $0xe4] ss:$8 sps:$4 sm:$0xff]   ;;  %v9752_v40 = vld [vmem:[%s15126_s3 + $0xe0] ss:$8 sps:$4 sm:$0xff]   ;;  %v9753_v41 = vld [vmem:[%s15126_s3 + $0xd4] ss:$8 sps:$4 sm:$0xff]  }
  0x4b   : > { %1746 = vperm.xlu1 %9621, %v10387_v4   ;;  %v683_v39 = vld [vmem:[%s10382_s30 + $0x28] sm:$0xff]  ;;  %v685_v42 = vld [vmem:[%s10382_s30 + $0x38] sm:$0xff]  ;;  %v10604_v6 = vld [vmem:[%s10382_s30 + $0xb0] sm:$0xff] }
  0x4c   : > { %2830 = vmatpush1.bf16.msra.mxu0 %v9731_v12  ;;  %v9755_v43 = vld [vmem:[%s15126_s3 + $0xd0] ss:$8 sps:$4 sm:$0xff]   ;;  %v9756_v44 = vld [vmem:[%s15126_s3 + $0xc4] ss:$8 sps:$4 sm:$0xff]   ;;  %v9758_v46 = vld [vmem:[%s15126_s3 + $0xc0] ss:$8 sps:$4 sm:$0xff]  }
  0x4d   : > { %2831 = vmatprep.subr.bf16.mxu0 %v9732_v13  ;;  %v687_v45 = vld [vmem:[%s10382_s30 + $0x48] sm:$0xff]  ;;  %v9759_v47 = vld [vmem:[%s15126_s3 + $0xb4] ss:$8 sps:$4 sm:$0xff]   ;;  %v9761_v49 = vld [vmem:[%s15126_s3 + $0xb0] ss:$8 sps:$4 sm:$0xff]  }
  0x4e   : > { %1766 = vperm.xlu0 %9620, %v10412_v11   ;;  %v10519_v48 = vld [vmem:[%s10382_s30 + $0x58] sm:$0xff]  ;;  %v9762_v50 = vld [vmem:[%s15126_s3 + $0xa4] ss:$8 sps:$4 sm:$0xff]   ;;  %v9764_v52 = vld [vmem:[%s15126_s3 + $0xa0] ss:$8 sps:$4 sm:$0xff]  }
  0x4f   : > { %9622 = vset.pattern.permute.xlu1 %v14868_v14  ;;  %v10530_v51 = vld [vmem:[%s10382_s30 + $0x68] sm:$0xff]  ;;  %v9765_v53 = vld [vmem:[%s15126_s3 + $0x94] ss:$8 sps:$4 sm:$0xff]   ;;  %v9767_v55 = vld [vmem:[%s15126_s3 + $0x90] ss:$8 sps:$4 sm:$0xff]  }
  0x50   : > { %756 = vperm.xlu1 %9622, %v680_v3   ;;  %2832 = vmatpush1.bf16.msra.mxu0 %v9734_v16  ;;  %v10541_v54 = vld [vmem:[%s10382_s30 + $0x78] sm:$0xff]  ;;  %v9768_v56 = vld [vmem:[%s15126_s3 + $0x84] ss:$8 sps:$4 sm:$0xff]   ;;  %v9770_v58 = vld [vmem:[%s15126_s3 + $0x80] ss:$8 sps:$4 sm:$0xff]  }
  0x51   : > { %2833 = vmatprep.subr.bf16.mxu0 %v9735_v17  ;;  %v10552_v57 = vld [vmem:[%s10382_s30 + $0x88] sm:$0xff]  ;;  %v10559_v59 = vld [vmem:[%s10382_s30 + $0x98] sm:$0xff]  ;;  %v10610_v7 = vld [vmem:[%s10382_s30 + $0xc0] sm:$0xff] }
  0x52   : > { %1774 = vperm.xlu0 %9620, %v10423_v15   ;;  %v10564_v60 = vld [vmem:[%s10382_s30 + $0xa8] sm:$0xff]  ;;  %v10570_v61 = vld [vmem:[%s10382_s30 + $0xb8] sm:$0xff]  ;;  %v10616_v8 = vld [vmem:[%s10382_s30 + $0xd0] sm:$0xff] }
  0x53   : > { %v10576_v62 = vld [vmem:[%s10382_s30 + $0xc8] sm:$0xff]  ;;  %v705_v63 = vld [vmem:[%s10382_s30 + $0xd8] sm:$0xff]  ;;  %v10621_v9 = vld [vmem:[%s10382_s30 + $0xe0] sm:$0xff] }
  0x54   : > { %9623 = vset.pattern.permute.xlu1 %v14866_v1  ;;  %2834 = vmatpush1.bf16.msra.mxu0 %v9737_v21  ;;  %v10631_v12 = vld [vmem:[%s10382_s30 + $0xf0] sm:$0xff]  ;;  %v710_v16 = vld [vmem:[%s10382_s30 + $0x100] sm:$0xff]  ;;  %v10659_v29 = vld [vmem:[%s10382_s30 + $0xe8] sm:$0xff] }
  0x55   : > { %1220 = vperm.xlu1 %9623, %v680_v3   ;;  %2835 = vmatprep.subr.bf16.mxu0 %v9738_v22  ;;  %v10587_v3 = vld [vmem:[%s10382_s30 + $0x80] sm:$0xff]  ;;  %v712_v19 = vld [vmem:[%s10382_s30 + $0x110] sm:$0xff] }
  0x56   : > { %1782 = vperm.xlu0 %9620, %v10433_v18   ;;  %v714_v21 = vld [vmem:[%s10382_s30 + $0x120] sm:$0xff] }
  0x57   : > { %v742_v22 = vld [vmem:[%s15134_s4] sm:$0xf]  ;;  %s15211_s4 = sld [smem:[#allocation198_spill]] }
  0x58   : > { %2836 = vmatpush1.bf16.msra.mxu0 %v9740_v25 }
  0x59   : > { %1224 = vperm.xlu1 %9623, %v681_v20   ;;  %2837 = vmatprep.subr.bf16.mxu0 %v9741_v26  ;;  %v743_v26 = vunpack.c.l.bf16 %v742_v22 }
  0x5a   : > { %1790 = vperm.xlu0 %9620, %v10445_v23  }
  0x5c   : > { %2838 = vmatpush1.bf16.msra.mxu0 %v9743_v28  ;;  %v14865_v28 = vsub.s32 4, %v10447_v24 }
  0x5d   : > { %9624 = vset.pattern.permute.xlu1 %v14870_v0  ;;  %2839 = vmatprep.subr.bf16.mxu0 %v9744_v31 }
  0x5e   : > { %9639 = vset.pattern.permute.xlu0 %v14868_v14  ;;  %1754 = vperm.xlu1 %9624, %v681_v20  }
  0x5f   : > { %746 = vperm.xlu0 %9639, %v678_v2   ;;  %v692_v2 = vld [vmem:[%s10382_s30 + $0x70] sm:$0xff] }
  0x60   : > { %2840 = vmatpush1.bf16.msra.mxu0 %v9746_v33  ;;  %v10667_v33 = vsub.s32 2, %v10447_v24 }
  0x61   : > { %2841 = vmatprep.subr.bf16.mxu0 %v9747_v36 }
  0x62   : > { %9625 = vset.pattern.permute.xlu1 %v14868_v14  ;;  %15138 = vst [vmem:[#allocation19_spill] sm:$0xff] %v10667_v33 }
  0x63   : > { %751 = vperm.xlu0 %9639, %v10387_v4   ;;  %766 = vperm.xlu1 %9625, %v10391_v5   ;;  %v10593_v4 = vld [vmem:[%s10382_s30 + $0x90] sm:$0xff] }
  0x64   : > { %2842 = vmatpush2.bf16.msra.mxu0 %v9749_v37  ;;  %v1470_v37 = vrot.slane %v743_v26, %v10471_v32 }
  0x65   : > { %2843 = vmatprep.subr.bf16.mxu0 %v9750_v38  ;;  %v14864_v38 = vsub.s32 6, %v10447_v24 }
  0x67   : > { %761 = vperm.xlu0 %9639, %v681_v20   ;;  %9626 = vset.pattern.permute.xlu1 %v14866_v1 }
  0x68   : > { %1228 = vperm.xlu1 %9626, %v10391_v5   ;;  %2844 = vmatpush2.bf16.msra.mxu0 %v9752_v40  ;;  %v10598_v5 = vld [vmem:[%s10382_s30 + $0xa0] sm:$0xff]  ;;  %v1474_v40 = vrot.slane %v743_v26, %v1473_v27  ;;  %v2004_v27 = vrot.slane %v743_v26, %v14864_v38 }
  0x69   : > { %2845 = vmatprep.subr.bf16.mxu0 %v9753_v41  ;;  %v2271_v41 = vld [vmem:[%s15141_s0] sm:$0x3] }
  0x6b   : > { %771 = vperm.xlu0 %9639, %v683_v39  }
  0x6c   : > { %1232 = vperm.xlu1 %9626, %v683_v39   ;;  %2846 = vmatpush2.bf16.msra.mxu0 %v9755_v43  ;;  %v2000_v43 = vrot.slane %v743_v26, %v10667_v33 }
  0x6d   : > { %2847 = vmatprep.subr.bf16.mxu0 %v9756_v44  ;;  %v1068_v44 = vrot.slane %v743_v26, %v10670_v34 }
  0x6f   : > { %781 = vperm.xlu0 %9639, %v685_v42  }
  0x70   : > { %9627 = vset.pattern.permute.xlu1 %v14870_v0  ;;  %2848 = vmatpush2.bf16.msra.mxu0 %v9758_v46  ;;  %v2272_v46 = vunpack.c.l.bf16 %v2271_v41 }
  0x71   : > { %1762 = vperm.xlu1 %9627, %v683_v39   ;;  %2849 = vmatprep.subr.bf16.mxu0 %v9759_v47  ;;  %v1072_v39 = vrot.slane %v743_v26, %v14865_v28  ;;  %v10693_v47 = vrot.slane %v1470_v37, %v10471_v32 }
  0x73   : > { %791 = vperm.xlu0 %9639, %v687_v45  }
  0x74   : > { %2850 = vmatpush2.bf16.msra.mxu0 %v9761_v49  ;;  %v10701_v49 = vrot.slane %v1474_v40, %v10471_v32 }
  0x75   : > { %9628 = vset.pattern.permute.xlu1 %v14868_v14  ;;  %2851 = vmatprep.subr.bf16.mxu0 %v9762_v50 }
  0x76   : > { %776 = vperm.xlu1 %9628, %v10412_v11  }
  0x77   : > { %801 = vperm.xlu0 %9639, %v10519_v48  }
  0x78   : > { %2852 = vmatpush2.bf16.msra.mxu0 %v9764_v52  ;;  %v10709_v52 = vrot.slane %v1068_v44, %v10670_v34 }
  0x79   : > { %2853 = vmatprep.subr.bf16.mxu0 %v9765_v53 }
  0x7a   : > { %9629 = vset.pattern.permute.xlu1 %v14866_v1 }
  0x7b   : > { %1236 = vperm.xlu1 %9629, %v10412_v11   ;;  %811 = vperm.xlu0 %9639, %v10530_v51  }
  0x7c   : > { %2854 = vmatpush2.bf16.msra.mxu0 %v9767_v55 }
  0x7d   : > { %2855 = vmatprep.subr.bf16.mxu0 %v9768_v56  ;;  %v10718_v56 = vrot.slane %v2004_v27, %v10667_v33 }
  0x7f   : > { %1240 = vperm.xlu1 %9629, %v685_v42   ;;  %821 = vperm.xlu0 %9639, %v10541_v54  }
  0x80   : > { %2856 = vmatpush2.bf16.msra.mxu0 %v9770_v58 }
  0x83   : > { %9630 = vset.pattern.permute.xlu1 %v14870_v0  ;;  %831 = vperm.xlu0 %9639, %v10552_v57  }
  0x84   : > { %1770 = vperm.xlu1 %9630, %v685_v42  }
  0x87   : > { %841 = vperm.xlu0 %9639, %v10559_v59  }
  0x88   : > { %9631 = vset.pattern.permute.xlu1 %v14868_v14 }
  0x89   : > { %786 = vperm.xlu1 %9631, %v10423_v15  }
  0x8b   : > { %851 = vperm.xlu0 %9639, %v10564_v60  }
  0x8d   : > { %9632 = vset.pattern.permute.xlu1 %v14866_v1 }
  0x8e   : > { %1244 = vperm.xlu1 %9632, %v10423_v15  }
  0x8f   : > { %861 = vperm.xlu0 %9639, %v10570_v61  }
  0x92   : > { %1248 = vperm.xlu1 %9632, %v687_v45  }
  0x93   : > { %871 = vperm.xlu0 %9639, %v10576_v62  }
  0x96   : > { %9633 = vset.pattern.permute.xlu1 %v14870_v0 }
  0x97   : > { %1778 = vperm.xlu1 %9633, %v687_v45   ;;  %881 = vperm.xlu0 %9639, %v705_v63  }
  0x9b   : > { %9634 = vset.pattern.permute.xlu1 %v14868_v14  ;;  %9660 = vset.pattern.permute.xlu0 %v14870_v0 }
  0x9c   : > { %796 = vperm.xlu1 %9634, %v10433_v18   ;;  %1798 = vperm.xlu0 %9660, %v692_v2  }
  0xa0   : > { %9635 = vset.pattern.permute.xlu1 %v14866_v1  ;;  %1806 = vperm.xlu0 %9660, %v10587_v3  }
  0xa1   : > { %1252 = vperm.xlu1 %9635, %v10433_v18  }
  0xa4   : > { %1814 = vperm.xlu0 %9660, %v10593_v4  }
  0xa5   : > { %1256 = vperm.xlu1 %9635, %v10519_v48  }
  0xa8   : > { %1822 = vperm.xlu0 %9660, %v10598_v5  }
  0xa9   : > { %9636 = vset.pattern.permute.xlu1 %v14870_v0 }
  0xaa   : > { %1786 = vperm.xlu1 %9636, %v10519_v48   ;;  %v10698_v48 = vrot.slane %v1072_v39, %v10670_v34 }
  0xac   : > { %1830 = vperm.xlu0 %9660, %v10604_v6  }
  0xae   : > { %9637 = vset.pattern.permute.xlu1 %v14868_v14 }
  0xaf   : > { %806 = vperm.xlu1 %9637, %v10445_v23  }
  0xb0   : > { %1838 = vperm.xlu0 %9660, %v10610_v7  }
  0xb3   : > { %9638 = vset.pattern.permute.xlu1 %v14866_v1 }
  0xb4   : > { %1260 = vperm.xlu1 %9638, %v10445_v23   ;;  %1846 = vperm.xlu0 %9660, %v10616_v8  }
  0xb8   : > { %1264 = vperm.xlu1 %9638, %v10530_v51   ;;  %1854 = vperm.xlu0 %9660, %v10621_v9  }
  0xbc   : > { %9640 = vset.pattern.permute.xlu1 %v14870_v0  ;;  %1862 = vperm.xlu0 %9660, %v10631_v12  }
  0xbd   : > { %1794 = vperm.xlu1 %9640, %v10530_v51   ;;  %v10626_v10 = vpop.permute.xlu1 %1212  ;;  %v10628_v11 = vpop.permute.xlu0 %1742  ;;  %v10706_v51 = vrot.slane %v2000_v43, %v10667_v33 }
  0xbe   : > { %15127 = vst [vmem:[#allocation9_spill] sm:$0xff] %v10626_v10  ;;  %15128 = vst [vmem:[#allocation10_spill] sm:$0xff] %v10628_v11  ;;  %v1485_v55 = vmul.f32 %v10693_v47, %v10626_v10  ;;  %v1486_v22 = vmul.f32 %v10701_v49, %v10626_v10  ;;  %v2016_v37 = vmul.f32 %v10718_v56, %v10628_v11 }
  0xc0   : > { %1870 = vperm.xlu0 %9660, %v710_v16   ;;  %v2015_v16 = vmul.f32 %v10706_v51, %v10628_v11 }
  0xc1   : > { %9641 = vset.pattern.permute.xlu1 %v14868_v14  ;;  %v10635_v13 = vpop.permute.xlu1 %1216  ;;  %v10637_v15 = vpop.permute.xlu0 %1750 }
  0xc2   : > { %15129 = vst [vmem:[#allocation11_spill] sm:$0xff] %v10635_v13  ;;  %15130 = vst [vmem:[#allocation12_spill] sm:$0xff] %v10637_v15  ;;  %816 = vperm.xlu1 %9641, %v692_v2   ;;  %v2020_v26 = vmul.f32 %v10718_v56, %v10637_v15  ;;  %v1487_v44 = vmul.f32 %v10693_v47, %v10635_v13 }
  0xc4   : > { %1878 = vperm.xlu0 %9660, %v712_v19  }
  0xc5   : > { %v10640_v17 = vpop.permute.xlu0 %1758 }
  0xc6   : > { %15131 = vst [vmem:[#allocation13_spill] sm:$0xff] %v10640_v17  ;;  %9642 = vset.pattern.permute.xlu1 %v14866_v1  ;;  %v10643_v18 = vpop.permute.xlu1 %1746 }
  0xc7   : > { %15132 = vst [vmem:[#allocation14_spill] sm:$0xff] %v10643_v18  ;;  %1268 = vperm.xlu1 %9642, %v692_v2   ;;  %v2277_v2 = vrot.slane %v2272_v46, %v10670_v34 }
  0xc8   : > { %1886 = vperm.xlu0 %9660, %v714_v21  }
  0xc9   : > { %v10646_v20 = vpop.permute.xlu0 %1766 }
  0xca   : > { %15133 = vst [vmem:[#allocation15_spill] sm:$0xff] %v10646_v20 }
  0xcb   : > { %1272 = vperm.xlu1 %9642, %v10541_v54   ;;  %v10653_v23 = vpop.permute.xlu1 %756 }
  0xcc   : > { %15135 = vst [vmem:[#allocation16_spill] sm:$0xff] %v10653_v23  ;;  %9677 = vset.pattern.permute.xlu0 %v14868_v14  ;;  %v1088_v58 = vmul.f32 %v10698_v48, %v10653_v23  ;;  %v1087_v27 = vmul.f32 %v10709_v52, %v10653_v23  ;;  %v2018_v23 = vmul.f32 %v10718_v56, %v10643_v18 }
  0xcd   : > { %v10655_v25 = vpop.permute.xlu0 %1774  ;;  %891 = vperm.xlu0 %9677, %v10659_v29  }
  0xce   : > { %15136 = vst [vmem:[#allocation17_spill] sm:$0xff] %v10655_v25 }
  0xcf   : > { %9643 = vset.pattern.permute.xlu1 %v14870_v0 }
  0xd0   : > { %1802 = vperm.xlu1 %9643, %v10541_v54   ;;  %v10663_v31 = vpop.permute.xlu1 %1220  ;;  %v2281_v54 = vrot.slane %v2272_v46, %v10667_v33  ;;  %v2019_v46 = vmul.f32 %v10706_v51, %v10637_v15 }
  0xd1   : > { %15137 = vst [vmem:[#allocation18_spill] sm:$0xff] %v10663_v31  ;;  %v10672_v36 = vpop.permute.xlu0 %1782  ;;  %v1490_v50 = vmul.f32 %v10701_v49, %v10663_v31 }
  0xd2   : > { %15140 = vst [vmem:[#allocation21_spill] sm:$0xff] %v10672_v36  ;;  %v10741_v41 = vrot.slane %v2281_v54, %v10670_v34  ;;  %v2024_v54 = vmul.f32 %v10718_v56, %v10640_v17 }
  0xd3   : > { %v1618_v39 = vadd.f32 %v1490_v50, %v1088_v58  ;;  %v10755_v50 = vrot.slane %v2277_v2, %v10670_v34  ;;  %v2017_v2 = vmul.f32 %v10706_v51, %v10643_v18 }
  0xd4   : > { %9644 = vset.pattern.permute.xlu1 %v14868_v14  ;;  %v10685_v42 = vpop.permute.xlu1 %1224 }
  0xd5   : > { %15142 = vst [vmem:[#allocation22_spill] sm:$0xff] %v10685_v42  ;;  %826 = vperm.xlu1 %9644, %v10587_v3   ;;  %v10690_v45 = vpop.permute.xlu0 %1790  ;;  %v2148_v14 = vadd.f32 %v2020_v26, %v1618_v39  ;;  %v1492_v15 = vmul.f32 %v10701_v49, %v10685_v42 }
  0xd6   : > { %15143 = vst [vmem:[#allocation23_spill] sm:$0xff] %v10690_v45 }
  0xd9   : > { %9645 = vset.pattern.permute.xlu1 %v14866_v1  ;;  %v10712_v53 = vpop.permute.xlu1 %1754 }
  0xda   : > { %15144 = vst [vmem:[#allocation24_spill] sm:$0xff] %v10712_v53  ;;  %v10722_v63 = vpop.permute.xlu0 %746  ;;  %1276 = vperm.xlu1 %9645, %v10587_v3   ;;  %v1489_v3 = vmul.f32 %v10693_v47, %v10663_v31 }
  0xdb   : > { %15145 = vst [vmem:[#allocation25_spill] sm:$0xff] %v10722_v63  ;;  %v1083_v19 = vmul.f32 %v10709_v52, %v10722_v63  ;;  %v1084_v21 = vmul.f32 %v10698_v48, %v10722_v63 }
  0xdc   : > { %v1617_v0 = vadd.f32 %v1489_v3, %v1087_v27 }
  0xdd   : > { %v1614_v40 = vadd.f32 %v1486_v22, %v1084_v21  ;;  %v1613_v43 = vadd.f32 %v1485_v55, %v1083_v19  ;;  %v1488_v19 = vmul.f32 %v10701_v49, %v10635_v13  ;;  %v10766_v21 = vld [vmem:[%s10382_s30 + $0xf8] sm:$0xff] }
  0xde   : > { %v10749_v38 = vpop.permute.xlu0 %751  ;;  %1280 = vperm.xlu1 %9645, %v10552_v57   ;;  %v10752_v28 = vpop.permute.xlu1 %766  ;;  %901 = vperm.xlu0 %9677, %v10766_v21  }
  0xdf   : > { %15146 = vst [vmem:[#allocation26_spill] sm:$0xff] %v10749_v38  ;;  %15147 = vst [vmem:[#allocation27_spill] sm:$0xff] %v10752_v28  ;;  %v1085_v55 = vmul.f32 %v10709_v52, %v10749_v38  ;;  %v1086_v58 = vmul.f32 %v10698_v48, %v10749_v38  ;;  %v2144_v22 = vadd.f32 %v2016_v37, %v1614_v40 }
  0xe0   : > { %v2143_v1 = vadd.f32 %v2015_v16, %v1613_v43  ;;  %v1491_v38 = vmul.f32 %v10693_v47, %v10685_v42  ;;  %v15149_v16 = vmov 2  }
  0xe1   : > { %v1616_v63 = vadd.f32 %v1488_v19, %v1086_v58  ;;  %v1615_v31 = vadd.f32 %v1487_v44, %v1085_v55  ;;  %v2293_v26 = vadd.f32 %v10741_v41, %v2144_v22  ;;  %v1092_v55 = vmul.f32 %v10698_v48, %v10752_v28 }
  0xe2   : > { %v10777_v37 = vpop.permute.xlu0 %761  ;;  %9646 = vset.pattern.permute.xlu1 %v15149_v16  ;;  %v2292_v3 = vadd.f32 %v10755_v50, %v2143_v1  ;;  %v2297_v1 = vadd.f32 %v10741_v41, %v2148_v14  ;;  %v2147_v19 = vadd.f32 %v2019_v46, %v1617_v0  ;;  %v15152_v14 = vmov 0  }
  0xe3   : > { %15148 = vst [vmem:[#allocation28_spill] sm:$0xff] %v10777_v37  ;;  %v1089_v39 = vmul.f32 %v10709_v52, %v10777_v37  ;;  %v1090_v40 = vmul.f32 %v10698_v48, %v10777_v37  ;;  %1810 = vperm.xlu1 %9646, %v10552_v57   ;;  %v10787_v43 = vpop.permute.xlu1 %1228  ;;  %v2146_v44 = vadd.f32 %v2018_v23, %v1616_v63 }
  0xe4   : > { %15150 = vst [vmem:[#allocation29_spill] sm:$0xff] %v10787_v43  ;;  %v2145_v27 = vadd.f32 %v2017_v2, %v1615_v31  ;;  %v1494_v58 = vmul.f32 %v10701_v49, %v10787_v43  ;;  %v2021_v57 = vmul.f32 %v10706_v51, %v10712_v53  ;;  %v2022_v23 = vmul.f32 %v10718_v56, %v10712_v53 }
  0xe5   : > { %v2295_v22 = vadd.f32 %v10741_v41, %v2146_v44  ;;  %v1620_v37 = vadd.f32 %v1492_v15, %v1090_v40  ;;  %v1619_v18 = vadd.f32 %v1491_v38, %v1089_v39  ;;  %v1493_v31 = vmul.f32 %v10693_v47, %v10787_v43 }
  0xe6   : > { %v2294_v42 = vadd.f32 %v10755_v50, %v2145_v27  ;;  %v10802_v63 = vpop.permute.xlu0 %771  ;;  %v2421_v2 = vmax.f32 %v2293_v26, 0.0  ;;  %v2420_v44 = vmax.f32 %v2292_v3, 0.0  ;;  %v1622_v38 = vadd.f32 %v1494_v58, %v1092_v55 }
  0xe7   : > { %15151 = vst [vmem:[#allocation30_spill] sm:$0xff] %v10802_v63  ;;  %9647 = vset.pattern.permute.xlu1 %v15152_v14  ;;  %v10805_v0 = vpop.permute.xlu1 %1232  ;;  %v2423_v46 = vmax.f32 %v2295_v22, 0.0  ;;  %v1093_v39 = vmul.f32 %v10709_v52, %v10802_v63  ;;  %v1094_v40 = vmul.f32 %v10698_v48, %v10802_v63  ;;  %v2150_v27 = vadd.f32 %v2022_v23, %v1620_v37 }
  0xe8   : > { %15153 = vst [vmem:[#allocation31_spill] sm:$0xff] %v10805_v0  ;;  %v2422_v15 = vmax.f32 %v2294_v42, 0.0  ;;  %836 = vperm.xlu1 %9647, %v10593_v4   ;;  %v2149_v53 = vadd.f32 %v2021_v57, %v1619_v18  ;;  %v1495_v26 = vmul.f32 %v10693_v47, %v10805_v0  ;;  %v1496_v43 = vmul.f32 %v10701_v49, %v10805_v0 }
  0xe9   : > { %v2549_v22 = vpack.c.bf16 %v2423_v46, %v2421_v2  ;;  %v1091_v42 = vmul.f32 %v10709_v52, %v10752_v28  ;;  %v2299_v55 = vadd.f32 %v10741_v41, %v2150_v27  ;;  %v2023_v63 = vmul.f32 %v10706_v51, %v10640_v17 }
  0xea   : > { %v2548_v3 = vpack.c.bf16 %v2422_v15, %v2420_v44  ;;  %v2298_v58 = vadd.f32 %v10755_v50, %v2149_v53  ;;  %v2152_v18 = vadd.f32 %v2024_v54, %v1622_v38  ;;  %v15154_v37 = vmov 1  }
  0xeb   : > { %2857 = vmatprep.mubr.bf16.mxu0 %v2549_v22  ;;  %v2425_v23 = vmax.f32 %v2297_v1, 0.0  ;;  %v2427_v2 = vmax.f32 %v2299_v55, 0.0  ;;  %v2296_v46 = vadd.f32 %v10755_v50, %v2147_v19  ;;  %v1621_v44 = vadd.f32 %v1493_v31, %v1091_v42 }
  0xec   : > { %9648 = vset.pattern.permute.xlu1 %v15154_v37  ;;  %2858 = vmatmul.mubr.bf16.vlgmr.msra.gmra.mxu0 %v2548_v3  ;;  %v10823_v57 = vpop.permute.xlu1 %1762  ;;  %v1624_v54 = vadd.f32 %v1496_v43, %v1094_v40  ;;  %v1623_v38 = vadd.f32 %v1495_v26, %v1093_v39  ;;  %v2426_v22 = vmax.f32 %v2298_v58, 0.0  ;;  %v2301_v1 = vadd.f32 %v10741_v41, %v2152_v18  ;;  %v10838_v43 = vld [vmem:[%s10382_s30 + $0x108] sm:$0xff] }
  0xed   : > { %15155 = vst [vmem:[#allocation32_spill] sm:$0xff] %v10823_v57  ;;  %v2025_v15 = vmul.f32 %v10706_v51, %v10823_v57  ;;  %v2026_v53 = vmul.f32 %v10718_v56, %v10823_v57  ;;  %1284 = vperm.xlu1 %9648, %v10593_v4   ;;  %v2551_v27 = vpack.c.bf16 %v2427_v2, %v2425_v23  ;;  %v2424_v19 = vmax.f32 %v2296_v46, 0.0  ;;  %v10857_v46 = vpop.permute.xlu0 %781 }
  0xee   : > { %v2151_v31 = vadd.f32 %v2023_v63, %v1621_v44  ;;  %v2429_v39 = vmax.f32 %v2301_v1, 0.0  ;;  %911 = vperm.xlu0 %9677, %v10838_v43   ;;  %15158 = vst [vmem:[#allocation35_spill] sm:$0xff] %v10857_v46  ;;  %v1097_v1 = vmul.f32 %v10709_v52, %v10857_v46 }
  0xef   : > { %v2154_v3 = vadd.f32 %v2026_v53, %v1624_v54  ;;  %v2153_v55 = vadd.f32 %v2025_v15, %v1623_v38  ;;  %2867 = vmatprep.mubr.bf16.mxu0 %v2551_v27  ;;  %v2550_v28 = vpack.c.bf16 %v2426_v22, %v2424_v19  ;;  %v2027_v15 = vmul.f32 %v10706_v51, %v10646_v20 }
  0xf0   : > { %v2300_v26 = vadd.f32 %v10755_v50, %v2151_v31  ;;  %v2028_v53 = vmul.f32 %v10718_v56, %v10646_v20 }
  0xf1   : > { %1288 = vperm.xlu1 %9648, %v10559_v59   ;;  %v10833_v42 = vpop.permute.xlu1 %776  ;;  %v2303_v57 = vadd.f32 %v10741_v41, %v2154_v3  ;;  %v2302_v4 = vadd.f32 %v10755_v50, %v2153_v55  ;;  %v9773_v3 = vld [vmem:[%s14847_s5 + $0x70] ss:$8 sps:$4 sm:$0xff]   ;;  %v1098_v55 = vmul.f32 %v10698_v48, %v10857_v46 }
  0xf2   : > { %15156 = vst [vmem:[#allocation33_spill] sm:$0xff] %v10833_v42  ;;  %v2428_v44 = vmax.f32 %v2300_v26, 0.0  ;;  %v9776_v26 = vld [vmem:[%s14847_s5 + $0x60] ss:$8 sps:$4 sm:$0xff]  }
  0xf3   : > { %v2431_v40 = vmax.f32 %v2303_v57, 0.0  ;;  %v2430_v18 = vmax.f32 %v2302_v4, 0.0  ;;  %v1095_v57 = vmul.f32 %v10709_v52, %v10833_v42  ;;  %v9774_v4 = vld [vmem:[%s14847_s5 + $0x64] ss:$8 sps:$4 sm:$0xff]  }
  0xf4   : > { %2868 = vmatmul.mubr.bf16.gmra.mxu0 %v2550_v28  ;;  %v9771_v28 = vld [vmem:[%s14847_s5 + $0x74] ss:$8 sps:$4 sm:$0xff]  }
  0xf5   : > { %9649 = vset.pattern.permute.xlu1 %v15149_v16  ;;  %v2553_v63 = vpack.c.bf16 %v2431_v40, %v2429_v39  ;;  %3583 = vmatprep.subr.bf16.mxu1 %v9771_v28  ;;  %v2552_v38 = vpack.c.bf16 %v2430_v18, %v2428_v44 }
  0xf6   : > { %1818 = vperm.xlu1 %9649, %v10559_v59   ;;  %v10844_v58 = vpop.permute.xlu1 %1236  ;;  %v1096_v59 = vmul.f32 %v10698_v48, %v10833_v42  ;;  %3584 = vmatpush1.bf16.msra.mxu1 %v9773_v3  ;;  %v9780_v3 = vld [vmem:[%s14847_s5 + $0x44] ss:$8 sps:$4 sm:$0xff]  }
  0xf7   : > { %15157 = vst [vmem:[#allocation34_spill] sm:$0xff] %v10844_v58  ;;  %v1497_v23 = vmul.f32 %v10693_v47, %v10844_v58  ;;  %v1498_v2 = vmul.f32 %v10701_v49, %v10844_v58  ;;  %2877 = vmatprep.mubr.bf16.mxu0 %v2553_v63  ;;  %3585 = vmatprep.subr.bf16.mxu1 %v9774_v4  ;;  %v733_v58 = vld [vmem:[%s10382_s30 + $0x1b8] sm:$0xff] }
  0xf9   : > { %v1626_v27 = vadd.f32 %v1498_v2, %v1096_v59  ;;  %v1625_v22 = vadd.f32 %v1497_v23, %v1095_v57  ;;  %v9777_v57 = vld [vmem:[%s14847_s5 + $0x54] ss:$8 sps:$4 sm:$0xff]   ;;  %v9779_v59 = vld [vmem:[%s14847_s5 + $0x50] ss:$8 sps:$4 sm:$0xff]  }
  0xfa   : > { %9650 = vset.pattern.permute.xlu1 %v15152_v14  ;;  %v10864_v54 = vpop.permute.xlu1 %1240  ;;  %3586 = vmatpush1.bf16.msra.mxu1 %v9776_v26 }
  0xfb   : > { %15159 = vst [vmem:[#allocation36_spill] sm:$0xff] %v10864_v54  ;;  %846 = vperm.xlu1 %9650, %v10598_v5   ;;  %v1499_v19 = vmul.f32 %v10693_v47, %v10864_v54  ;;  %v1500_v31 = vmul.f32 %v10701_v49, %v10864_v54  ;;  %v2156_v39 = vadd.f32 %v2028_v53, %v1626_v27  ;;  %v11148_v54 = vld [vmem:[%s10382_s30 + $0x140] sm:$0xff] }
  0xfc   : > { %2878 = vmatmul.mubr.bf16.gmra.mxu0 %v2552_v38  ;;  %v2155_v40 = vadd.f32 %v2027_v15, %v1625_v22  ;;  %3587 = vmatprep.subr.bf16.mxu1 %v9777_v57 }
  0xfd   : > { %v1628_v2 = vadd.f32 %v1500_v31, %v1098_v55  ;;  %v1627_v28 = vadd.f32 %v1499_v19, %v1097_v1  ;;  %v2305_v15 = vadd.f32 %v10741_v41, %v2156_v39  ;;  %v9782_v1 = vld [vmem:[%s14847_s5 + $0x40] ss:$8 sps:$4 sm:$0xff]   ;;  %v10912_v55 = vld [vmem:[%s10382_s30 + $0x118] sm:$0xff] }
  0xfe   : > { %v2304_v38 = vadd.f32 %v10755_v50, %v2155_v40  ;;  %3588 = vmatpush1.bf16.msra.mxu1 %v9779_v59  ;;  %921 = vperm.xlu0 %9677, %v10912_v55  }
  0xff   : > { %9651 = vset.pattern.permute.xlu1 %v15154_v37  ;;  %v10885_v63 = vpop.permute.xlu1 %1770  ;;  %v2433_v19 = vmax.f32 %v2305_v15, 0.0  ;;  %3589 = vmatprep.subr.bf16.mxu1 %v9780_v3  ;;  %v2031_v15 = vmul.f32 %v10706_v51, %v10655_v25 }
 0x100   : > { %15160 = vst [vmem:[#allocation37_spill] sm:$0xff] %v10885_v63  ;;  %v2029_v18 = vmul.f32 %v10706_v51, %v10885_v63  ;;  %v2030_v23 = vmul.f32 %v10718_v56, %v10885_v63  ;;  %1292 = vperm.xlu1 %9651, %v10598_v5   ;;  %v2432_v4 = vmax.f32 %v2304_v38, 0.0 }
 0x102   : > { %v2158_v44 = vadd.f32 %v2030_v23, %v1628_v2  ;;  %v2157_v53 = vadd.f32 %v2029_v18, %v1627_v28  ;;  %v10919_v23 = vpop.permute.xlu0 %791  ;;  %3590 = vmatpush1.bf16.msra.mxu1 %v9782_v1  ;;  %v9783_v2 = vld [vmem:[%s14847_s5 + $0x34] ss:$8 sps:$4 sm:$0xff]   ;;  %v9786_v1 = vld [vmem:[%s14847_s5 + $0x24] ss:$8 sps:$4 sm:$0xff]  }
 0x103   : > { %15163 = vst [vmem:[#allocation40_spill] sm:$0xff] %v10919_v23  ;;  %3591 = vmatprep.subr.bf16.mxu1 %v9783_v2 }
 0x104   : > { %1296 = vperm.xlu1 %9651, %v10564_v60   ;;  %v10901_v5 = vpop.permute.xlu1 %786  ;;  %v2307_v27 = vadd.f32 %v10741_v41, %v2158_v44  ;;  %v2306_v22 = vadd.f32 %v10755_v50, %v2157_v53  ;;  %v2032_v53 = vmul.f32 %v10718_v56, %v10655_v25 }
 0x105   : > { %15161 = vst [vmem:[#allocation38_spill] sm:$0xff] %v10901_v5  ;;  %v1099_v59 = vmul.f32 %v10709_v52, %v10901_v5  ;;  %v1100_v44 = vmul.f32 %v10698_v48, %v10901_v5 }
 0x106   : > { %v2435_v31 = vmax.f32 %v2307_v27, 0.0  ;;  %v2434_v39 = vmax.f32 %v2306_v22, 0.0  ;;  %v10942_v3 = vpop.permute.xlu0 %801 }
 0x107   : > { %15165 = vst [vmem:[#allocation42_spill] sm:$0xff] %v10942_v3  ;;  %v1105_v5 = vmul.f32 %v10709_v52, %v10942_v3 }
 0x108   : > { %9652 = vset.pattern.permute.xlu1 %v15149_v16  ;;  %v2555_v40 = vpack.c.bf16 %v2435_v31, %v2433_v19  ;;  %v2554_v26 = vpack.c.bf16 %v2434_v39, %v2432_v4  ;;  %v9788_v19 = vld [vmem:[%s14847_s5 + $0x20] ss:$8 sps:$4 sm:$0xff]   ;;  %v1101_v31 = vmul.f32 %v10709_v52, %v10919_v23  ;;  %v1102_v4 = vmul.f32 %v10698_v48, %v10919_v23 }
 0x109   : > { %1826 = vperm.xlu1 %9652, %v10564_v60   ;;  %v10917_v18 = vpop.permute.xlu1 %1244  ;;  %v9785_v60 = vld [vmem:[%s14847_s5 + $0x30] ss:$8 sps:$4 sm:$0xff]  }
 0x10a   : > { %15162 = vst [vmem:[#allocation39_spill] sm:$0xff] %v10917_v18  ;;  %v1501_v28 = vmul.f32 %v10693_v47, %v10917_v18  ;;  %v1502_v57 = vmul.f32 %v10701_v49, %v10917_v18  ;;  %2887 = vmatprep.mubr.bf16.mxu0 %v2555_v40  ;;  %3592 = vmatpush1.bf16.msra.mxu1 %v9785_v60  ;;  %v9791_v60 = vld [vmem:[%s14847_s5 + $0x10] ss:$8 sps:$4 sm:$0xff]  }
 0x10b   : > { %2888 = vmatmul.mubr.bf16.gmra.mxu0 %v2554_v26  ;;  %3593 = vmatprep.subr.bf16.mxu1 %v9786_v1  ;;  %v9792_v1 = vld [vmem:[%s14847_s5 + $0x4] ss:$8 sps:$4 sm:$0xff]  }
 0x10c   : > { %v1630_v27 = vadd.f32 %v1502_v57, %v1100_v44  ;;  %v1629_v22 = vadd.f32 %v1501_v28, %v1099_v59  ;;  %v9789_v28 = vld [vmem:[%s14847_s5 + $0x14] ss:$8 sps:$4 sm:$0xff]  }
 0x10d   : > { %9653 = vset.pattern.permute.xlu1 %v15152_v14  ;;  %v10940_v38 = vpop.permute.xlu1 %1248 }
 0x10e   : > { %15164 = vst [vmem:[#allocation41_spill] sm:$0xff] %v10940_v38  ;;  %856 = vperm.xlu1 %9653, %v10604_v6   ;;  %v1503_v39 = vmul.f32 %v10693_v47, %v10940_v38  ;;  %v1504_v40 = vmul.f32 %v10701_v49, %v10940_v38  ;;  %v2160_v26 = vadd.f32 %v2032_v53, %v1630_v27  ;;  %v10973_v27 = vpop.permute.xlu0 %811 }
 0x10f   : > { %v2159_v2 = vadd.f32 %v2031_v15, %v1629_v22  ;;  %3594 = vmatpush1.bf16.msra.mxu1 %v9788_v19  ;;  %15167 = vst [vmem:[#allocation44_spill] sm:$0xff] %v10973_v27  ;;  %v10976_v22 = vld [vmem:[%s10382_s30 + $0x128] sm:$0xff] }
 0x110   : > { %v1632_v15 = vadd.f32 %v1504_v40, %v1102_v4  ;;  %v1631_v53 = vadd.f32 %v1503_v39, %v1101_v31  ;;  %3595 = vmatprep.subr.bf16.mxu1 %v9789_v28  ;;  %931 = vperm.xlu0 %9677, %v10976_v22   ;;  %v2309_v38 = vadd.f32 %v10741_v41, %v2160_v26  ;;  %v9794_v31 = vld [vmem:[%s14847_s5] ss:$8 sps:$4 sm:$0xff]   ;;  %v10993_v28 = vld [vmem:[%s10382_s30 + $0x138] sm:$0xff] }
 0x111   : > { %v9795_v26 = vld [vmem:[%s14847_s5 + $0xf4] ss:$8 sps:$4 sm:$0xff]  }
 0x112   : > { %9654 = vset.pattern.permute.xlu1 %v15154_v37  ;;  %v10963_v57 = vpop.permute.xlu1 %1778 }
 0x113   : > { %15166 = vst [vmem:[#allocation43_spill] sm:$0xff] %v10963_v57  ;;  %v2033_v59 = vmul.f32 %v10706_v51, %v10963_v57  ;;  %v2034_v44 = vmul.f32 %v10718_v56, %v10963_v57  ;;  %1300 = vperm.xlu1 %9654, %v10604_v6   ;;  %v2308_v6 = vadd.f32 %v10755_v50, %v2159_v2  ;;  %v2437_v2 = vmax.f32 %v2309_v38, 0.0 }
 0x114   : > { %3596 = vmatpush1.bf16.msra.mxu1 %v9791_v60  ;;  %941 = vperm.xlu0 %9677, %v10993_v28  }
 0x115   : > { %v2162_v19 = vadd.f32 %v2034_v44, %v1632_v15  ;;  %v2161_v57 = vadd.f32 %v2033_v59, %v1631_v53  ;;  %3597 = vmatprep.subr.bf16.mxu1 %v9792_v1  ;;  %v2436_v59 = vmax.f32 %v2308_v6, 0.0  ;;  %v10998_v15 = vpop.permute.xlu0 %821  ;;  %v9797_v53 = vld [vmem:[%s14847_s5 + $0xf0] ss:$8 sps:$4 sm:$0xff]  }
 0x116   : > { %15169 = vst [vmem:[#allocation46_spill] sm:$0xff] %v10998_v15 }
 0x117   : > { %1304 = vperm.xlu1 %9654, %v10570_v61   ;;  %v10988_v4 = vpop.permute.xlu1 %796  ;;  %v2311_v39 = vadd.f32 %v10741_v41, %v2162_v19  ;;  %v2310_v40 = vadd.f32 %v10755_v50, %v2161_v57  ;;  %v11006_v19 = vld [vmem:[%s10382_s30 + $0x148] sm:$0xff] }
 0x118   : > { %15168 = vst [vmem:[#allocation45_spill] sm:$0xff] %v10988_v4  ;;  %3598 = vmatpush1.bf16.msra.mxu1 %v9794_v31  ;;  %951 = vperm.xlu0 %9677, %v11006_v19  }
 0x119   : > { %v2439_v60 = vmax.f32 %v2311_v39, 0.0  ;;  %v2438_v44 = vmax.f32 %v2310_v40, 0.0  ;;  %3599 = vmatprep.subr.bf16.mxu1 %v9795_v26  ;;  %v9798_v39 = vld [vmem:[%s14847_s5 + $0xe4] ss:$8 sps:$4 sm:$0xff]   ;;  %v1103_v40 = vmul.f32 %v10709_v52, %v10988_v4  ;;  %v9800_v26 = vld [vmem:[%s14847_s5 + $0xe0] ss:$8 sps:$4 sm:$0xff]  }
 0x11b   : > { %9655 = vset.pattern.permute.xlu1 %v15149_v16  ;;  %v2557_v57 = vpack.c.bf16 %v2439_v60, %v2437_v2  ;;  %v2556_v1 = vpack.c.bf16 %v2438_v44, %v2436_v59  ;;  %v11026_v2 = vpop.permute.xlu0 %831  ;;  %v721_v60 = vld [vmem:[%s10382_s30 + $0x158] sm:$0xff]  ;;  %v2035_v59 = vmul.f32 %v10706_v51, %v10672_v36  ;;  %v2036_v44 = vmul.f32 %v10718_v56, %v10672_v36 }
 0x11c   : > { %1834 = vperm.xlu1 %9655, %v10570_v61   ;;  %v11009_v38 = vpop.permute.xlu1 %1252  ;;  %3600 = vmatpush2.bf16.msra.mxu1 %v9797_v53  ;;  %v1104_v61 = vmul.f32 %v10698_v48, %v10988_v4  ;;  %15171 = vst [vmem:[#allocation48_spill] sm:$0xff] %v11026_v2  ;;  %v1106_v4 = vmul.f32 %v10698_v48, %v10942_v3  ;;  %v737_v36 = vld [vmem:[%s10382_s30 + $0x1d8] sm:$0xff] }
 0x11d   : > { %15170 = vst [vmem:[#allocation47_spill] sm:$0xff] %v11009_v38  ;;  %v1505_v6 = vmul.f32 %v10693_v47, %v11009_v38  ;;  %v1506_v31 = vmul.f32 %v10701_v49, %v11009_v38  ;;  %2897 = vmatprep.mubr.bf16.mxu0 %v2557_v57  ;;  %3601 = vmatprep.subr.bf16.mxu1 %v9798_v39  ;;  %v9801_v38 = vld [vmem:[%s14847_s5 + $0xd4] ss:$8 sps:$4 sm:$0xff]  }
 0x11e   : > { %2898 = vmatmul.mubr.bf16.gmra.mxu0 %v2556_v1  ;;  %961 = vperm.xlu0 %9677, %v721_v60  }
 0x11f   : > { %v1634_v57 = vadd.f32 %v1506_v31, %v1104_v61  ;;  %v1633_v1 = vadd.f32 %v1505_v6, %v1103_v40  ;;  %v9803_v6 = vld [vmem:[%s14847_s5 + $0xd0] ss:$8 sps:$4 sm:$0xff]   ;;  %v723_v61 = vld [vmem:[%s10382_s30 + $0x168] sm:$0xff]  ;;  %v11055_v63 = vpop.permute.xlu0 %841 }
 0x120   : > { %9656 = vset.pattern.permute.xlu1 %v15152_v14  ;;  %v11034_v53 = vpop.permute.xlu1 %1256  ;;  %3602 = vmatpush2.bf16.msra.mxu1 %v9800_v26  ;;  %15174 = vst [vmem:[#allocation51_spill] sm:$0xff] %v11055_v63  ;;  %v9804_v26 = vld [vmem:[%s14847_s5 + $0xc4] ss:$8 sps:$4 sm:$0xff]  }
 0x121   : > { %15172 = vst [vmem:[#allocation49_spill] sm:$0xff] %v11034_v53  ;;  %v1508_v39 = vmul.f32 %v10701_v49, %v11034_v53  ;;  %866 = vperm.xlu1 %9656, %v10610_v7   ;;  %v1507_v23 = vmul.f32 %v10693_v47, %v11034_v53  ;;  %3603 = vmatprep.subr.bf16.mxu1 %v9801_v38  ;;  %v725_v53 = vld [vmem:[%s10382_s30 + $0x178] sm:$0xff] }
 0x122   : > { %v2164_v31 = vadd.f32 %v2036_v44, %v1634_v57  ;;  %v2163_v40 = vadd.f32 %v2035_v59, %v1633_v1  ;;  %v9806_v44 = vld [vmem:[%s14847_s5 + $0xc0] ss:$8 sps:$4 sm:$0xff]   ;;  %971 = vperm.xlu0 %9677, %v723_v61  }
 0x123   : > { %v1636_v3 = vadd.f32 %v1508_v39, %v1106_v4  ;;  %v1635_v59 = vadd.f32 %v1507_v23, %v1105_v5  ;;  %v9807_v4 = vld [vmem:[%s14847_s5 + $0xb4] ss:$8 sps:$4 sm:$0xff]  }
 0x124   : > { %3604 = vmatpush2.bf16.msra.mxu1 %v9803_v6  ;;  %v2313_v1 = vadd.f32 %v10741_v41, %v2164_v31  ;;  %v9809_v6 = vld [vmem:[%s14847_s5 + $0xb0] ss:$8 sps:$4 sm:$0xff]  }
 0x125   : > { %9657 = vset.pattern.permute.xlu1 %v15154_v37  ;;  %v11053_v18 = vpop.permute.xlu1 %1786  ;;  %3605 = vmatprep.subr.bf16.mxu1 %v9804_v26 }
 0x126   : > { %15173 = vst [vmem:[#allocation50_spill] sm:$0xff] %v11053_v18  ;;  %v2037_v60 = vmul.f32 %v10706_v51, %v11053_v18  ;;  %v2038_v38 = vmul.f32 %v10718_v56, %v11053_v18  ;;  %1308 = vperm.xlu1 %9657, %v10610_v7   ;;  %v2312_v18 = vadd.f32 %v10755_v50, %v2163_v40  ;;  %v2441_v31 = vmax.f32 %v2313_v1, 0.0 }
 0x127   : > { %981 = vperm.xlu0 %9677, %v725_v53  }
 0x128   : > { %v2166_v57 = vadd.f32 %v2038_v38, %v1636_v3  ;;  %v2165_v39 = vadd.f32 %v2037_v60, %v1635_v59  ;;  %3606 = vmatpush2.bf16.msra.mxu1 %v9806_v44  ;;  %v11082_v3 = vpop.permute.xlu0 %851  ;;  %v2440_v61 = vmax.f32 %v2312_v18, 0.0  ;;  %v9810_v60 = vld [vmem:[%s14847_s5 + $0xa4] ss:$8 sps:$4 sm:$0xff]   ;;  %v9812_v44 = vld [vmem:[%s14847_s5 + $0xa0] ss:$8 sps:$4 sm:$0xff]  }
 0x129   : > { %15176 = vst [vmem:[#allocation53_spill] sm:$0xff] %v11082_v3  ;;  %3607 = vmatprep.subr.bf16.mxu1 %v9807_v4  ;;  %v11095_v4 = vld [vmem:[%s10382_s30 + $0x130] sm:$0xff] }
 0x12a   : > { %1312 = vperm.xlu1 %9657, %v10576_v62   ;;  %v11075_v7 = vpop.permute.xlu1 %806  ;;  %v2315_v5 = vadd.f32 %v10741_v41, %v2166_v57  ;;  %v2314_v23 = vadd.f32 %v10755_v50, %v2165_v39 }
 0x12b   : > { %15175 = vst [vmem:[#allocation52_spill] sm:$0xff] %v11075_v7  ;;  %9692 = vset.pattern.permute.xlu0 %v15149_v16  ;;  %v1107_v1 = vmul.f32 %v10709_v52, %v11075_v7 }
 0x12c   : > { %v2443_v40 = vmax.f32 %v2315_v5, 0.0  ;;  %v2442_v26 = vmax.f32 %v2314_v23, 0.0  ;;  %3608 = vmatpush2.bf16.msra.mxu1 %v9809_v6  ;;  %1894 = vperm.xlu0 %9692, %v11095_v4   ;;  %v11107_v39 = vpop.permute.xlu0 %861  ;;  %v9813_v5 = vld [vmem:[%s14847_s5 + $0x94] ss:$8 sps:$4 sm:$0xff]   ;;  %v2039_v23 = vmul.f32 %v10706_v51, %v10690_v45  ;;  %v9815_v6 = vld [vmem:[%s14847_s5 + $0x90] ss:$8 sps:$4 sm:$0xff]  }
 0x12d   : > { %15178 = vst [vmem:[#allocation55_spill] sm:$0xff] %v11107_v39  ;;  %3609 = vmatprep.subr.bf16.mxu1 %v9810_v60  ;;  %v1109_v60 = vmul.f32 %v10709_v52, %v10973_v27 }
 0x12e   : > { %9658 = vset.pattern.permute.xlu1 %v15149_v16  ;;  %v2559_v38 = vpack.c.bf16 %v2443_v40, %v2441_v31  ;;  %v2558_v59 = vpack.c.bf16 %v2442_v26, %v2440_v61  ;;  %v2040_v31 = vmul.f32 %v10718_v56, %v10690_v45 }
 0x12f   : > { %1842 = vperm.xlu1 %9658, %v10576_v62   ;;  %v11092_v53 = vpop.permute.xlu1 %1260  ;;  %v1108_v62 = vmul.f32 %v10698_v48, %v11075_v7 }
 0x130   : > { %15177 = vst [vmem:[#allocation54_spill] sm:$0xff] %v11092_v53  ;;  %v1509_v18 = vmul.f32 %v10693_v47, %v11092_v53  ;;  %v1510_v57 = vmul.f32 %v10701_v49, %v11092_v53  ;;  %2907 = vmatprep.mubr.bf16.mxu0 %v2559_v38  ;;  %3610 = vmatpush2.bf16.msra.mxu1 %v9812_v44 }
 0x131   : > { %2908 = vmatmul.mubr.bf16.gmra.mxu0 %v2558_v59  ;;  %3611 = vmatprep.subr.bf16.mxu1 %v9813_v5  ;;  %v1110_v38 = vmul.f32 %v10698_v48, %v10973_v27 }
 0x132   : > { %v1638_v61 = vadd.f32 %v1510_v57, %v1108_v62  ;;  %v1637_v26 = vadd.f32 %v1509_v18, %v1107_v1  ;;  %v9816_v18 = vld [vmem:[%s14847_s5 + $0x84] ss:$8 sps:$4 sm:$0xff]   ;;  %v9818_v57 = vld [vmem:[%s14847_s5 + $0x80] ss:$8 sps:$4 sm:$0xff]   ;;  %v11137_v1 = vpop.permute.xlu0 %871  ;;  %1902 = vperm.xlu0 %9692, %v11148_v54  }
 0x133   : > { %9659 = vset.pattern.permute.xlu1 %v15152_v14  ;;  %v11120_v40 = vpop.permute.xlu1 %1264  ;;  %15180 = vst [vmem:[#allocation57_spill] sm:$0xff] %v11137_v1 }
 0x134   : > { %15179 = vst [vmem:[#allocation56_spill] sm:$0xff] %v11120_v40  ;;  %876 = vperm.xlu1 %9659, %v10616_v8   ;;  %v1511_v59 = vmul.f32 %v10693_v47, %v11120_v40  ;;  %v1512_v44 = vmul.f32 %v10701_v49, %v11120_v40  ;;  %3612 = vmatpush2.bf16.msra.mxu1 %v9815_v6 }
 0x135   : > { %v2168_v62 = vadd.f32 %v2040_v31, %v1638_v61  ;;  %v2167_v5 = vadd.f32 %v2039_v23, %v1637_v26  ;;  %3613 = vmatprep.subr.bf16.mxu1 %v9816_v18  ;;  %v10075_v18 = vld [vmem:[%s10382_s30 + $0xd8] sm:$0xff] }
 0x136   : > { %v1640_v7 = vadd.f32 %v1512_v44, %v1110_v38  ;;  %v1639_v27 = vadd.f32 %v1511_v59, %v1109_v60 }
 0x137   : > { %v2317_v31 = vadd.f32 %v10741_v41, %v2168_v62  ;;  %v2316_v26 = vadd.f32 %v10755_v50, %v2167_v5 }
 0x138   : > { %9661 = vset.pattern.permute.xlu1 %v15154_v37  ;;  %v11140_v53 = vpop.permute.xlu1 %1794  ;;  %3614 = vmatpush2.bf16.msra.mxu1 %v9818_v57 }
 0x139   : > { %15181 = vst [vmem:[#allocation58_spill] sm:$0xff] %v11140_v53  ;;  %v2041_v40 = vmul.f32 %v10706_v51, %v11140_v53  ;;  %v2042_v6 = vmul.f32 %v10718_v56, %v11140_v53  ;;  %1316 = vperm.xlu1 %9661, %v10616_v8   ;;  %v11156_v53 = vpop.permute.xlu0 %881  ;;  %v2445_v38 = vmax.f32 %v2317_v31, 0.0  ;;  %v2444_v44 = vmax.f32 %v2316_v26, 0.0 }
 0x13a   : > { %15183 = vst [vmem:[#allocation60_spill] sm:$0xff] %v11156_v53  ;;  %v1138_v0 = vmul.f32 %v10698_v48, %v11156_v53 }
 0x13b   : > { %v2170_v23 = vadd.f32 %v2042_v6, %v1640_v7  ;;  %v2169_v61 = vadd.f32 %v2041_v40, %v1639_v27 }
 0x13d   : > { %1320 = vperm.xlu1 %9661, %v10075_v18   ;;  %v11154_v46 = vpop.permute.xlu1 %816  ;;  %v2319_v8 = vadd.f32 %v10741_v41, %v2170_v23  ;;  %v2318_v60 = vadd.f32 %v10755_v50, %v2169_v61  ;;  %v11167_v6 = vpop.permute.xlu0 %1798 }
 0x13e   : > { %15182 = vst [vmem:[#allocation59_spill] sm:$0xff] %v11154_v46  ;;  %15185 = vst [vmem:[#allocation62_spill] sm:$0xff] %v11167_v6  ;;  %v1111_v23 = vmul.f32 %v10709_v52, %v11154_v46  ;;  %v1112_v31 = vmul.f32 %v10698_v48, %v11154_v46 }
 0x13f   : > { %v2447_v59 = vmax.f32 %v2319_v8, 0.0  ;;  %v2446_v57 = vmax.f32 %v2318_v60, 0.0  ;;  %v2044_v8 = vmul.f32 %v10718_v56, %v11167_v6 }
 0x141   : > { %9662 = vset.pattern.permute.xlu1 %v15149_v16  ;;  %v2561_v7 = vpack.c.bf16 %v2447_v59, %v2445_v38  ;;  %v2560_v27 = vpack.c.bf16 %v2446_v57, %v2444_v44  ;;  %v1113_v38 = vmul.f32 %v10709_v52, %v10998_v15  ;;  %v1114_v59 = vmul.f32 %v10698_v48, %v10998_v15 }
 0x142   : > { %1850 = vperm.xlu1 %9662, %v10075_v18   ;;  %v11161_v40 = vpop.permute.xlu1 %1268  ;;  %v2043_v18 = vmul.f32 %v10706_v51, %v11167_v6 }
 0x143   : > { %15184 = vst [vmem:[#allocation61_spill] sm:$0xff] %v11161_v40  ;;  %v1513_v62 = vmul.f32 %v10693_v47, %v11161_v40  ;;  %v1514_v5 = vmul.f32 %v10701_v49, %v11161_v40  ;;  %2917 = vmatprep.mubr.bf16.mxu0 %v2561_v7  ;;  %v11198_v40 = vld [vmem:[%s10382_s30 + $0x150] sm:$0xff] }
 0x144   : > { %2918 = vmatmul.mubr.bf16.gmra.mxu0 %v2560_v27  ;;  %1910 = vperm.xlu0 %9692, %v11198_v40  }
 0x145   : > { %v1641_v61 = vadd.f32 %v1513_v62, %v1111_v23  ;;  %v1642_v26 = vadd.f32 %v1514_v5, %v1112_v31 }
 0x146   : > { %9663 = vset.pattern.permute.xlu1 %v15152_v14  ;;  %v11178_v60 = vpop.permute.xlu1 %1272 }
 0x147   : > { %15186 = vst [vmem:[#allocation63_spill] sm:$0xff] %v11178_v60  ;;  %886 = vperm.xlu1 %9663, %v10621_v9   ;;  %v1515_v44 = vmul.f32 %v10693_v47, %v11178_v60  ;;  %v1516_v57 = vmul.f32 %v10701_v49, %v11178_v60  ;;  %v2171_v7 = vadd.f32 %v2043_v18, %v1641_v61 }
 0x148   : > { %v2172_v27 = vadd.f32 %v2044_v8, %v1642_v26 }
 0x149   : > { %v1644_v31 = vadd.f32 %v1516_v57, %v1114_v59  ;;  %v1643_v46 = vadd.f32 %v1515_v44, %v1113_v38  ;;  %v2320_v8 = vadd.f32 %v10755_v50, %v2171_v7 }
 0x14a   : > { %v2321_v26 = vadd.f32 %v10741_v41, %v2172_v27 }
 0x14b   : > { %9664 = vset.pattern.permute.xlu1 %v15154_v37  ;;  %v11190_v62 = vpop.permute.xlu1 %1802  ;;  %v2448_v44 = vmax.f32 %v2320_v8, 0.0 }
 0x14c   : > { %15187 = vst [vmem:[#allocation64_spill] sm:$0xff] %v11190_v62  ;;  %v2045_v5 = vmul.f32 %v10706_v51, %v11190_v62  ;;  %v2046_v23 = vmul.f32 %v10718_v56, %v11190_v62  ;;  %1324 = vperm.xlu1 %9664, %v10621_v9   ;;  %v2449_v59 = vmax.f32 %v2321_v26, 0.0 }
 0x14e   : > { %v2174_v61 = vadd.f32 %v2046_v23, %v1644_v31  ;;  %v2173_v18 = vadd.f32 %v2045_v5, %v1643_v46  ;;  %v11216_v5 = vpop.permute.xlu0 %1806 }
 0x14f   : > { %15190 = vst [vmem:[#allocation67_spill] sm:$0xff] %v11216_v5  ;;  %v2048_v8 = vmul.f32 %v10718_v56, %v11216_v5 }
 0x150   : > { %1328 = vperm.xlu1 %9664, %v10659_v29   ;;  %v11204_v60 = vpop.permute.xlu1 %826  ;;  %v2323_v62 = vadd.f32 %v10741_v41, %v2174_v61  ;;  %v2322_v9 = vadd.f32 %v10755_v50, %v2173_v18  ;;  %v2047_v18 = vmul.f32 %v10706_v51, %v11216_v5 }
 0x151   : > { %15188 = vst [vmem:[#allocation65_spill] sm:$0xff] %v11204_v60  ;;  %v1116_v61 = vmul.f32 %v10698_v48, %v11204_v60 }
 0x152   : > { %v2451_v38 = vmax.f32 %v2323_v62, 0.0  ;;  %v2450_v57 = vmax.f32 %v2322_v9, 0.0  ;;  %v1115_v62 = vmul.f32 %v10709_v52, %v11204_v60 }
 0x154   : > { %9665 = vset.pattern.permute.xlu1 %v15149_v16  ;;  %v2563_v23 = vpack.c.bf16 %v2451_v38, %v2449_v59  ;;  %v2562_v31 = vpack.c.bf16 %v2450_v57, %v2448_v44  ;;  %v1117_v59 = vmul.f32 %v10709_v52, %v11026_v2  ;;  %v1118_v38 = vmul.f32 %v10698_v48, %v11026_v2  ;;  %v11479_v2 = vld [vmem:[%s10382_s30 + $0x1a8] sm:$0xff] }
 0x155   : > { %1858 = vperm.xlu1 %9665, %v10659_v29   ;;  %v11210_v46 = vpop.permute.xlu1 %1276 }
 0x156   : > { %15189 = vst [vmem:[#allocation66_spill] sm:$0xff] %v11210_v46  ;;  %v1517_v7 = vmul.f32 %v10693_v47, %v11210_v46  ;;  %v1518_v27 = vmul.f32 %v10701_v49, %v11210_v46  ;;  %2927 = vmatprep.mubr.bf16.mxu0 %v2563_v23  ;;  %v11247_v46 = vld [vmem:[%s10382_s30 + $0x160] sm:$0xff] }
 0x157   : > { %2928 = vmatmul.mubr.bf16.gmra.mxu0 %v2562_v31  ;;  %1918 = vperm.xlu0 %9692, %v11247_v46  }
 0x158   : > { %v1645_v26 = vadd.f32 %v1517_v7, %v1115_v62  ;;  %v1646_v29 = vadd.f32 %v1518_v27, %v1116_v61  ;;  %v10076_v62 = vld [vmem:[%s10382_s30 + $0xf0] sm:$0xff] }
 0x159   : > { %9666 = vset.pattern.permute.xlu1 %v15152_v14  ;;  %v11227_v9 = vpop.permute.xlu1 %1280 }
 0x15a   : > { %15191 = vst [vmem:[#allocation68_spill] sm:$0xff] %v11227_v9  ;;  %896 = vperm.xlu1 %9666, %v10631_v12   ;;  %v1519_v44 = vmul.f32 %v10693_v47, %v11227_v9  ;;  %v1520_v57 = vmul.f32 %v10701_v49, %v11227_v9  ;;  %v2175_v23 = vadd.f32 %v2047_v18, %v1645_v26 }
 0x15b   : > { %v2176_v31 = vadd.f32 %v2048_v8, %v1646_v29 }
 0x15c   : > { %v1648_v61 = vadd.f32 %v1520_v57, %v1118_v38  ;;  %v1647_v60 = vadd.f32 %v1519_v44, %v1117_v59  ;;  %v2324_v8 = vadd.f32 %v10755_v50, %v2175_v23 }
 0x15d   : > { %v2325_v29 = vadd.f32 %v10741_v41, %v2176_v31 }
 0x15e   : > { %9667 = vset.pattern.permute.xlu1 %v15154_v37  ;;  %v11239_v7 = vpop.permute.xlu1 %1810  ;;  %v2452_v44 = vmax.f32 %v2324_v8, 0.0 }
 0x15f   : > { %15192 = vst [vmem:[#allocation69_spill] sm:$0xff] %v11239_v7  ;;  %v2049_v12 = vmul.f32 %v10706_v51, %v11239_v7  ;;  %v2050_v27 = vmul.f32 %v10718_v56, %v11239_v7  ;;  %1332 = vperm.xlu1 %9667, %v10076_v62   ;;  %v2453_v38 = vmax.f32 %v2325_v29, 0.0 }
 0x161   : > { %v2178_v26 = vadd.f32 %v2050_v27, %v1648_v61  ;;  %v2177_v18 = vadd.f32 %v2049_v12, %v1647_v60  ;;  %v11265_v12 = vpop.permute.xlu0 %1814 }
 0x162   : > { %15195 = vst [vmem:[#allocation72_spill] sm:$0xff] %v11265_v12  ;;  %v2052_v8 = vmul.f32 %v10718_v56, %v11265_v12 }
 0x163   : > { %1336 = vperm.xlu1 %9667, %v10766_v21   ;;  %v11253_v9 = vpop.permute.xlu1 %836  ;;  %v2327_v7 = vadd.f32 %v10741_v41, %v2178_v26  ;;  %v2326_v62 = vadd.f32 %v10755_v50, %v2177_v18  ;;  %v2051_v18 = vmul.f32 %v10706_v51, %v11265_v12  ;;  %v11295_v12 = vld [vmem:[%s10382_s30 + $0x170] sm:$0xff] }
 0x164   : > { %15193 = vst [vmem:[#allocation70_spill] sm:$0xff] %v11253_v9  ;;  %v1120_v26 = vmul.f32 %v10698_v48, %v11253_v9  ;;  %1926 = vperm.xlu0 %9692, %v11295_v12  }
 0x165   : > { %v2455_v59 = vmax.f32 %v2327_v7, 0.0  ;;  %v2454_v57 = vmax.f32 %v2326_v62, 0.0  ;;  %v1119_v7 = vmul.f32 %v10709_v52, %v11253_v9 }
 0x167   : > { %9668 = vset.pattern.permute.xlu1 %v15149_v16  ;;  %v2565_v27 = vpack.c.bf16 %v2455_v59, %v2453_v38  ;;  %v2564_v61 = vpack.c.bf16 %v2454_v57, %v2452_v44  ;;  %v10077_v38 = vld [vmem:[%s10382_s30 + $0x100] sm:$0xff]  ;;  %v1121_v59 = vmul.f32 %v10709_v52, %v11055_v63  ;;  %v1122_v44 = vmul.f32 %v10698_v48, %v11055_v63 }
 0x168   : > { %1866 = vperm.xlu1 %9668, %v10766_v21   ;;  %v11259_v60 = vpop.permute.xlu1 %1284 }
 0x169   : > { %15194 = vst [vmem:[#allocation71_spill] sm:$0xff] %v11259_v60  ;;  %v1521_v23 = vmul.f32 %v10693_v47, %v11259_v60  ;;  %v1522_v31 = vmul.f32 %v10701_v49, %v11259_v60  ;;  %2937 = vmatprep.mubr.bf16.mxu0 %v2565_v27 }
 0x16a   : > { %2938 = vmatmul.mubr.bf16.gmra.mxu0 %v2564_v61 }
 0x16b   : > { %v1649_v29 = vadd.f32 %v1521_v23, %v1119_v7  ;;  %v1650_v21 = vadd.f32 %v1522_v31, %v1120_v26 }
 0x16c   : > { %9669 = vset.pattern.permute.xlu1 %v15152_v14  ;;  %v11276_v62 = vpop.permute.xlu1 %1288 }
 0x16d   : > { %15196 = vst [vmem:[#allocation73_spill] sm:$0xff] %v11276_v62  ;;  %906 = vperm.xlu1 %9669, %v10077_v38   ;;  %v1523_v57 = vmul.f32 %v10693_v47, %v11276_v62  ;;  %v1524_v27 = vmul.f32 %v10701_v49, %v11276_v62  ;;  %v2179_v61 = vadd.f32 %v2051_v18, %v1649_v29 }
 0x16e   : > { %v2180_v23 = vadd.f32 %v2052_v8, %v1650_v21 }
 0x16f   : > { %v1652_v9 = vadd.f32 %v1524_v27, %v1122_v44  ;;  %v1651_v60 = vadd.f32 %v1523_v57, %v1121_v59  ;;  %v2328_v18 = vadd.f32 %v10755_v50, %v2179_v61 }
 0x170   : > { %v2329_v29 = vadd.f32 %v10741_v41, %v2180_v23  ;;  %v11313_v23 = vpop.permute.xlu0 %1822 }
 0x171   : > { %9670 = vset.pattern.permute.xlu1 %v15154_v37  ;;  %v11288_v31 = vpop.permute.xlu1 %1818  ;;  %v2456_v57 = vmax.f32 %v2328_v18, 0.0  ;;  %15200 = vst [vmem:[#allocation77_spill] sm:$0xff] %v11313_v23  ;;  %v2056_v18 = vmul.f32 %v10718_v56, %v11313_v23 }
 0x172   : > { %15197 = vst [vmem:[#allocation74_spill] sm:$0xff] %v11288_v31  ;;  %v2053_v7 = vmul.f32 %v10706_v51, %v11288_v31  ;;  %v2054_v26 = vmul.f32 %v10718_v56, %v11288_v31  ;;  %1340 = vperm.xlu1 %9670, %v10077_v38   ;;  %v2457_v44 = vmax.f32 %v2329_v29, 0.0 }
 0x174   : > { %v2182_v62 = vadd.f32 %v2054_v26, %v1652_v9  ;;  %v2181_v21 = vadd.f32 %v2053_v7, %v1651_v60 }
 0x176   : > { %1344 = vperm.xlu1 %9670, %v10838_v43   ;;  %v11301_v8 = vpop.permute.xlu1 %846  ;;  %v2331_v5 = vadd.f32 %v10741_v41, %v2182_v62  ;;  %v2330_v38 = vadd.f32 %v10755_v50, %v2181_v21  ;;  %v2055_v21 = vmul.f32 %v10706_v51, %v11313_v23 }
 0x177   : > { %15198 = vst [vmem:[#allocation75_spill] sm:$0xff] %v11301_v8  ;;  %v1124_v7 = vmul.f32 %v10698_v48, %v11301_v8 }
 0x178   : > { %v2459_v59 = vmax.f32 %v2331_v5, 0.0  ;;  %v2458_v27 = vmax.f32 %v2330_v38, 0.0  ;;  %v1123_v5 = vmul.f32 %v10709_v52, %v11301_v8 }
 0x17a   : > { %9671 = vset.pattern.permute.xlu1 %v15149_v16  ;;  %v2567_v9 = vpack.c.bf16 %v2459_v59, %v2457_v44  ;;  %v2566_v26 = vpack.c.bf16 %v2458_v27, %v2456_v57  ;;  %v10078_v44 = vld [vmem:[%s10382_s30 + $0x110] sm:$0xff]  ;;  %v1125_v59 = vmul.f32 %v10709_v52, %v11082_v3  ;;  %v1126_v57 = vmul.f32 %v10698_v48, %v11082_v3 }
 0x17b   : > { %1874 = vperm.xlu1 %9671, %v10838_v43   ;;  %v11307_v60 = vpop.permute.xlu1 %1292 }
 0x17c   : > { %15199 = vst [vmem:[#allocation76_spill] sm:$0xff] %v11307_v60  ;;  %v1525_v61 = vmul.f32 %v10693_v47, %v11307_v60  ;;  %v1526_v62 = vmul.f32 %v10701_v49, %v11307_v60  ;;  %2947 = vmatprep.mubr.bf16.mxu0 %v2567_v9  ;;  %v11347_v60 = vld [vmem:[%s10382_s30 + $0x190] sm:$0xff] }
 0x17d   : > { %2948 = vmatmul.mubr.bf16.gmra.mxu0 %v2566_v26  ;;  %v11336_v26 = vld [vmem:[%s10382_s30 + $0x180] sm:$0xff] }
 0x17e   : > { %v1653_v43 = vadd.f32 %v1525_v61, %v1123_v5  ;;  %v1654_v29 = vadd.f32 %v1526_v62, %v1124_v7  ;;  %1934 = vperm.xlu0 %9692, %v11336_v26  }
 0x17f   : > { %9672 = vset.pattern.permute.xlu1 %v15152_v14  ;;  %v11324_v38 = vpop.permute.xlu1 %1296 }
 0x180   : > { %15201 = vst [vmem:[#allocation78_spill] sm:$0xff] %v11324_v38  ;;  %916 = vperm.xlu1 %9672, %v10078_v44   ;;  %v1527_v27 = vmul.f32 %v10693_v47, %v11324_v38  ;;  %v1528_v9 = vmul.f32 %v10701_v49, %v11324_v38  ;;  %v2183_v61 = vadd.f32 %v2055_v21, %v1653_v43 }
 0x181   : > { %v2184_v62 = vadd.f32 %v2056_v18, %v1654_v29 }
 0x182   : > { %v1656_v31 = vadd.f32 %v1528_v9, %v1126_v57  ;;  %v1655_v38 = vadd.f32 %v1527_v27, %v1125_v59  ;;  %1942 = vperm.xlu0 %9692, %v11347_v60   ;;  %v2332_v18 = vadd.f32 %v10755_v50, %v2183_v61  ;;  %v730_v59 = vld [vmem:[%s10382_s30 + $0x1a0] sm:$0xff] }
 0x183   : > { %v2333_v29 = vadd.f32 %v10741_v41, %v2184_v62  ;;  %v11360_v62 = vld [vmem:[%s10382_s30 + $0x188] sm:$0xff] }
 0x184   : > { %9673 = vset.pattern.permute.xlu1 %v15154_v37  ;;  %v11340_v5 = vpop.permute.xlu1 %1826  ;;  %v2460_v9 = vmax.f32 %v2332_v18, 0.0 }
 0x185   : > { %15202 = vst [vmem:[#allocation79_spill] sm:$0xff] %v11340_v5  ;;  %v2057_v7 = vmul.f32 %v10706_v51, %v11340_v5  ;;  %v2058_v8 = vmul.f32 %v10718_v56, %v11340_v5  ;;  %1348 = vperm.xlu1 %9673, %v10078_v44   ;;  %v2461_v57 = vmax.f32 %v2333_v29, 0.0 }
 0x186   : > { %1950 = vperm.xlu0 %9692, %v730_v59  }
 0x187   : > { %v2186_v43 = vadd.f32 %v2058_v8, %v1656_v31  ;;  %v2185_v21 = vadd.f32 %v2057_v7, %v1655_v38 }
 0x189   : > { %1352 = vperm.xlu1 %9673, %v10912_v55   ;;  %v11353_v23 = vpop.permute.xlu1 %856  ;;  %v2335_v5 = vadd.f32 %v10741_v41, %v2186_v43  ;;  %v2334_v44 = vadd.f32 %v10755_v50, %v2185_v21  ;;  %v11370_v43 = vpop.permute.xlu0 %1830 }
 0x18a   : > { %15203 = vst [vmem:[#allocation80_spill] sm:$0xff] %v11353_v23  ;;  %9703 = vset.pattern.permute.xlu0 %v15152_v14  ;;  %15205 = vst [vmem:[#allocation82_spill] sm:$0xff] %v11370_v43  ;;  %v1127_v29 = vmul.f32 %v10709_v52, %v11353_v23  ;;  %v2060_v59 = vmul.f32 %v10718_v56, %v11370_v43 }
 0x18b   : > { %v2463_v27 = vmax.f32 %v2335_v5, 0.0  ;;  %v2462_v31 = vmax.f32 %v2334_v44, 0.0  ;;  %991 = vperm.xlu0 %9703, %v11360_v62   ;;  %v2059_v44 = vmul.f32 %v10706_v51, %v11370_v43 }
 0x18d   : > { %9674 = vset.pattern.permute.xlu1 %v15149_v16  ;;  %v2569_v8 = vpack.c.bf16 %v2463_v27, %v2461_v57  ;;  %v2568_v38 = vpack.c.bf16 %v2462_v31, %v2460_v9  ;;  %v10079_v27 = vld [vmem:[%s10382_s30 + $0x120] sm:$0xff]  ;;  %v1129_v9 = vmul.f32 %v10709_v52, %v11107_v39  ;;  %v1130_v31 = vmul.f32 %v10698_v48, %v11107_v39 }
 0x18e   : > { %1882 = vperm.xlu1 %9674, %v10912_v55   ;;  %v11363_v61 = vpop.permute.xlu1 %1300  ;;  %v1128_v55 = vmul.f32 %v10698_v48, %v11353_v23 }
 0x18f   : > { %15204 = vst [vmem:[#allocation81_spill] sm:$0xff] %v11363_v61  ;;  %v1529_v7 = vmul.f32 %v10693_v47, %v11363_v61  ;;  %v1530_v5 = vmul.f32 %v10701_v49, %v11363_v61  ;;  %2957 = vmatprep.mubr.bf16.mxu0 %v2569_v8 }
 0x190   : > { %2958 = vmatmul.mubr.bf16.gmra.mxu0 %v2568_v38 }
 0x191   : > { %v1657_v21 = vadd.f32 %v1529_v7, %v1127_v29  ;;  %v1658_v18 = vadd.f32 %v1530_v5, %v1128_v55 }
 0x192   : > { %9675 = vset.pattern.permute.xlu1 %v15152_v14  ;;  %v11382_v57 = vpop.permute.xlu1 %1304 }
 0x193   : > { %15206 = vst [vmem:[#allocation83_spill] sm:$0xff] %v11382_v57  ;;  %926 = vperm.xlu1 %9675, %v10079_v27   ;;  %v1531_v8 = vmul.f32 %v10693_v47, %v11382_v57  ;;  %v1532_v38 = vmul.f32 %v10701_v49, %v11382_v57  ;;  %v2187_v7 = vadd.f32 %v2059_v44, %v1657_v21 }
 0x194   : > { %v2188_v5 = vadd.f32 %v2060_v59, %v1658_v18 }
 0x195   : > { %v1660_v61 = vadd.f32 %v1532_v38, %v1130_v31  ;;  %v1659_v43 = vadd.f32 %v1531_v8, %v1129_v9  ;;  %v2336_v21 = vadd.f32 %v10755_v50, %v2187_v7  ;;  %v11409_v9 = vld [vmem:[%s10382_s30 + $0x198] sm:$0xff]  ;;  %v11414_v8 = vpop.permute.xlu0 %1838 }
 0x196   : > { %v2337_v39 = vadd.f32 %v10741_v41, %v2188_v5  ;;  %15210 = vst [vmem:[#allocation87_spill] sm:$0xff] %v11414_v8  ;;  %1001 = vperm.xlu0 %9703, %v11409_v9   ;;  %v2064_v7 = vmul.f32 %v10718_v56, %v11414_v8 }
 0x197   : > { %9676 = vset.pattern.permute.xlu1 %v15154_v37  ;;  %v11394_v29 = vpop.permute.xlu1 %1834 }
 0x198   : > { %15207 = vst [vmem:[#allocation84_spill] sm:$0xff] %v11394_v29  ;;  %v2061_v55 = vmul.f32 %v10706_v51, %v11394_v29  ;;  %v2062_v23 = vmul.f32 %v10718_v56, %v11394_v29  ;;  %1356 = vperm.xlu1 %9676, %v10079_v27   ;;  %v2465_v15 = vmax.f32 %v2337_v39, 0.0  ;;  %v2464_v27 = vmax.f32 %v2336_v21, 0.0 }
 0x199   : > { %v11435_v21 = vpop.permute.xlu0 %1846 }
 0x19a   : > { %v2190_v6 = vadd.f32 %v2062_v23, %v1660_v61  ;;  %v2189_v57 = vadd.f32 %v2061_v55, %v1659_v43  ;;  %15213 = vst [vmem:[#allocation89_spill] sm:$0xff] %v11435_v21  ;;  %1011 = vperm.xlu0 %9703, %v11479_v2  }
 0x19c   : > { %1360 = vperm.xlu1 %9676, %v10976_v22   ;;  %v11403_v18 = vpop.permute.xlu1 %866  ;;  %v2339_v44 = vadd.f32 %v10741_v41, %v2190_v6  ;;  %v2338_v59 = vadd.f32 %v10755_v50, %v2189_v57 }
 0x19d   : > { %15208 = vst [vmem:[#allocation85_spill] sm:$0xff] %v11403_v18  ;;  %v1132_v39 = vmul.f32 %v10698_v48, %v11403_v18  ;;  %v1131_v57 = vmul.f32 %v10709_v52, %v11403_v18 }
 0x19e   : > { %v2467_v29 = vmax.f32 %v2339_v44, 0.0  ;;  %v2466_v31 = vmax.f32 %v2338_v59, 0.0  ;;  %v1133_v59 = vmul.f32 %v10709_v52, %v11137_v1  ;;  %1021 = vperm.xlu0 %9703, %v733_v58  }
 0x1a0   : > { %9678 = vset.pattern.permute.xlu1 %v15149_v16  ;;  %v2571_v23 = vpack.c.bf16 %v2467_v29, %v2465_v15  ;;  %v2570_v61 = vpack.c.bf16 %v2466_v31, %v2464_v27  ;;  %v2063_v29 = vmul.f32 %v10706_v51, %v11414_v8  ;;  %v1134_v27 = vmul.f32 %v10698_v48, %v11137_v1 }
 0x1a1   : > { %1890 = vperm.xlu1 %9678, %v10976_v22   ;;  %v11412_v43 = vpop.permute.xlu1 %1308  ;;  %v2644_v22 = vld [vmem:[%s15211_s4] sm:$0x3] }
 0x1a2   : > { %15209 = vst [vmem:[#allocation86_spill] sm:$0xff] %v11412_v43  ;;  %v1533_v6 = vmul.f32 %v10693_v47, %v11412_v43  ;;  %v1534_v15 = vmul.f32 %v10701_v49, %v11412_v43  ;;  %2967 = vmatprep.mubr.bf16.mxu0 %v2571_v23  ;;  %v2645_v44 = vunpack.c.l.bf16 %v2644_v22 }
 0x1a3   : > { %2968 = vmatmul.mubr.bf16.gmra.mxu0 %v2570_v61 }
 0x1a4   : > { %v1662_v38 = vadd.f32 %v1534_v15, %v1132_v39  ;;  %v1661_v5 = vadd.f32 %v1533_v6, %v1131_v57  ;;  %v2650_v15 = vrot.slane %v2645_v44, %v10670_v34  ;;  %v2654_v57 = vrot.slane %v2645_v44, %v10667_v33 }
 0x1a5   : > { %9679 = vset.pattern.permute.xlu1 %v15152_v14  ;;  %v11433_v55 = vpop.permute.xlu1 %1312 }
 0x1a6   : > { %15212 = vst [vmem:[#allocation88_spill] sm:$0xff] %v11433_v55  ;;  %936 = vperm.xlu1 %9679, %v11095_v4   ;;  %v1535_v31 = vmul.f32 %v10693_v47, %v11433_v55  ;;  %v1536_v23 = vmul.f32 %v10701_v49, %v11433_v55  ;;  %v2192_v61 = vadd.f32 %v2064_v7, %v1662_v38  ;;  %v11456_v38 = vpop.permute.xlu0 %1854 }
 0x1a7   : > { %v2191_v39 = vadd.f32 %v2063_v29, %v1661_v5  ;;  %15215 = vst [vmem:[#allocation91_spill] sm:$0xff] %v11456_v38  ;;  %v11461_v44 = vrot.slane %v2654_v57, %v10670_v34  ;;  %v11464_v63 = vrot.slane %v2650_v15, %v10670_v34 }
 0x1a8   : > { %v1664_v43 = vadd.f32 %v1536_v23, %v1134_v27  ;;  %v1663_v55 = vadd.f32 %v1535_v31, %v1133_v59  ;;  %v2341_v5 = vadd.f32 %v10741_v41, %v2192_v61 }
 0x1a9   : > { %v2340_v1 = vadd.f32 %v10755_v50, %v2191_v39 }
 0x1aa   : > { %9680 = vset.pattern.permute.xlu1 %v15154_v37  ;;  %v11447_v6 = vpop.permute.xlu1 %1842  ;;  %v11472_v39 = vpop.permute.xlu0 %1862 }
 0x1ab   : > { %15214 = vst [vmem:[#allocation90_spill] sm:$0xff] %v11447_v6  ;;  %v2065_v22 = vmul.f32 %v10706_v51, %v11447_v6  ;;  %v2066_v18 = vmul.f32 %v10718_v56, %v11447_v6  ;;  %1364 = vperm.xlu1 %9680, %v11095_v4   ;;  %v2468_v23 = vmax.f32 %v2340_v1, 0.0  ;;  %15217 = vst [vmem:[#allocation93_spill] sm:$0xff] %v11472_v39 }
 0x1ac   : > { %v2859_v7 = vpop.f32.mrf.mxu0 }
 0x1ad   : > { %v2194_v29 = vadd.f32 %v2066_v18, %v1664_v43  ;;  %v2193_v8 = vadd.f32 %v2065_v22, %v1663_v55  ;;  %v2469_v43 = vmax.f32 %v2341_v5, 0.0  ;;  %v2860_v22 = vadd.f32 %v2859_v7, %v11464_v63 }
 0x1ae   : > { %v2861_v3 = vpop.f32.mrf.mxu0 }
 0x1af   : > { %1368 = vperm.xlu1 %9680, %v10993_v28   ;;  %v11467_v4 = vpop.permute.xlu1 %876  ;;  %v2343_v59 = vadd.f32 %v10741_v41, %v2194_v29  ;;  %v2342_v27 = vadd.f32 %v10755_v50, %v2193_v8  ;;  %v2862_v15 = vadd.f32 %v2861_v3, %v11461_v44 }
 0x1b0   : > { %15216 = vst [vmem:[#allocation92_spill] sm:$0xff] %v11467_v4  ;;  %v2863_v18 = vpop.f32.mrf.mxu0 }
 0x1b1   : > { %v2864_v55 = vadd.f32 %v2863_v18, %v11464_v63  ;;  %v2471_v31 = vmax.f32 %v2343_v59, 0.0  ;;  %v2470_v61 = vmax.f32 %v2342_v27, 0.0  ;;  %v3179_v27 = vmax.f32 %v2862_v15, 0.0 }
 0x1b2   : > { %v2865_v57 = vpop.f32.mrf.mxu0  ;;  %v1135_v18 = vmul.f32 %v10709_v52, %v11467_v4 }
 0x1b3   : > { %v2866_v6 = vadd.f32 %v2865_v57, %v11461_v44  ;;  %9681 = vset.pattern.permute.xlu1 %v15149_v16  ;;  %v2573_v29 = vpack.c.bf16 %v2471_v31, %v2469_v43  ;;  %v2572_v8 = vpack.c.bf16 %v2470_v61, %v2468_v23  ;;  %v3180_v59 = vmax.f32 %v2864_v55, 0.0  ;;  %v11495_v61 = vpop.permute.xlu0 %1870 }
 0x1b4   : > { %v2869_v5 = vpop.f32.mrf.mxu0  ;;  %1898 = vperm.xlu1 %9681, %v10993_v28   ;;  %v11482_v1 = vpop.permute.xlu1 %1316  ;;  %v1136_v28 = vmul.f32 %v10698_v48, %v11467_v4  ;;  %v3178_v23 = vmax.f32 %v2860_v22, 0.0  ;;  %v2067_v55 = vmul.f32 %v10706_v51, %v11435_v21  ;;  %15219 = vst [vmem:[#allocation95_spill] sm:$0xff] %v11495_v61  ;;  %v2068_v57 = vmul.f32 %v10718_v56, %v11435_v21 }
 0x1b5   : > { %15218 = vst [vmem:[#allocation94_spill] sm:$0xff] %v11482_v1  ;;  %v1537_v3 = vmul.f32 %v10693_v47, %v11482_v1  ;;  %v1538_v7 = vmul.f32 %v10701_v49, %v11482_v1  ;;  %2977 = vmatprep.mubr.bf16.mxu0 %v2573_v29  ;;  %v3181_v31 = vmax.f32 %v2866_v6, 0.0  ;;  %v1137_v21 = vmul.f32 %v10709_v52, %v11156_v53 }
 0x1b6   : > { %v2871_v43 = vpop.f32.mrf.mxu0  ;;  %2978 = vmatmul.mubr.bf16.gmra.mxu0 %v2572_v8  ;;  %v3306_v8 = vpack.c.bf16 %v3180_v59, %v3178_v23 }
 0x1b7   : > { %v3307_v1 = vpack.c.bf16 %v3181_v31, %v3179_v27  ;;  %v1666_v42 = vadd.f32 %v1538_v7, %v1136_v28  ;;  %v1665_v4 = vadd.f32 %v1537_v3, %v1135_v18  ;;  %v2872_v6 = vadd.f32 %v2871_v43, %v11461_v44  ;;  %v735_v31 = vld [vmem:[%s10382_s30 + $0x1c8] sm:$0xff] }
 0x1b8   : > { %v2873_v15 = vpop.f32.mrf.mxu0  ;;  %9682 = vset.pattern.permute.xlu1 %v15152_v14  ;;  %v11500_v29 = vpop.permute.xlu1 %1320  ;;  %v2870_v27 = vadd.f32 %v2869_v5, %v11464_v63  ;;  %1031 = vperm.xlu0 %9703, %v735_v31  }
 0x1b9   : > { %15220 = vst [vmem:[#allocation96_spill] sm:$0xff] %v11500_v29  ;;  %v2874_v22 = vadd.f32 %v2873_v15, %v11464_v63  ;;  %946 = vperm.xlu1 %9682, %v11148_v54   ;;  %v1539_v7 = vmul.f32 %v10693_v47, %v11500_v29  ;;  %v1540_v59 = vmul.f32 %v10701_v49, %v11500_v29  ;;  %v3183_v23 = vmax.f32 %v2872_v6, 0.0 }
 0x1ba   : > { %3615 = vmatprep.mubr.bf16.mxu1 %v3307_v1  ;;  %v2875_v3 = vpop.f32.mrf.mxu0  ;;  %v2196_v28 = vadd.f32 %v2068_v57, %v1666_v42  ;;  %v2195_v43 = vadd.f32 %v2067_v55, %v1665_v4  ;;  %v11525_v42 = vpop.permute.xlu0 %1878  ;;  %v3182_v57 = vmax.f32 %v2870_v27, 0.0 }
 0x1bb   : > { %v2876_v18 = vadd.f32 %v2875_v3, %v11461_v44  ;;  %3616 = vmatmul.mubr.bf16.vlgmr.msra.gmra.mxu1 %v3306_v8  ;;  %v3184_v15 = vmax.f32 %v2874_v22, 0.0  ;;  %15222 = vst [vmem:[#allocation98_spill] sm:$0xff] %v11525_v42  ;;  %v1668_v4 = vadd.f32 %v1540_v59, %v1138_v0  ;;  %v1667_v55 = vadd.f32 %v1539_v7, %v1137_v21 }
 0x1bc   : > { %v2879_v58 = vpop.f32.mrf.mxu0  ;;  %v2344_v29 = vadd.f32 %v10755_v50, %v2195_v43  ;;  %1041 = vperm.xlu0 %9703, %v737_v36  }
 0x1bd   : > { %v3185_v53 = vmax.f32 %v2876_v18, 0.0  ;;  %9683 = vset.pattern.permute.xlu1 %v15154_v37  ;;  %v11518_v45 = vpop.permute.xlu1 %1850  ;;  %v2345_v18 = vadd.f32 %v10741_v41, %v2196_v28  ;;  %v3308_v25 = vpack.c.bf16 %v3184_v15, %v3182_v57  ;;  %v2880_v7 = vadd.f32 %v2879_v58, %v11464_v63 }
 0x1be   : > { %15221 = vst [vmem:[#allocation97_spill] sm:$0xff] %v11518_v45  ;;  %v2069_v1 = vmul.f32 %v10706_v51, %v11518_v45  ;;  %v2070_v5 = vmul.f32 %v10718_v56, %v11518_v45  ;;  %v2881_v8 = vpop.f32.mrf.mxu0  ;;  %1372 = vperm.xlu1 %9683, %v11148_v54   ;;  %v11539_v27 = vpop.permute.xlu0 %1886  ;;  %v2472_v43 = vmax.f32 %v2344_v29, 0.0 }
 0x1bf   : > { %v3309_v6 = vpack.c.bf16 %v3185_v53, %v3183_v23  ;;  %v2882_v45 = vadd.f32 %v2881_v8, %v11461_v44  ;;  %15224 = vst [vmem:[#allocation100_spill] sm:$0xff] %v11539_v27  ;;  %v2473_v28 = vmax.f32 %v2345_v18, 0.0 }
 0x1c0   : > { %v2883_v22 = vpop.f32.mrf.mxu0  ;;  %v2198_v3 = vadd.f32 %v2070_v5, %v1668_v4  ;;  %v2197_v31 = vadd.f32 %v2069_v1, %v1667_v55  ;;  %v11542_v5 = vld [vmem:[%s10382_s30 + $0x1b0] sm:$0xff]  ;;  %9712 = vset.pattern.permute.xlu0 %v15149_v16  ;;  %v10080_v4 = vld [vmem:[%s10382_s30 + $0x148] sm:$0xff] }
 0x1c1   : > { %v2884_v20 = vadd.f32 %v2883_v22, %v11464_v63  ;;  %3625 = vmatprep.mubr.bf16.mxu1 %v3309_v6  ;;  %v3187_v15 = vmax.f32 %v2882_v45, 0.0  ;;  %1958 = vperm.xlu0 %9712, %v11542_v5  }
 0x1c2   : > { %v2885_v54 = vpop.f32.mrf.mxu0  ;;  %1376 = vperm.xlu1 %9683, %v11006_v19   ;;  %v11533_v0 = vpop.permute.xlu1 %886  ;;  %v2347_v53 = vadd.f32 %v10741_v41, %v2198_v3  ;;  %v2346_v21 = vadd.f32 %v10755_v50, %v2197_v31  ;;  %v2072_v3 = vmul.f32 %v10718_v56, %v11456_v38 }
 0x1c3   : > { %15223 = vst [vmem:[#allocation99_spill] sm:$0xff] %v11533_v0  ;;  %v2886_v59 = vadd.f32 %v2885_v54, %v11461_v44  ;;  %3626 = vmatmul.mubr.bf16.gmra.mxu1 %v3308_v25  ;;  %v3188_v19 = vmax.f32 %v2884_v20, 0.0  ;;  %v3186_v25 = vmax.f32 %v2880_v7, 0.0  ;;  %v1140_v20 = vmul.f32 %v10698_v48, %v11533_v0  ;;  %v11560_v18 = vpop.permute.xlu0 %891 }
 0x1c4   : > { %v2475_v36 = vmax.f32 %v2347_v53, 0.0  ;;  %v2474_v23 = vmax.f32 %v2346_v21, 0.0  ;;  %v1139_v22 = vmul.f32 %v10709_v52, %v11533_v0  ;;  %15226 = vst [vmem:[#allocation102_spill] sm:$0xff] %v11560_v18  ;;  %v2071_v54 = vmul.f32 %v10706_v51, %v11456_v38  ;;  %v10081_v0 = vld [vmem:[%s10382_s30 + $0x158] sm:$0xff] }
 0x1c5   : > { %v3189_v1 = vmax.f32 %v2886_v59, 0.0  ;;  %v3310_v6 = vpack.c.bf16 %v3188_v19, %v3186_v25  ;;  %v1141_v59 = vmul.f32 %v10709_v52, %v11560_v18 }
 0x1c6   : > { %9684 = vset.pattern.permute.xlu1 %v15149_v16  ;;  %v2575_v58 = vpack.c.bf16 %v2475_v36, %v2473_v28  ;;  %v2574_v8 = vpack.c.bf16 %v2474_v23, %v2472_v43  ;;  %v1142_v28 = vmul.f32 %v10698_v48, %v11560_v18 }
 0x1c7   : > { %1906 = vperm.xlu1 %9684, %v10080_v4   ;;  %v11548_v55 = vpop.permute.xlu1 %1324  ;;  %v3311_v29 = vpack.c.bf16 %v3189_v1, %v3187_v15 }
 0x1c8   : > { %15225 = vst [vmem:[#allocation101_spill] sm:$0xff] %v11548_v55  ;;  %v1541_v45 = vmul.f32 %v10693_v47, %v11548_v55  ;;  %v1542_v57 = vmul.f32 %v10701_v49, %v11548_v55  ;;  %2987 = vmatprep.mubr.bf16.mxu0 %v2575_v58  ;;  %v10082_v55 = vld [vmem:[%s10382_s30 + $0x168] sm:$0xff] }
 0x1c9   : > { %2988 = vmatmul.mubr.bf16.gmra.mxu0 %v2574_v8  ;;  %3635 = vmatprep.mubr.bf16.mxu1 %v3311_v29 }
 0x1ca   : > { %v1670_v31 = vadd.f32 %v1542_v57, %v1140_v20  ;;  %v1669_v7 = vadd.f32 %v1541_v45, %v1139_v22  ;;  %v11588_v22 = vld [vmem:[%s10382_s30 + $0x1c0] sm:$0xff] }
 0x1cb   : > { %3636 = vmatmul.mubr.bf16.gmra.mxu1 %v3310_v6  ;;  %v2889_v53 = vpop.f32.mrf.mxu0  ;;  %9685 = vset.pattern.permute.xlu1 %v15152_v14  ;;  %v11565_v21 = vpop.permute.xlu1 %1328 }
 0x1cc   : > { %15227 = vst [vmem:[#allocation103_spill] sm:$0xff] %v11565_v21  ;;  %956 = vperm.xlu1 %9685, %v11198_v40   ;;  %v1543_v36 = vmul.f32 %v10693_v47, %v11565_v21  ;;  %v1544_v43 = vmul.f32 %v10701_v49, %v11565_v21  ;;  %v2200_v15 = vadd.f32 %v2072_v3, %v1670_v31 }
 0x1cd   : > { %v2891_v23 = vpop.f32.mrf.mxu0  ;;  %v2199_v1 = vadd.f32 %v2071_v54, %v1669_v7  ;;  %v2890_v58 = vadd.f32 %v2889_v53, %v11464_v63  ;;  %1966 = vperm.xlu0 %9712, %v11588_v22  }
 0x1ce   : > { %v2892_v8 = vadd.f32 %v2891_v23, %v11461_v44  ;;  %v1672_v57 = vadd.f32 %v1544_v43, %v1142_v28  ;;  %v1671_v6 = vadd.f32 %v1543_v36, %v1141_v59  ;;  %v2349_v31 = vadd.f32 %v10741_v41, %v2200_v15 }
 0x1cf   : > { %v2893_v19 = vpop.f32.mrf.mxu0  ;;  %v2348_v23 = vadd.f32 %v10755_v50, %v2199_v1  ;;  %v3190_v21 = vmax.f32 %v2890_v58, 0.0 }
 0x1d0   : > { %v2894_v25 = vadd.f32 %v2893_v19, %v11464_v63  ;;  %9686 = vset.pattern.permute.xlu1 %v15154_v37  ;;  %v11580_v4 = vpop.permute.xlu1 %1858  ;;  %v3191_v19 = vmax.f32 %v2892_v8, 0.0  ;;  %v2477_v43 = vmax.f32 %v2349_v31, 0.0  ;;  %v2075_v31 = vmul.f32 %v10706_v51, %v11472_v39 }
 0x1d1   : > { %15228 = vst [vmem:[#allocation104_spill] sm:$0xff] %v11580_v4  ;;  %v2073_v29 = vmul.f32 %v10706_v51, %v11580_v4  ;;  %v2074_v20 = vmul.f32 %v10718_v56, %v11580_v4  ;;  %v2895_v45 = vpop.f32.mrf.mxu0  ;;  %1380 = vperm.xlu1 %9686, %v11198_v40  }
 0x1d2   : > { %v2896_v3 = vadd.f32 %v2895_v45, %v11461_v44  ;;  %v3192_v54 = vmax.f32 %v2894_v25, 0.0  ;;  %v2476_v25 = vmax.f32 %v2348_v23, 0.0 }
 0x1d3   : > { %v2202_v53 = vadd.f32 %v2074_v20, %v1672_v57  ;;  %v2201_v7 = vadd.f32 %v2073_v29, %v1671_v6  ;;  %v2076_v6 = vmul.f32 %v10718_v56, %v11472_v39 }
 0x1d4   : > { %v3193_v4 = vmax.f32 %v2896_v3, 0.0  ;;  %v3312_v15 = vpack.c.bf16 %v3192_v54, %v3190_v21 }
 0x1d5   : > { %1384 = vperm.xlu1 %9686, %v10081_v0   ;;  %v11595_v40 = vpop.permute.xlu1 %896  ;;  %v2351_v59 = vadd.f32 %v10741_v41, %v2202_v53  ;;  %v2350_v28 = vadd.f32 %v10755_v50, %v2201_v7 }
 0x1d6   : > { %15229 = vst [vmem:[#allocation105_spill] sm:$0xff] %v11595_v40  ;;  %v3313_v36 = vpack.c.bf16 %v3193_v4, %v3191_v19  ;;  %v1144_v29 = vmul.f32 %v10698_v48, %v11595_v40  ;;  %v1143_v57 = vmul.f32 %v10709_v52, %v11595_v40 }
 0x1d7   : > { %v2479_v45 = vmax.f32 %v2351_v59, 0.0  ;;  %v2478_v20 = vmax.f32 %v2350_v28, 0.0 }
 0x1d8   : > { %3645 = vmatprep.mubr.bf16.mxu1 %v3313_v36 }
 0x1d9   : > { %3646 = vmatmul.mubr.bf16.gmra.mxu1 %v3312_v15  ;;  %9687 = vset.pattern.permute.xlu1 %v15149_v16  ;;  %v2577_v1 = vpack.c.bf16 %v2479_v45, %v2477_v43  ;;  %v2576_v58 = vpack.c.bf16 %v2478_v20, %v2476_v25 }
 0x1da   : > { %1914 = vperm.xlu1 %9687, %v10081_v0   ;;  %v11600_v8 = vpop.permute.xlu1 %1332  ;;  %v11612_v0 = vpop.permute.xlu0 %901 }
 0x1db   : > { %15230 = vst [vmem:[#allocation106_spill] sm:$0xff] %v11600_v8  ;;  %v1545_v4 = vmul.f32 %v10693_v47, %v11600_v8  ;;  %v1546_v21 = vmul.f32 %v10701_v49, %v11600_v8  ;;  %2997 = vmatprep.mubr.bf16.mxu0 %v2577_v1  ;;  %15231 = vst [vmem:[#allocation107_spill] sm:$0xff] %v11612_v0  ;;  %v1145_v23 = vmul.f32 %v10709_v52, %v11612_v0 }
 0x1dc   : > { %2998 = vmatmul.mubr.bf16.gmra.mxu0 %v2576_v58  ;;  %v1146_v19 = vmul.f32 %v10698_v48, %v11612_v0 }
 0x1dd   : > { %v1674_v3 = vadd.f32 %v1546_v21, %v1144_v29  ;;  %v1673_v7 = vadd.f32 %v1545_v4, %v1143_v57 }
 0x1de   : > { %v2899_v54 = vpop.f32.mrf.mxu0  ;;  %9688 = vset.pattern.permute.xlu1 %v15152_v14  ;;  %v11617_v53 = vpop.permute.xlu1 %1336 }
 0x1df   : > { %15232 = vst [vmem:[#allocation108_spill] sm:$0xff] %v11617_v53  ;;  %966 = vperm.xlu1 %9688, %v11247_v46   ;;  %v1547_v59 = vmul.f32 %v10693_v47, %v11617_v53  ;;  %v1548_v28 = vmul.f32 %v10701_v49, %v11617_v53  ;;  %v2204_v43 = vadd.f32 %v2076_v6, %v1674_v3  ;;  %v11640_v3 = vld [vmem:[%s10382_s30 + $0x1d0] sm:$0xff] }
 0x1e0   : > { %v2901_v36 = vpop.f32.mrf.mxu0  ;;  %v2203_v45 = vadd.f32 %v2075_v31, %v1673_v7  ;;  %v2900_v25 = vadd.f32 %v2899_v54, %v11464_v63  ;;  %1974 = vperm.xlu0 %9712, %v11640_v3  }
 0x1e1   : > { %v2902_v20 = vadd.f32 %v2901_v36, %v11461_v44  ;;  %v1676_v57 = vadd.f32 %v1548_v28, %v1146_v19  ;;  %v1675_v6 = vadd.f32 %v1547_v59, %v1145_v23  ;;  %v2353_v54 = vadd.f32 %v10741_v41, %v2204_v43 }
 0x1e2   : > { %v2903_v15 = vpop.f32.mrf.mxu0  ;;  %v2352_v53 = vadd.f32 %v10755_v50, %v2203_v45  ;;  %v3194_v8 = vmax.f32 %v2900_v25, 0.0 }
 0x1e3   : > { %v2904_v1 = vadd.f32 %v2903_v15, %v11464_v63  ;;  %9689 = vset.pattern.permute.xlu1 %v15154_v37  ;;  %v11632_v58 = vpop.permute.xlu1 %1866  ;;  %v2481_v28 = vmax.f32 %v2353_v54, 0.0 }
 0x1e4   : > { %15233 = vst [vmem:[#allocation109_spill] sm:$0xff] %v11632_v58  ;;  %v2077_v29 = vmul.f32 %v10706_v51, %v11632_v58  ;;  %v2078_v4 = vmul.f32 %v10718_v56, %v11632_v58  ;;  %v2905_v21 = vpop.f32.mrf.mxu0  ;;  %1388 = vperm.xlu1 %9689, %v11247_v46   ;;  %v3195_v58 = vmax.f32 %v2902_v20, 0.0 }
 0x1e5   : > { %v2906_v31 = vadd.f32 %v2905_v21, %v11461_v44  ;;  %v3196_v7 = vmax.f32 %v2904_v1, 0.0  ;;  %v2480_v1 = vmax.f32 %v2352_v53, 0.0 }
 0x1e6   : > { %v2206_v36 = vadd.f32 %v2078_v4, %v1676_v57  ;;  %v2205_v15 = vadd.f32 %v2077_v29, %v1675_v6  ;;  %v2079_v6 = vmul.f32 %v10706_v51, %v11495_v61 }
 0x1e7   : > { %v3197_v40 = vmax.f32 %v2906_v31, 0.0  ;;  %v3314_v43 = vpack.c.bf16 %v3196_v7, %v3194_v8 }
 0x1e8   : > { %1392 = vperm.xlu1 %9689, %v10082_v55   ;;  %v11647_v46 = vpop.permute.xlu1 %906  ;;  %v2355_v23 = vadd.f32 %v10741_v41, %v2206_v36  ;;  %v2354_v19 = vadd.f32 %v10755_v50, %v2205_v15 }
 0x1e9   : > { %15234 = vst [vmem:[#allocation110_spill] sm:$0xff] %v11647_v46  ;;  %v3315_v59 = vpack.c.bf16 %v3197_v40, %v3195_v58  ;;  %v1148_v29 = vmul.f32 %v10698_v48, %v11647_v46  ;;  %v1147_v53 = vmul.f32 %v10709_v52, %v11647_v46  ;;  %v2080_v58 = vmul.f32 %v10718_v56, %v11495_v61  ;;  %v10083_v61 = vld [vmem:[%s10382_s30 + $0x178] sm:$0xff] }
 0x1ea   : > { %v2483_v21 = vmax.f32 %v2355_v23, 0.0  ;;  %v2482_v4 = vmax.f32 %v2354_v19, 0.0 }
 0x1eb   : > { %3655 = vmatprep.mubr.bf16.mxu1 %v3315_v59 }
 0x1ec   : > { %3656 = vmatmul.mubr.bf16.gmra.mxu1 %v3314_v43  ;;  %9690 = vset.pattern.permute.xlu1 %v15149_v16  ;;  %v2579_v45 = vpack.c.bf16 %v2483_v21, %v2481_v28  ;;  %v2578_v25 = vpack.c.bf16 %v2482_v4, %v2480_v1 }
 0x1ed   : > { %1922 = vperm.xlu1 %9690, %v10082_v55   ;;  %v11652_v20 = vpop.permute.xlu1 %1340  ;;  %v11664_v55 = vpop.permute.xlu0 %911 }
 0x1ee   : > { %15235 = vst [vmem:[#allocation111_spill] sm:$0xff] %v11652_v20  ;;  %v1549_v40 = vmul.f32 %v10693_v47, %v11652_v20  ;;  %v1550_v8 = vmul.f32 %v10701_v49, %v11652_v20  ;;  %3007 = vmatprep.mubr.bf16.mxu0 %v2579_v45  ;;  %15236 = vst [vmem:[#allocation112_spill] sm:$0xff] %v11664_v55  ;;  %v1149_v36 = vmul.f32 %v10709_v52, %v11664_v55 }
 0x1ef   : > { %3008 = vmatmul.mubr.bf16.gmra.mxu0 %v2578_v25  ;;  %v1150_v15 = vmul.f32 %v10698_v48, %v11664_v55 }
 0x1f0   : > { %v1678_v57 = vadd.f32 %v1550_v8, %v1148_v29  ;;  %v1677_v7 = vadd.f32 %v1549_v40, %v1147_v53 }
 0x1f1   : > { %v2909_v31 = vpop.f32.mrf.mxu0  ;;  %9691 = vset.pattern.permute.xlu1 %v15152_v14  ;;  %v11669_v54 = vpop.permute.xlu1 %1344 }
 0x1f2   : > { %15237 = vst [vmem:[#allocation113_spill] sm:$0xff] %v11669_v54  ;;  %976 = vperm.xlu1 %9691, %v11295_v12   ;;  %v1551_v23 = vmul.f32 %v10693_v47, %v11669_v54  ;;  %v1552_v19 = vmul.f32 %v10701_v49, %v11669_v54  ;;  %v2208_v28 = vadd.f32 %v2080_v58, %v1678_v57  ;;  %v738_v57 = vld [vmem:[%s10382_s30 + $0x1e0] sm:$0xff] }
 0x1f3   : > { %v2911_v59 = vpop.f32.mrf.mxu0  ;;  %v2207_v21 = vadd.f32 %v2079_v6, %v1677_v7  ;;  %v2910_v1 = vadd.f32 %v2909_v31, %v11464_v63  ;;  %1982 = vperm.xlu0 %9712, %v738_v57   ;;  %v2083_v57 = vmul.f32 %v10706_v51, %v11525_v42 }
 0x1f4   : > { %v2912_v4 = vadd.f32 %v2911_v59, %v11461_v44  ;;  %v1680_v53 = vadd.f32 %v1552_v19, %v1150_v15  ;;  %v1679_v58 = vadd.f32 %v1551_v23, %v1149_v36  ;;  %v2357_v31 = vadd.f32 %v10741_v41, %v2208_v28 }
 0x1f5   : > { %v2913_v43 = vpop.f32.mrf.mxu0  ;;  %v2356_v54 = vadd.f32 %v10755_v50, %v2207_v21 }
 0x1f6   : > { %v2914_v45 = vadd.f32 %v2913_v43, %v11464_v63  ;;  %9693 = vset.pattern.permute.xlu1 %v15154_v37  ;;  %v11684_v25 = vpop.permute.xlu1 %1874  ;;  %v3199_v46 = vmax.f32 %v2912_v4, 0.0  ;;  %v2485_v23 = vmax.f32 %v2357_v31, 0.0  ;;  %v11701_v4 = vpop.permute.xlu0 %921 }
 0x1f7   : > { %15238 = vst [vmem:[#allocation114_spill] sm:$0xff] %v11684_v25  ;;  %v2081_v29 = vmul.f32 %v10706_v51, %v11684_v25  ;;  %v2082_v40 = vmul.f32 %v10718_v56, %v11684_v25  ;;  %v2915_v8 = vpop.f32.mrf.mxu0  ;;  %1396 = vperm.xlu1 %9693, %v11295_v12   ;;  %v3198_v25 = vmax.f32 %v2910_v1, 0.0  ;;  %9717 = vset.pattern.permute.xlu0 %v15152_v14  ;;  %15240 = vst [vmem:[#allocation116_spill] sm:$0xff] %v11701_v4 }
 0x1f8   : > { %v2916_v6 = vadd.f32 %v2915_v8, %v11461_v44  ;;  %v3200_v7 = vmax.f32 %v2914_v45, 0.0  ;;  %v2484_v45 = vmax.f32 %v2356_v54, 0.0  ;;  %v739_v8 = vld [vmem:[%s10382_s30 + $0x1e8] sm:$0xff] }
 0x1f9   : > { %v2210_v59 = vadd.f32 %v2082_v40, %v1680_v53  ;;  %v2209_v43 = vadd.f32 %v2081_v29, %v1679_v58  ;;  %1051 = vperm.xlu0 %9717, %v739_v8  }
 0x1fa   : > { %v3201_v20 = vmax.f32 %v2916_v6, 0.0  ;;  %v3316_v19 = vpack.c.bf16 %v3200_v7, %v3198_v25  ;;  %v11715_v53 = vpop.permute.xlu0 %931 }
 0x1fb   : > { %1400 = vperm.xlu1 %9693, %v10083_v61   ;;  %v11696_v55 = vpop.permute.xlu1 %916  ;;  %v2359_v12 = vadd.f32 %v10741_v41, %v2210_v59  ;;  %v2358_v36 = vadd.f32 %v10755_v50, %v2209_v43  ;;  %15242 = vst [vmem:[#allocation118_spill] sm:$0xff] %v11715_v53  ;;  %v1153_v59 = vmul.f32 %v10709_v52, %v11701_v4 }
 0x1fc   : > { %15239 = vst [vmem:[#allocation115_spill] sm:$0xff] %v11696_v55  ;;  %v3317_v15 = vpack.c.bf16 %v3201_v20, %v3199_v46  ;;  %v1152_v46 = vmul.f32 %v10698_v48, %v11696_v55  ;;  %v1151_v25 = vmul.f32 %v10709_v52, %v11696_v55  ;;  %v1154_v43 = vmul.f32 %v10698_v48, %v11701_v4 }
 0x1fd   : > { %v2487_v28 = vmax.f32 %v2359_v12, 0.0  ;;  %v2486_v21 = vmax.f32 %v2358_v36, 0.0 }
 0x1fe   : > { %3665 = vmatprep.mubr.bf16.mxu1 %v3317_v15 }
 0x1ff   : > { %3666 = vmatmul.mubr.bf16.gmra.mxu1 %v3316_v19  ;;  %9694 = vset.pattern.permute.xlu1 %v15149_v16  ;;  %v2581_v1 = vpack.c.bf16 %v2487_v28, %v2485_v23  ;;  %v2580_v29 = vpack.c.bf16 %v2486_v21, %v2484_v45  ;;  %v11733_v28 = vpop.permute.xlu0 %941 }
 0x200   : > { %1930 = vperm.xlu1 %9694, %v10083_v61   ;;  %v11704_v40 = vpop.permute.xlu1 %1348  ;;  %v2084_v61 = vmul.f32 %v10718_v56, %v11525_v42 }
 0x201   : > { %15241 = vst [vmem:[#allocation117_spill] sm:$0xff] %v11704_v40  ;;  %v1553_v20 = vmul.f32 %v10693_v47, %v11704_v40  ;;  %v1554_v54 = vmul.f32 %v10701_v49, %v11704_v40  ;;  %3017 = vmatprep.mubr.bf16.mxu0 %v2581_v1 }
 0x202   : > { %3018 = vmatmul.mubr.bf16.gmra.mxu0 %v2580_v29 }
 0x203   : > { %v1682_v58 = vadd.f32 %v1554_v54, %v1152_v46  ;;  %v1681_v7 = vadd.f32 %v1553_v20, %v1151_v25 }
 0x204   : > { %v2919_v6 = vpop.f32.mrf.mxu0  ;;  %9695 = vset.pattern.permute.xlu1 %v15152_v14  ;;  %v11722_v31 = vpop.permute.xlu1 %1352 }
 0x205   : > { %15243 = vst [vmem:[#allocation119_spill] sm:$0xff] %v11722_v31  ;;  %986 = vperm.xlu1 %9695, %v11336_v26   ;;  %v1555_v12 = vmul.f32 %v10693_v47, %v11722_v31  ;;  %v1556_v36 = vmul.f32 %v10701_v49, %v11722_v31  ;;  %v2212_v23 = vadd.f32 %v2084_v61, %v1682_v58  ;;  %v741_v31 = vld [vmem:[%s10382_s30 + $0x1f8] sm:$0xff] }
 0x206   : > { %v2921_v15 = vpop.f32.mrf.mxu0  ;;  %v2211_v45 = vadd.f32 %v2083_v57, %v1681_v7  ;;  %v2920_v21 = vadd.f32 %v2919_v6, %v11464_v63  ;;  %1061 = vperm.xlu0 %9717, %v741_v31  }
 0x207   : > { %v2922_v1 = vadd.f32 %v2921_v15, %v11461_v44  ;;  %v1684_v25 = vadd.f32 %v1556_v36, %v1154_v43  ;;  %v1683_v61 = vadd.f32 %v1555_v12, %v1153_v59  ;;  %v2361_v57 = vadd.f32 %v10741_v41, %v2212_v23  ;;  %v11755_v43 = vpop.permute.xlu0 %951 }
 0x208   : > { %v2923_v19 = vpop.f32.mrf.mxu0  ;;  %v3202_v4 = vmax.f32 %v2920_v21, 0.0 }
 0x209   : > { %v2924_v29 = vadd.f32 %v2923_v19, %v11464_v63  ;;  %9696 = vset.pattern.permute.xlu1 %v15154_v37  ;;  %v11739_v8 = vpop.permute.xlu1 %1882  ;;  %v2360_v19 = vadd.f32 %v10755_v50, %v2211_v45  ;;  %v3203_v42 = vmax.f32 %v2922_v1, 0.0  ;;  %v2489_v36 = vmax.f32 %v2361_v57, 0.0 }
 0x20a   : > { %15244 = vst [vmem:[#allocation120_spill] sm:$0xff] %v11739_v8  ;;  %v2085_v46 = vmul.f32 %v10706_v51, %v11739_v8  ;;  %v2086_v20 = vmul.f32 %v10718_v56, %v11739_v8  ;;  %v2925_v54 = vpop.f32.mrf.mxu0  ;;  %1404 = vperm.xlu1 %9696, %v11336_v26   ;;  %9721 = vset.pattern.permute.xlu0 %v15149_v16 }
 0x20b   : > { %v2926_v58 = vadd.f32 %v2925_v54, %v11461_v44  ;;  %v3204_v6 = vmax.f32 %v2924_v29, 0.0  ;;  %v2488_v29 = vmax.f32 %v2360_v19, 0.0  ;;  %v11769_v54 = vpop.permute.xlu0 %961  ;;  %v1158_v19 = vmul.f32 %v10698_v48, %v11715_v53 }
 0x20c   : > { %v2214_v7 = vadd.f32 %v2086_v20, %v1684_v25  ;;  %v2213_v15 = vadd.f32 %v2085_v46, %v1683_v61  ;;  %v740_v46 = vld [vmem:[%s10382_s30 + $0x1f0] sm:$0xff] }
 0x20d   : > { %v3205_v55 = vmax.f32 %v2926_v58, 0.0  ;;  %v3318_v23 = vpack.c.bf16 %v3204_v6, %v3202_v4  ;;  %1990 = vperm.xlu0 %9721, %v740_v46   ;;  %v2087_v58 = vmul.f32 %v10706_v51, %v11539_v27 }
 0x20e   : > { %1408 = vperm.xlu1 %9696, %v11360_v62   ;;  %v11751_v8 = vpop.permute.xlu1 %926  ;;  %v2363_v26 = vadd.f32 %v10741_v41, %v2214_v7  ;;  %v2362_v59 = vadd.f32 %v10755_v50, %v2213_v15  ;;  %v1157_v15 = vmul.f32 %v10709_v52, %v11715_v53 }
 0x20f   : > { %15245 = vst [vmem:[#allocation121_spill] sm:$0xff] %v11751_v8  ;;  %v3319_v12 = vpack.c.bf16 %v3205_v55, %v3203_v42  ;;  %v1156_v42 = vmul.f32 %v10698_v48, %v11751_v8  ;;  %v1155_v25 = vmul.f32 %v10709_v52, %v11751_v8 }
 0x210   : > { %v2491_v45 = vmax.f32 %v2363_v26, 0.0  ;;  %v2490_v1 = vmax.f32 %v2362_v59, 0.0 }
 0x211   : > { %3675 = vmatprep.mubr.bf16.mxu1 %v3319_v12 }
 0x212   : > { %3676 = vmatmul.mubr.bf16.gmra.mxu1 %v3318_v23  ;;  %9697 = vset.pattern.permute.xlu1 %v15149_v16  ;;  %v2583_v31 = vpack.c.bf16 %v2491_v45, %v2489_v36  ;;  %v2582_v21 = vpack.c.bf16 %v2490_v1, %v2488_v29  ;;  %v11789_v36 = vpop.permute.xlu0 %971 }
 0x213   : > { %1938 = vperm.xlu1 %9697, %v11360_v62   ;;  %v11761_v20 = vpop.permute.xlu1 %1356  ;;  %v2088_v62 = vmul.f32 %v10718_v56, %v11539_v27 }
 0x214   : > { %15246 = vst [vmem:[#allocation122_spill] sm:$0xff] %v11761_v20  ;;  %v1557_v55 = vmul.f32 %v10693_v47, %v11761_v20  ;;  %v1558_v4 = vmul.f32 %v10701_v49, %v11761_v20  ;;  %3027 = vmatprep.mubr.bf16.mxu0 %v2583_v31 }
 0x215   : > { %3028 = vmatmul.mubr.bf16.gmra.mxu0 %v2582_v21 }
 0x216   : > { %v1686_v61 = vadd.f32 %v1558_v4, %v1156_v42  ;;  %v1685_v7 = vadd.f32 %v1557_v55, %v1155_v25  ;;  %v10084_v4 = vld [vmem:[%s10382_s30 + $0x190] sm:$0xff]  ;;  %v11805_v53 = vpop.permute.xlu0 %981 }
 0x217   : > { %v2929_v57 = vpop.f32.mrf.mxu0  ;;  %9698 = vset.pattern.permute.xlu1 %v15152_v14  ;;  %v11778_v6 = vpop.permute.xlu1 %1360 }
 0x218   : > { %15247 = vst [vmem:[#allocation123_spill] sm:$0xff] %v11778_v6  ;;  %996 = vperm.xlu1 %9698, %v11347_v60   ;;  %v1559_v26 = vmul.f32 %v10693_v47, %v11778_v6  ;;  %v1560_v59 = vmul.f32 %v10701_v49, %v11778_v6  ;;  %v2216_v23 = vadd.f32 %v2088_v62, %v1686_v61 }
 0x219   : > { %v2931_v12 = vpop.f32.mrf.mxu0  ;;  %v2215_v29 = vadd.f32 %v2087_v58, %v1685_v7  ;;  %v2930_v60 = vadd.f32 %v2929_v57, %v11464_v63 }
 0x21a   : > { %v2932_v1 = vadd.f32 %v2931_v12, %v11461_v44  ;;  %v1688_v25 = vadd.f32 %v1560_v59, %v1158_v19  ;;  %v1687_v62 = vadd.f32 %v1559_v26, %v1157_v15  ;;  %v2365_v58 = vadd.f32 %v10741_v41, %v2216_v23 }
 0x21b   : > { %v2933_v45 = vpop.f32.mrf.mxu0  ;;  %v3206_v8 = vmax.f32 %v2930_v60, 0.0 }
 0x21c   : > { %v2934_v31 = vadd.f32 %v2933_v45, %v11464_v63  ;;  %9699 = vset.pattern.permute.xlu1 %v15154_v37  ;;  %v11795_v21 = vpop.permute.xlu1 %1890  ;;  %v2364_v45 = vadd.f32 %v10755_v50, %v2215_v29  ;;  %v3207_v6 = vmax.f32 %v2932_v1, 0.0  ;;  %v2493_v59 = vmax.f32 %v2365_v58, 0.0 }
 0x21d   : > { %15248 = vst [vmem:[#allocation124_spill] sm:$0xff] %v11795_v21  ;;  %v2089_v46 = vmul.f32 %v10706_v51, %v11795_v21  ;;  %v2090_v42 = vmul.f32 %v10718_v56, %v11795_v21  ;;  %v2935_v55 = vpop.f32.mrf.mxu0  ;;  %1412 = vperm.xlu1 %9699, %v10084_v4   ;;  %v15250_v1 = vsub.s32 4, %v10447_v24  ;;  %v5682_v58 = vrot.slane %v10464_v30, %v10670_v34 }
 0x21e   : > { %v2936_v61 = vadd.f32 %v2935_v55, %v11461_v44  ;;  %v3208_v57 = vmax.f32 %v2934_v31, 0.0 }
 0x21f   : > { %v2218_v7 = vadd.f32 %v2090_v42, %v1688_v25  ;;  %v2217_v12 = vadd.f32 %v2089_v46, %v1687_v62  ;;  %v2492_v46 = vmax.f32 %v2364_v45, 0.0  ;;  %v5686_v55 = vrot.slane %v10464_v30, %v15250_v1 }
 0x220   : > { %v3209_v27 = vmax.f32 %v2936_v61, 0.0  ;;  %v3320_v23 = vpack.c.bf16 %v3208_v57, %v3206_v8  ;;  %v15253_v61 = vsub.s32 6, %v10447_v24  ;;  %v5828_v57 = vrot.slane %v10464_v30, %v10471_v32 }
 0x221   : > { %1416 = vperm.xlu1 %9699, %v11409_v9   ;;  %v11808_v21 = vpop.permute.xlu1 %936  ;;  %v2367_v15 = vadd.f32 %v10741_v41, %v2218_v7  ;;  %v2366_v19 = vadd.f32 %v10755_v50, %v2217_v12  ;;  %v6102_v7 = vrot.slane %v10464_v30, %v10667_v33 }
 0x222   : > { %15249 = vst [vmem:[#allocation125_spill] sm:$0xff] %v11808_v21  ;;  %v3321_v26 = vpack.c.bf16 %v3209_v27, %v3207_v6  ;;  %v11819_v27 = vpop.permute.xlu0 %1894  ;;  %v1159_v8 = vmul.f32 %v10709_v52, %v11808_v21  ;;  %v1160_v6 = vmul.f32 %v10698_v48, %v11808_v21  ;;  %v11857_v1 = vrot.slane %v5828_v57, %v10471_v32 }
 0x223   : > { %v2495_v31 = vmax.f32 %v2367_v15, 0.0  ;;  %v2494_v42 = vmax.f32 %v2366_v19, 0.0  ;;  %15252 = vst [vmem:[#allocation127_spill] sm:$0xff] %v11819_v27  ;;  %v2091_v15 = vmul.f32 %v10706_v51, %v11819_v27  ;;  %v2092_v24 = vmul.f32 %v10718_v56, %v11819_v27 }
 0x224   : > { %3685 = vmatprep.mubr.bf16.mxu1 %v3321_v26 }
 0x225   : > { %3686 = vmatmul.mubr.bf16.gmra.mxu1 %v3320_v23  ;;  %9700 = vset.pattern.permute.xlu1 %v15149_v16  ;;  %v2585_v29 = vpack.c.bf16 %v2495_v31, %v2493_v59  ;;  %v2584_v60 = vpack.c.bf16 %v2494_v42, %v2492_v46  ;;  %v11844_v59 = vrot.slane %v5686_v55, %v10670_v34  ;;  %v10085_v31 = vld [vmem:[%s10382_s30 + $0x1a0] sm:$0xff] }
 0x226   : > { %1946 = vperm.xlu1 %9700, %v11409_v9   ;;  %v11817_v4 = vpop.permute.xlu1 %1364  ;;  %v6106_v9 = vrot.slane %v10464_v30, %v15253_v61  ;;  %v1161_v23 = vmul.f32 %v10709_v52, %v11733_v28  ;;  %v11851_v46 = vrot.slane %v5682_v58, %v10670_v34  ;;  %v1162_v42 = vmul.f32 %v10698_v48, %v11733_v28 }
 0x227   : > { %15251 = vst [vmem:[#allocation126_spill] sm:$0xff] %v11817_v4  ;;  %v1561_v25 = vmul.f32 %v10693_v47, %v11817_v4  ;;  %v1562_v62 = vmul.f32 %v10701_v49, %v11817_v4  ;;  %3037 = vmatprep.mubr.bf16.mxu0 %v2585_v29  ;;  %15254 = vst [vmem:[#allocation128_spill] sm:$0xff] %v11844_v59  ;;  %v5776_v61 = vmul.f32 %v11844_v59, %v11733_v28 }
 0x228   : > { %3038 = vmatmul.mubr.bf16.gmra.mxu0 %v2584_v60  ;;  %15255 = vst [vmem:[#allocation129_spill] sm:$0xff] %v11851_v46 }
 0x229   : > { %v1689_v12 = vadd.f32 %v1561_v25, %v1159_v8  ;;  %v1690_v45 = vadd.f32 %v1562_v62, %v1160_v6  ;;  %v11860_v6 = vrot.slane %v6102_v7, %v10667_v33  ;;  %v11863_v25 = vrot.slane %v6106_v9, %v10667_v33 }
 0x22a   : > { %v2939_v19 = vpop.f32.mrf.mxu0  ;;  %9701 = vset.pattern.permute.xlu1 %v15152_v14  ;;  %v1369_v26 = vpop.permute.xlu1 %1368  ;;  %v5775_v62 = vmul.f32 %v11851_v46, %v11733_v28 }
 0x22b   : > { %v1563_v30 = vmul.f32 %v10693_v47, %v1369_v26  ;;  %1006 = vperm.xlu1 %9701, %v10085_v31   ;;  %v1564_v29 = vmul.f32 %v10701_v49, %v1369_v26  ;;  %v2219_v55 = vadd.f32 %v2091_v15, %v1689_v12  ;;  %v2220_v8 = vadd.f32 %v2092_v24, %v1690_v45 }
 0x22c   : > { %v2941_v60 = vpop.f32.mrf.mxu0  ;;  %v5921_v27 = vmul.f32 %v11857_v1, %v1369_v26  ;;  %v5922_v32 = vmul.f32 %v10480_v35, %v1369_v26  ;;  %v2940_v57 = vadd.f32 %v2939_v19, %v11464_v63 }
 0x22d   : > { %v2942_v12 = vadd.f32 %v2941_v60, %v11461_v44  ;;  %v1691_v9 = vadd.f32 %v1563_v30, %v1161_v23  ;;  %v1692_v15 = vadd.f32 %v1564_v29, %v1162_v42  ;;  %v2369_v19 = vadd.f32 %v10741_v41, %v2220_v8 }
 0x22e   : > { %v2943_v58 = vpop.f32.mrf.mxu0  ;;  %v2368_v60 = vadd.f32 %v10755_v50, %v2219_v55  ;;  %v6049_v30 = vadd.f32 %v5921_v27, %v5775_v62  ;;  %v6050_v42 = vadd.f32 %v5922_v32, %v5776_v61  ;;  %v3210_v55 = vmax.f32 %v2940_v57, 0.0 }
 0x22f   : > { %v2944_v7 = vadd.f32 %v2943_v58, %v11464_v63  ;;  %9702 = vset.pattern.permute.xlu1 %v15154_v37  ;;  %v1899_v45 = vpop.permute.xlu1 %1898  ;;  %v3211_v29 = vmax.f32 %v2942_v12, 0.0 }
 0x230   : > { %v2093_v24 = vmul.f32 %v10706_v51, %v1899_v45  ;;  %v2094_v28 = vmul.f32 %v10718_v56, %v1899_v45  ;;  %v2945_v21 = vpop.f32.mrf.mxu0  ;;  %1420 = vperm.xlu1 %9702, %v10085_v31   ;;  %v6195_v4 = vmul.f32 %v11860_v6, %v1899_v45  ;;  %v6196_v58 = vmul.f32 %v11863_v25, %v1899_v45 }
 0x231   : > { %v2946_v26 = vadd.f32 %v2945_v21, %v11461_v44  ;;  %v3212_v40 = vmax.f32 %v2944_v7, 0.0  ;;  %v2497_v45 = vmax.f32 %v2369_v19, 0.0  ;;  %v2496_v27 = vmax.f32 %v2368_v60, 0.0  ;;  %v1903_v7 = vpop.permute.xlu0 %1902 }
 0x232   : > { %v2221_v20 = vadd.f32 %v2093_v24, %v1691_v9  ;;  %v2222_v23 = vadd.f32 %v2094_v28, %v1692_v15  ;;  %v11885_v38 = vadd.f32 %v6195_v4, %v6049_v30  ;;  %v11887_v8 = vadd.f32 %v6196_v58, %v6050_v42 }
 0x233   : > { %v3213_v39 = vmax.f32 %v2946_v26, 0.0  ;;  %v3322_v61 = vpack.c.bf16 %v3212_v40, %v3210_v55  ;;  %v2095_v19 = vmul.f32 %v10706_v51, %v1903_v7  ;;  %v2096_v60 = vmul.f32 %v10718_v56, %v1903_v7 }
 0x234   : > { %1424 = vperm.xlu1 %9702, %v11479_v2   ;;  %v947_v31 = vpop.permute.xlu1 %946  ;;  %v2371_v0 = vadd.f32 %v10741_v41, %v2222_v23  ;;  %v2370_v21 = vadd.f32 %v10755_v50, %v2221_v20  ;;  %15256 = vst [vmem:[#allocation130_spill] sm:$0xff] %v11885_v38  ;;  %15257 = vst [vmem:[#allocation131_spill] sm:$0xff] %v11887_v8  ;;  %v6197_v58 = vmul.f32 %v11860_v6, %v1903_v7 }
 0x235   : > { %v3323_v9 = vpack.c.bf16 %v3213_v39, %v3211_v29  ;;  %v1163_v32 = vmul.f32 %v10709_v52, %v947_v31  ;;  %v1164_v20 = vmul.f32 %v10698_v48, %v947_v31  ;;  %v5777_v4 = vmul.f32 %v11851_v46, %v947_v31 }
 0x236   : > { %v2499_v15 = vmax.f32 %v2371_v0, 0.0  ;;  %v2498_v62 = vmax.f32 %v2370_v21, 0.0  ;;  %v5778_v57 = vmul.f32 %v11844_v59, %v947_v31  ;;  %v1165_v21 = vmul.f32 %v10709_v52, %v11755_v43 }
 0x237   : > { %3695 = vmatprep.mubr.bf16.mxu1 %v3323_v9 }
 0x238   : > { %9704 = vset.pattern.permute.xlu1 %v15149_v16  ;;  %v2587_v12 = vpack.c.bf16 %v2499_v15, %v2497_v45  ;;  %v2586_v24 = vpack.c.bf16 %v2498_v62, %v2496_v27  ;;  %3696 = vmatmul.mubr.bf16.gmra.mxu1 %v3322_v61  ;;  %v1166_v45 = vmul.f32 %v10698_v48, %v11755_v43 }
 0x239   : > { %1954 = vperm.xlu1 %9704, %v11479_v2   ;;  %v1373_v39 = vpop.permute.xlu1 %1372  ;;  %v5779_v61 = vmul.f32 %v11851_v46, %v11755_v43 }
 0x23a   : > { %v1565_v0 = vmul.f32 %v10693_v47, %v1373_v39  ;;  %v1566_v40 = vmul.f32 %v10701_v49, %v1373_v39  ;;  %v5923_v28 = vmul.f32 %v11857_v1, %v1373_v39  ;;  %v5924_v26 = vmul.f32 %v10480_v35, %v1373_v39  ;;  %3047 = vmatprep.mubr.bf16.mxu0 %v2587_v12 }
 0x23b   : > { %3048 = vmatmul.mubr.bf16.gmra.mxu0 %v2586_v24  ;;  %v6198_v24 = vmul.f32 %v11863_v25, %v1903_v7 }
 0x23c   : > { %v1693_v23 = vadd.f32 %v1565_v0, %v1163_v32  ;;  %v1694_v30 = vadd.f32 %v1566_v40, %v1164_v20  ;;  %v6051_v2 = vadd.f32 %v5923_v28, %v5777_v4  ;;  %v6052_v42 = vadd.f32 %v5924_v26, %v5778_v57 }
 0x23d   : > { %v2949_v29 = vpop.f32.mrf.mxu0  ;;  %9705 = vset.pattern.permute.xlu1 %v15152_v14  ;;  %v1377_v31 = vpop.permute.xlu1 %1376  ;;  %v5780_v20 = vmul.f32 %v11844_v59, %v11755_v43 }
 0x23e   : > { %v1567_v55 = vmul.f32 %v10693_v47, %v1377_v31  ;;  %1016 = vperm.xlu1 %9705, %v11542_v5   ;;  %v2224_v9 = vadd.f32 %v2096_v60, %v1694_v30  ;;  %v1568_v15 = vmul.f32 %v10701_v49, %v1377_v31  ;;  %v11910_v62 = vadd.f32 %v6197_v58, %v6051_v2 }
 0x23f   : > { %v2951_v27 = vpop.f32.mrf.mxu0  ;;  %v2223_v32 = vadd.f32 %v2095_v19, %v1693_v23  ;;  %v5925_v12 = vmul.f32 %v11857_v1, %v1377_v31  ;;  %v2950_v4 = vadd.f32 %v2949_v29, %v11464_v63  ;;  %v5926_v0 = vmul.f32 %v10480_v35, %v1377_v31 }
 0x240   : > { %15258 = vst [vmem:[#allocation132_spill] sm:$0xff] %v11910_v62  ;;  %v1695_v39 = vadd.f32 %v1567_v55, %v1165_v21  ;;  %v2952_v40 = vadd.f32 %v2951_v27, %v11461_v44  ;;  %v1696_v19 = vadd.f32 %v1568_v15, %v1166_v45  ;;  %v2373_v43 = vadd.f32 %v10741_v41, %v2224_v9  ;;  %v9819_v55 = vld [vmem:[%s14849_s7 + $0x70] ss:$8 sps:$4 sm:$0xff]   ;;  %v9821_v45 = vld [vmem:[%s14849_s7 + $0x74] ss:$8 sps:$4 sm:$0xff]  }
 0x241   : > { %v2953_v57 = vpop.f32.mrf.mxu0  ;;  %v2372_v30 = vadd.f32 %v10755_v50, %v2223_v32  ;;  %v11929_v2 = vadd.f32 %v6198_v24, %v6052_v42  ;;  %v6053_v29 = vadd.f32 %v5925_v12, %v5779_v61  ;;  %v6054_v27 = vadd.f32 %v5926_v0, %v5780_v20  ;;  %v10086_v32 = vld [vmem:[%s10382_s30 + $0x1b8] sm:$0xff]  ;;  %4341 = vmatprep.subr.bf16.mxu0 %v9821_v45 }
 0x242   : > { %v2954_v28 = vadd.f32 %v2953_v57, %v11464_v63  ;;  %9706 = vset.pattern.permute.xlu1 %v15154_v37  ;;  %v1907_v26 = vpop.permute.xlu1 %1906  ;;  %v3215_v57 = vmax.f32 %v2952_v40, 0.0  ;;  %4342 = vmatpush1.bf16.msra.mxu0 %v9819_v55 }
 0x243   : > { %v2097_v60 = vmul.f32 %v10706_v51, %v1907_v26  ;;  %v2098_v7 = vmul.f32 %v10718_v56, %v1907_v26  ;;  %v2955_v58 = vpop.f32.mrf.mxu0  ;;  %1428 = vperm.xlu1 %9706, %v11542_v5   ;;  %15259 = vst [vmem:[#allocation133_spill] sm:$0xff] %v11929_v2  ;;  %v6199_v9 = vmul.f32 %v11860_v6, %v1907_v26 }
 0x244   : > { %v2956_v23 = vadd.f32 %v2955_v58, %v11461_v44  ;;  %v3216_v5 = vmax.f32 %v2954_v28, 0.0  ;;  %v6200_v24 = vmul.f32 %v11863_v25, %v1907_v26 }
 0x245   : > { %v2225_v31 = vadd.f32 %v2097_v60, %v1695_v39  ;;  %v2226_v21 = vadd.f32 %v2098_v7, %v1696_v19  ;;  %v3214_v39 = vmax.f32 %v2950_v4, 0.0  ;;  %v2501_v19 = vmax.f32 %v2373_v43, 0.0 }
 0x246   : > { %v3217_v15 = vmax.f32 %v2956_v23, 0.0  ;;  %v2500_v60 = vmax.f32 %v2372_v30, 0.0  ;;  %v11942_v23 = vadd.f32 %v6199_v9, %v6053_v29  ;;  %v11944_v0 = vadd.f32 %v6200_v24, %v6054_v27 }
 0x247   : > { %1432 = vperm.xlu1 %9706, %v10086_v32   ;;  %v957_v42 = vpop.permute.xlu1 %956  ;;  %v2375_v61 = vadd.f32 %v10741_v41, %v2226_v21  ;;  %v2374_v12 = vadd.f32 %v10755_v50, %v2225_v31  ;;  %v3324_v20 = vpack.c.bf16 %v3216_v5, %v3214_v39  ;;  %v1911_v31 = vpop.permute.xlu0 %1910 }
 0x248   : > { %v3325_v28 = vpack.c.bf16 %v3217_v15, %v3215_v57  ;;  %15260 = vst [vmem:[#allocation134_spill] sm:$0xff] %v11942_v23  ;;  %15261 = vst [vmem:[#allocation135_spill] sm:$0xff] %v11944_v0  ;;  %v1168_v26 = vmul.f32 %v10698_v48, %v957_v42  ;;  %v5781_v4 = vmul.f32 %v11851_v46, %v957_v42  ;;  %v9822_v0 = vld [vmem:[%s14849_s7 + $0x60] ss:$8 sps:$4 sm:$0xff]  }
 0x249   : > { %v2503_v7 = vmax.f32 %v2375_v61, 0.0  ;;  %v2502_v58 = vmax.f32 %v2374_v12, 0.0  ;;  %v5782_v43 = vmul.f32 %v11844_v59, %v957_v42  ;;  %v1167_v15 = vmul.f32 %v10709_v52, %v957_v42 }
 0x24a   : > { %3705 = vmatprep.mubr.bf16.mxu1 %v3325_v28  ;;  %v6201_v9 = vmul.f32 %v11860_v6, %v1911_v31  ;;  %v2100_v57 = vmul.f32 %v10718_v56, %v1911_v31  ;;  %v5783_v12 = vmul.f32 %v11851_v46, %v11769_v54  ;;  %v2099_v39 = vmul.f32 %v10706_v51, %v1911_v31 }
 0x24b   : > { %9707 = vset.pattern.permute.xlu1 %v15149_v16  ;;  %v2589_v40 = vpack.c.bf16 %v2503_v7, %v2501_v19  ;;  %v2588_v21 = vpack.c.bf16 %v2502_v58, %v2500_v60  ;;  %3706 = vmatmul.mubr.bf16.gmra.mxu1 %v3324_v20  ;;  %v6202_v42 = vmul.f32 %v11863_v25, %v1911_v31 }
 0x24c   : > { %1962 = vperm.xlu1 %9707, %v10086_v32   ;;  %v1381_v30 = vpop.permute.xlu1 %1380  ;;  %v1169_v28 = vmul.f32 %v10709_v52, %v11769_v54  ;;  %v1170_v7 = vmul.f32 %v10698_v48, %v11769_v54  ;;  %v5784_v58 = vmul.f32 %v11844_v59, %v11769_v54 }
 0x24d   : > { %v1569_v29 = vmul.f32 %v10693_v47, %v1381_v30  ;;  %v1570_v55 = vmul.f32 %v10701_v49, %v1381_v30  ;;  %v5927_v45 = vmul.f32 %v11857_v1, %v1381_v30  ;;  %v5928_v5 = vmul.f32 %v10480_v35, %v1381_v30  ;;  %3057 = vmatprep.mubr.bf16.mxu0 %v2589_v40 }
 0x24e   : > { %3058 = vmatmul.mubr.bf16.gmra.mxu0 %v2588_v21 }
 0x24f   : > { %v1698_v27 = vadd.f32 %v1570_v55, %v1168_v26  ;;  %v6055_v61 = vadd.f32 %v5927_v45, %v5781_v4  ;;  %v6056_v32 = vadd.f32 %v5928_v5, %v5782_v43  ;;  %v1697_v24 = vadd.f32 %v1569_v29, %v1167_v15 }
 0x250   : > { %v2959_v19 = vpop.f32.mrf.mxu0  ;;  %9708 = vset.pattern.permute.xlu1 %v15152_v14  ;;  %v1385_v60 = vpop.permute.xlu1 %1384 }
 0x251   : > { %v1571_v20 = vmul.f32 %v10693_v47, %v1385_v60  ;;  %1026 = vperm.xlu1 %9708, %v11588_v22   ;;  %v1572_v40 = vmul.f32 %v10701_v49, %v1385_v60  ;;  %v5929_v21 = vmul.f32 %v11857_v1, %v1385_v60  ;;  %v5930_v26 = vmul.f32 %v10480_v35, %v1385_v60 }
 0x252   : > { %v2961_v31 = vpop.f32.mrf.mxu0  ;;  %v11973_v4 = vadd.f32 %v6201_v9, %v6055_v61  ;;  %v2228_v43 = vadd.f32 %v2100_v57, %v1698_v27  ;;  %v2227_v30 = vadd.f32 %v2099_v39, %v1697_v24  ;;  %v11975_v55 = vadd.f32 %v6202_v42, %v6056_v32  ;;  %v9824_v9 = vld [vmem:[%s14849_s7 + $0x64] ss:$8 sps:$4 sm:$0xff]  }
 0x253   : > { %v6057_v45 = vadd.f32 %v5929_v21, %v5783_v12  ;;  %v1699_v54 = vadd.f32 %v1571_v20, %v1169_v28  ;;  %v6058_v27 = vadd.f32 %v5930_v26, %v5784_v58  ;;  %v1700_v57 = vadd.f32 %v1572_v40, %v1170_v7  ;;  %4343 = vmatprep.subr.bf16.mxu0 %v9824_v9 }
 0x254   : > { %15262 = vst [vmem:[#allocation136_spill] sm:$0xff] %v11973_v4  ;;  %v2963_v29 = vpop.f32.mrf.mxu0  ;;  %15263 = vst [vmem:[#allocation137_spill] sm:$0xff] %v11975_v55  ;;  %v2962_v61 = vadd.f32 %v2961_v31, %v11461_v44  ;;  %v2960_v39 = vadd.f32 %v2959_v19, %v11464_v63  ;;  %v2377_v42 = vadd.f32 %v10741_v41, %v2228_v43  ;;  %4344 = vmatpush1.bf16.msra.mxu0 %v9822_v0  ;;  %v10087_v19 = vld [vmem:[%s10382_s30 + $0x1c8] sm:$0xff] }
 0x255   : > { %v2964_v5 = vadd.f32 %v2963_v29, %v11464_v63  ;;  %9709 = vset.pattern.permute.xlu1 %v15154_v37  ;;  %v1915_v15 = vpop.permute.xlu1 %1914  ;;  %v2376_v20 = vadd.f32 %v10755_v50, %v2227_v30 }
 0x256   : > { %v2101_v32 = vmul.f32 %v10706_v51, %v1915_v15  ;;  %v2102_v12 = vmul.f32 %v10718_v56, %v1915_v15  ;;  %v2965_v24 = vpop.f32.mrf.mxu0  ;;  %1436 = vperm.xlu1 %9709, %v11588_v22   ;;  %v6203_v28 = vmul.f32 %v11860_v6, %v1915_v15  ;;  %v6204_v40 = vmul.f32 %v11863_v25, %v1915_v15 }
 0x257   : > { %v2966_v60 = vadd.f32 %v2965_v24, %v11461_v44  ;;  %v3220_v21 = vmax.f32 %v2964_v5, 0.0  ;;  %v3219_v22 = vmax.f32 %v2962_v61, 0.0  ;;  %v1919_v61 = vpop.permute.xlu0 %1918 }
 0x258   : > { %v2229_v7 = vadd.f32 %v2101_v32, %v1699_v54  ;;  %v2230_v58 = vadd.f32 %v2102_v12, %v1700_v57  ;;  %v11995_v31 = vadd.f32 %v6203_v28, %v6057_v45  ;;  %v12000_v24 = vadd.f32 %v6204_v40, %v6058_v27 }
 0x259   : > { %v3221_v26 = vmax.f32 %v2966_v60, 0.0  ;;  %v3218_v54 = vmax.f32 %v2960_v39, 0.0  ;;  %v2505_v57 = vmax.f32 %v2377_v42, 0.0  ;;  %v2504_v32 = vmax.f32 %v2376_v20, 0.0 }
 0x25a   : > { %15264 = vst [vmem:[#allocation138_spill] sm:$0xff] %v11995_v31  ;;  %1440 = vperm.xlu1 %9709, %v10087_v19   ;;  %v967_v29 = vpop.permute.xlu1 %966  ;;  %v2379_v43 = vadd.f32 %v10741_v41, %v2230_v58  ;;  %v2378_v9 = vadd.f32 %v10755_v50, %v2229_v7  ;;  %15265 = vst [vmem:[#allocation139_spill] sm:$0xff] %v12000_v24 }
 0x25b   : > { %v3327_v30 = vpack.c.bf16 %v3221_v26, %v3219_v22  ;;  %v3326_v5 = vpack.c.bf16 %v3220_v21, %v3218_v54  ;;  %v1172_v60 = vmul.f32 %v10698_v48, %v967_v29  ;;  %v5785_v28 = vmul.f32 %v11851_v46, %v967_v29 }
 0x25c   : > { %v2507_v0 = vmax.f32 %v2379_v43, 0.0  ;;  %v2506_v15 = vmax.f32 %v2378_v9, 0.0  ;;  %v5786_v27 = vmul.f32 %v11844_v59, %v967_v29  ;;  %v1171_v40 = vmul.f32 %v10709_v52, %v967_v29  ;;  %v9825_v29 = vld [vmem:[%s14849_s7 + $0x50] ss:$8 sps:$4 sm:$0xff]  }
 0x25d   : > { %3715 = vmatprep.mubr.bf16.mxu1 %v3327_v30  ;;  %v6205_v21 = vmul.f32 %v11860_v6, %v1919_v61  ;;  %v2104_v22 = vmul.f32 %v10718_v56, %v1919_v61  ;;  %v5787_v9 = vmul.f32 %v11851_v46, %v11789_v36 }
 0x25e   : > { %9710 = vset.pattern.permute.xlu1 %v15149_v16  ;;  %v2591_v45 = vpack.c.bf16 %v2507_v0, %v2505_v57  ;;  %v2590_v12 = vpack.c.bf16 %v2506_v15, %v2504_v32  ;;  %3716 = vmatmul.mubr.bf16.gmra.mxu1 %v3326_v5  ;;  %v2103_v57 = vmul.f32 %v10706_v51, %v1919_v61  ;;  %v9827_v32 = vld [vmem:[%s14849_s7 + $0x54] ss:$8 sps:$4 sm:$0xff]  }
 0x25f   : > { %1970 = vperm.xlu1 %9710, %v10087_v19   ;;  %v1389_v39 = vpop.permute.xlu1 %1388  ;;  %v6206_v15 = vmul.f32 %v11863_v25, %v1919_v61  ;;  %v1173_v5 = vmul.f32 %v10709_v52, %v11789_v36  ;;  %4345 = vmatprep.subr.bf16.mxu0 %v9827_v32 }
 0x260   : > { %v1573_v42 = vmul.f32 %v10693_v47, %v1389_v39  ;;  %v1574_v7 = vmul.f32 %v10701_v49, %v1389_v39  ;;  %v5931_v58 = vmul.f32 %v11857_v1, %v1389_v39  ;;  %v5932_v20 = vmul.f32 %v10480_v35, %v1389_v39  ;;  %3067 = vmatprep.mubr.bf16.mxu0 %v2591_v45 }
 0x261   : > { %3068 = vmatmul.mubr.bf16.gmra.mxu0 %v2590_v12  ;;  %v1174_v45 = vmul.f32 %v10698_v48, %v11789_v36  ;;  %v5788_v12 = vmul.f32 %v11844_v59, %v11789_v36 }
 0x262   : > { %v1702_v26 = vadd.f32 %v1574_v7, %v1172_v60  ;;  %v6059_v43 = vadd.f32 %v5931_v58, %v5785_v28  ;;  %v6060_v19 = vadd.f32 %v5932_v20, %v5786_v27  ;;  %v1701_v54 = vadd.f32 %v1573_v42, %v1171_v40  ;;  %4346 = vmatpush1.bf16.msra.mxu0 %v9825_v29 }
 0x263   : > { %v2969_v30 = vpop.f32.mrf.mxu0  ;;  %9711 = vset.pattern.permute.xlu1 %v15152_v14  ;;  %v1393_v0 = vpop.permute.xlu1 %1392 }
 0x264   : > { %v1575_v60 = vmul.f32 %v10693_v47, %v1393_v0  ;;  %1036 = vperm.xlu1 %9711, %v11640_v3   ;;  %v1576_v28 = vmul.f32 %v10701_v49, %v1393_v0  ;;  %v5933_v27 = vmul.f32 %v11857_v1, %v1393_v0  ;;  %v5934_v39 = vmul.f32 %v10480_v35, %v1393_v0 }
 0x265   : > { %v2971_v61 = vpop.f32.mrf.mxu0  ;;  %v12035_v42 = vadd.f32 %v6205_v21, %v6059_v43  ;;  %v2232_v7 = vadd.f32 %v2104_v22, %v1702_v26  ;;  %v2231_v58 = vadd.f32 %v2103_v57, %v1701_v54  ;;  %v12037_v36 = vadd.f32 %v6206_v15, %v6060_v19  ;;  %v10088_v43 = vld [vmem:[%s10382_s30 + $0x1d0] sm:$0xff] }
 0x266   : > { %v6061_v40 = vadd.f32 %v5933_v27, %v5787_v9  ;;  %v1703_v24 = vadd.f32 %v1575_v60, %v1173_v5  ;;  %v6062_v55 = vadd.f32 %v5934_v39, %v5788_v12  ;;  %v1704_v0 = vadd.f32 %v1576_v28, %v1174_v45  ;;  %v10089_v39 = vld [vmem:[%s10382_s30 + $0x1d8] sm:$0xff] }
 0x267   : > { %15266 = vst [vmem:[#allocation140_spill] sm:$0xff] %v12035_v42  ;;  %v2973_v20 = vpop.f32.mrf.mxu0  ;;  %15267 = vst [vmem:[#allocation141_spill] sm:$0xff] %v12037_v36  ;;  %v2972_v32 = vadd.f32 %v2971_v61, %v11461_v44  ;;  %v2970_v19 = vadd.f32 %v2969_v30, %v11464_v63  ;;  %v2381_v54 = vadd.f32 %v10741_v41, %v2232_v7 }
 0x268   : > { %v2974_v3 = vadd.f32 %v2973_v20, %v11464_v63  ;;  %9713 = vset.pattern.permute.xlu1 %v15154_v37  ;;  %v1923_v31 = vpop.permute.xlu1 %1922  ;;  %v2380_v5 = vadd.f32 %v10755_v50, %v2231_v58 }
 0x269   : > { %v2105_v21 = vmul.f32 %v10706_v51, %v1923_v31  ;;  %v2106_v26 = vmul.f32 %v10718_v56, %v1923_v31  ;;  %v2975_v22 = vpop.f32.mrf.mxu0  ;;  %1444 = vperm.xlu1 %9713, %v10088_v43   ;;  %v6207_v57 = vmul.f32 %v11860_v6, %v1923_v31  ;;  %v6208_v45 = vmul.f32 %v11863_v25, %v1923_v31 }
 0x26a   : > { %v2976_v9 = vadd.f32 %v2975_v22, %v11461_v44  ;;  %v3224_v12 = vmax.f32 %v2974_v3, 0.0  ;;  %v3223_v27 = vmax.f32 %v2972_v32, 0.0  ;;  %v1927_v32 = vpop.permute.xlu0 %1926 }
 0x26b   : > { %v2233_v29 = vadd.f32 %v2105_v21, %v1703_v24  ;;  %v2234_v15 = vadd.f32 %v2106_v26, %v1704_v0  ;;  %v12051_v28 = vadd.f32 %v6207_v57, %v6061_v40  ;;  %v12056_v20 = vadd.f32 %v6208_v45, %v6062_v55 }
 0x26c   : > { %v3225_v60 = vmax.f32 %v2976_v9, 0.0  ;;  %v3222_v24 = vmax.f32 %v2970_v19, 0.0  ;;  %v2509_v0 = vmax.f32 %v2381_v54, 0.0  ;;  %v2508_v26 = vmax.f32 %v2380_v5, 0.0  ;;  %v9828_v19 = vld [vmem:[%s14849_s7 + $0x40] ss:$8 sps:$4 sm:$0xff]  }
 0x26d   : > { %15268 = vst [vmem:[#allocation142_spill] sm:$0xff] %v12051_v28  ;;  %1448 = vperm.xlu1 %9713, %v10089_v39   ;;  %v977_v30 = vpop.permute.xlu1 %976  ;;  %v2383_v61 = vadd.f32 %v10741_v41, %v2234_v15  ;;  %v2382_v7 = vadd.f32 %v10755_v50, %v2233_v29  ;;  %15269 = vst [vmem:[#allocation143_spill] sm:$0xff] %v12056_v20  ;;  %v9830_v54 = vld [vmem:[%s14849_s7 + $0x44] ss:$8 sps:$4 sm:$0xff]   ;;  %v1177_v45 = vmul.f32 %v10709_v52, %v11805_v53 }
 0x26e   : > { %v3329_v21 = vpack.c.bf16 %v3225_v60, %v3223_v27  ;;  %v3328_v3 = vpack.c.bf16 %v3224_v12, %v3222_v24  ;;  %v5789_v43 = vmul.f32 %v11851_v46, %v977_v30  ;;  %v5790_v9 = vmul.f32 %v11844_v59, %v977_v30  ;;  %4347 = vmatprep.subr.bf16.mxu0 %v9830_v54 }
 0x26f   : > { %v2511_v58 = vmax.f32 %v2383_v61, 0.0  ;;  %v2510_v31 = vmax.f32 %v2382_v7, 0.0  ;;  %v1176_v12 = vmul.f32 %v10698_v48, %v977_v30  ;;  %v6209_v60 = vmul.f32 %v11860_v6, %v1927_v32  ;;  %v12078_v61 = vpop.permute.xlu0 %1934  ;;  %4348 = vmatpush1.bf16.msra.mxu0 %v9828_v19  ;;  %v9833_v19 = vld [vmem:[%s14849_s7 + $0x34] ss:$8 sps:$4 sm:$0xff]  }
 0x270   : > { %3725 = vmatprep.mubr.bf16.mxu1 %v3329_v21  ;;  %v1178_v27 = vmul.f32 %v10698_v48, %v11805_v53  ;;  %4349 = vmatprep.subr.bf16.mxu0 %v9833_v19  ;;  %v10091_v19 = vld [vmem:[%s10382_s30 + $0x1e8] sm:$0xff] }
 0x271   : > { %9714 = vset.pattern.permute.xlu1 %v15149_v16  ;;  %v2593_v40 = vpack.c.bf16 %v2511_v58, %v2509_v0  ;;  %v2592_v22 = vpack.c.bf16 %v2510_v31, %v2508_v26  ;;  %3726 = vmatmul.mubr.bf16.gmra.mxu1 %v3328_v3  ;;  %v5791_v0 = vmul.f32 %v11851_v46, %v11805_v53 }
 0x272   : > { %1978 = vperm.xlu1 %9714, %v10089_v39   ;;  %v1397_v55 = vpop.permute.xlu1 %1396  ;;  %v1175_v39 = vmul.f32 %v10709_v52, %v977_v30  ;;  %v2108_v58 = vmul.f32 %v10718_v56, %v1927_v32  ;;  %v6210_v3 = vmul.f32 %v11863_v25, %v1927_v32  ;;  %v5792_v30 = vmul.f32 %v11844_v59, %v11805_v53 }
 0x273   : > { %v1577_v57 = vmul.f32 %v10693_v47, %v1397_v55  ;;  %v1578_v29 = vmul.f32 %v10701_v49, %v1397_v55  ;;  %v5935_v15 = vmul.f32 %v11857_v1, %v1397_v55  ;;  %v5936_v5 = vmul.f32 %v10480_v35, %v1397_v55  ;;  %3077 = vmatprep.mubr.bf16.mxu0 %v2593_v40  ;;  %v9831_v55 = vld [vmem:[%s14849_s7 + $0x30] ss:$8 sps:$4 sm:$0xff]   ;;  %v12105_v4 = vpop.permute.xlu0 %1942 }
 0x274   : > { %3078 = vmatmul.mubr.bf16.gmra.mxu0 %v2592_v22  ;;  %v2107_v22 = vmul.f32 %v10706_v51, %v1927_v32 }
 0x275   : > { %v6063_v7 = vadd.f32 %v5935_v15, %v5789_v43  ;;  %v6064_v24 = vadd.f32 %v5936_v5, %v5790_v9  ;;  %v1706_v21 = vadd.f32 %v1578_v29, %v1176_v12  ;;  %v1705_v40 = vadd.f32 %v1577_v57, %v1175_v39  ;;  %v10090_v9 = vld [vmem:[%s10382_s30 + $0x1e0] sm:$0xff]  ;;  %4350 = vmatpush1.bf16.msra.mxu0 %v9831_v55 }
 0x276   : > { %v2979_v26 = vpop.f32.mrf.mxu0  ;;  %9715 = vset.pattern.permute.xlu1 %v15152_v14  ;;  %v1401_v31 = vpop.permute.xlu1 %1400 }
 0x277   : > { %v1579_v43 = vmul.f32 %v10693_v47, %v1401_v31  ;;  %1046 = vperm.xlu1 %9715, %v10090_v9   ;;  %v1580_v54 = vmul.f32 %v10701_v49, %v1401_v31  ;;  %v5937_v29 = vmul.f32 %v11857_v1, %v1401_v31  ;;  %v5938_v53 = vmul.f32 %v10480_v35, %v1401_v31 }
 0x278   : > { %v2981_v57 = vpop.f32.mrf.mxu0  ;;  %v12099_v32 = vadd.f32 %v6209_v60, %v6063_v7  ;;  %v2236_v15 = vadd.f32 %v2108_v58, %v1706_v21  ;;  %v12101_v12 = vadd.f32 %v6210_v3, %v6064_v24  ;;  %v2235_v20 = vadd.f32 %v2107_v22, %v1705_v40 }
 0x279   : > { %v6065_v39 = vadd.f32 %v5937_v29, %v5791_v0  ;;  %v1707_v28 = vadd.f32 %v1579_v43, %v1177_v45  ;;  %v6066_v31 = vadd.f32 %v5938_v53, %v5792_v30  ;;  %v1708_v23 = vadd.f32 %v1580_v54, %v1178_v27  ;;  %v9834_v27 = vld [vmem:[%s14849_s7 + $0x20] ss:$8 sps:$4 sm:$0xff]   ;;  %v9836_v30 = vld [vmem:[%s14849_s7 + $0x24] ss:$8 sps:$4 sm:$0xff]   ;;  %v12126_v53 = vpop.permute.xlu0 %1950 }
 0x27a   : > { %15270 = vst [vmem:[#allocation144_spill] sm:$0xff] %v12099_v32  ;;  %v2983_v5 = vpop.f32.mrf.mxu0  ;;  %15271 = vst [vmem:[#allocation145_spill] sm:$0xff] %v12101_v12  ;;  %v2982_v60 = vadd.f32 %v2981_v57, %v11461_v44  ;;  %v2980_v45 = vadd.f32 %v2979_v26, %v11464_v63  ;;  %v2385_v40 = vadd.f32 %v10741_v41, %v2236_v15  ;;  %4351 = vmatprep.subr.bf16.mxu0 %v9836_v30 }
 0x27b   : > { %v2984_v36 = vadd.f32 %v2983_v5, %v11464_v63  ;;  %9716 = vset.pattern.permute.xlu1 %v15154_v37  ;;  %v1931_v42 = vpop.permute.xlu1 %1930  ;;  %15272 = vst [vmem:[#allocation146_spill] sm:$0xff] %v12126_v53  ;;  %4352 = vmatpush1.bf16.msra.mxu0 %v9834_v27  ;;  %v9839_v5 = vld [vmem:[%s14849_s7 + $0x14] ss:$8 sps:$4 sm:$0xff]  }
 0x27c   : > { %v2109_v7 = vmul.f32 %v10706_v51, %v1931_v42  ;;  %v2110_v24 = vmul.f32 %v10718_v56, %v1931_v42  ;;  %v2985_v21 = vpop.f32.mrf.mxu0  ;;  %1452 = vperm.xlu1 %9716, %v10090_v9   ;;  %v2384_v9 = vadd.f32 %v10755_v50, %v2235_v20  ;;  %v6211_v26 = vmul.f32 %v11860_v6, %v1931_v42 }
 0x27d   : > { %v2986_v0 = vadd.f32 %v2985_v21, %v11461_v44  ;;  %v3228_v22 = vmax.f32 %v2984_v36, 0.0  ;;  %v3227_v55 = vmax.f32 %v2982_v60, 0.0  ;;  %v3226_v29 = vmax.f32 %v2980_v45, 0.0  ;;  %4353 = vmatprep.subr.bf16.mxu0 %v9839_v5 }
 0x27e   : > { %v2237_v58 = vadd.f32 %v2109_v7, %v1707_v28  ;;  %v2238_v3 = vadd.f32 %v2110_v24, %v1708_v23  ;;  %v6212_v36 = vmul.f32 %v11863_v25, %v1931_v42  ;;  %v2513_v20 = vmax.f32 %v2385_v40, 0.0  ;;  %v9837_v42 = vld [vmem:[%s14849_s7 + $0x10] ss:$8 sps:$4 sm:$0xff]  }
 0x27f   : > { %v3229_v43 = vmax.f32 %v2986_v0, 0.0  ;;  %v3330_v60 = vpack.c.bf16 %v3228_v22, %v3226_v29  ;;  %v2512_v7 = vmax.f32 %v2384_v9, 0.0  ;;  %v12132_v21 = vadd.f32 %v6211_v26, %v6065_v39  ;;  %v992_v22 = vpop.permute.xlu0 %991  ;;  %4354 = vmatpush1.bf16.msra.mxu0 %v9837_v42 }
 0x280   : > { %1456 = vperm.xlu1 %9716, %v10091_v19   ;;  %v12122_v23 = vpop.permute.xlu1 %986  ;;  %v2387_v28 = vadd.f32 %v10741_v41, %v2238_v3  ;;  %v2386_v54 = vadd.f32 %v10755_v50, %v2237_v58  ;;  %v9842_v3 = vld [vmem:[%s14849_s7 + $0x4] ss:$8 sps:$4 sm:$0xff]   ;;  %v12143_v40 = vadd.f32 %v6212_v36, %v6066_v31  ;;  %v9840_v31 = vld [vmem:[%s14849_s7] ss:$8 sps:$4 sm:$0xff]   ;;  %v2112_v9 = vmul.f32 %v10718_v56, %v12078_v61 }
 0x281   : > { %v3331_v57 = vpack.c.bf16 %v3229_v43, %v3227_v55  ;;  %15273 = vst [vmem:[#allocation147_spill] sm:$0xff] %v12132_v21  ;;  %v1180_v30 = vmul.f32 %v10698_v48, %v12122_v23  ;;  %v1179_v43 = vmul.f32 %v10709_v52, %v12122_v23  ;;  %4355 = vmatprep.subr.bf16.mxu0 %v9842_v3 }
 0x282   : > { %v2515_v15 = vmax.f32 %v2387_v28, 0.0  ;;  %v2514_v24 = vmax.f32 %v2386_v54, 0.0  ;;  %15274 = vst [vmem:[#allocation148_spill] sm:$0xff] %v12143_v40  ;;  %v2111_v28 = vmul.f32 %v10706_v51, %v12078_v61  ;;  %v1181_v29 = vmul.f32 %v10709_v52, %v992_v22  ;;  %v10093_v40 = vld [vmem:[%s10382_s30 + $0x1f8] sm:$0xff] }
 0x283   : > { %3735 = vmatprep.mubr.bf16.mxu1 %v3331_v57  ;;  %v10092_v57 = vld [vmem:[%s10382_s30 + $0x1f0] sm:$0xff]  ;;  %4356 = vmatpush1.bf16.msra.mxu0 %v9840_v31 }
 0x284   : > { %9718 = vset.pattern.permute.xlu1 %v15149_v16  ;;  %v2595_v45 = vpack.c.bf16 %v2515_v15, %v2513_v20  ;;  %3736 = vmatmul.mubr.bf16.gmra.mxu1 %v3330_v60  ;;  %v2594_v58 = vpack.c.bf16 %v2514_v24, %v2512_v7  ;;  %v1182_v20 = vmul.f32 %v10698_v48, %v992_v22  ;;  %v9843_v7 = vld [vmem:[%s14849_s7 + $0xf0] ss:$8 sps:$4 sm:$0xff]  }
 0x285   : > { %1986 = vperm.xlu1 %9718, %v10091_v19   ;;  %v12138_v0 = vpop.permute.xlu1 %1404  ;;  %v9845_v19 = vld [vmem:[%s14849_s7 + $0xf4] ss:$8 sps:$4 sm:$0xff]  }
 0x286   : > { %v1581_v39 = vmul.f32 %v10693_v47, %v12138_v0  ;;  %v1582_v27 = vmul.f32 %v10701_v49, %v12138_v0  ;;  %3087 = vmatprep.mubr.bf16.mxu0 %v2595_v45  ;;  %4357 = vmatprep.subr.bf16.mxu0 %v9845_v19 }
 0x287   : > { %3088 = vmatmul.mubr.bf16.gmra.mxu0 %v2594_v58 }
 0x288   : > { %v1710_v26 = vadd.f32 %v1582_v27, %v1180_v30  ;;  %v1709_v54 = vadd.f32 %v1581_v39, %v1179_v43  ;;  %v9848_v27 = vld [vmem:[%s14849_s7 + $0xe4] ss:$8 sps:$4 sm:$0xff]   ;;  %4358 = vmatpush2.bf16.msra.mxu0 %v9843_v7  ;;  %v6213_v7 = vmul.f32 %v11860_v6, %v12078_v61 }
 0x289   : > { %v2989_v55 = vpop.f32.mrf.mxu0  ;;  %9719 = vset.pattern.permute.xlu1 %v15152_v14  ;;  %v1409_v36 = vpop.permute.xlu1 %1408  ;;  %4359 = vmatprep.subr.bf16.mxu0 %v9848_v27  ;;  %v5939_v27 = vmul.f32 %v11857_v1, %v12138_v0 }
 0x28a   : > { %1056 = vperm.xlu1 %9719, %v10092_v57   ;;  %v1583_v15 = vmul.f32 %v10693_v47, %v1409_v36  ;;  %v1584_v5 = vmul.f32 %v10701_v49, %v1409_v36  ;;  %v2240_v45 = vadd.f32 %v2112_v9, %v1710_v26  ;;  %v2239_v39 = vadd.f32 %v2111_v28, %v1709_v54  ;;  %v9846_v54 = vld [vmem:[%s14849_s7 + $0xe0] ss:$8 sps:$4 sm:$0xff]  }
 0x28b   : > { %v2991_v60 = vpop.f32.mrf.mxu0  ;;  %v2990_v19 = vadd.f32 %v2989_v55, %v11464_v63  ;;  %v9851_v55 = vld [vmem:[%s14849_s7 + $0xd4] ss:$8 sps:$4 sm:$0xff]   ;;  %v5942_v32 = vmul.f32 %v10480_v35, %v1409_v36 }
 0x28c   : > { %v1711_v42 = vadd.f32 %v1583_v15, %v1181_v29  ;;  %v1712_v30 = vadd.f32 %v1584_v5, %v1182_v20  ;;  %v2992_v43 = vadd.f32 %v2991_v60, %v11461_v44  ;;  %v5796_v29 = vmul.f32 %v11844_v59, %v992_v22  ;;  %4360 = vmatpush2.bf16.msra.mxu0 %v9846_v54 }
 0x28d   : > { %v2993_v24 = vpop.f32.mrf.mxu0  ;;  %v2389_v5 = vadd.f32 %v10741_v41, %v2240_v45  ;;  %4361 = vmatprep.subr.bf16.mxu0 %v9851_v55 }
 0x28e   : > { %v2994_v58 = vadd.f32 %v2993_v24, %v11464_v63  ;;  %9720 = vset.pattern.permute.xlu1 %v15154_v37  ;;  %v12174_v3 = vpop.permute.xlu1 %1938  ;;  %v5795_v37 = vmul.f32 %v11851_v46, %v992_v22  ;;  %v2388_v24 = vadd.f32 %v10755_v50, %v2239_v39  ;;  %v5793_v39 = vmul.f32 %v11851_v46, %v12122_v23 }
 0x28f   : > { %v2113_v31 = vmul.f32 %v10706_v51, %v12174_v3  ;;  %v2114_v9 = vmul.f32 %v10718_v56, %v12174_v3  ;;  %v2995_v26 = vpop.f32.mrf.mxu0  ;;  %1460 = vperm.xlu1 %9720, %v10092_v57  }
 0x290   : > { %v2996_v28 = vadd.f32 %v2995_v26, %v11461_v44  ;;  %v3232_v57 = vmax.f32 %v2994_v58, 0.0  ;;  %v3231_v26 = vmax.f32 %v2992_v43, 0.0  ;;  %v6214_v58 = vmul.f32 %v11863_v25, %v12078_v61 }
 0x291   : > { %v2241_v20 = vadd.f32 %v2113_v31, %v1711_v42  ;;  %v2242_v15 = vadd.f32 %v2114_v9, %v1712_v30  ;;  %v5940_v30 = vmul.f32 %v10480_v35, %v12138_v0  ;;  %v3230_v43 = vmax.f32 %v2990_v19, 0.0 }
 0x292   : > { %v3233_v60 = vmax.f32 %v2996_v28, 0.0  ;;  %v5794_v31 = vmul.f32 %v11844_v59, %v12122_v23  ;;  %v2517_v28 = vmax.f32 %v2389_v5, 0.0  ;;  %v5941_v61 = vmul.f32 %v11857_v1, %v1409_v36  ;;  %v9849_v23 = vld [vmem:[%s14849_s7 + $0xd0] ss:$8 sps:$4 sm:$0xff]   ;;  %v9854_v5 = vld [vmem:[%s14849_s7 + $0xc4] ss:$8 sps:$4 sm:$0xff]  }
 0x293   : > { %1464 = vperm.xlu1 %9720, %v10093_v40   ;;  %v12199_v22 = vpop.permute.xlu1 %996  ;;  %v2391_v42 = vadd.f32 %v10741_v41, %v2242_v15  ;;  %v2390_v45 = vadd.f32 %v10755_v50, %v2241_v20  ;;  %v3332_v15 = vpack.c.bf16 %v3232_v57, %v3230_v43  ;;  %v2516_v21 = vmax.f32 %v2388_v24, 0.0  ;;  %4362 = vmatpush2.bf16.msra.mxu0 %v9849_v23 }
 0x294   : > { %v3333_v9 = vpack.c.bf16 %v3233_v60, %v3231_v26  ;;  %v1183_v2 = vmul.f32 %v10709_v52, %v12199_v22  ;;  %v6067_v36 = vadd.f32 %v5939_v27, %v5793_v39  ;;  %v6068_v57 = vadd.f32 %v5940_v30, %v5794_v31  ;;  %v9852_v27 = vld [vmem:[%s14849_s7 + $0xc0] ss:$8 sps:$4 sm:$0xff]   ;;  %4363 = vmatprep.subr.bf16.mxu0 %v9854_v5  ;;  %v9855_v5 = vld [vmem:[%s14849_s7 + $0xb0] ss:$8 sps:$4 sm:$0xff]  }
 0x295   : > { %v2519_v20 = vmax.f32 %v2391_v42, 0.0  ;;  %v2518_v12 = vmax.f32 %v2390_v45, 0.0  ;;  %v1184_v60 = vmul.f32 %v10698_v48, %v12199_v22  ;;  %v6069_v42 = vadd.f32 %v5941_v61, %v5795_v37  ;;  %v9857_v37 = vld [vmem:[%s14849_s7 + $0xb4] ss:$8 sps:$4 sm:$0xff]  }
 0x296   : > { %3745 = vmatprep.mubr.bf16.mxu1 %v3333_v9  ;;  %v12233_v26 = vadd.f32 %v6214_v58, %v6068_v57  ;;  %v2116_v45 = vmul.f32 %v10718_v56, %v12105_v4  ;;  %v6070_v30 = vadd.f32 %v5942_v32, %v5796_v29  ;;  %v2115_v43 = vmul.f32 %v10706_v51, %v12105_v4 }
 0x297   : > { %9722 = vset.pattern.permute.xlu1 %v15149_v16  ;;  %v2597_v0 = vpack.c.bf16 %v2519_v20, %v2517_v28  ;;  %3746 = vmatmul.mubr.bf16.gmra.mxu1 %v3332_v15  ;;  %v2596_v54 = vpack.c.bf16 %v2518_v12, %v2516_v21  ;;  %v1002_v12 = vpop.permute.xlu0 %1001  ;;  %v12231_v21 = vadd.f32 %v6213_v7, %v6067_v36 }
 0x298   : > { %1994 = vperm.xlu1 %9722, %v10093_v40   ;;  %v1413_v19 = vpop.permute.xlu1 %1412  ;;  %v5797_v40 = vmul.f32 %v11851_v46, %v12199_v22  ;;  %15276 = vst [vmem:[#allocation150_spill] sm:$0xff] %v12233_v26  ;;  %v1185_v28 = vmul.f32 %v10709_v52, %v1002_v12  ;;  %v6215_v20 = vmul.f32 %v11860_v6, %v12174_v3 }
 0x299   : > { %v1585_v16 = vmul.f32 %v10693_v47, %v1413_v19  ;;  %v1586_v24 = vmul.f32 %v10701_v49, %v1413_v19  ;;  %v5943_v55 = vmul.f32 %v11857_v1, %v1413_v19  ;;  %3097 = vmatprep.mubr.bf16.mxu0 %v2597_v0  ;;  %15275 = vst [vmem:[#allocation149_spill] sm:$0xff] %v12231_v21 }
 0x29a   : > { %3098 = vmatmul.mubr.bf16.gmra.mxu0 %v2596_v54  ;;  %v6216_v32 = vmul.f32 %v11863_v25, %v12174_v3  ;;  %v1186_v29 = vmul.f32 %v10698_v48, %v1002_v12  ;;  %v5800_v23 = vmul.f32 %v11844_v59, %v1002_v12  ;;  %v6217_v3 = vmul.f32 %v11860_v6, %v12105_v4 }
 0x29b   : > { %v1714_v39 = vadd.f32 %v1586_v24, %v1184_v60  ;;  %v1713_v31 = vadd.f32 %v1585_v16, %v1183_v2  ;;  %v6071_v58 = vadd.f32 %v5943_v55, %v5797_v40  ;;  %v5799_v2 = vmul.f32 %v11851_v46, %v1002_v12  ;;  %4364 = vmatpush2.bf16.msra.mxu0 %v9852_v27  ;;  %v9860_v40 = vld [vmem:[%s14849_s7 + $0xa4] ss:$8 sps:$4 sm:$0xff]  }
 0x29c   : > { %v2999_v9 = vpop.f32.mrf.mxu0  ;;  %v1417_v7 = vpop.permute.xlu1 %1416  ;;  %v6218_v36 = vmul.f32 %v11863_v25, %v12105_v4  ;;  %v5798_v57 = vmul.f32 %v11844_v59, %v12199_v22  ;;  %v5944_v60 = vmul.f32 %v10480_v35, %v1413_v19  ;;  %4365 = vmatprep.subr.bf16.mxu0 %v9857_v37  ;;  %v12271_v4 = vadd.f32 %v6215_v20, %v6069_v42  ;;  %v9858_v42 = vld [vmem:[%s14849_s7 + $0xa0] ss:$8 sps:$4 sm:$0xff]  }
 0x29d   : > { %v1587_v61 = vmul.f32 %v10693_v47, %v1417_v7  ;;  %v1588_v15 = vmul.f32 %v10701_v49, %v1417_v7  ;;  %v2244_v54 = vadd.f32 %v2116_v45, %v1714_v39  ;;  %v5945_v16 = vmul.f32 %v11857_v1, %v1417_v7 }
 0x29e   : > { %v3001_v0 = vpop.f32.mrf.mxu0  ;;  %v2243_v55 = vadd.f32 %v2115_v43, %v1713_v31  ;;  %15277 = vst [vmem:[#allocation151_spill] sm:$0xff] %v12271_v4  ;;  %v12273_v27 = vadd.f32 %v6216_v32, %v6070_v30  ;;  %v3000_v37 = vadd.f32 %v2999_v9, %v11464_v63  ;;  %v5946_v30 = vmul.f32 %v10480_v35, %v1417_v7  ;;  %v9863_v9 = vld [vmem:[%s14849_s7 + $0x94] ss:$8 sps:$4 sm:$0xff]  }
 0x29f   : > { %v3002_v12 = vadd.f32 %v3001_v0, %v11461_v44  ;;  %v1715_v22 = vadd.f32 %v1587_v61, %v1185_v28  ;;  %v1716_v19 = vadd.f32 %v1588_v15, %v1186_v29  ;;  %v2393_v0 = vadd.f32 %v10741_v41, %v2244_v54  ;;  %4366 = vmatpush2.bf16.msra.mxu0 %v9855_v5  ;;  %v12290_v54 = vpop.permute.xlu0 %1011 }
 0x2a0   : > { %v3003_v24 = vpop.f32.mrf.mxu0  ;;  %15278 = vst [vmem:[#allocation152_spill] sm:$0xff] %v12273_v27  ;;  %4367 = vmatprep.subr.bf16.mxu0 %v9860_v40  ;;  %v12288_v32 = vadd.f32 %v6217_v3, %v6071_v58  ;;  %v6072_v5 = vadd.f32 %v5944_v60, %v5798_v57  ;;  %v9861_v58 = vld [vmem:[%s14849_s7 + $0x90] ss:$8 sps:$4 sm:$0xff]  }
 0x2a1   : > { %v3004_v45 = vadd.f32 %v3003_v24, %v11464_v63  ;;  %v1947_v39 = vpop.permute.xlu1 %1946  ;;  %v2392_v24 = vadd.f32 %v10755_v50, %v2243_v55  ;;  %v3235_v29 = vmax.f32 %v3002_v12, 0.0 }
 0x2a2   : > { %v2117_v26 = vmul.f32 %v10706_v51, %v1947_v39  ;;  %v2118_v43 = vmul.f32 %v10718_v56, %v1947_v39  ;;  %v3005_v31 = vpop.f32.mrf.mxu0  ;;  %15279 = vst [vmem:[#allocation153_spill] sm:$0xff] %v12288_v32  ;;  %v6219_v40 = vmul.f32 %v11860_v6, %v1947_v39  ;;  %v12300_v12 = vadd.f32 %v6218_v36, %v6072_v5 }
 0x2a3   : > { %v3006_v21 = vadd.f32 %v3005_v31, %v11461_v44  ;;  %v3236_v61 = vmax.f32 %v3004_v45, 0.0  ;;  %4368 = vmatpush2.bf16.msra.mxu0 %v9858_v42 }
 0x2a4   : > { %v2245_v28 = vadd.f32 %v2117_v26, %v1715_v22  ;;  %v2246_v20 = vadd.f32 %v2118_v43, %v1716_v19  ;;  %v6073_v26 = vadd.f32 %v5945_v16, %v5799_v2  ;;  %v3234_v22 = vmax.f32 %v3000_v37, 0.0  ;;  %4369 = vmatprep.subr.bf16.mxu0 %v9863_v9  ;;  %15280 = vst [vmem:[#allocation154_spill] sm:$0xff] %v12300_v12  ;;  %v9866_v2 = vld [vmem:[%s14849_s7 + $0x84] ss:$8 sps:$4 sm:$0xff]  }
 0x2a5   : > { %v3237_v15 = vmax.f32 %v3006_v21, 0.0  ;;  %v2521_v19 = vmax.f32 %v2393_v0, 0.0  ;;  %v2520_v43 = vmax.f32 %v2392_v24, 0.0  ;;  %v12298_v21 = vpop.f32.mrf.mxu1  ;;  %v6074_v37 = vadd.f32 %v5946_v30, %v5800_v23  ;;  %v9864_v23 = vld [vmem:[%s14849_s7 + $0x80] ss:$8 sps:$4 sm:$0xff]  }
 0x2a6   : > { %v1007_v55 = vpop.permute.xlu1 %1006  ;;  %v2395_v31 = vadd.f32 %v10741_v41, %v2246_v20  ;;  %v2394_v7 = vadd.f32 %v10755_v50, %v2245_v28  ;;  %v3334_v45 = vpack.c.bf16 %v3236_v61, %v3234_v22  ;;  %v12305_v16 = vadd.f32 %v6219_v40, %v6073_v26 }
 0x2a7   : > { %v3335_v3 = vpack.c.bf16 %v3237_v15, %v3235_v29  ;;  %v6220_v0 = vmul.f32 %v11863_v25, %v1947_v39  ;;  %v1188_v24 = vmul.f32 %v10698_v48, %v1007_v55  ;;  %v5801_v20 = vmul.f32 %v11851_v46, %v1007_v55  ;;  %v12311_v29 = vpop.permute.xlu0 %1021  ;;  %4370 = vmatpush2.bf16.msra.mxu0 %v9861_v58  ;;  %v12318_v39 = vpop.f32.mrf.mxu1 }
 0x2a8   : > { %v2523_v57 = vmax.f32 %v2395_v31, 0.0  ;;  %v2522_v60 = vmax.f32 %v2394_v7, 0.0  ;;  %15281 = vst [vmem:[#allocation155_spill] sm:$0xff] %v12305_v16  ;;  %v5802_v36 = vmul.f32 %v11844_v59, %v1007_v55  ;;  %v1187_v7 = vmul.f32 %v10709_v52, %v1007_v55  ;;  %4371 = vmatprep.subr.bf16.mxu0 %v9866_v2 }
 0x2a9   : > { %3755 = vmatprep.mubr.bf16.mxu1 %v3335_v3  ;;  %v12316_v30 = vadd.f32 %v6220_v0, %v6074_v37  ;;  %v2120_v26 = vmul.f32 %v10718_v56, %v12126_v53  ;;  %v1189_v55 = vmul.f32 %v10709_v52, %v12290_v54 }
 0x2aa   : > { %v2599_v42 = vpack.c.bf16 %v2523_v57, %v2521_v19  ;;  %v2598_v28 = vpack.c.bf16 %v2522_v60, %v2520_v43  ;;  %3756 = vmatmul.mubr.bf16.gmra.mxu1 %v3334_v45  ;;  %v2119_v43 = vmul.f32 %v10706_v51, %v12126_v53  ;;  %v12333_v60 = vpop.f32.mrf.mxu1  ;;  %v1190_v45 = vmul.f32 %v10698_v48, %v12290_v54 }
 0x2ab   : > { %v1421_v9 = vpop.permute.xlu1 %1420  ;;  %15282 = vst [vmem:[#allocation156_spill] sm:$0xff] %v12316_v30  ;;  %4372 = vmatpush2.bf16.msra.mxu0 %v9864_v23 }
 0x2ac   : > { %v1589_v61 = vmul.f32 %v10693_v47, %v1421_v9  ;;  %v1590_v15 = vmul.f32 %v10701_v49, %v1421_v9  ;;  %v5947_v5 = vmul.f32 %v11857_v1, %v1421_v9  ;;  %v5948_v31 = vmul.f32 %v10480_v35, %v1421_v9  ;;  %3107 = vmatprep.mubr.bf16.mxu0 %v2599_v42  ;;  %v12346_v23 = vpop.f32.mrf.mxu1 }
 0x2ad   : > { %3108 = vmatmul.mubr.bf16.gmra.mxu0 %v2598_v28  ;;  %v5803_v28 = vmul.f32 %v11851_v46, %v12290_v54 }
 0x2ae   : > { %v1718_v40 = vadd.f32 %v1590_v15, %v1188_v24  ;;  %v12327_v22 = vadd.f32 %v5947_v5, %v5801_v20  ;;  %v12329_v19 = vadd.f32 %v5948_v31, %v5802_v36  ;;  %v1717_v58 = vadd.f32 %v1589_v61, %v1187_v7  ;;  %v12341_v24 = vpop.permute.xlu0 %1031 }
 0x2af   : > { %v3009_v3 = vpop.f32.mrf.mxu0  ;;  %v1425_v57 = vpop.permute.xlu1 %1424  ;;  %v5804_v61 = vmul.f32 %v11844_v59, %v12290_v54 }
 0x2b0   : > { %15283 = vst [vmem:[#allocation157_spill] sm:$0xff] %v12327_v22  ;;  %15284 = vst [vmem:[#allocation158_spill] sm:$0xff] %v12329_v19  ;;  %v1591_v2 = vmul.f32 %v10693_v47, %v1425_v57  ;;  %v1592_v37 = vmul.f32 %v10701_v49, %v1425_v57  ;;  %v2248_v42 = vadd.f32 %v2120_v26, %v1718_v40 }
 0x2b1   : > { %v3011_v0 = vpop.f32.mrf.mxu0  ;;  %v5949_v20 = vmul.f32 %v11857_v1, %v1425_v57  ;;  %v2247_v9 = vadd.f32 %v2119_v43, %v1717_v58  ;;  %v5950_v15 = vmul.f32 %v10480_v35, %v1425_v57  ;;  %v3010_v43 = vadd.f32 %v3009_v3, %v11464_v63 }
 0x2b2   : > { %v3012_v5 = vadd.f32 %v3011_v0, %v11461_v44  ;;  %v1719_v26 = vadd.f32 %v1591_v2, %v1189_v55  ;;  %v1720_v40 = vadd.f32 %v1592_v37, %v1190_v45  ;;  %v2397_v54 = vadd.f32 %v10741_v41, %v2248_v42  ;;  %v12359_v16 = vpop.permute.xlu0 %1041  ;;  %v12361_v55 = vpop.f32.mrf.mxu1 }
 0x2b3   : > { %v3013_v36 = vpop.f32.mrf.mxu0  ;;  %v2396_v57 = vadd.f32 %v10755_v50, %v2247_v9  ;;  %v6078_v42 = vadd.f32 %v5950_v15, %v5804_v61 }
 0x2b4   : > { %v3014_v31 = vadd.f32 %v3013_v36, %v11464_v63  ;;  %v1955_v7 = vpop.permute.xlu1 %1954  ;;  %v6077_v36 = vadd.f32 %v5949_v20, %v5803_v28  ;;  %v3239_v45 = vmax.f32 %v3012_v5, 0.0  ;;  %v12369_v5 = vpop.f32.mrf.mxu1 }
 0x2b5   : > { %v2121_v19 = vmul.f32 %v10706_v51, %v1955_v7  ;;  %v2122_v22 = vmul.f32 %v10718_v56, %v1955_v7  ;;  %v3015_v53 = vpop.f32.mrf.mxu0  ;;  %v6223_v12 = vmul.f32 %v11860_v6, %v1955_v7  ;;  %v6224_v9 = vmul.f32 %v11863_v25, %v1955_v7 }
 0x2b6   : > { %v3016_v58 = vadd.f32 %v3015_v53, %v11461_v44  ;;  %v3240_v2 = vmax.f32 %v3014_v31, 0.0  ;;  %v1959_v4 = vpop.permute.xlu0 %1958 }
 0x2b7   : > { %v2249_v30 = vadd.f32 %v2121_v19, %v1719_v26  ;;  %v2250_v0 = vadd.f32 %v2122_v22, %v1720_v40  ;;  %v3238_v19 = vmax.f32 %v3010_v43, 0.0  ;;  %v2525_v22 = vmax.f32 %v2397_v54, 0.0 }
 0x2b8   : > { %v3241_v37 = vmax.f32 %v3016_v58, 0.0  ;;  %v2524_v26 = vmax.f32 %v2396_v57, 0.0  ;;  %v12367_v27 = vadd.f32 %v6223_v12, %v6077_v36  ;;  %v12371_v58 = vadd.f32 %v6224_v9, %v6078_v42 }
 0x2b9   : > { %v1017_v32 = vpop.permute.xlu1 %1016  ;;  %v2399_v3 = vadd.f32 %v10741_v41, %v2250_v0  ;;  %v2398_v53 = vadd.f32 %v10755_v50, %v2249_v30  ;;  %v3336_v31 = vpack.c.bf16 %v3240_v2, %v3238_v19  ;;  %v12381_v2 = vpop.f32.mrf.mxu1 }
 0x2ba   : > { %v3337_v40 = vpack.c.bf16 %v3241_v37, %v3239_v45  ;;  %15285 = vst [vmem:[#allocation159_spill] sm:$0xff] %v12367_v27  ;;  %15286 = vst [vmem:[#allocation160_spill] sm:$0xff] %v12371_v58  ;;  %v1191_v61 = vmul.f32 %v10709_v52, %v1017_v32  ;;  %v1192_v15 = vmul.f32 %v10698_v48, %v1017_v32 }
 0x2bb   : > { %v2527_v28 = vmax.f32 %v2399_v3, 0.0  ;;  %v2526_v20 = vmax.f32 %v2398_v53, 0.0  ;;  %v5805_v7 = vmul.f32 %v11851_v46, %v1017_v32  ;;  %v5806_v43 = vmul.f32 %v11844_v59, %v1017_v32 }
 0x2bc   : > { %3765 = vmatprep.mubr.bf16.mxu1 %v3337_v40  ;;  %v2123_v37 = vmul.f32 %v10706_v51, %v1959_v4  ;;  %v2124_v3 = vmul.f32 %v10718_v56, %v1959_v4  ;;  %v12386_v40 = vpop.f32.mrf.mxu1 }
 0x2bd   : > { %v2601_v0 = vpack.c.bf16 %v2527_v28, %v2525_v22  ;;  %v2600_v30 = vpack.c.bf16 %v2526_v20, %v2524_v26  ;;  %3766 = vmatmul.mubr.bf16.gmra.mxu1 %v3336_v31  ;;  %v6225_v26 = vmul.f32 %v11860_v6, %v1959_v4  ;;  %v1193_v28 = vmul.f32 %v10709_v52, %v12311_v29 }
 0x2be   : > { %v1429_v12 = vpop.permute.xlu1 %1428  ;;  %v1194_v20 = vmul.f32 %v10698_v48, %v12311_v29 }
 0x2bf   : > { %v1593_v54 = vmul.f32 %v10693_v47, %v1429_v12  ;;  %v1594_v57 = vmul.f32 %v10701_v49, %v1429_v12  ;;  %v5951_v36 = vmul.f32 %v11857_v1, %v1429_v12  ;;  %v5952_v45 = vmul.f32 %v10480_v35, %v1429_v12  ;;  %3117 = vmatprep.mubr.bf16.mxu0 %v2601_v0 }
 0x2c0   : > { %3118 = vmatmul.mubr.bf16.gmra.mxu0 %v2600_v30 }
 0x2c1   : > { %v1721_v53 = vadd.f32 %v1593_v54, %v1191_v61  ;;  %v1722_v32 = vadd.f32 %v1594_v57, %v1192_v15  ;;  %v6079_v42 = vadd.f32 %v5951_v36, %v5805_v7  ;;  %v6080_v9 = vadd.f32 %v5952_v45, %v5806_v43 }
 0x2c2   : > { %v3019_v19 = vpop.f32.mrf.mxu0  ;;  %v1433_v22 = vpop.permute.xlu1 %1432  ;;  %v5807_v7 = vmul.f32 %v11851_v46, %v12311_v29  ;;  %v5808_v43 = vmul.f32 %v11844_v59, %v12311_v29  ;;  %v6226_v57 = vmul.f32 %v11863_v25, %v1959_v4 }
 0x2c3   : > { %v1595_v31 = vmul.f32 %v10693_v47, %v1433_v22  ;;  %v1596_v0 = vmul.f32 %v10701_v49, %v1433_v22  ;;  %v2251_v61 = vadd.f32 %v2123_v37, %v1721_v53  ;;  %v2252_v15 = vadd.f32 %v2124_v3, %v1722_v32  ;;  %v12405_v3 = vpop.f32.mrf.mxu1 }
 0x2c4   : > { %v3021_v30 = vpop.f32.mrf.mxu0  ;;  %v5953_v36 = vmul.f32 %v11857_v1, %v1433_v22  ;;  %v5954_v45 = vmul.f32 %v10480_v35, %v1433_v22  ;;  %v12403_v37 = vadd.f32 %v6225_v26, %v6079_v42  ;;  %15288 = vst [vmem:[#allocation162_spill] sm:$0xff] %v12405_v3  ;;  %v3020_v4 = vadd.f32 %v3019_v19, %v11464_v63 }
 0x2c5   : > { %v3022_v12 = vadd.f32 %v3021_v30, %v11461_v44  ;;  %v1723_v53 = vadd.f32 %v1595_v31, %v1193_v28  ;;  %v1724_v32 = vadd.f32 %v1596_v0, %v1194_v20  ;;  %v2401_v22 = vadd.f32 %v10741_v41, %v2252_v15  ;;  %v12416_v18 = vpop.f32.mrf.mxu1 }
 0x2c6   : > { %v3023_v54 = vpop.f32.mrf.mxu0  ;;  %15287 = vst [vmem:[#allocation161_spill] sm:$0xff] %v12403_v37  ;;  %v12413_v37 = vadd.f32 %v6226_v57, %v6080_v9  ;;  %v6081_v31 = vadd.f32 %v5953_v36, %v5807_v7  ;;  %v6082_v15 = vadd.f32 %v5954_v45, %v5808_v43 }
 0x2c7   : > { %v3024_v58 = vadd.f32 %v3023_v54, %v11464_v63  ;;  %v1963_v27 = vpop.permute.xlu1 %1962  ;;  %v2400_v54 = vadd.f32 %v10755_v50, %v2251_v61  ;;  %v3243_v38 = vmax.f32 %v3022_v12, 0.0  ;;  %v3242_v12 = vmax.f32 %v3020_v4, 0.0 }
 0x2c8   : > { %v2125_v29 = vmul.f32 %v10706_v51, %v1963_v27  ;;  %v2126_v30 = vmul.f32 %v10718_v56, %v1963_v27  ;;  %v3025_v62 = vpop.f32.mrf.mxu0  ;;  %15289 = vst [vmem:[#allocation163_spill] sm:$0xff] %v12413_v37  ;;  %v6227_v0 = vmul.f32 %v11860_v6, %v1963_v27  ;;  %v6228_v61 = vmul.f32 %v11863_v25, %v1963_v27 }
 0x2c9   : > { %v3026_v8 = vadd.f32 %v3025_v62, %v11461_v44  ;;  %v3244_v28 = vmax.f32 %v3024_v58, 0.0 }
 0x2ca   : > { %v2253_v42 = vadd.f32 %v2125_v29, %v1723_v53  ;;  %v2254_v26 = vadd.f32 %v2126_v30, %v1724_v32  ;;  %v2529_v53 = vmax.f32 %v2401_v22, 0.0  ;;  %v2528_v32 = vmax.f32 %v2400_v54, 0.0  ;;  %v12425_v29 = vpop.f32.mrf.mxu1 }
 0x2cb   : > { %v3245_v20 = vmax.f32 %v3026_v8, 0.0  ;;  %v12421_v8 = vadd.f32 %v6227_v0, %v6081_v31  ;;  %v3338_v7 = vpack.c.bf16 %v3244_v28, %v3242_v12  ;;  %v12423_v36 = vadd.f32 %v6228_v61, %v6082_v15 }
 0x2cc   : > { %v1027_v17 = vpop.permute.xlu1 %1026  ;;  %v2403_v19 = vadd.f32 %v10741_v41, %v2254_v26  ;;  %v2402_v62 = vadd.f32 %v10755_v50, %v2253_v42  ;;  %v1967_v26 = vpop.permute.xlu0 %1966 }
 0x2cd   : > { %v3339_v9 = vpack.c.bf16 %v3245_v20, %v3243_v38  ;;  %15290 = vst [vmem:[#allocation164_spill] sm:$0xff] %v12421_v8  ;;  %15291 = vst [vmem:[#allocation165_spill] sm:$0xff] %v12423_v36  ;;  %v1195_v43 = vmul.f32 %v10709_v52, %v1027_v17  ;;  %v1196_v27 = vmul.f32 %v10698_v48, %v1027_v17 }
 0x2ce   : > { %v2531_v57 = vmax.f32 %v2403_v19, 0.0  ;;  %v2530_v58 = vmax.f32 %v2402_v62, 0.0  ;;  %v5809_v45 = vmul.f32 %v11851_v46, %v1027_v17  ;;  %v5810_v38 = vmul.f32 %v11844_v59, %v1027_v17  ;;  %v12437_v19 = vpop.f32.mrf.mxu1 }
 0x2cf   : > { %3775 = vmatprep.mubr.bf16.mxu1 %v3339_v9  ;;  %v2127_v31 = vmul.f32 %v10706_v51, %v1967_v26  ;;  %v2128_v0 = vmul.f32 %v10718_v56, %v1967_v26 }
 0x2d0   : > { %v2603_v30 = vpack.c.bf16 %v2531_v57, %v2529_v53  ;;  %v2602_v42 = vpack.c.bf16 %v2530_v58, %v2528_v32  ;;  %3776 = vmatmul.mubr.bf16.gmra.mxu1 %v3338_v7  ;;  %v6229_v32 = vmul.f32 %v11860_v6, %v1967_v26  ;;  %v12440_v9 = vpop.f32.mrf.mxu1  ;;  %v1197_v57 = vmul.f32 %v10709_v52, %v12341_v24 }
 0x2d1   : > { %v1437_v4 = vpop.permute.xlu1 %1436  ;;  %15292 = vst [vmem:[#allocation166_spill] sm:$0xff] %v12440_v9  ;;  %v1198_v58 = vmul.f32 %v10698_v48, %v12341_v24 }
 0x2d2   : > { %v1597_v22 = vmul.f32 %v10693_v47, %v1437_v4  ;;  %v1598_v54 = vmul.f32 %v10701_v49, %v1437_v4  ;;  %v5955_v28 = vmul.f32 %v11857_v1, %v1437_v4  ;;  %v5956_v20 = vmul.f32 %v10480_v35, %v1437_v4  ;;  %3127 = vmatprep.mubr.bf16.mxu0 %v2603_v30 }
 0x2d3   : > { %3128 = vmatmul.mubr.bf16.gmra.mxu0 %v2602_v42 }
 0x2d4   : > { %v1725_v62 = vadd.f32 %v1597_v22, %v1195_v43  ;;  %v1726_v17 = vadd.f32 %v1598_v54, %v1196_v27  ;;  %v6083_v15 = vadd.f32 %v5955_v28, %v5809_v45  ;;  %v6084_v61 = vadd.f32 %v5956_v20, %v5810_v38 }
 0x2d5   : > { %v3029_v12 = vpop.f32.mrf.mxu0  ;;  %v1441_v53 = vpop.permute.xlu1 %1440  ;;  %v5811_v45 = vmul.f32 %v11851_v46, %v12341_v24  ;;  %v5812_v38 = vmul.f32 %v11844_v59, %v12341_v24  ;;  %v6230_v54 = vmul.f32 %v11863_v25, %v1967_v26 }
 0x2d6   : > { %v1599_v7 = vmul.f32 %v10693_v47, %v1441_v53  ;;  %v1600_v30 = vmul.f32 %v10701_v49, %v1441_v53  ;;  %v2255_v43 = vadd.f32 %v2127_v31, %v1725_v62  ;;  %v2256_v27 = vadd.f32 %v2128_v0, %v1726_v17  ;;  %v12459_v0 = vpop.f32.mrf.mxu1 }
 0x2d7   : > { %v3031_v42 = vpop.f32.mrf.mxu0  ;;  %v5957_v28 = vmul.f32 %v11857_v1, %v1441_v53  ;;  %v5958_v20 = vmul.f32 %v10480_v35, %v1441_v53  ;;  %v12457_v31 = vadd.f32 %v6229_v32, %v6083_v15  ;;  %15294 = vst [vmem:[#allocation168_spill] sm:$0xff] %v12459_v0  ;;  %v3030_v13 = vadd.f32 %v3029_v12, %v11464_v63 }
 0x2d8   : > { %v3032_v4 = vadd.f32 %v3031_v42, %v11461_v44  ;;  %v1727_v62 = vadd.f32 %v1599_v7, %v1197_v57  ;;  %v1728_v17 = vadd.f32 %v1600_v30, %v1198_v58  ;;  %v2404_v26 = vadd.f32 %v10755_v50, %v2255_v43  ;;  %v12470_v10 = vpop.f32.mrf.mxu1 }
 0x2d9   : > { %v3033_v22 = vpop.f32.mrf.mxu0  ;;  %15293 = vst [vmem:[#allocation167_spill] sm:$0xff] %v12457_v31  ;;  %v12467_v31 = vadd.f32 %v6230_v54, %v6084_v61  ;;  %v6085_v7 = vadd.f32 %v5957_v28, %v5811_v45  ;;  %15296 = vst [vmem:[#allocation170_spill] sm:$0xff] %v12470_v10 }
 0x2da   : > { %v3034_v36 = vadd.f32 %v3033_v22, %v11464_v63  ;;  %v1971_v8 = vpop.permute.xlu1 %1970  ;;  %v2405_v22 = vadd.f32 %v10741_v41, %v2256_v27  ;;  %v3247_v11 = vmax.f32 %v3032_v4, 0.0  ;;  %v3246_v4 = vmax.f32 %v3030_v13, 0.0 }
 0x2db   : > { %v2129_v24 = vmul.f32 %v10706_v51, %v1971_v8  ;;  %v2130_v42 = vmul.f32 %v10718_v56, %v1971_v8  ;;  %v3035_v37 = vpop.f32.mrf.mxu0  ;;  %15295 = vst [vmem:[#allocation169_spill] sm:$0xff] %v12467_v31  ;;  %v6231_v30 = vmul.f32 %v11860_v6, %v1971_v8  ;;  %v6232_v27 = vmul.f32 %v11863_v25, %v1971_v8 }
 0x2dc   : > { %v3036_v53 = vadd.f32 %v3035_v37, %v11461_v44  ;;  %v3248_v57 = vmax.f32 %v3034_v36, 0.0  ;;  %v6086_v37 = vadd.f32 %v5958_v20, %v5812_v38 }
 0x2dd   : > { %v2257_v15 = vadd.f32 %v2129_v24, %v1727_v62  ;;  %v2258_v32 = vadd.f32 %v2130_v42, %v1728_v17  ;;  %v2533_v62 = vmax.f32 %v2405_v22, 0.0  ;;  %v2532_v17 = vmax.f32 %v2404_v26, 0.0  ;;  %v12479_v42 = vpop.f32.mrf.mxu1 }
 0x2de   : > { %v3249_v58 = vmax.f32 %v3036_v53, 0.0  ;;  %v12475_v24 = vadd.f32 %v6231_v30, %v6085_v7  ;;  %v3340_v45 = vpack.c.bf16 %v3248_v57, %v3246_v4  ;;  %v12477_v28 = vadd.f32 %v6232_v27, %v6086_v37 }
 0x2df   : > { %v2406_v43 = vadd.f32 %v10755_v50, %v2257_v15  ;;  %v1037_v14 = vpop.permute.xlu1 %1036  ;;  %v2407_v12 = vadd.f32 %v10741_v41, %v2258_v32  ;;  %v1975_v15 = vpop.permute.xlu0 %1974 }
 0x2e0   : > { %v3341_v61 = vpack.c.bf16 %v3249_v58, %v3247_v11  ;;  %15297 = vst [vmem:[#allocation171_spill] sm:$0xff] %v12475_v24  ;;  %15298 = vst [vmem:[#allocation172_spill] sm:$0xff] %v12477_v28  ;;  %v1199_v38 = vmul.f32 %v10709_v52, %v1037_v14  ;;  %v1200_v13 = vmul.f32 %v10698_v48, %v1037_v14  ;;  %v12485_v26 = vpop.f32.mrf.mxu1 }
 0x2e1   : > { %v2535_v54 = vmax.f32 %v2407_v12, 0.0  ;;  %v2534_v36 = vmax.f32 %v2406_v43, 0.0  ;;  %v5813_v8 = vmul.f32 %v11851_v46, %v1037_v14  ;;  %v5814_v11 = vmul.f32 %v11844_v59, %v1037_v14  ;;  %15299 = vst [vmem:[#allocation173_spill] sm:$0xff] %v12485_v26 }
 0x2e2   : > { %3785 = vmatprep.mubr.bf16.mxu1 %v3341_v61  ;;  %v2131_v30 = vmul.f32 %v10706_v51, %v1975_v15  ;;  %v2132_v43 = vmul.f32 %v10718_v56, %v1975_v15  ;;  %v6233_v61 = vmul.f32 %v11860_v6, %v1975_v15 }
 0x2e3   : > { %v2605_v53 = vpack.c.bf16 %v2535_v54, %v2533_v62  ;;  %v2604_v32 = vpack.c.bf16 %v2534_v36, %v2532_v17  ;;  %3786 = vmatmul.mubr.bf16.gmra.mxu1 %v3340_v45  ;;  %v12493_v17 = vpop.f32.mrf.mxu1 }
 0x2e4   : > { %v1445_v20 = vpop.permute.xlu1 %1444  ;;  %15300 = vst [vmem:[#allocation174_spill] sm:$0xff] %v12493_v17 }
 0x2e5   : > { %v1601_v22 = vmul.f32 %v10693_v47, %v1445_v20  ;;  %v1602_v57 = vmul.f32 %v10701_v49, %v1445_v20  ;;  %v5959_v58 = vmul.f32 %v11857_v1, %v1445_v20  ;;  %v5960_v7 = vmul.f32 %v10480_v35, %v1445_v20  ;;  %3137 = vmatprep.mubr.bf16.mxu0 %v2605_v53 }
 0x2e6   : > { %3138 = vmatmul.mubr.bf16.gmra.mxu0 %v2604_v32  ;;  %v1201_v53 = vmul.f32 %v10709_v52, %v12359_v16  ;;  %v1202_v32 = vmul.f32 %v10698_v48, %v12359_v16 }
 0x2e7   : > { %v1729_v12 = vadd.f32 %v1601_v22, %v1199_v38  ;;  %v1730_v14 = vadd.f32 %v1602_v57, %v1200_v13  ;;  %v6087_v37 = vadd.f32 %v5959_v58, %v5813_v8  ;;  %v6088_v27 = vadd.f32 %v5960_v7, %v5814_v11  ;;  %v12508_v58 = vpop.f32.mrf.mxu1 }
 0x2e8   : > { %v3039_v4 = vpop.f32.mrf.mxu0  ;;  %v1449_v62 = vpop.permute.xlu1 %1448  ;;  %v5815_v8 = vmul.f32 %v11851_v46, %v12359_v16  ;;  %v5816_v11 = vmul.f32 %v11844_v59, %v12359_v16  ;;  %v6234_v57 = vmul.f32 %v11863_v25, %v1975_v15  ;;  %15301 = vst [vmem:[#allocation175_spill] sm:$0xff] %v12508_v58 }
 0x2e9   : > { %v1603_v54 = vmul.f32 %v10693_v47, %v1449_v62  ;;  %v1604_v36 = vmul.f32 %v10701_v49, %v1449_v62  ;;  %v2259_v38 = vadd.f32 %v2131_v30, %v1729_v12  ;;  %v2260_v13 = vadd.f32 %v2132_v43, %v1730_v14 }
 0x2ea   : > { %v3041_v45 = vpop.f32.mrf.mxu0  ;;  %v5961_v7 = vmul.f32 %v11857_v1, %v1449_v62  ;;  %v5962_v28 = vmul.f32 %v10480_v35, %v1449_v62  ;;  %v12513_v12 = vadd.f32 %v6233_v61, %v6087_v37  ;;  %v3040_v26 = vadd.f32 %v3039_v4, %v11464_v63  ;;  %v12523_v61 = vpop.f32.mrf.mxu1 }
 0x2eb   : > { %v3042_v20 = vadd.f32 %v3041_v45, %v11461_v44  ;;  %v1731_v14 = vadd.f32 %v1603_v54, %v1201_v53  ;;  %v1732_v24 = vadd.f32 %v1604_v36, %v1202_v32  ;;  %v2408_v15 = vadd.f32 %v10755_v50, %v2259_v38  ;;  %15304 = vst [vmem:[#allocation178_spill] sm:$0xff] %v12523_v61 }
 0x2ec   : > { %v3043_v22 = vpop.f32.mrf.mxu0  ;;  %15302 = vst [vmem:[#allocation176_spill] sm:$0xff] %v12513_v12  ;;  %v2409_v62 = vadd.f32 %v10741_v41, %v2260_v13  ;;  %v12521_v37 = vadd.f32 %v6234_v57, %v6088_v27  ;;  %v6089_v53 = vadd.f32 %v5961_v7, %v5815_v8 }
 0x2ed   : > { %v3044_v30 = vadd.f32 %v3043_v22, %v11464_v63  ;;  %v1979_v43 = vpop.permute.xlu1 %1978  ;;  %v3251_v17 = vmax.f32 %v3042_v20, 0.0  ;;  %v12529_v20 = vpop.f32.mrf.mxu1  ;;  %v2536_v57 = vmax.f32 %v2408_v15, 0.0 }
 0x2ee   : > { %v2133_v16 = vmul.f32 %v10706_v51, %v1979_v43  ;;  %v2134_v45 = vmul.f32 %v10718_v56, %v1979_v43  ;;  %v3045_v31 = vpop.f32.mrf.mxu0  ;;  %15303 = vst [vmem:[#allocation177_spill] sm:$0xff] %v12521_v37  ;;  %v6235_v32 = vmul.f32 %v11860_v6, %v1979_v43  ;;  %v6236_v13 = vmul.f32 %v11863_v25, %v1979_v43 }
 0x2ef   : > { %v3046_v58 = vadd.f32 %v3045_v31, %v11461_v44  ;;  %v3252_v54 = vmax.f32 %v3044_v30, 0.0  ;;  %v6090_v31 = vadd.f32 %v5962_v28, %v5816_v11  ;;  %15305 = vst [vmem:[#allocation179_spill] sm:$0xff] %v12529_v20  ;;  %v2537_v27 = vmax.f32 %v2409_v62, 0.0  ;;  %v12535_v28 = vpop.f32.mrf.mxu1 }
 0x2f0   : > { %v2261_v22 = vadd.f32 %v2133_v16, %v1731_v14  ;;  %v2262_v9 = vadd.f32 %v2134_v45, %v1732_v24  ;;  %v3250_v24 = vmax.f32 %v3040_v26, 0.0  ;;  %v1983_v45 = vpop.permute.xlu0 %1982  ;;  %15308 = vst [vmem:[#allocation182_spill] sm:$0xff] %v12535_v28 }
 0x2f1   : > { %v3253_v36 = vmax.f32 %v3046_v58, 0.0  ;;  %v12531_v58 = vadd.f32 %v6235_v32, %v6089_v53  ;;  %v12533_v7 = vadd.f32 %v6236_v13, %v6090_v31  ;;  %v12548_v31 = vld [vmem:[%s14848_s6] sm:$0x3]  ;;  %v12550_v13 = vpop.f32.mrf.mxu1 }
 0x2f2   : > { %v2410_v38 = vadd.f32 %v10755_v50, %v2261_v22  ;;  %v1047_v12 = vpop.permute.xlu1 %1046  ;;  %v2411_v4 = vadd.f32 %v10741_v41, %v2262_v9  ;;  %v3342_v8 = vpack.c.bf16 %v3252_v54, %v3250_v24  ;;  %15309 = vst [vmem:[#allocation183_spill] sm:$0xff] %v12550_v13 }
 0x2f3   : > { %v3343_v14 = vpack.c.bf16 %v3253_v36, %v3251_v17  ;;  %15306 = vst [vmem:[#allocation180_spill] sm:$0xff] %v12531_v58  ;;  %15307 = vst [vmem:[#allocation181_spill] sm:$0xff] %v12533_v7  ;;  %v1203_v11 = vmul.f32 %v10709_v52, %v1047_v12  ;;  %v5817_v26 = vmul.f32 %v11851_v46, %v1047_v12 }
 0x2f4   : > { %v2539_v16 = vmax.f32 %v2411_v4, 0.0  ;;  %v2538_v30 = vmax.f32 %v2410_v38, 0.0  ;;  %v1204_v36 = vmul.f32 %v10698_v48, %v1047_v12  ;;  %v5818_v53 = vmul.f32 %v11844_v59, %v1047_v12  ;;  %v1052_v38 = vpop.permute.xlu0 %1051 }
 0x2f5   : > { %3795 = vmatprep.mubr.bf16.mxu1 %v3343_v14  ;;  %v2135_v14 = vmul.f32 %v10706_v51, %v1983_v45  ;;  %v1205_v12 = vmul.f32 %v10709_v52, %v1052_v38 }
 0x2f6   : > { %v2607_v22 = vpack.c.bf16 %v2539_v16, %v2537_v27  ;;  %v2606_v9 = vpack.c.bf16 %v2538_v30, %v2536_v57  ;;  %3796 = vmatmul.mubr.bf16.gmra.mxu1 %v3342_v8  ;;  %v2136_v16 = vmul.f32 %v10718_v56, %v1983_v45  ;;  %v1206_v8 = vmul.f32 %v10698_v48, %v1052_v38 }
 0x2f7   : > { %v1453_v43 = vpop.permute.xlu1 %1452 }
 0x2f8   : > { %v1605_v17 = vmul.f32 %v10693_v47, %v1453_v43  ;;  %v1606_v15 = vmul.f32 %v10701_v49, %v1453_v43  ;;  %v5963_v62 = vmul.f32 %v11857_v1, %v1453_v43  ;;  %v5964_v54 = vmul.f32 %v10480_v35, %v1453_v43  ;;  %3147 = vmatprep.mubr.bf16.mxu0 %v2607_v22 }
 0x2f9   : > { %3148 = vmatmul.mubr.bf16.gmra.mxu0 %v2606_v9 }
 0x2fa   : > { %v1733_v32 = vadd.f32 %v1605_v17, %v1203_v11  ;;  %v6091_v4 = vadd.f32 %v5963_v62, %v5817_v26  ;;  %v1734_v24 = vadd.f32 %v1606_v15, %v1204_v36  ;;  %v6092_v57 = vadd.f32 %v5964_v54, %v5818_v53  ;;  %v12559_v17 = vpop.f32.mrf.mxu1 }
 0x2fb   : > { %v3049_v27 = vpop.f32.mrf.mxu0  ;;  %v1457_v30 = vpop.permute.xlu1 %1456  ;;  %15310 = vst [vmem:[#allocation184_spill] sm:$0xff] %v12559_v17  ;;  %v5819_v15 = vmul.f32 %v11851_v46, %v1052_v38  ;;  %v5820_v62 = vmul.f32 %v11844_v59, %v1052_v38  ;;  %v6237_v53 = vmul.f32 %v11860_v6, %v1983_v45  ;;  %v6238_v26 = vmul.f32 %v11863_v25, %v1983_v45 }
 0x2fc   : > { %v1607_v22 = vmul.f32 %v10693_v47, %v1457_v30  ;;  %v1608_v9 = vmul.f32 %v10701_v49, %v1457_v30  ;;  %v2263_v43 = vadd.f32 %v2135_v14, %v1733_v32  ;;  %v2264_v36 = vadd.f32 %v2136_v16, %v1734_v24  ;;  %v12568_v32 = vpop.f32.mrf.mxu1 }
 0x2fd   : > { %v3051_v11 = vpop.f32.mrf.mxu0  ;;  %v5965_v7 = vmul.f32 %v11857_v1, %v1457_v30  ;;  %15311 = vst [vmem:[#allocation185_spill] sm:$0xff] %v12568_v32  ;;  %v3050_v16 = vadd.f32 %v3049_v27, %v11464_v63  ;;  %v5966_v61 = vmul.f32 %v10480_v35, %v1457_v30  ;;  %v12577_v32 = vadd.f32 %v6237_v53, %v6091_v4 }
 0x2fe   : > { %v3052_v58 = vadd.f32 %v3051_v11, %v11461_v44  ;;  %v1735_v14 = vadd.f32 %v1607_v22, %v1205_v12  ;;  %v1736_v13 = vadd.f32 %v1608_v9, %v1206_v8  ;;  %v2413_v11 = vadd.f32 %v10741_v41, %v2264_v36  ;;  %v1062_v9 = vpop.permute.xlu0 %1061  ;;  %v12581_v3 = vpop.f32.mrf.mxu1 }
 0x2ff   : > { %v3053_v54 = vpop.f32.mrf.mxu0  ;;  %15312 = vst [vmem:[#allocation186_spill] sm:$0xff] %v12577_v32  ;;  %v12579_v0 = vadd.f32 %v6238_v26, %v6092_v57 }
 0x300   : > { %v3054_v37 = vadd.f32 %v3053_v54, %v11464_v63  ;;  %v1987_v20 = vpop.permute.xlu1 %1986  ;;  %v2412_v54 = vadd.f32 %v10755_v50, %v2263_v43  ;;  %v3255_v12 = vmax.f32 %v3052_v58, 0.0  ;;  %v6093_v43 = vadd.f32 %v5965_v7, %v5819_v15 }
 0x301   : > { %v2137_v28 = vmul.f32 %v10706_v51, %v1987_v20  ;;  %v2138_v38 = vmul.f32 %v10718_v56, %v1987_v20  ;;  %v3055_v24 = vpop.f32.mrf.mxu0  ;;  %15313 = vst [vmem:[#allocation187_spill] sm:$0xff] %v12579_v0  ;;  %v6239_v30 = vmul.f32 %v11860_v6, %v1987_v20  ;;  %v3254_v58 = vmax.f32 %v3050_v16, 0.0 }
 0x302   : > { %v3056_v17 = vadd.f32 %v3055_v24, %v11461_v44  ;;  %v3256_v8 = vmax.f32 %v3054_v37, 0.0  ;;  %v2541_v37 = vmax.f32 %v2413_v11, 0.0 }
 0x303   : > { %v2265_v45 = vadd.f32 %v2137_v28, %v1735_v14  ;;  %v2266_v10 = vadd.f32 %v2138_v38, %v1736_v13  ;;  %v15314_v28 = vunpack.c.l.bf16 %v12548_v31  ;;  %v2540_v13 = vmax.f32 %v2412_v54, 0.0 }
 0x304   : > { %v3257_v22 = vmax.f32 %v3056_v17, 0.0  ;;  %v12589_v53 = vadd.f32 %v6239_v30, %v6093_v43  ;;  %v3344_v14 = vpack.c.bf16 %v3256_v8, %v3254_v58  ;;  %v6094_v38 = vadd.f32 %v5966_v61, %v5820_v62 }
 0x305   : > { %v2414_v27 = vadd.f32 %v10755_v50, %v2265_v45  ;;  %v1057_v24 = vpop.permute.xlu1 %1056  ;;  %v2415_v36 = vadd.f32 %v10741_v41, %v2266_v10  ;;  %v3412_v4 = vrot.slane %v15314_v28, %v10667_v33  ;;  %v6240_v45 = vmul.f32 %v11863_v25, %v1987_v20  ;;  %v12592_v10 = vpop.f32.mrf.mxu1 }
 0x306   : > { %v3345_v17 = vpack.c.bf16 %v3257_v22, %v3255_v12  ;;  %15315 = vst [vmem:[#allocation188_spill] sm:$0xff] %v12589_v53  ;;  %v1207_v16 = vmul.f32 %v10709_v52, %v1057_v24  ;;  %v5821_v11 = vmul.f32 %v11851_v46, %v1057_v24  ;;  %v1991_v12 = vpop.permute.xlu0 %1990 }
 0x307   : > { %v2543_v57 = vmax.f32 %v2415_v36, 0.0  ;;  %v2542_v26 = vmax.f32 %v2414_v27, 0.0  ;;  %v12595_v0 = vrot.slane %v3412_v4, %v10670_v34  ;;  %v12599_v22 = vadd.f32 %v6240_v45, %v6094_v38  ;;  %v12611_v30 = vpop.f32.mrf.mxu1 }
 0x308   : > { %3805 = vmatprep.mubr.bf16.mxu1 %v3345_v17  ;;  %v1208_v27 = vmul.f32 %v10698_v48, %v1057_v24  ;;  %v5822_v36 = vmul.f32 %v11844_v59, %v1057_v24  ;;  %v2139_v4 = vmul.f32 %v10706_v51, %v1991_v12  ;;  %v15317_v24 = vunpack.c.l.bf16 %v12548_v31 }
 0x309   : > { %v2609_v7 = vpack.c.bf16 %v2543_v57, %v2541_v37  ;;  %v2608_v15 = vpack.c.bf16 %v2542_v26, %v2540_v13  ;;  %3806 = vmatmul.mubr.bf16.gmra.mxu1 %v3344_v14  ;;  %15316 = vst [vmem:[#allocation189_spill] sm:$0xff] %v12599_v22  ;;  %v12609_v43 = vadd.f32 %v12346_v23, %v12595_v0  ;;  %v12615_v26 = vpop.f32.mrf.mxu1 }
 0x30a   : > { %v1461_v54 = vpop.permute.xlu1 %1460  ;;  %v2140_v13 = vmul.f32 %v10718_v56, %v1991_v12  ;;  %v3408_v38 = vrot.slane %v15317_v24, %v10670_v34  ;;  %v12622_v23 = vadd.f32 %v12318_v39, %v12595_v0  ;;  %v5824_v31 = vmul.f32 %v11844_v59, %v1062_v9 }
 0x30b   : > { %v1609_v61 = vmul.f32 %v10693_v47, %v1461_v54  ;;  %v1610_v20 = vmul.f32 %v10701_v49, %v1461_v54  ;;  %v5967_v62 = vmul.f32 %v11857_v1, %v1461_v54  ;;  %v5968_v8 = vmul.f32 %v10480_v35, %v1461_v54  ;;  %3157 = vmatprep.mubr.bf16.mxu0 %v2609_v7 }
 0x30c   : > { %3158 = vmatmul.mubr.bf16.gmra.mxu0 %v2608_v15  ;;  %v1210_v54 = vmul.f32 %v10698_v48, %v1062_v9  ;;  %v6241_v39 = vmul.f32 %v11860_v6, %v1991_v12 }
 0x30d   : > { %v1737_v28 = vadd.f32 %v1609_v61, %v1207_v16  ;;  %v6095_v58 = vadd.f32 %v5967_v62, %v5821_v11  ;;  %v1738_v37 = vadd.f32 %v1610_v20, %v1208_v27  ;;  %v6096_v57 = vadd.f32 %v5968_v8, %v5822_v36  ;;  %v12632_v27 = vpop.f32.mrf.mxu1 }
 0x30e   : > { %v3059_v17 = vpop.f32.mrf.mxu0  ;;  %v1465_v14 = vpop.permute.xlu1 %1464  ;;  %v1209_v11 = vmul.f32 %v10709_v52, %v1062_v9  ;;  %v5823_v20 = vmul.f32 %v11851_v46, %v1062_v9 }
 0x30f   : > { %v1611_v45 = vmul.f32 %v10693_v47, %v1465_v14  ;;  %v1612_v7 = vmul.f32 %v10701_v49, %v1465_v14  ;;  %v2267_v61 = vadd.f32 %v2139_v4, %v1737_v28  ;;  %v2268_v62 = vadd.f32 %v2140_v13, %v1738_v37  ;;  %v9867_v13 = vld [vmem:[%s14851_s9 + $0x70] ss:$8 sps:$4 sm:$0xff]  }
 0x310   : > { %v3061_v15 = vpop.f32.mrf.mxu0  ;;  %v6242_v47 = vmul.f32 %v11863_v25, %v1991_v12  ;;  %v3060_v49 = vadd.f32 %v3059_v17, %v11464_v63  ;;  %v9869_v12 = vld [vmem:[%s14851_s9 + $0x74] ss:$8 sps:$4 sm:$0xff]  }
 0x311   : > { %v3062_v36 = vadd.f32 %v3061_v15, %v11461_v44  ;;  %v1739_v28 = vadd.f32 %v1611_v45, %v1209_v11  ;;  %v1740_v4 = vadd.f32 %v1612_v7, %v1210_v54  ;;  %v2416_v17 = vadd.f32 %v10755_v50, %v2267_v61  ;;  %5099 = vmatprep.subr.bf16.mxu1 %v9869_v12 }
 0x312   : > { %v3063_v8 = vpop.f32.mrf.mxu0  ;;  %v5969_v15 = vmul.f32 %v11857_v1, %v1465_v14  ;;  %v5970_v45 = vmul.f32 %v10480_v35, %v1465_v14  ;;  %v2417_v54 = vadd.f32 %v10741_v41, %v2268_v62  ;;  %5100 = vmatpush1.bf16.msra.mxu1 %v9867_v13  ;;  %v12655_v61 = vadd.f32 %v6241_v39, %v6095_v58 }
 0x313   : > { %v3064_v52 = vadd.f32 %v3063_v8, %v11464_v63  ;;  %v1995_v48 = vpop.permute.xlu1 %1994  ;;  %v12652_v8 = vpop.f32.mrf.mxu1  ;;  %v12657_v53 = vadd.f32 %v6242_v47, %v6096_v57  ;;  %v3259_v14 = vmax.f32 %v3062_v36, 0.0 }
 0x314   : > { %v2141_v24 = vmul.f32 %v10706_v51, %v1995_v48  ;;  %v2142_v9 = vmul.f32 %v10718_v56, %v1995_v48  ;;  %v3065_v37 = vpop.f32.mrf.mxu0  ;;  %v6243_v7 = vmul.f32 %v11860_v6, %v1995_v48  ;;  %v6244_v22 = vmul.f32 %v11863_v25, %v1995_v48  ;;  %15318 = vst [vmem:[#allocation190_spill] sm:$0xff] %v12655_v61 }
 0x315   : > { %v3066_v56 = vadd.f32 %v3065_v37, %v11461_v44  ;;  %v3260_v16 = vmax.f32 %v3064_v52, 0.0  ;;  %15319 = vst [vmem:[#allocation191_spill] sm:$0xff] %v12657_v53  ;;  %v6097_v62 = vadd.f32 %v5969_v15, %v5823_v20  ;;  %v6098_v37 = vadd.f32 %v5970_v45, %v5824_v31  ;;  %v12664_v58 = vpop.f32.mrf.mxu1 }
 0x316   : > { %v2269_v51 = vadd.f32 %v2141_v24, %v1739_v28  ;;  %v2270_v11 = vadd.f32 %v2142_v9, %v1740_v4  ;;  %v2544_v24 = vmax.f32 %v2416_v17, 0.0  ;;  %v3258_v9 = vmax.f32 %v3060_v49, 0.0 }
 0x317   : > { %v3261_v28 = vmax.f32 %v3066_v56, 0.0  ;;  %v2545_v52 = vmax.f32 %v2417_v54, 0.0  ;;  %v12662_v48 = vrot.slane %v3408_v38, %v10670_v34  ;;  %v12666_v39 = vadd.f32 %v6243_v7, %v6097_v62  ;;  %v12673_v31 = vpop.f32.mrf.mxu1 }
 0x318   : > { %v2418_v32 = vadd.f32 %v10755_v50, %v2269_v51  ;;  %v2419_v4 = vadd.f32 %v10741_v41, %v2270_v11  ;;  %v3346_v57 = vpack.c.bf16 %v3260_v16, %v3258_v9  ;;  %v12668_v50 = vadd.f32 %v6244_v22, %v6098_v37 }
 0x319   : > { %v3347_v59 = vpack.c.bf16 %v3261_v28, %v3259_v14  ;;  %15320 = vst [vmem:[#allocation192_spill] sm:$0xff] %v12666_v39  ;;  %v3937_v41 = vmax.f32 %v12622_v23, 0.0  ;;  %v3634_v38 = vadd.f32 %v12386_v40, %v12595_v0  ;;  %v15322_v16 = vmax.f32 %v12609_v43, 0.0  ;;  %v12689_v23 = vpop.f32.mrf.mxu1 }
 0x31a   : > { %v2546_v12 = vmax.f32 %v2418_v32, 0.0  ;;  %v2547_v46 = vmax.f32 %v2419_v4, 0.0  ;;  %15321 = vst [vmem:[#allocation193_spill] sm:$0xff] %v12668_v50  ;;  %v3622_v32 = vadd.f32 %v12333_v60, %v12662_v48  ;;  %v3618_v22 = vadd.f32 %v12298_v21, %v12662_v48  ;;  %v9872_v60 = vld [vmem:[%s14851_s9 + $0x64] ss:$8 sps:$4 sm:$0xff]  }
 0x31b   : > { %3815 = vmatprep.mubr.bf16.mxu1 %v3347_v59  ;;  %v4065_v49 = vpack.c.bf16 %v15322_v16, %v3937_v41  ;;  %v3630_v59 = vadd.f32 %v12369_v5, %v12595_v0  ;;  %v3943_v36 = vmax.f32 %v3634_v38, 0.0  ;;  %5101 = vmatprep.subr.bf16.mxu1 %v9872_v60  ;;  %v3632_v15 = vadd.f32 %v12381_v2, %v12662_v48  ;;  %v12693_v45 = vpop.f32.mrf.mxu1  ;;  %v15324_v60 = vld [vmem:[#allocation168_spill] sm:$0xff] }
 0x31c   : > { %v2611_v47 = vpack.c.bf16 %v2547_v46, %v2545_v52  ;;  %v2610_v20 = vpack.c.bf16 %v2546_v12, %v2544_v24  ;;  %3816 = vmatmul.mubr.bf16.gmra.mxu1 %v3346_v57  ;;  %v9870_v46 = vld [vmem:[%s14851_s9 + $0x60] ss:$8 sps:$4 sm:$0xff]   ;;  %v3938_v40 = vmax.f32 %v3622_v32, 0.0  ;;  %v3936_v21 = vmax.f32 %v3618_v22, 0.0 }
 0x31d   : > { %5102 = vmatpush1.bf16.msra.mxu1 %v9870_v46  ;;  %v3941_v17 = vmax.f32 %v3630_v59, 0.0  ;;  %v3644_v51 = vadd.f32 %v12437_v19, %v12595_v0  ;;  %v3628_v14 = vadd.f32 %v12361_v55, %v12662_v48  ;;  %v3640_v2 = vadd.f32 %v12416_v18, %v12595_v0  ;;  %v12705_v19 = vpop.f32.mrf.mxu1  ;;  %v15323_v22 = vld [vmem:[#allocation162_spill] sm:$0xff] }
 0x31e   : > { %3167 = vmatprep.mubr.bf16.mxu0 %v2611_v47  ;;  %v4064_v5 = vpack.c.bf16 %v3938_v40, %v3936_v21  ;;  %v3942_v9 = vmax.f32 %v3632_v15, 0.0  ;;  %v3642_v18 = vadd.f32 %v12425_v29, %v12662_v48  ;;  %v3654_v16 = vadd.f32 %v12479_v42, %v12595_v0  ;;  %v9873_v29 = vld [vmem:[%s14851_s9 + $0x50] ss:$8 sps:$4 sm:$0xff]   ;;  %v9875_v42 = vld [vmem:[%s14851_s9 + $0x54] ss:$8 sps:$4 sm:$0xff]  }
 0x31f   : > { %3168 = vmatmul.mubr.bf16.gmra.mxu0 %v2610_v20  ;;  %v4067_v54 = vpack.c.bf16 %v3943_v36, %v3941_v17  ;;  %v3947_v37 = vmax.f32 %v3644_v51, 0.0  ;;  %v3940_v57 = vmax.f32 %v3628_v14, 0.0  ;;  %v12707_v41 = vpop.f32.mrf.mxu1  ;;  %v3945_v47 = vmax.f32 %v3640_v2, 0.0  ;;  %5103 = vmatprep.subr.bf16.mxu1 %v9875_v42 }
 0x320   : > { %4373 = vmatprep.mubr.bf16.mxu0 %v4065_v49  ;;  %v3638_v59 = vadd.f32 %v15323_v22, %v12662_v48  ;;  %v3650_v40 = vadd.f32 %v15324_v60, %v12595_v0  ;;  %v3951_v36 = vmax.f32 %v3654_v16, 0.0  ;;  %v15329_v22 = vld [vmem:[#allocation175_spill] sm:$0xff] }
 0x321   : > { %v3069_v43 = vpop.f32.mrf.mxu0  ;;  %v4066_v32 = vpack.c.bf16 %v3942_v9, %v3940_v57  ;;  %v4069_v49 = vpack.c.bf16 %v3947_v37, %v3945_v47  ;;  %v12715_v46 = vpop.f32.mrf.mxu1  ;;  %5104 = vmatpush1.bf16.msra.mxu1 %v9873_v29  ;;  %v15330_v29 = vld [vmem:[#allocation184_spill] sm:$0xff] }
 0x322   : > { %v3070_v28 = vadd.f32 %v3069_v43, %v11464_v63  ;;  %v3946_v43 = vmax.f32 %v3642_v18, 0.0  ;;  %v3944_v21 = vmax.f32 %v3638_v59, 0.0  ;;  %v3949_v17 = vmax.f32 %v3650_v40, 0.0 }
 0x323   : > { %v3071_v13 = vpop.f32.mrf.mxu0  ;;  %v3662_v59 = vadd.f32 %v15329_v22, %v12662_v48  ;;  %v3674_v42 = vadd.f32 %v15330_v29, %v12595_v0  ;;  %v3680_v22 = vadd.f32 %v12581_v3, %v12595_v0 }
 0x324   : > { %v3072_v11 = vadd.f32 %v3071_v13, %v11461_v44  ;;  %v3262_v55 = vmax.f32 %v3070_v28, 0.0  ;;  %v12725_v13 = vpop.f32.mrf.mxu1  ;;  %v4068_v15 = vpack.c.bf16 %v3946_v43, %v3944_v21  ;;  %v4071_v14 = vpack.c.bf16 %v3951_v36, %v3949_v17  ;;  %v15327_v28 = vld [vmem:[#allocation166_spill] sm:$0xff]  ;;  %v15331_v17 = vld [vmem:[#allocation173_spill] sm:$0xff] }
 0x325   : > { %v3073_v7 = vpop.f32.mrf.mxu0 }
 0x326   : > { %v3074_v56 = vadd.f32 %v3073_v7, %v11464_v63  ;;  %v3263_v12 = vmax.f32 %v3072_v11, 0.0  ;;  %v15325_v7 = vld [vmem:[#allocation170_spill] sm:$0xff]  ;;  %v12733_v2 = vpop.f32.mrf.mxu1 }
 0x327   : > { %v3075_v4 = vpop.f32.mrf.mxu0  ;;  %4374 = vmatmul.mubr.bf16.vlgmr.msra.gmra.mxu0 %v4064_v5  ;;  %v3652_v51 = vadd.f32 %v15325_v7, %v12662_v48  ;;  %v15326_v11 = vld [vmem:[#allocation178_spill] sm:$0xff] }
 0x328   : > { %v3076_v24 = vadd.f32 %v3075_v4, %v11461_v44  ;;  %4383 = vmatprep.mubr.bf16.mxu0 %v4067_v54  ;;  %v3264_v62 = vmax.f32 %v3074_v56, 0.0  ;;  %v3664_v56 = vadd.f32 %v15326_v11, %v12595_v0  ;;  %v3648_v4 = vadd.f32 %v15327_v28, %v12662_v48  ;;  %v15332_v7 = vld [vmem:[#allocation182_spill] sm:$0xff] }
 0x329   : > { %v3950_v37 = vmax.f32 %v3652_v51, 0.0  ;;  %v3670_v51 = vadd.f32 %v15332_v7, %v12595_v0  ;;  %v9876_v28 = vld [vmem:[%s14851_s9 + $0x40] ss:$8 sps:$4 sm:$0xff]  }
 0x32a   : > { %v3265_v52 = vmax.f32 %v3076_v24, 0.0  ;;  %v3348_v38 = vpack.c.bf16 %v3264_v62, %v3262_v55  ;;  %v15328_v24 = vld [vmem:[#allocation174_spill] sm:$0xff]  ;;  %v3955_v55 = vmax.f32 %v3664_v56, 0.0  ;;  %v3954_v56 = vmax.f32 %v3662_v59, 0.0 }
 0x32b   : > { %v3660_v9 = vadd.f32 %v15328_v24, %v12595_v0 }
 0x32c   : > { %v3349_v20 = vpack.c.bf16 %v3265_v52, %v3263_v12  ;;  %v12737_v12 = vpop.f32.mrf.mxu1 }
 0x32e   : > { %3825 = vmatprep.mubr.bf16.mxu1 %v3349_v20  ;;  %v12745_v60 = vpop.f32.mrf.mxu1 }
 0x32f   : > { %3826 = vmatmul.mubr.bf16.gmra.mxu1 %v3348_v38  ;;  %4384 = vmatmul.mubr.bf16.gmra.mxu0 %v4066_v32  ;;  %v3948_v32 = vmax.f32 %v3648_v4, 0.0  ;;  %v3953_v38 = vmax.f32 %v3660_v9, 0.0  ;;  %v9878_v4 = vld [vmem:[%s14851_s9 + $0x44] ss:$8 sps:$4 sm:$0xff]   ;;  %v3957_v9 = vmax.f32 %v3670_v51, 0.0 }
 0x330   : > { %4393 = vmatprep.mubr.bf16.mxu0 %v4069_v49  ;;  %5105 = vmatprep.subr.bf16.mxu1 %v9878_v4  ;;  %v9882_v51 = vld [vmem:[%s14851_s9 + $0x20] ss:$8 sps:$4 sm:$0xff]  }
 0x331   : > { %v4070_v49 = vpack.c.bf16 %v3950_v37, %v3948_v32  ;;  %v4073_v21 = vpack.c.bf16 %v3955_v55, %v3953_v38  ;;  %v15333_v37 = vld [vmem:[#allocation183_spill] sm:$0xff]  ;;  %5106 = vmatpush1.bf16.msra.mxu1 %v9876_v28  ;;  %v15335_v4 = vld [vmem:[#allocation185_spill] sm:$0xff] }
 0x332   : > { %v9879_v55 = vld [vmem:[%s14851_s9 + $0x30] ss:$8 sps:$4 sm:$0xff]  }
 0x334   : > { %v3079_v5 = vpop.f32.mrf.mxu0 }
 0x335   : > { %v3080_v47 = vadd.f32 %v3079_v5, %v11464_v63  ;;  %v3658_v5 = vadd.f32 %v15331_v17, %v12662_v48 }
 0x336   : > { %v3081_v54 = vpop.f32.mrf.mxu0 }
 0x337   : > { %4394 = vmatmul.mubr.bf16.gmra.mxu0 %v4068_v15  ;;  %v3082_v52 = vadd.f32 %v3081_v54, %v11461_v44  ;;  %v3266_v36 = vmax.f32 %v3080_v47, 0.0  ;;  %v12753_v54 = vpop.f32.mrf.mxu1  ;;  %v3952_v24 = vmax.f32 %v3658_v5, 0.0  ;;  %v9881_v47 = vld [vmem:[%s14851_s9 + $0x34] ss:$8 sps:$4 sm:$0xff]  }
 0x338   : > { %v3083_v62 = vpop.f32.mrf.mxu0  ;;  %4403 = vmatprep.mubr.bf16.mxu0 %v4071_v14  ;;  %v3959_v14 = vmax.f32 %v3674_v42, 0.0  ;;  %5107 = vmatprep.subr.bf16.mxu1 %v9881_v47 }
 0x339   : > { %v3084_v57 = vadd.f32 %v3083_v62, %v11464_v63  ;;  %v3267_v40 = vmax.f32 %v3082_v52, 0.0  ;;  %v4072_v62 = vpack.c.bf16 %v3954_v56, %v3952_v24  ;;  %v3672_v52 = vadd.f32 %v15333_v37, %v12662_v48  ;;  %5108 = vmatpush1.bf16.msra.mxu1 %v9879_v55 }
 0x33a   : > { %v3085_v20 = vpop.f32.mrf.mxu0  ;;  %v4075_v32 = vpack.c.bf16 %v3959_v14, %v3957_v9  ;;  %v3694_v56 = vadd.f32 %v12664_v58, %v12595_v0 }
 0x33b   : > { %v3086_v18 = vadd.f32 %v3085_v20, %v11461_v44  ;;  %v3268_v16 = vmax.f32 %v3084_v57, 0.0  ;;  %v12763_v57 = vpop.f32.mrf.mxu1  ;;  %v3684_v20 = vadd.f32 %v12611_v30, %v12595_v0  ;;  %v3958_v59 = vmax.f32 %v3672_v52, 0.0 }
 0x33c   : > { %v3967_v47 = vmax.f32 %v3694_v56, 0.0 }
 0x33d   : > { %v3269_v43 = vmax.f32 %v3086_v18, 0.0  ;;  %v3350_v11 = vpack.c.bf16 %v3268_v16, %v3266_v36  ;;  %v15334_v18 = vld [vmem:[#allocation179_spill] sm:$0xff]  ;;  %v12775_v16 = vpop.f32.mrf.mxu1  ;;  %v3961_v36 = vmax.f32 %v3680_v22, 0.0 }
 0x33e   : > { %v3668_v38 = vadd.f32 %v15334_v18, %v12662_v48 }
 0x33f   : > { %4404 = vmatmul.mubr.bf16.gmra.mxu0 %v4070_v49  ;;  %v3351_v15 = vpack.c.bf16 %v3269_v43, %v3267_v40  ;;  %v3963_v43 = vmax.f32 %v3684_v20, 0.0  ;;  %v12779_v42 = vpop.f32.mrf.mxu1 }
 0x340   : > { %4413 = vmatprep.mubr.bf16.mxu0 %v4073_v21  ;;  %v3956_v29 = vmax.f32 %v3668_v38, 0.0 }
 0x341   : > { %3835 = vmatprep.mubr.bf16.mxu1 %v3351_v15  ;;  %v3682_v15 = vadd.f32 %v12592_v10, %v12662_v48  ;;  %v4077_v28 = vpack.c.bf16 %v3963_v43, %v3961_v36  ;;  %v3678_v10 = vadd.f32 %v15335_v4, %v12662_v48  ;;  %v12797_v24 = vpop.f32.mrf.mxu1 }
 0x342   : > { %3836 = vmatmul.mubr.bf16.gmra.mxu1 %v3350_v11  ;;  %v4074_v5 = vpack.c.bf16 %v3958_v59, %v3956_v29  ;;  %v9884_v11 = vld [vmem:[%s14851_s9 + $0x24] ss:$8 sps:$4 sm:$0xff]  }
 0x343   : > { %5109 = vmatprep.subr.bf16.mxu1 %v9884_v11  ;;  %v3962_v55 = vmax.f32 %v3682_v15, 0.0  ;;  %v12801_v18 = vpop.f32.mrf.mxu1  ;;  %v9890_v29 = vld [vmem:[%s14851_s9 + $0x4] ss:$8 sps:$4 sm:$0xff]  }
 0x344   : > { %5110 = vmatpush1.bf16.msra.mxu1 %v9882_v51  ;;  %v9896_v11 = vld [vmem:[%s14851_s9 + $0xe4] ss:$8 sps:$4 sm:$0xff]  }
 0x345   : > { %v12811_v43 = vpop.f32.mrf.mxu1 }
 0x347   : > { %v3089_v49 = vpop.f32.mrf.mxu0  ;;  %4414 = vmatmul.mubr.bf16.gmra.mxu0 %v4072_v62  ;;  %v3690_v62 = vadd.f32 %v12632_v27, %v12595_v0  ;;  %v9887_v27 = vld [vmem:[%s14851_s9 + $0x14] ss:$8 sps:$4 sm:$0xff]   ;;  %v12828_v15 = vpop.f32.mrf.mxu1 }
 0x348   : > { %4423 = vmatprep.mubr.bf16.mxu0 %v4075_v32  ;;  %v3090_v3 = vadd.f32 %v3089_v49, %v11464_v63  ;;  %v3960_v32 = vmax.f32 %v3678_v10, 0.0  ;;  %v9885_v49 = vld [vmem:[%s14851_s9 + $0x10] ss:$8 sps:$4 sm:$0xff]   ;;  %5111 = vmatprep.subr.bf16.mxu1 %v9887_v27  ;;  %v3714_v10 = vadd.f32 %v12733_v2, %v12595_v0 }
 0x349   : > { %v3091_v40 = vpop.f32.mrf.mxu0  ;;  %v3965_v22 = vmax.f32 %v3690_v62, 0.0  ;;  %5112 = vmatpush1.bf16.msra.mxu1 %v9885_v49  ;;  %v12838_v4 = vpop.f32.mrf.mxu1 }
 0x34a   : > { %v3092_v21 = vadd.f32 %v3091_v40, %v11461_v44  ;;  %v3270_v58 = vmax.f32 %v3090_v3, 0.0  ;;  %v4076_v59 = vpack.c.bf16 %v3962_v55, %v3960_v32  ;;  %v3692_v40 = vadd.f32 %v12652_v8, %v12662_v48  ;;  %5113 = vmatprep.subr.bf16.mxu1 %v9890_v29 }
 0x34b   : > { %v3093_v30 = vpop.f32.mrf.mxu0  ;;  %v4079_v36 = vpack.c.bf16 %v3967_v47, %v3965_v22  ;;  %v3688_v8 = vadd.f32 %v12615_v26, %v12662_v48  ;;  %v9891_v26 = vld [vmem:[%s14851_s9 + $0xf0] ss:$8 sps:$4 sm:$0xff]   ;;  %v3975_v49 = vmax.f32 %v3714_v10, 0.0 }
 0x34c   : > { %v3094_v17 = vadd.f32 %v3093_v30, %v11464_v63  ;;  %v3271_v37 = vmax.f32 %v3092_v21, 0.0  ;;  %v3704_v30 = vadd.f32 %v12705_v19, %v12595_v0  ;;  %v9888_v21 = vld [vmem:[%s14851_s9] ss:$8 sps:$4 sm:$0xff]   ;;  %v3966_v19 = vmax.f32 %v3692_v40, 0.0 }
 0x34d   : > { %v3095_v7 = vpop.f32.mrf.mxu0  ;;  %5114 = vmatpush1.bf16.msra.mxu1 %v9888_v21  ;;  %v3964_v51 = vmax.f32 %v3688_v8, 0.0  ;;  %v3712_v8 = vadd.f32 %v12725_v13, %v12662_v48  ;;  %v3720_v13 = vadd.f32 %v12745_v60, %v12595_v0  ;;  %v9908_v60 = vld [vmem:[%s14851_s9 + $0xa4] ss:$8 sps:$4 sm:$0xff]  }
 0x34e   : > { %v3096_v14 = vadd.f32 %v3095_v7, %v11461_v44  ;;  %v3272_v9 = vmax.f32 %v3094_v17, 0.0  ;;  %v9893_v17 = vld [vmem:[%s14851_s9 + $0xf4] ss:$8 sps:$4 sm:$0xff]   ;;  %v3971_v3 = vmax.f32 %v3704_v30, 0.0 }
 0x34f   : > { %4424 = vmatmul.mubr.bf16.gmra.mxu0 %v4074_v5  ;;  %v3700_v5 = vadd.f32 %v12689_v23, %v12595_v0  ;;  %5115 = vmatprep.subr.bf16.mxu1 %v9893_v17  ;;  %v4078_v23 = vpack.c.bf16 %v3966_v19, %v3964_v51  ;;  %v3708_v51 = vadd.f32 %v12707_v41, %v12662_v48  ;;  %v9903_v41 = vld [vmem:[%s14851_s9 + $0xb0] ss:$8 sps:$4 sm:$0xff]   ;;  %v3977_v10 = vmax.f32 %v3720_v13, 0.0 }
 0x350   : > { %v3273_v52 = vmax.f32 %v3096_v14, 0.0  ;;  %4433 = vmatprep.mubr.bf16.mxu0 %v4077_v28  ;;  %v3352_v38 = vpack.c.bf16 %v3272_v9, %v3270_v58  ;;  %v3702_v28 = vadd.f32 %v12693_v45, %v12662_v48  ;;  %v3710_v45 = vadd.f32 %v12715_v46, %v12595_v0  ;;  %v9897_v46 = vld [vmem:[%s14851_s9 + $0xd0] ss:$8 sps:$4 sm:$0xff]  }
 0x351   : > { %v3969_v56 = vmax.f32 %v3700_v5, 0.0  ;;  %5116 = vmatpush2.bf16.msra.mxu1 %v9891_v26  ;;  %v3724_v5 = vadd.f32 %v12763_v57, %v12595_v0  ;;  %v9902_v26 = vld [vmem:[%s14851_s9 + $0xc4] ss:$8 sps:$4 sm:$0xff]   ;;  %v9905_v57 = vld [vmem:[%s14851_s9 + $0xb4] ss:$8 sps:$4 sm:$0xff]   ;;  %v3728_v13 = vadd.f32 %v12775_v16, %v12662_v48  ;;  %v3742_v16 = vadd.f32 %v12838_v4, %v12662_v48 }
 0x352   : > { %v3353_v20 = vpack.c.bf16 %v3273_v52, %v3271_v37  ;;  %v9894_v37 = vld [vmem:[%s14851_s9 + $0xe0] ss:$8 sps:$4 sm:$0xff]   ;;  %v3698_v52 = vadd.f32 %v12673_v31, %v12662_v48  ;;  %5117 = vmatprep.subr.bf16.mxu1 %v9896_v11  ;;  %v3970_v32 = vmax.f32 %v3702_v28, 0.0  ;;  %v3973_v30 = vmax.f32 %v3710_v45, 0.0 }
 0x353   : > { %v4081_v62 = vpack.c.bf16 %v3971_v3, %v3969_v56  ;;  %v3974_v56 = vmax.f32 %v3712_v8, 0.0  ;;  %v3718_v45 = vadd.f32 %v12737_v12, %v12662_v48  ;;  %v3732_v8 = vadd.f32 %v12797_v24, %v12662_v48 }
 0x354   : > { %3845 = vmatprep.mubr.bf16.mxu1 %v3353_v20  ;;  %v9899_v20 = vld [vmem:[%s14851_s9 + $0xd4] ss:$8 sps:$4 sm:$0xff]   ;;  %v3968_v22 = vmax.f32 %v3698_v52, 0.0  ;;  %v4083_v3 = vpack.c.bf16 %v3975_v49, %v3973_v30  ;;  %v3734_v52 = vadd.f32 %v12801_v18, %v12595_v0  ;;  %v3740_v24 = vadd.f32 %v12828_v15, %v12595_v0 }
 0x355   : > { %3846 = vmatmul.mubr.bf16.gmra.mxu1 %v3352_v38  ;;  %v12855_v38 = vpop.f32.mrf.mxu1  ;;  %v9911_v18 = vld [vmem:[%s14851_s9 + $0x94] ss:$8 sps:$4 sm:$0xff]   ;;  %v3738_v15 = vadd.f32 %v12811_v43, %v12662_v48 }
 0x356   : > { %5118 = vmatpush2.bf16.msra.mxu1 %v9894_v37  ;;  %v4080_v21 = vpack.c.bf16 %v3970_v32, %v3968_v22  ;;  %v3983_v49 = vmax.f32 %v3734_v52, 0.0 }
 0x357   : > { %4434 = vmatmul.mubr.bf16.gmra.mxu0 %v4076_v59  ;;  %v12861_v59 = vpop.f32.mrf.mxu1  ;;  %5119 = vmatprep.subr.bf16.mxu1 %v9899_v20 }
 0x358   : > { %4443 = vmatprep.mubr.bf16.mxu0 %v4079_v36 }
 0x359   : > { %v12875_v11 = vpop.f32.mrf.mxu1 }
 0x35a   : > { %v3099_v7 = vpop.f32.mrf.mxu0  ;;  %5120 = vmatpush2.bf16.msra.mxu1 %v9897_v46  ;;  %v9909_v46 = vld [vmem:[%s14851_s9 + $0x90] ss:$8 sps:$4 sm:$0xff]  }
 0x35b   : > { %v3100_v2 = vadd.f32 %v3099_v7, %v11464_v63  ;;  %v9900_v7 = vld [vmem:[%s14851_s9 + $0xc0] ss:$8 sps:$4 sm:$0xff]   ;;  %5121 = vmatprep.subr.bf16.mxu1 %v9902_v26  ;;  %v12885_v28 = vpop.f32.mrf.mxu1 }
 0x35c   : > { %v3101_v14 = vpop.f32.mrf.mxu0 }
 0x35d   : > { %v3102_v55 = vadd.f32 %v3101_v14, %v11461_v44  ;;  %v3274_v36 = vmax.f32 %v3100_v2, 0.0  ;;  %v3979_v14 = vmax.f32 %v3724_v5, 0.0  ;;  %v3753_v2 = vpop.f32.mrf.mxu1 }
 0x35e   : > { %v3103_v9 = vpop.f32.mrf.mxu0  ;;  %5122 = vmatpush2.bf16.msra.mxu1 %v9900_v7 }
 0x35f   : > { %v3104_v58 = vadd.f32 %v3103_v9, %v11464_v63  ;;  %4444 = vmatmul.mubr.bf16.gmra.mxu0 %v4078_v23  ;;  %v3275_v40 = vmax.f32 %v3102_v55, 0.0  ;;  %v3972_v23 = vmax.f32 %v3708_v51, 0.0  ;;  %5123 = vmatprep.subr.bf16.mxu1 %v9905_v57  ;;  %v4085_v55 = vpack.c.bf16 %v3979_v14, %v3977_v10  ;;  %v9912_v51 = vld [vmem:[%s14851_s9 + $0x80] ss:$8 sps:$4 sm:$0xff]  }
 0x360   : > { %v3105_v47 = vpop.f32.mrf.mxu0  ;;  %4453 = vmatprep.mubr.bf16.mxu0 %v4081_v62  ;;  %v3722_v62 = vadd.f32 %v12753_v54, %v12662_v48  ;;  %v3730_v54 = vadd.f32 %v12779_v42, %v12595_v0  ;;  %v3976_v42 = vmax.f32 %v3718_v45, 0.0  ;;  %v3980_v10 = vmax.f32 %v3728_v13, 0.0 }
 0x361   : > { %v3106_v31 = vadd.f32 %v3105_v47, %v11461_v44  ;;  %v3276_v27 = vmax.f32 %v3104_v58, 0.0  ;;  %v4082_v9 = vpack.c.bf16 %v3974_v56, %v3972_v23  ;;  %v9906_v58 = vld [vmem:[%s14851_s9 + $0xa0] ss:$8 sps:$4 sm:$0xff]  }
 0x362   : > { %5124 = vmatpush2.bf16.msra.mxu1 %v9903_v41  ;;  %v3978_v20 = vmax.f32 %v3722_v62, 0.0 }
 0x363   : > { %v3277_v29 = vmax.f32 %v3106_v31, 0.0  ;;  %v3354_v19 = vpack.c.bf16 %v3276_v27, %v3274_v36  ;;  %5125 = vmatprep.subr.bf16.mxu1 %v9908_v60  ;;  %v9914_v36 = vld [vmem:[%s14851_s9 + $0x84] ss:$8 sps:$4 sm:$0xff]   ;;  %v3985_v60 = vmax.f32 %v3740_v24, 0.0 }
 0x365   : > { %v3355_v17 = vpack.c.bf16 %v3277_v29, %v3275_v40  ;;  %v3981_v29 = vmax.f32 %v3730_v54, 0.0 }
 0x366   : > { %5126 = vmatpush2.bf16.msra.mxu1 %v9906_v58  ;;  %v3750_v58 = vadd.f32 %v12875_v11, %v12595_v0 }
 0x367   : > { %3855 = vmatprep.mubr.bf16.mxu1 %v3355_v17  ;;  %4454 = vmatmul.mubr.bf16.gmra.mxu0 %v4080_v21  ;;  %v4084_v21 = vpack.c.bf16 %v3978_v20, %v3976_v42  ;;  %v4087_v26 = vpack.c.bf16 %v3983_v49, %v3981_v29  ;;  %v3984_v20 = vmax.f32 %v3738_v15, 0.0 }
 0x368   : > { %3856 = vmatmul.mubr.bf16.gmra.mxu1 %v3354_v19  ;;  %4463 = vmatprep.mubr.bf16.mxu0 %v4083_v3  ;;  %v3744_v19 = vadd.f32 %v12855_v38, %v12595_v0  ;;  %v3982_v38 = vmax.f32 %v3732_v8, 0.0  ;;  %v3989_v4 = vmax.f32 %v3750_v58, 0.0 }
 0x369   : > { %5127 = vmatprep.subr.bf16.mxu1 %v9911_v18 }
 0x36a   : > { %v12904_v32 = vpop.f32.mrf.mxu1  ;;  %5128 = vmatpush2.bf16.msra.mxu1 %v9909_v46  ;;  %v3987_v23 = vmax.f32 %v3744_v19, 0.0 }
 0x36b   : > { %5129 = vmatprep.subr.bf16.mxu1 %v9914_v36 }
 0x36c   : > { %v3759_v17 = vpop.f32.mrf.mxu1  ;;  %v4089_v52 = vpack.c.bf16 %v3987_v23, %v3985_v60 }
 0x36d   : > { %v3109_v37 = vpop.f32.mrf.mxu0  ;;  %v3760_v36 = vadd.f32 %v3759_v17, %v12595_v0 }
 0x36e   : > { %v3110_v22 = vadd.f32 %v3109_v37, %v11464_v63  ;;  %v3761_v14 = vpop.f32.mrf.mxu1  ;;  %5130 = vmatpush2.bf16.msra.mxu1 %v9912_v51  ;;  %v3754_v37 = vadd.f32 %v3753_v2, %v12595_v0  ;;  %v3752_v2 = vadd.f32 %v12885_v28, %v12662_v48 }
 0x36f   : > { %v3111_v47 = vpop.f32.mrf.mxu0  ;;  %4464 = vmatmul.mubr.bf16.gmra.mxu0 %v4082_v9  ;;  %v4086_v9 = vpack.c.bf16 %v3982_v38, %v3980_v10  ;;  %v3993_v13 = vmax.f32 %v3760_v36, 0.0  ;;  %v3758_v38 = vadd.f32 %v12904_v32, %v12662_v48 }
 0x370   : > { %4473 = vmatprep.mubr.bf16.mxu0 %v4085_v55  ;;  %v3112_v27 = vadd.f32 %v3111_v47, %v11461_v44  ;;  %v3278_v57 = vmax.f32 %v3110_v22, 0.0  ;;  %v3763_v62 = vpop.f32.mrf.mxu1  ;;  %v3986_v47 = vmax.f32 %v3742_v16, 0.0  ;;  %v3991_v54 = vmax.f32 %v3754_v37, 0.0 }
 0x371   : > { %v3113_v31 = vpop.f32.mrf.mxu0  ;;  %v3764_v46 = vadd.f32 %v3763_v62, %v12595_v0 }
 0x372   : > { %v3114_v12 = vadd.f32 %v3113_v31, %v11464_v63  ;;  %v3279_v3 = vmax.f32 %v3112_v27, 0.0  ;;  %v4088_v27 = vpack.c.bf16 %v3986_v47, %v3984_v20  ;;  %v4091_v22 = vpack.c.bf16 %v3991_v54, %v3989_v4 }
 0x373   : > { %v3115_v40 = vpop.f32.mrf.mxu0  ;;  %v3995_v19 = vmax.f32 %v3764_v46, 0.0 }
 0x374   : > { %v3116_v30 = vadd.f32 %v3115_v40, %v11461_v44  ;;  %v3280_v5 = vmax.f32 %v3114_v12, 0.0  ;;  %v3748_v40 = vadd.f32 %v12861_v59, %v12662_v48  ;;  %v3762_v59 = vadd.f32 %v3761_v14, %v12662_v48 }
 0x375   : > { %v4093_v17 = vpack.c.bf16 %v3995_v19, %v3993_v13 }
 0x376   : > { %v3281_v7 = vmax.f32 %v3116_v30, 0.0  ;;  %v3356_v41 = vpack.c.bf16 %v3280_v5, %v3278_v57  ;;  %v3994_v23 = vmax.f32 %v3762_v59, 0.0 }
 0x377   : > { %4474 = vmatmul.mubr.bf16.gmra.mxu0 %v4084_v21  ;;  %v3990_v21 = vmax.f32 %v3752_v2, 0.0 }
 0x378   : > { %4483 = vmatprep.mubr.bf16.mxu0 %v4087_v26  ;;  %v3357_v56 = vpack.c.bf16 %v3281_v7, %v3279_v3  ;;  %v3988_v7 = vmax.f32 %v3748_v40, 0.0 }
 0x37a   : > { %3865 = vmatprep.mubr.bf16.mxu1 %v3357_v56  ;;  %v4090_v24 = vpack.c.bf16 %v3990_v21, %v3988_v7 }
 0x37b   : > { %3866 = vmatmul.mubr.bf16.gmra.mxu1 %v3356_v41 }
 0x37d   : > { %v3767_v55 = vpop.f32.mrf.mxu1 }
 0x37e   : > { %v3768_v47 = vadd.f32 %v3767_v55, %v12662_v48 }
 0x37f   : > { %4484 = vmatmul.mubr.bf16.gmra.mxu0 %v4086_v9  ;;  %v3769_v31 = vpop.f32.mrf.mxu1  ;;  %v3992_v9 = vmax.f32 %v3758_v38, 0.0 }
 0x380   : > { %v3119_v45 = vpop.f32.mrf.mxu0  ;;  %4493 = vmatprep.mubr.bf16.mxu0 %v4089_v52  ;;  %v3770_v41 = vadd.f32 %v3769_v31, %v12595_v0  ;;  %v3996_v55 = vmax.f32 %v3768_v47, 0.0 }
 0x381   : > { %v3120_v11 = vadd.f32 %v3119_v45, %v11464_v63  ;;  %v3771_v29 = vpop.f32.mrf.mxu1  ;;  %v4092_v14 = vpack.c.bf16 %v3994_v23, %v3992_v9 }
 0x382   : > { %v3121_v18 = vpop.f32.mrf.mxu0  ;;  %v3997_v37 = vmax.f32 %v3770_v41, 0.0  ;;  %v3772_v52 = vadd.f32 %v3771_v29, %v12662_v48 }
 0x383   : > { %v3122_v43 = vadd.f32 %v3121_v18, %v11461_v44  ;;  %v3282_v3 = vmax.f32 %v3120_v11, 0.0  ;;  %v3773_v26 = vpop.f32.mrf.mxu1 }
 0x384   : > { %v3123_v49 = vpop.f32.mrf.mxu0  ;;  %v3774_v56 = vadd.f32 %v3773_v26, %v12595_v0 }
 0x385   : > { %v3124_v12 = vadd.f32 %v3123_v49, %v11464_v63  ;;  %v3283_v8 = vmax.f32 %v3122_v43, 0.0  ;;  %v3998_v49 = vmax.f32 %v3772_v52, 0.0 }
 0x386   : > { %v3125_v42 = vpop.f32.mrf.mxu0  ;;  %v3999_v60 = vmax.f32 %v3774_v56, 0.0 }
 0x387   : > { %v3126_v30 = vadd.f32 %v3125_v42, %v11461_v44  ;;  %4494 = vmatmul.mubr.bf16.gmra.mxu0 %v4088_v27  ;;  %v3284_v28 = vmax.f32 %v3124_v12, 0.0  ;;  %v4094_v40 = vpack.c.bf16 %v3998_v49, %v3996_v55 }
 0x388   : > { %4503 = vmatprep.mubr.bf16.mxu0 %v4091_v22  ;;  %v4095_v45 = vpack.c.bf16 %v3999_v60, %v3997_v37 }
 0x389   : > { %v3285_v5 = vmax.f32 %v3126_v30, 0.0  ;;  %v3358_v57 = vpack.c.bf16 %v3284_v28, %v3282_v3 }
 0x38b   : > { %v3359_v51 = vpack.c.bf16 %v3285_v5, %v3283_v8 }
 0x38d   : > { %3875 = vmatprep.mubr.bf16.mxu1 %v3359_v51 }
 0x38e   : > { %3876 = vmatmul.mubr.bf16.gmra.mxu1 %v3358_v57 }
 0x38f   : > { %4504 = vmatmul.mubr.bf16.gmra.mxu0 %v4090_v24 }
 0x390   : > { %4513 = vmatprep.mubr.bf16.mxu0 %v4093_v17  ;;  %v3777_v10 = vpop.f32.mrf.mxu1 }
 0x391   : > { %v3778_v21 = vadd.f32 %v3777_v10, %v12662_v48 }
 0x392   : > { %v3779_v16 = vpop.f32.mrf.mxu1 }
 0x393   : > { %v3129_v62 = vpop.f32.mrf.mxu0  ;;  %v3780_v18 = vadd.f32 %v3779_v16, %v12595_v0  ;;  %v4000_v19 = vmax.f32 %v3778_v21, 0.0 }
 0x394   : > { %v3781_v15 = vpop.f32.mrf.mxu1  ;;  %v3130_v27 = vadd.f32 %v3129_v62, %v11464_v63 }
 0x395   : > { %v3131_v58 = vpop.f32.mrf.mxu0  ;;  %v4001_v11 = vmax.f32 %v3780_v18, 0.0  ;;  %v3782_v30 = vadd.f32 %v3781_v15, %v12662_v48 }
 0x396   : > { %v3783_v32 = vpop.f32.mrf.mxu1  ;;  %v3132_v20 = vadd.f32 %v3131_v58, %v11461_v44  ;;  %v3286_v29 = vmax.f32 %v3130_v27, 0.0 }
 0x397   : > { %v3133_v54 = vpop.f32.mrf.mxu0  ;;  %4514 = vmatmul.mubr.bf16.gmra.mxu0 %v4092_v14  ;;  %v3784_v31 = vadd.f32 %v3783_v32, %v12595_v0  ;;  %v4002_v5 = vmax.f32 %v3782_v30, 0.0 }
 0x398   : > { %v3134_v4 = vadd.f32 %v3133_v54, %v11464_v63  ;;  %4523 = vmatprep.mubr.bf16.mxu0 %v4095_v45  ;;  %v3287_v42 = vmax.f32 %v3132_v20, 0.0 }
 0x399   : > { %v3135_v2 = vpop.f32.mrf.mxu0  ;;  %v4003_v43 = vmax.f32 %v3784_v31, 0.0  ;;  %v4096_v7 = vpack.c.bf16 %v4002_v5, %v4000_v19 }
 0x39a   : > { %v3136_v12 = vadd.f32 %v3135_v2, %v11461_v44  ;;  %v3288_v46 = vmax.f32 %v3134_v4, 0.0 }
 0x39b   : > { %v4097_v28 = vpack.c.bf16 %v4003_v43, %v4001_v11 }
 0x39c   : > { %v3289_v22 = vmax.f32 %v3136_v12, 0.0  ;;  %v3360_v8 = vpack.c.bf16 %v3288_v46, %v3286_v29 }
 0x39e   : > { %v3361_v36 = vpack.c.bf16 %v3289_v22, %v3287_v42 }
 0x39f   : > { %4524 = vmatmul.mubr.bf16.gmra.mxu0 %v4094_v40 }
 0x3a0   : > { %3885 = vmatprep.mubr.bf16.mxu1 %v3361_v36  ;;  %4533 = vmatprep.mubr.bf16.mxu0 %v4097_v28 }
 0x3a1   : > { %3886 = vmatmul.mubr.bf16.gmra.mxu1 %v3360_v8 }
 0x3a3   : > { %v3787_v3 = vpop.f32.mrf.mxu1 }
 0x3a4   : > { %v3788_v56 = vadd.f32 %v3787_v3, %v12662_v48 }
 0x3a5   : > { %v3789_v26 = vpop.f32.mrf.mxu1 }
 0x3a6   : > { %v3139_v51 = vpop.f32.mrf.mxu0  ;;  %v3790_v24 = vadd.f32 %v3789_v26, %v12595_v0  ;;  %v4004_v52 = vmax.f32 %v3788_v56, 0.0 }
 0x3a7   : > { %4534 = vmatmul.mubr.bf16.gmra.mxu0 %v4096_v7  ;;  %v3791_v13 = vpop.f32.mrf.mxu1  ;;  %v3140_v60 = vadd.f32 %v3139_v51, %v11464_v63 }
 0x3a8   : > { %v3141_v57 = vpop.f32.mrf.mxu0  ;;  %v3792_v59 = vadd.f32 %v3791_v13, %v12662_v48  ;;  %v4005_v62 = vmax.f32 %v3790_v24, 0.0 }
 0x3a9   : > { %v3793_v17 = vpop.f32.mrf.mxu1  ;;  %v3142_v41 = vadd.f32 %v3141_v57, %v11461_v44  ;;  %v3290_v32 = vmax.f32 %v3140_v60, 0.0 }
 0x3aa   : > { %v3143_v38 = vpop.f32.mrf.mxu0  ;;  %v3794_v23 = vadd.f32 %v3793_v17, %v12595_v0  ;;  %v4006_v9 = vmax.f32 %v3792_v59, 0.0 }
 0x3ab   : > { %v3144_v10 = vadd.f32 %v3143_v38, %v11464_v63  ;;  %v3291_v58 = vmax.f32 %v3142_v41, 0.0 }
 0x3ac   : > { %v3145_v16 = vpop.f32.mrf.mxu0  ;;  %v4007_v37 = vmax.f32 %v3794_v23, 0.0  ;;  %v4098_v54 = vpack.c.bf16 %v4006_v9, %v4004_v52 }
 0x3ad   : > { %v3146_v14 = vadd.f32 %v3145_v16, %v11461_v44  ;;  %v3292_v15 = vmax.f32 %v3144_v10, 0.0 }
 0x3ae   : > { %v4099_v47 = vpack.c.bf16 %v4007_v37, %v4005_v62 }
 0x3af   : > { %v3293_v45 = vmax.f32 %v3146_v14, 0.0  ;;  %v3362_v20 = vpack.c.bf16 %v3292_v15, %v3290_v32 }
 0x3b0   : > { %4543 = vmatprep.mubr.bf16.mxu0 %v4099_v47 }
 0x3b1   : > { %v3363_v18 = vpack.c.bf16 %v3293_v45, %v3291_v58  ;;  %4544 = vmatmul.mubr.bf16.gmra.mxu0 %v4098_v54 }
 0x3b3   : > { %3895 = vmatprep.mubr.bf16.mxu1 %v3363_v18 }
 0x3b4   : > { %3896 = vmatmul.mubr.bf16.gmra.mxu1 %v3362_v20 }
 0x3b6   : > { %v3797_v31 = vpop.f32.mrf.mxu1 }
 0x3b7   : > { %v3798_v55 = vadd.f32 %v3797_v31, %v12662_v48 }
 0x3b8   : > { %v3799_v4 = vpop.f32.mrf.mxu1 }
 0x3b9   : > { %v3149_v49 = vpop.f32.mrf.mxu0  ;;  %v3800_v43 = vadd.f32 %v3799_v4, %v12595_v0  ;;  %v4008_v5 = vmax.f32 %v3798_v55, 0.0 }
 0x3ba   : > { %v3801_v27 = vpop.f32.mrf.mxu1  ;;  %v3150_v29 = vadd.f32 %v3149_v49, %v11464_v63 }
 0x3bb   : > { %v3151_v2 = vpop.f32.mrf.mxu0  ;;  %v3802_v12 = vadd.f32 %v3801_v27, %v12662_v48  ;;  %v4009_v28 = vmax.f32 %v3800_v43, 0.0 }
 0x3bc   : > { %v3803_v46 = vpop.f32.mrf.mxu1  ;;  %v3152_v42 = vadd.f32 %v3151_v2, %v11461_v44  ;;  %v3294_v51 = vmax.f32 %v3150_v29, 0.0 }
 0x3bd   : > { %v3153_v11 = vpop.f32.mrf.mxu0  ;;  %v3804_v22 = vadd.f32 %v3803_v46, %v12595_v0  ;;  %v4010_v30 = vmax.f32 %v3802_v12, 0.0 }
 0x3be   : > { %v3154_v40 = vadd.f32 %v3153_v11, %v11464_v63  ;;  %v3295_v3 = vmax.f32 %v3152_v42, 0.0  ;;  %v4160_v11 = vld [vmem:[%s14850_s8] sm:$0x3]  ;;  %v9915_v42 = vld [vmem:[#allocation2 + $0x70] ss:$8 sps:$4 sm:$0xff]  }
 0x3bf   : > { %v3155_v36 = vpop.f32.mrf.mxu0  ;;  %v4011_v21 = vmax.f32 %v3804_v22, 0.0  ;;  %v4100_v13 = vpack.c.bf16 %v4010_v30, %v4008_v5  ;;  %v9917_v22 = vld [vmem:[#allocation2 + $0x74] ss:$8 sps:$4 sm:$0xff]  }
 0x3c0   : > { %v3156_v8 = vadd.f32 %v3155_v36, %v11461_v44  ;;  %v3296_v19 = vmax.f32 %v3154_v40, 0.0  ;;  %6533 = vmatprep.subr.bf16.mxu0 %v9917_v22 }
 0x3c1   : > { %v4101_v26 = vpack.c.bf16 %v4011_v21, %v4009_v28  ;;  %v4161_v28 = vunpack.c.l.bf16 %v4160_v11  ;;  %6534 = vmatpush1.bf16.msra.mxu0 %v9915_v42 }
 0x3c2   : > { %v3297_v7 = vmax.f32 %v3156_v8, 0.0  ;;  %v3364_v24 = vpack.c.bf16 %v3296_v19, %v3294_v51 }
 0x3c3   : > { %4553 = vmatprep.mubr.bf16.mxu0 %v4101_v26 }
 0x3c4   : > { %v3365_v57 = vpack.c.bf16 %v3297_v7, %v3295_v3  ;;  %4554 = vmatmul.mubr.bf16.gmra.mxu0 %v4100_v13 }
 0x3c6   : > { %3905 = vmatprep.mubr.bf16.mxu1 %v3365_v57  ;;  %v4170_v57 = vrot.slane %v4161_v28, %v10667_v33 }
 0x3c7   : > { %3906 = vmatmul.mubr.bf16.gmra.mxu1 %v3364_v24 }
 0x3c9   : > { %v3807_v59 = vpop.f32.mrf.mxu1 }
 0x3ca   : > { %v3808_v60 = vadd.f32 %v3807_v59, %v12662_v48 }
 0x3cb   : > { %v3809_v56 = vpop.f32.mrf.mxu1 }
 0x3cc   : > { %v3159_v17 = vpop.f32.mrf.mxu0  ;;  %v3810_v23 = vadd.f32 %v3809_v56, %v12595_v0  ;;  %v4012_v54 = vmax.f32 %v3808_v60, 0.0 }
 0x3cd   : > { %v3811_v38 = vpop.f32.mrf.mxu1  ;;  %v3160_v52 = vadd.f32 %v3159_v17, %v11464_v63  ;;  %v4166_v17 = vrot.slane %v4161_v28, %v10670_v34 }
 0x3ce   : > { %v3161_v41 = vpop.f32.mrf.mxu0  ;;  %v3812_v10 = vadd.f32 %v3811_v38, %v12662_v48  ;;  %v4013_v45 = vmax.f32 %v3810_v23, 0.0 }
 0x3cf   : > { %v3813_v9 = vpop.f32.mrf.mxu1  ;;  %v3162_v62 = vadd.f32 %v3161_v41, %v11461_v44  ;;  %v3298_v49 = vmax.f32 %v3160_v52, 0.0 }
 0x3d0   : > { %v3163_v16 = vpop.f32.mrf.mxu0  ;;  %v3814_v37 = vadd.f32 %v3813_v9, %v12595_v0  ;;  %v4014_v15 = vmax.f32 %v3812_v10, 0.0 }
 0x3d1   : > { %v3164_v14 = vadd.f32 %v3163_v16, %v11464_v63  ;;  %v3299_v20 = vmax.f32 %v3162_v62, 0.0 }
 0x3d2   : > { %v3165_v58 = vpop.f32.mrf.mxu0  ;;  %v4015_v47 = vmax.f32 %v3814_v37, 0.0  ;;  %v4102_v27 = vpack.c.bf16 %v4014_v15, %v4012_v54 }
 0x3d3   : > { %v3166_v32 = vadd.f32 %v3165_v58, %v11461_v44  ;;  %v3300_v18 = vmax.f32 %v3164_v14, 0.0  ;;  %v13000_v14 = vrot.slane %v4166_v17, %v10670_v34 }
 0x3d4   : > { %v4103_v4 = vpack.c.bf16 %v4015_v47, %v4013_v45 }
 0x3d5   : > { %v3301_v31 = vmax.f32 %v3166_v32, 0.0  ;;  %v3366_v43 = vpack.c.bf16 %v3300_v18, %v3298_v49  ;;  %v9918_v49 = vld [vmem:[#allocation2 + $0x60] ss:$8 sps:$4 sm:$0xff]  }
 0x3d6   : > { %4563 = vmatprep.mubr.bf16.mxu0 %v4103_v4 }
 0x3d7   : > { %v3367_v2 = vpack.c.bf16 %v3301_v31, %v3299_v20  ;;  %4564 = vmatmul.mubr.bf16.gmra.mxu0 %v4102_v27  ;;  %v9920_v27 = vld [vmem:[#allocation2 + $0x64] ss:$8 sps:$4 sm:$0xff]  }
 0x3d8   : > { %6535 = vmatprep.subr.bf16.mxu0 %v9920_v27 }
 0x3d9   : > { %3915 = vmatprep.mubr.bf16.mxu1 %v3367_v2  ;;  %6536 = vmatpush1.bf16.msra.mxu0 %v9918_v49 }
 0x3da   : > { %3916 = vmatmul.mubr.bf16.gmra.mxu1 %v3366_v43 }
 0x3dc   : > { %v3817_v12 = vpop.f32.mrf.mxu1 }
 0x3dd   : > { %v3818_v21 = vadd.f32 %v3817_v12, %v12662_v48 }
 0x3de   : > { %v3819_v55 = vpop.f32.mrf.mxu1 }
 0x3df   : > { %v3169_v46 = vpop.f32.mrf.mxu0  ;;  %v3820_v30 = vadd.f32 %v3819_v55, %v12595_v0  ;;  %v4016_v38 = vmax.f32 %v3818_v21, 0.0 }
 0x3e0   : > { %v3821_v40 = vpop.f32.mrf.mxu1  ;;  %v3170_v26 = vadd.f32 %v3169_v46, %v11464_v63 }
 0x3e1   : > { %v3171_v29 = vpop.f32.mrf.mxu0  ;;  %v3822_v36 = vadd.f32 %v3821_v40, %v12662_v48  ;;  %v4017_v24 = vmax.f32 %v3820_v30, 0.0 }
 0x3e2   : > { %v3823_v8 = vpop.f32.mrf.mxu1  ;;  %v3172_v19 = vadd.f32 %v3171_v29, %v11461_v44  ;;  %v3302_v16 = vmax.f32 %v3170_v26, 0.0 }
 0x3e3   : > { %v3173_v5 = vpop.f32.mrf.mxu0  ;;  %v3824_v3 = vadd.f32 %v3823_v8, %v12595_v0  ;;  %v4018_v51 = vmax.f32 %v3822_v36, 0.0 }
 0x3e4   : > { %v3174_v7 = vadd.f32 %v3173_v5, %v11464_v63  ;;  %v3303_v10 = vmax.f32 %v3172_v19, 0.0  ;;  %v12997_v63 = vrot.slane %v4170_v57, %v10670_v34 }
 0x3e5   : > { %v3175_v13 = vpop.f32.mrf.mxu0  ;;  %v4019_v59 = vmax.f32 %v3824_v3, 0.0  ;;  %v4104_v62 = vpack.c.bf16 %v4018_v51, %v4016_v38 }
 0x3e6   : > { %v3176_v56 = vadd.f32 %v3175_v13, %v11461_v44  ;;  %v3304_v41 = vmax.f32 %v3174_v7, 0.0 }
 0x3e7   : > { %v4375_v23 = vpop.f32.mrf.mxu0  ;;  %v4105_v9 = vpack.c.bf16 %v4019_v59, %v4017_v24 }
 0x3e8   : > { %v3305_v60 = vmax.f32 %v3176_v56, 0.0  ;;  %v3368_v44 = vpack.c.bf16 %v3304_v41, %v3302_v16  ;;  %v4376_v32 = vadd.f32 %v4375_v23, %v13000_v14 }
 0x3e9   : > { %v4377_v37 = vpop.f32.mrf.mxu0  ;;  %4573 = vmatprep.mubr.bf16.mxu0 %v4105_v9 }
 0x3ea   : > { %v3369_v52 = vpack.c.bf16 %v3305_v60, %v3303_v10  ;;  %4574 = vmatmul.mubr.bf16.gmra.mxu0 %v4104_v62  ;;  %v4378_v45 = vadd.f32 %v4377_v37, %v12997_v63  ;;  %v4694_v55 = vmax.f32 %v4376_v32, 0.0 }
 0x3eb   : > { %v4379_v15 = vpop.f32.mrf.mxu0 }
 0x3ec   : > { %v4380_v58 = vadd.f32 %v4379_v15, %v13000_v14  ;;  %3925 = vmatprep.mubr.bf16.mxu1 %v3369_v52  ;;  %v4695_v2 = vmax.f32 %v4378_v45, 0.0  ;;  %v9923_v45 = vld [vmem:[#allocation2 + $0x54] ss:$8 sps:$4 sm:$0xff]  }
 0x3ed   : > { %3926 = vmatmul.mubr.bf16.gmra.mxu1 %v3368_v44  ;;  %v4381_v47 = vpop.f32.mrf.mxu0  ;;  %6537 = vmatprep.subr.bf16.mxu0 %v9923_v45 }
 0x3ee   : > { %v4382_v54 = vadd.f32 %v4381_v47, %v12997_v63  ;;  %v4696_v31 = vmax.f32 %v4380_v58, 0.0  ;;  %v9921_v58 = vld [vmem:[#allocation2 + $0x50] ss:$8 sps:$4 sm:$0xff]  }
 0x3ef   : > { %v3827_v18 = vpop.f32.mrf.mxu1  ;;  %v4385_v20 = vpop.f32.mrf.mxu0  ;;  %6538 = vmatpush1.bf16.msra.mxu0 %v9921_v58 }
 0x3f0   : > { %v4697_v4 = vmax.f32 %v4382_v54, 0.0  ;;  %v4822_v40 = vpack.c.bf16 %v4696_v31, %v4694_v55  ;;  %v3828_v28 = vadd.f32 %v3827_v18, %v12662_v48  ;;  %v4386_v5 = vadd.f32 %v4385_v20, %v13000_v14 }
 0x3f1   : > { %v3829_v43 = vpop.f32.mrf.mxu1  ;;  %v4387_v12 = vpop.f32.mrf.mxu0 }
 0x3f2   : > { %v3830_v46 = vadd.f32 %v3829_v43, %v12595_v0  ;;  %v4823_v22 = vpack.c.bf16 %v4697_v4, %v4695_v2  ;;  %v4388_v29 = vadd.f32 %v4387_v12, %v12997_v63  ;;  %v4020_v56 = vmax.f32 %v3828_v28, 0.0 }
 0x3f3   : > { %v3831_v11 = vpop.f32.mrf.mxu1  ;;  %v4389_v42 = vpop.f32.mrf.mxu0  ;;  %v4698_v38 = vmax.f32 %v4386_v5, 0.0 }
 0x3f4   : > { %v3832_v30 = vadd.f32 %v3831_v11, %v12662_v48  ;;  %v4390_v36 = vadd.f32 %v4389_v42, %v13000_v14  ;;  %5131 = vmatprep.mubr.bf16.mxu1 %v4823_v22  ;;  %v4021_v7 = vmax.f32 %v3830_v46, 0.0  ;;  %v4699_v13 = vmax.f32 %v4388_v29, 0.0 }
 0x3f5   : > { %v3833_v21 = vpop.f32.mrf.mxu1  ;;  %v4391_v8 = vpop.f32.mrf.mxu0  ;;  %5132 = vmatmul.mubr.bf16.vlgmr.msra.gmra.mxu1 %v4822_v40 }
 0x3f6   : > { %v3834_v19 = vadd.f32 %v3833_v21, %v12595_v0  ;;  %v4392_v3 = vadd.f32 %v4391_v8, %v12997_v63  ;;  %v4022_v26 = vmax.f32 %v3832_v30, 0.0  ;;  %v4700_v57 = vmax.f32 %v4390_v36, 0.0 }
 0x3f7   : > { %v4395_v51 = vpop.f32.mrf.mxu0 }
 0x3f8   : > { %v4023_v24 = vmax.f32 %v3834_v19, 0.0  ;;  %v4701_v59 = vmax.f32 %v4392_v3, 0.0  ;;  %v4106_v10 = vpack.c.bf16 %v4022_v26, %v4020_v56  ;;  %v4824_v9 = vpack.c.bf16 %v4700_v57, %v4698_v38 }
 0x3f9   : > { %v4397_v17 = vpop.f32.mrf.mxu0  ;;  %v4396_v52 = vadd.f32 %v4395_v51, %v13000_v14 }
 0x3fa   : > { %v4107_v41 = vpack.c.bf16 %v4023_v24, %v4021_v7  ;;  %v4825_v23 = vpack.c.bf16 %v4701_v59, %v4699_v13  ;;  %v4398_v16 = vadd.f32 %v4397_v17, %v12997_v63 }
 0x3fb   : > { %v4399_v60 = vpop.f32.mrf.mxu0  ;;  %v4702_v20 = vmax.f32 %v4396_v52, 0.0  ;;  %v9924_v52 = vld [vmem:[#allocation2 + $0x40] ss:$8 sps:$4 sm:$0xff]  }
 0x3fc   : > { %v4400_v62 = vadd.f32 %v4399_v60, %v13000_v14  ;;  %4583 = vmatprep.mubr.bf16.mxu0 %v4107_v41  ;;  %5141 = vmatprep.mubr.bf16.mxu1 %v4825_v23  ;;  %v4703_v47 = vmax.f32 %v4398_v16, 0.0 }
 0x3fd   : > { %v4401_v37 = vpop.f32.mrf.mxu0  ;;  %4584 = vmatmul.mubr.bf16.gmra.mxu0 %v4106_v10  ;;  %5142 = vmatmul.mubr.bf16.gmra.mxu1 %v4824_v9 }
 0x3fe   : > { %v4402_v44 = vadd.f32 %v4401_v37, %v12997_v63  ;;  %v4704_v32 = vmax.f32 %v4400_v62, 0.0 }
 0x3ff   : > { %v4405_v15 = vpop.f32.mrf.mxu0 }
 0x400   : > { %v4705_v54 = vmax.f32 %v4402_v44, 0.0  ;;  %v4826_v27 = vpack.c.bf16 %v4704_v32, %v4702_v20  ;;  %v4406_v46 = vadd.f32 %v4405_v15, %v13000_v14  ;;  %v9926_v44 = vld [vmem:[#allocation2 + $0x44] ss:$8 sps:$4 sm:$0xff]   ;;  %v9927_v32 = vld [vmem:[#allocation2 + $0x30] ss:$8 sps:$4 sm:$0xff]  }
 0x401   : > { %v4407_v18 = vpop.f32.mrf.mxu0  ;;  %6539 = vmatprep.subr.bf16.mxu0 %v9926_v44 }
 0x402   : > { %v3837_v31 = vpop.f32.mrf.mxu1  ;;  %v4827_v4 = vpack.c.bf16 %v4705_v54, %v4703_v47  ;;  %v4408_v2 = vadd.f32 %v4407_v18, %v12997_v63  ;;  %v4706_v3 = vmax.f32 %v4406_v46, 0.0  ;;  %6540 = vmatpush1.bf16.msra.mxu0 %v9924_v52  ;;  %v9929_v54 = vld [vmem:[#allocation2 + $0x34] ss:$8 sps:$4 sm:$0xff]  }
 0x403   : > { %v4409_v49 = vpop.f32.mrf.mxu0  ;;  %v3838_v36 = vadd.f32 %v3837_v31, %v12662_v48  ;;  %6541 = vmatprep.subr.bf16.mxu0 %v9929_v54  ;;  %v9935_v52 = vld [vmem:[#allocation2 + $0x14] ss:$8 sps:$4 sm:$0xff]  }
 0x404   : > { %v4410_v43 = vadd.f32 %v4409_v49, %v13000_v14  ;;  %v3839_v12 = vpop.f32.mrf.mxu1  ;;  %5151 = vmatprep.mubr.bf16.mxu1 %v4827_v4  ;;  %v4707_v30 = vmax.f32 %v4408_v2, 0.0 }
 0x405   : > { %v4411_v55 = vpop.f32.mrf.mxu0  ;;  %5152 = vmatmul.mubr.bf16.gmra.mxu1 %v4826_v27  ;;  %v3840_v22 = vadd.f32 %v3839_v12, %v12595_v0  ;;  %v4024_v59 = vmax.f32 %v3838_v36, 0.0 }
 0x406   : > { %v4412_v11 = vadd.f32 %v4411_v55, %v12997_v63  ;;  %v3841_v42 = vpop.f32.mrf.mxu1  ;;  %v4708_v28 = vmax.f32 %v4410_v43, 0.0  ;;  %6542 = vmatpush1.bf16.msra.mxu0 %v9927_v32 }
 0x407   : > { %v3842_v40 = vadd.f32 %v3841_v42, %v12662_v48  ;;  %v4415_v29 = vpop.f32.mrf.mxu0  ;;  %v4025_v51 = vmax.f32 %v3840_v22, 0.0 }
 0x408   : > { %v4709_v21 = vmax.f32 %v4412_v11, 0.0  ;;  %v3843_v8 = vpop.f32.mrf.mxu1  ;;  %v4828_v56 = vpack.c.bf16 %v4708_v28, %v4706_v3  ;;  %v4416_v10 = vadd.f32 %v4415_v29, %v13000_v14 }
 0x409   : > { %v3844_v5 = vadd.f32 %v3843_v8, %v12595_v0  ;;  %v4417_v19 = vpop.f32.mrf.mxu0  ;;  %v4026_v7 = vmax.f32 %v3842_v40, 0.0 }
 0x40a   : > { %v4829_v26 = vpack.c.bf16 %v4709_v21, %v4707_v30  ;;  %v4418_v57 = vadd.f32 %v4417_v19, %v12997_v63  ;;  %v4710_v58 = vmax.f32 %v4416_v10, 0.0  ;;  %v9932_v19 = vld [vmem:[#allocation2 + $0x24] ss:$8 sps:$4 sm:$0xff]  }
 0x40b   : > { %v4027_v13 = vmax.f32 %v3844_v5, 0.0  ;;  %v4419_v24 = vpop.f32.mrf.mxu0  ;;  %v4108_v23 = vpack.c.bf16 %v4026_v7, %v4024_v59  ;;  %v9930_v5 = vld [vmem:[#allocation2 + $0x20] ss:$8 sps:$4 sm:$0xff]   ;;  %6543 = vmatprep.subr.bf16.mxu0 %v9932_v19 }
 0x40c   : > { %v4420_v17 = vadd.f32 %v4419_v24, %v13000_v14  ;;  %5161 = vmatprep.mubr.bf16.mxu1 %v4829_v26  ;;  %v4711_v9 = vmax.f32 %v4418_v57, 0.0  ;;  %6544 = vmatpush1.bf16.msra.mxu0 %v9930_v5  ;;  %v9942_v5 = vld [vmem:[#allocation2 + $0xe0] ss:$8 sps:$4 sm:$0xff]  }
 0x40d   : > { %v4421_v38 = vpop.f32.mrf.mxu0  ;;  %v4109_v41 = vpack.c.bf16 %v4027_v13, %v4025_v51  ;;  %5162 = vmatmul.mubr.bf16.gmra.mxu1 %v4828_v56  ;;  %6545 = vmatprep.subr.bf16.mxu0 %v9935_v52 }
 0x40e   : > { %v4422_v60 = vadd.f32 %v4421_v38, %v12997_v63  ;;  %v4712_v62 = vmax.f32 %v4420_v17, 0.0 }
 0x40f   : > { %v4425_v16 = vpop.f32.mrf.mxu0  ;;  %4593 = vmatprep.mubr.bf16.mxu0 %v4109_v41 }
 0x410   : > { %v4713_v37 = vmax.f32 %v4422_v60, 0.0  ;;  %4594 = vmatmul.mubr.bf16.gmra.mxu0 %v4108_v23  ;;  %v4830_v18 = vpack.c.bf16 %v4712_v62, %v4710_v58  ;;  %v4426_v27 = vadd.f32 %v4425_v16, %v13000_v14 }
 0x411   : > { %v4427_v15 = vpop.f32.mrf.mxu0 }
 0x412   : > { %v4831_v45 = vpack.c.bf16 %v4713_v37, %v4711_v9  ;;  %v4428_v20 = vadd.f32 %v4427_v15, %v12997_v63  ;;  %v4714_v40 = vmax.f32 %v4426_v27, 0.0  ;;  %v9933_v37 = vld [vmem:[#allocation2 + $0x10] ss:$8 sps:$4 sm:$0xff]  }
 0x413   : > { %v4429_v47 = vpop.f32.mrf.mxu0  ;;  %6546 = vmatpush1.bf16.msra.mxu0 %v9933_v37 }
 0x414   : > { %v4430_v31 = vadd.f32 %v4429_v47, %v13000_v14  ;;  %5171 = vmatprep.mubr.bf16.mxu1 %v4831_v45  ;;  %v4715_v55 = vmax.f32 %v4428_v20, 0.0  ;;  %v9938_v45 = vld [vmem:[#allocation2 + $0x4] ss:$8 sps:$4 sm:$0xff]  }
 0x415   : > { %v3847_v4 = vpop.f32.mrf.mxu1  ;;  %v4431_v49 = vpop.f32.mrf.mxu0  ;;  %5172 = vmatmul.mubr.bf16.gmra.mxu1 %v4830_v18  ;;  %v9936_v18 = vld [vmem:[#allocation2] ss:$8 sps:$4 sm:$0xff]   ;;  %6547 = vmatprep.subr.bf16.mxu0 %v9938_v45 }
 0x416   : > { %v4432_v2 = vadd.f32 %v4431_v49, %v12997_v63  ;;  %v4716_v46 = vmax.f32 %v4430_v31, 0.0  ;;  %v3848_v28 = vadd.f32 %v3847_v4, %v12662_v48  ;;  %v9941_v31 = vld [vmem:[#allocation2 + $0xf4] ss:$8 sps:$4 sm:$0xff]  }
 0x417   : > { %v3849_v43 = vpop.f32.mrf.mxu1  ;;  %v4435_v12 = vpop.f32.mrf.mxu0  ;;  %6548 = vmatpush1.bf16.msra.mxu0 %v9936_v18  ;;  %v9950_v18 = vld [vmem:[#allocation2 + $0xc4] ss:$8 sps:$4 sm:$0xff]  }
 0x418   : > { %v4717_v11 = vmax.f32 %v4432_v2, 0.0  ;;  %v3850_v29 = vadd.f32 %v3849_v43, %v12595_v0  ;;  %v4832_v3 = vpack.c.bf16 %v4716_v46, %v4714_v40  ;;  %v4436_v59 = vadd.f32 %v4435_v12, %v13000_v14  ;;  %v9939_v46 = vld [vmem:[#allocation2 + $0xf0] ss:$8 sps:$4 sm:$0xff]   ;;  %6549 = vmatprep.subr.bf16.mxu0 %v9941_v31 }
 0x419   : > { %v3851_v42 = vpop.f32.mrf.mxu1  ;;  %v4437_v22 = vpop.f32.mrf.mxu0  ;;  %v4028_v38 = vmax.f32 %v3848_v28, 0.0 }
 0x41a   : > { %v3852_v30 = vadd.f32 %v3851_v42, %v12662_v48  ;;  %v4833_v36 = vpack.c.bf16 %v4717_v11, %v4715_v55  ;;  %v4438_v7 = vadd.f32 %v4437_v22, %v12997_v63  ;;  %v4029_v24 = vmax.f32 %v3850_v29, 0.0  ;;  %v9944_v42 = vld [vmem:[#allocation2 + $0xe4] ss:$8 sps:$4 sm:$0xff]  }
 0x41b   : > { %v3853_v21 = vpop.f32.mrf.mxu1  ;;  %v4439_v8 = vpop.f32.mrf.mxu0  ;;  %v4718_v44 = vmax.f32 %v4436_v59, 0.0  ;;  %6550 = vmatpush2.bf16.msra.mxu0 %v9939_v46 }
 0x41c   : > { %v3854_v26 = vadd.f32 %v3853_v21, %v12595_v0  ;;  %v4440_v51 = vadd.f32 %v4439_v8, %v13000_v14  ;;  %5181 = vmatprep.mubr.bf16.mxu1 %v4833_v36  ;;  %v4030_v13 = vmax.f32 %v3852_v30, 0.0  ;;  %v4719_v23 = vmax.f32 %v4438_v7, 0.0  ;;  %6551 = vmatprep.subr.bf16.mxu0 %v9944_v42 }
 0x41d   : > { %v4441_v57 = vpop.f32.mrf.mxu0  ;;  %5182 = vmatmul.mubr.bf16.gmra.mxu1 %v4832_v3 }
 0x41e   : > { %v4031_v56 = vmax.f32 %v3854_v26, 0.0  ;;  %v4442_v17 = vadd.f32 %v4441_v57, %v12997_v63  ;;  %v4720_v10 = vmax.f32 %v4440_v51, 0.0  ;;  %v4110_v16 = vpack.c.bf16 %v4030_v13, %v4028_v38 }
 0x41f   : > { %v4445_v41 = vpop.f32.mrf.mxu0  ;;  %6552 = vmatpush2.bf16.msra.mxu0 %v9942_v5 }
 0x420   : > { %v4721_v60 = vmax.f32 %v4442_v17, 0.0  ;;  %v4111_v9 = vpack.c.bf16 %v4031_v56, %v4029_v24  ;;  %v4834_v47 = vpack.c.bf16 %v4720_v10, %v4718_v44  ;;  %v4446_v4 = vadd.f32 %v4445_v41, %v13000_v14  ;;  %v9947_v24 = vld [vmem:[#allocation2 + $0xd4] ss:$8 sps:$4 sm:$0xff]   ;;  %v9945_v10 = vld [vmem:[#allocation2 + $0xd0] ss:$8 sps:$4 sm:$0xff]  }
 0x421   : > { %v4447_v62 = vpop.f32.mrf.mxu0  ;;  %6553 = vmatprep.subr.bf16.mxu0 %v9947_v24 }
 0x422   : > { %4603 = vmatprep.mubr.bf16.mxu0 %v4111_v9  ;;  %v4835_v15 = vpack.c.bf16 %v4721_v60, %v4719_v23  ;;  %v4448_v32 = vadd.f32 %v4447_v62, %v12997_v63  ;;  %v4722_v22 = vmax.f32 %v4446_v4, 0.0 }
 0x423   : > { %v4449_v58 = vpop.f32.mrf.mxu0  ;;  %4604 = vmatmul.mubr.bf16.gmra.mxu0 %v4110_v16 }
 0x424   : > { %v4450_v54 = vadd.f32 %v4449_v58, %v13000_v14  ;;  %5191 = vmatprep.mubr.bf16.mxu1 %v4835_v15  ;;  %v4723_v2 = vmax.f32 %v4448_v32, 0.0  ;;  %6554 = vmatpush2.bf16.msra.mxu0 %v9945_v10 }
 0x425   : > { %v4451_v20 = vpop.f32.mrf.mxu0  ;;  %5192 = vmatmul.mubr.bf16.gmra.mxu1 %v4834_v47  ;;  %6555 = vmatprep.subr.bf16.mxu0 %v9950_v18 }
 0x426   : > { %v4452_v49 = vadd.f32 %v4451_v20, %v12997_v63  ;;  %v4724_v43 = vmax.f32 %v4450_v54, 0.0  ;;  %v9948_v54 = vld [vmem:[#allocation2 + $0xc0] ss:$8 sps:$4 sm:$0xff]  }
 0x427   : > { %v4455_v27 = vpop.f32.mrf.mxu0 }
 0x428   : > { %v4725_v12 = vmax.f32 %v4452_v49, 0.0  ;;  %v3857_v55 = vpop.f32.mrf.mxu1  ;;  %v4836_v36 = vpack.c.bf16 %v4724_v43, %v4722_v22  ;;  %v4456_v19 = vadd.f32 %v4455_v27, %v13000_v14  ;;  %v9953_v49 = vld [vmem:[#allocation2 + $0xb4] ss:$8 sps:$4 sm:$0xff]   ;;  %6556 = vmatpush2.bf16.msra.mxu0 %v9948_v54 }
 0x429   : > { %v4457_v11 = vpop.f32.mrf.mxu0  ;;  %v3858_v51 = vadd.f32 %v3857_v55, %v12662_v48  ;;  %v9951_v55 = vld [vmem:[#allocation2 + $0xb0] ss:$8 sps:$4 sm:$0xff]   ;;  %6557 = vmatprep.subr.bf16.mxu0 %v9953_v49 }
 0x42a   : > { %v3859_v40 = vpop.f32.mrf.mxu1  ;;  %v4837_v29 = vpack.c.bf16 %v4725_v12, %v4723_v2  ;;  %v4458_v28 = vadd.f32 %v4457_v11, %v12997_v63  ;;  %v4726_v60 = vmax.f32 %v4456_v19, 0.0 }
 0x42b   : > { %v4459_v30 = vpop.f32.mrf.mxu0  ;;  %v3860_v3 = vadd.f32 %v3859_v40, %v12595_v0  ;;  %v4032_v37 = vmax.f32 %v3858_v51, 0.0 }
 0x42c   : > { %v4460_v21 = vadd.f32 %v4459_v30, %v13000_v14  ;;  %v3861_v8 = vpop.f32.mrf.mxu1  ;;  %5201 = vmatprep.mubr.bf16.mxu1 %v4837_v29  ;;  %v4727_v38 = vmax.f32 %v4458_v28, 0.0  ;;  %v9956_v29 = vld [vmem:[#allocation2 + $0xa4] ss:$8 sps:$4 sm:$0xff]   ;;  %6558 = vmatpush2.bf16.msra.mxu0 %v9951_v55 }
 0x42d   : > { %v3862_v7 = vadd.f32 %v3861_v8, %v12662_v48  ;;  %v4461_v26 = vpop.f32.mrf.mxu0  ;;  %5202 = vmatmul.mubr.bf16.gmra.mxu1 %v4836_v36  ;;  %v4033_v9 = vmax.f32 %v3860_v3, 0.0  ;;  %6559 = vmatprep.subr.bf16.mxu0 %v9956_v29 }
 0x42e   : > { %v4462_v13 = vadd.f32 %v4461_v26, %v12997_v63  ;;  %v3863_v57 = vpop.f32.mrf.mxu1  ;;  %v4728_v59 = vmax.f32 %v4460_v21, 0.0  ;;  %v9954_v21 = vld [vmem:[#allocation2 + $0xa0] ss:$8 sps:$4 sm:$0xff]  }
 0x42f   : > { %v3864_v56 = vadd.f32 %v3863_v57, %v12595_v0  ;;  %v4465_v17 = vpop.f32.mrf.mxu0  ;;  %v4034_v41 = vmax.f32 %v3862_v7, 0.0 }
 0x430   : > { %v4729_v23 = vmax.f32 %v4462_v13, 0.0  ;;  %v4838_v44 = vpack.c.bf16 %v4728_v59, %v4726_v60  ;;  %v4466_v31 = vadd.f32 %v4465_v17, %v13000_v14  ;;  %v9959_v13 = vld [vmem:[#allocation2 + $0x94] ss:$8 sps:$4 sm:$0xff]   ;;  %6560 = vmatpush2.bf16.msra.mxu0 %v9954_v21  ;;  %v9957_v17 = vld [vmem:[#allocation2 + $0x90] ss:$8 sps:$4 sm:$0xff]  }
 0x431   : > { %v4035_v16 = vmax.f32 %v3864_v56, 0.0  ;;  %v4467_v62 = vpop.f32.mrf.mxu0  ;;  %v4112_v45 = vpack.c.bf16 %v4034_v41, %v4032_v37  ;;  %6561 = vmatprep.subr.bf16.mxu0 %v9959_v13 }
 0x432   : > { %v4839_v52 = vpack.c.bf16 %v4729_v23, %v4727_v38  ;;  %v4468_v47 = vadd.f32 %v4467_v62, %v12997_v63  ;;  %v4730_v11 = vmax.f32 %v4466_v31, 0.0 }
 0x433   : > { %v4469_v15 = vpop.f32.mrf.mxu0  ;;  %v4113_v58 = vpack.c.bf16 %v4035_v16, %v4033_v9 }
 0x434   : > { %v4470_v32 = vadd.f32 %v4469_v15, %v13000_v14  ;;  %5211 = vmatprep.mubr.bf16.mxu1 %v4839_v52  ;;  %v4731_v2 = vmax.f32 %v4468_v47, 0.0  ;;  %v9962_v52 = vld [vmem:[#allocation2 + $0x84] ss:$8 sps:$4 sm:$0xff]   ;;  %6562 = vmatpush2.bf16.msra.mxu0 %v9957_v17  ;;  %v9960_v47 = vld [vmem:[#allocation2 + $0x80] ss:$8 sps:$4 sm:$0xff]  }
 0x435   : > { %v4471_v20 = vpop.f32.mrf.mxu0  ;;  %4613 = vmatprep.mubr.bf16.mxu0 %v4113_v58  ;;  %5212 = vmatmul.mubr.bf16.gmra.mxu1 %v4838_v44 }
 0x436   : > { %v4472_v4 = vadd.f32 %v4471_v20, %v12997_v63  ;;  %4614 = vmatmul.mubr.bf16.gmra.mxu0 %v4112_v45  ;;  %v4732_v43 = vmax.f32 %v4470_v32, 0.0  ;;  %6563 = vmatprep.subr.bf16.mxu0 %v9962_v52 }
 0x437   : > { %v4475_v27 = vpop.f32.mrf.mxu0 }
 0x438   : > { %v4733_v12 = vmax.f32 %v4472_v4, 0.0  ;;  %v4840_v30 = vpack.c.bf16 %v4732_v43, %v4730_v11  ;;  %v4476_v8 = vadd.f32 %v4475_v27, %v13000_v14  ;;  %6564 = vmatpush2.bf16.msra.mxu0 %v9960_v47 }
 0x439   : > { %v4477_v46 = vpop.f32.mrf.mxu0 }
 0x43a   : > { %v4841_v42 = vpack.c.bf16 %v4733_v12, %v4731_v2  ;;  %v4478_v36 = vadd.f32 %v4477_v46, %v12997_v63  ;;  %v4734_v38 = vmax.f32 %v4476_v8, 0.0 }
 0x43b   : > { %v3867_v22 = vpop.f32.mrf.mxu1  ;;  %v4479_v40 = vpop.f32.mrf.mxu0 }
 0x43c   : > { %v4480_v28 = vadd.f32 %v4479_v40, %v13000_v14  ;;  %5221 = vmatprep.mubr.bf16.mxu1 %v4841_v42  ;;  %v4735_v57 = vmax.f32 %v4478_v36, 0.0  ;;  %v3868_v41 = vadd.f32 %v3867_v22, %v12662_v48 }
 0x43d   : > { %v3869_v5 = vpop.f32.mrf.mxu1  ;;  %v4481_v19 = vpop.f32.mrf.mxu0  ;;  %5222 = vmatmul.mubr.bf16.gmra.mxu1 %v4840_v30 }
 0x43e   : > { %v4482_v3 = vadd.f32 %v4481_v19, %v12997_v63  ;;  %v4736_v7 = vmax.f32 %v4480_v28, 0.0  ;;  %v3870_v24 = vadd.f32 %v3869_v5, %v12595_v0  ;;  %v4036_v32 = vmax.f32 %v3868_v41, 0.0 }
 0x43f   : > { %v3871_v26 = vpop.f32.mrf.mxu1  ;;  %v4485_v51 = vpop.f32.mrf.mxu0 }
 0x440   : > { %v4737_v59 = vmax.f32 %v4482_v3, 0.0  ;;  %v3872_v56 = vadd.f32 %v3871_v26, %v12662_v48  ;;  %v4842_v16 = vpack.c.bf16 %v4736_v7, %v4734_v38  ;;  %v4037_v44 = vmax.f32 %v3870_v24, 0.0 }
 0x441   : > { %v3873_v23 = vpop.f32.mrf.mxu1  ;;  %v4487_v10 = vpop.f32.mrf.mxu0  ;;  %v4486_v18 = vadd.f32 %v4485_v51, %v13000_v14 }
 0x442   : > { %v3874_v60 = vadd.f32 %v3873_v23, %v12595_v0  ;;  %v4843_v9 = vpack.c.bf16 %v4737_v59, %v4735_v57  ;;  %v4038_v62 = vmax.f32 %v3872_v56, 0.0  ;;  %v4488_v58 = vadd.f32 %v4487_v10, %v12997_v63 }
 0x443   : > { %v4489_v37 = vpop.f32.mrf.mxu0  ;;  %v4738_v55 = vmax.f32 %v4486_v18, 0.0 }
 0x444   : > { %v4039_v15 = vmax.f32 %v3874_v60, 0.0  ;;  %v4490_v45 = vadd.f32 %v4489_v37, %v13000_v14  ;;  %5231 = vmatprep.mubr.bf16.mxu1 %v4843_v9  ;;  %v4114_v4 = vpack.c.bf16 %v4038_v62, %v4036_v32  ;;  %v4739_v27 = vmax.f32 %v4488_v58, 0.0 }
 0x445   : > { %v4491_v54 = vpop.f32.mrf.mxu0  ;;  %5232 = vmatmul.mubr.bf16.gmra.mxu1 %v4842_v16 }
 0x446   : > { %v4492_v20 = vadd.f32 %v4491_v54, %v12997_v63  ;;  %v4115_v31 = vpack.c.bf16 %v4039_v15, %v4037_v44  ;;  %v4740_v2 = vmax.f32 %v4490_v45, 0.0 }
 0x447   : > { %v4495_v49 = vpop.f32.mrf.mxu0 }
 0x448   : > { %v4741_v43 = vmax.f32 %v4492_v20, 0.0  ;;  %4623 = vmatprep.mubr.bf16.mxu0 %v4115_v31  ;;  %v4844_v42 = vpack.c.bf16 %v4740_v2, %v4738_v55  ;;  %v4496_v30 = vadd.f32 %v4495_v49, %v13000_v14 }
 0x449   : > { %v4497_v12 = vpop.f32.mrf.mxu0  ;;  %4624 = vmatmul.mubr.bf16.gmra.mxu0 %v4114_v4 }
 0x44a   : > { %v4845_v46 = vpack.c.bf16 %v4741_v43, %v4739_v27  ;;  %v4498_v22 = vadd.f32 %v4497_v12, %v12997_v63  ;;  %v4742_v26 = vmax.f32 %v4496_v30, 0.0 }
 0x44b   : > { %v4499_v11 = vpop.f32.mrf.mxu0 }
 0x44c   : > { %v4500_v40 = vadd.f32 %v4499_v11, %v13000_v14  ;;  %5241 = vmatprep.mubr.bf16.mxu1 %v4845_v46  ;;  %v4743_v8 = vmax.f32 %v4498_v22, 0.0 }
 0x44d   : > { %v4501_v29 = vpop.f32.mrf.mxu0  ;;  %5242 = vmatmul.mubr.bf16.gmra.mxu1 %v4844_v42 }
 0x44e   : > { %v4502_v36 = vadd.f32 %v4501_v29, %v12997_v63  ;;  %v3877_v28 = vpop.f32.mrf.mxu1  ;;  %v4744_v5 = vmax.f32 %v4500_v40, 0.0 }
 0x44f   : > { %v4505_v21 = vpop.f32.mrf.mxu0  ;;  %v3878_v17 = vadd.f32 %v3877_v28, %v12662_v48 }
 0x450   : > { %v4745_v19 = vmax.f32 %v4502_v36, 0.0  ;;  %v3879_v3 = vpop.f32.mrf.mxu1  ;;  %v4846_v56 = vpack.c.bf16 %v4744_v5, %v4742_v26  ;;  %v4506_v9 = vadd.f32 %v4505_v21, %v13000_v14 }
 0x451   : > { %v4507_v7 = vpop.f32.mrf.mxu0  ;;  %v3880_v57 = vadd.f32 %v3879_v3, %v12595_v0  ;;  %v4040_v15 = vmax.f32 %v3878_v17, 0.0 }
 0x452   : > { %v3881_v51 = vpop.f32.mrf.mxu1  ;;  %v4847_v13 = vpack.c.bf16 %v4745_v19, %v4743_v8  ;;  %v4508_v38 = vadd.f32 %v4507_v7, %v12997_v63  ;;  %v4746_v18 = vmax.f32 %v4506_v9, 0.0 }
 0x453   : > { %v3882_v24 = vadd.f32 %v3881_v51, %v12662_v48  ;;  %v4509_v59 = vpop.f32.mrf.mxu0  ;;  %v4041_v37 = vmax.f32 %v3880_v57, 0.0 }
 0x454   : > { %v4510_v41 = vadd.f32 %v4509_v59, %v13000_v14  ;;  %v3883_v23 = vpop.f32.mrf.mxu1  ;;  %5251 = vmatprep.mubr.bf16.mxu1 %v4847_v13  ;;  %v4747_v58 = vmax.f32 %v4508_v38, 0.0 }
 0x455   : > { %v3884_v10 = vadd.f32 %v3883_v23, %v12595_v0  ;;  %v4511_v60 = vpop.f32.mrf.mxu0  ;;  %v4042_v16 = vmax.f32 %v3882_v24, 0.0  ;;  %5252 = vmatmul.mubr.bf16.gmra.mxu1 %v4846_v56 }
 0x456   : > { %v4512_v62 = vadd.f32 %v4511_v60, %v12997_v63  ;;  %v4748_v45 = vmax.f32 %v4510_v41, 0.0 }
 0x457   : > { %v4043_v52 = vmax.f32 %v3884_v10, 0.0  ;;  %v4515_v44 = vpop.f32.mrf.mxu0  ;;  %v4116_v20 = vpack.c.bf16 %v4042_v16, %v4040_v15 }
 0x458   : > { %v4749_v47 = vmax.f32 %v4512_v62, 0.0  ;;  %v4848_v49 = vpack.c.bf16 %v4748_v45, %v4746_v18  ;;  %v4516_v12 = vadd.f32 %v4515_v44, %v13000_v14 }
 0x459   : > { %v4517_v32 = vpop.f32.mrf.mxu0  ;;  %v4117_v54 = vpack.c.bf16 %v4043_v52, %v4041_v37 }
 0x45a   : > { %v4849_v31 = vpack.c.bf16 %v4749_v47, %v4747_v58  ;;  %v4518_v27 = vadd.f32 %v4517_v32, %v12997_v63  ;;  %v4750_v30 = vmax.f32 %v4516_v12, 0.0 }
 0x45b   : > { %v4519_v4 = vpop.f32.mrf.mxu0  ;;  %4633 = vmatprep.mubr.bf16.mxu0 %v4117_v54 }
 0x45c   : > { %v4520_v2 = vadd.f32 %v4519_v4, %v13000_v14  ;;  %4634 = vmatmul.mubr.bf16.gmra.mxu0 %v4116_v20  ;;  %5261 = vmatprep.mubr.bf16.mxu1 %v4849_v31  ;;  %v4751_v11 = vmax.f32 %v4518_v27, 0.0 }
 0x45d   : > { %v4521_v43 = vpop.f32.mrf.mxu0  ;;  %5262 = vmatmul.mubr.bf16.gmra.mxu1 %v4848_v49 }
 0x45e   : > { %v4522_v55 = vadd.f32 %v4521_v43, %v12997_v63  ;;  %v4752_v42 = vmax.f32 %v4520_v2, 0.0 }
 0x45f   : > { %v4525_v46 = vpop.f32.mrf.mxu0 }
 0x460   : > { %v4753_v22 = vmax.f32 %v4522_v55, 0.0  ;;  %v4850_v8 = vpack.c.bf16 %v4752_v42, %v4750_v30  ;;  %v4526_v26 = vadd.f32 %v4525_v46, %v13000_v14 }
 0x461   : > { %v3887_v40 = vpop.f32.mrf.mxu1  ;;  %v4527_v29 = vpop.f32.mrf.mxu0 }
 0x462   : > { %v4851_v36 = vpack.c.bf16 %v4753_v22, %v4751_v11  ;;  %v4528_v5 = vadd.f32 %v4527_v29, %v12997_v63  ;;  %v3888_v24 = vadd.f32 %v3887_v40, %v12662_v48  ;;  %v4754_v9 = vmax.f32 %v4526_v26, 0.0 }
 0x463   : > { %v3889_v28 = vpop.f32.mrf.mxu1  ;;  %v4529_v21 = vpop.f32.mrf.mxu0 }
 0x464   : > { %v4530_v19 = vadd.f32 %v4529_v21, %v13000_v14  ;;  %5271 = vmatprep.mubr.bf16.mxu1 %v4851_v36  ;;  %v3890_v51 = vadd.f32 %v3889_v28, %v12595_v0  ;;  %v4755_v17 = vmax.f32 %v4528_v5, 0.0  ;;  %v4044_v52 = vmax.f32 %v3888_v24, 0.0 }
 0x465   : > { %v3891_v3 = vpop.f32.mrf.mxu1  ;;  %v4531_v7 = vpop.f32.mrf.mxu0  ;;  %5272 = vmatmul.mubr.bf16.gmra.mxu1 %v4850_v8 }
 0x466   : > { %v3892_v13 = vadd.f32 %v3891_v3, %v12662_v48  ;;  %v4532_v57 = vadd.f32 %v4531_v7, %v12997_v63  ;;  %v4756_v38 = vmax.f32 %v4530_v19, 0.0  ;;  %v4045_v16 = vmax.f32 %v3890_v51, 0.0 }
 0x467   : > { %v3893_v59 = vpop.f32.mrf.mxu1  ;;  %v4535_v56 = vpop.f32.mrf.mxu0 }
 0x468   : > { %v4757_v41 = vmax.f32 %v4532_v57, 0.0  ;;  %v3894_v23 = vadd.f32 %v3893_v59, %v12595_v0  ;;  %v4046_v10 = vmax.f32 %v3892_v13, 0.0  ;;  %v4852_v15 = vpack.c.bf16 %v4756_v38, %v4754_v9 }
 0x469   : > { %v4537_v60 = vpop.f32.mrf.mxu0  ;;  %v4536_v18 = vadd.f32 %v4535_v56, %v13000_v14 }
 0x46a   : > { %v4047_v62 = vmax.f32 %v3894_v23, 0.0  ;;  %v4853_v37 = vpack.c.bf16 %v4757_v41, %v4755_v17  ;;  %v4538_v58 = vadd.f32 %v4537_v60, %v12997_v63  ;;  %v4118_v32 = vpack.c.bf16 %v4046_v10, %v4044_v52 }
 0x46b   : > { %v4539_v44 = vpop.f32.mrf.mxu0  ;;  %v4758_v27 = vmax.f32 %v4536_v18, 0.0 }
 0x46c   : > { %v4540_v45 = vadd.f32 %v4539_v44, %v13000_v14  ;;  %5281 = vmatprep.mubr.bf16.mxu1 %v4853_v37  ;;  %v4119_v47 = vpack.c.bf16 %v4047_v62, %v4045_v16  ;;  %v4759_v31 = vmax.f32 %v4538_v58, 0.0 }
 0x46d   : > { %v4541_v54 = vpop.f32.mrf.mxu0  ;;  %5282 = vmatmul.mubr.bf16.gmra.mxu1 %v4852_v15 }
 0x46e   : > { %v4542_v20 = vadd.f32 %v4541_v54, %v12997_v63  ;;  %4643 = vmatprep.mubr.bf16.mxu0 %v4119_v47  ;;  %v4760_v4 = vmax.f32 %v4540_v45, 0.0 }
 0x46f   : > { %4644 = vmatmul.mubr.bf16.gmra.mxu0 %v4118_v32 }
 0x470   : > { %v4761_v49 = vmax.f32 %v4542_v20, 0.0  ;;  %v4854_v12 = vpack.c.bf16 %v4760_v4, %v4758_v27 }
 0x471   : > { %v4545_v2 = vpop.f32.mrf.mxu0 }
 0x472   : > { %v4855_v43 = vpack.c.bf16 %v4761_v49, %v4759_v31  ;;  %v4546_v29 = vadd.f32 %v4545_v2, %v13000_v14 }
 0x473   : > { %v4547_v55 = vpop.f32.mrf.mxu0 }
 0x474   : > { %v3897_v46 = vpop.f32.mrf.mxu1  ;;  %5291 = vmatprep.mubr.bf16.mxu1 %v4855_v43  ;;  %v4548_v22 = vadd.f32 %v4547_v55, %v12997_v63  ;;  %v4762_v13 = vmax.f32 %v4546_v29, 0.0 }
 0x475   : > { %v4549_v11 = vpop.f32.mrf.mxu0  ;;  %5292 = vmatmul.mubr.bf16.gmra.mxu1 %v4854_v12  ;;  %v3898_v5 = vadd.f32 %v3897_v46, %v12662_v48 }
 0x476   : > { %v3899_v42 = vpop.f32.mrf.mxu1  ;;  %v4550_v40 = vadd.f32 %v4549_v11, %v13000_v14  ;;  %v4763_v7 = vmax.f32 %v4548_v22, 0.0 }
 0x477   : > { %v4551_v30 = vpop.f32.mrf.mxu0  ;;  %v3900_v28 = vadd.f32 %v3899_v42, %v12595_v0  ;;  %v4048_v17 = vmax.f32 %v3898_v5, 0.0 }
 0x478   : > { %v3901_v36 = vpop.f32.mrf.mxu1  ;;  %v4552_v21 = vadd.f32 %v4551_v30, %v12997_v63  ;;  %v4764_v19 = vmax.f32 %v4550_v40, 0.0 }
 0x479   : > { %v3902_v8 = vadd.f32 %v3901_v36, %v12662_v48  ;;  %v4049_v24 = vmax.f32 %v3900_v28, 0.0 }
 0x47a   : > { %v3903_v3 = vpop.f32.mrf.mxu1  ;;  %v4765_v26 = vmax.f32 %v4552_v21, 0.0  ;;  %v4856_v38 = vpack.c.bf16 %v4764_v19, %v4762_v13 }
 0x47b   : > { %v3904_v51 = vadd.f32 %v3903_v3, %v12595_v0  ;;  %v4050_v57 = vmax.f32 %v3902_v8, 0.0 }
 0x47c   : > { %v4857_v56 = vpack.c.bf16 %v4765_v26, %v4763_v7 }
 0x47d   : > { %v4051_v59 = vmax.f32 %v3904_v51, 0.0  ;;  %v4120_v23 = vpack.c.bf16 %v4050_v57, %v4048_v17 }
 0x47e   : > { %5301 = vmatprep.mubr.bf16.mxu1 %v4857_v56 }
 0x47f   : > { %v4121_v41 = vpack.c.bf16 %v4051_v59, %v4049_v24  ;;  %5302 = vmatmul.mubr.bf16.gmra.mxu1 %v4856_v38 }
 0x481   : > { %4653 = vmatprep.mubr.bf16.mxu0 %v4121_v41 }
 0x482   : > { %4654 = vmatmul.mubr.bf16.gmra.mxu0 %v4120_v23 }
 0x484   : > { %v4555_v10 = vpop.f32.mrf.mxu0 }
 0x485   : > { %v4556_v44 = vadd.f32 %v4555_v10, %v13000_v14 }
 0x486   : > { %v4557_v60 = vpop.f32.mrf.mxu0 }
 0x487   : > { %v3907_v9 = vpop.f32.mrf.mxu1  ;;  %v4558_v37 = vadd.f32 %v4557_v60, %v12997_v63  ;;  %v4766_v27 = vmax.f32 %v4556_v44, 0.0 }
 0x488   : > { %v4559_v16 = vpop.f32.mrf.mxu0  ;;  %v3908_v54 = vadd.f32 %v3907_v9, %v12662_v48 }
 0x489   : > { %v3909_v62 = vpop.f32.mrf.mxu1  ;;  %v4560_v52 = vadd.f32 %v4559_v16, %v13000_v14  ;;  %v4767_v31 = vmax.f32 %v4558_v37, 0.0 }
 0x48a   : > { %v4561_v15 = vpop.f32.mrf.mxu0  ;;  %v3910_v45 = vadd.f32 %v3909_v62, %v12595_v0  ;;  %v4052_v46 = vmax.f32 %v3908_v54, 0.0 }
 0x48b   : > { %v3911_v58 = vpop.f32.mrf.mxu1  ;;  %v4562_v47 = vadd.f32 %v4561_v15, %v12997_v63  ;;  %v4768_v18 = vmax.f32 %v4560_v52, 0.0 }
 0x48c   : > { %v3912_v32 = vadd.f32 %v3911_v58, %v12662_v48  ;;  %v4053_v43 = vmax.f32 %v3910_v45, 0.0  ;;  %v4918_v58 = vld [vmem:[%s14852_s10] sm:$0x3] }
 0x48d   : > { %v3913_v20 = vpop.f32.mrf.mxu1  ;;  %v4769_v4 = vmax.f32 %v4562_v47, 0.0  ;;  %v4858_v11 = vpack.c.bf16 %v4768_v18, %v4766_v27  ;;  %v4919_v18 = vunpack.c.l.bf16 %v4918_v58  ;;  %v9965_v27 = vld [vmem:[#allocation4 + $0x74] ss:$8 sps:$4 sm:$0xff]  }
 0x48e   : > { %v3914_v49 = vadd.f32 %v3913_v20, %v12595_v0  ;;  %v4054_v2 = vmax.f32 %v3912_v32, 0.0  ;;  %7440 = vmatprep.subr.bf16.mxu1 %v9965_v27 }
 0x48f   : > { %v4859_v55 = vpack.c.bf16 %v4769_v4, %v4767_v31 }
 0x490   : > { %v4055_v12 = vmax.f32 %v3914_v49, 0.0  ;;  %v4122_v22 = vpack.c.bf16 %v4054_v2, %v4052_v46  ;;  %v9963_v49 = vld [vmem:[#allocation4 + $0x70] ss:$8 sps:$4 sm:$0xff]  }
 0x491   : > { %5311 = vmatprep.mubr.bf16.mxu1 %v4859_v55  ;;  %7441 = vmatpush1.bf16.msra.mxu1 %v9963_v49 }
 0x492   : > { %v4123_v42 = vpack.c.bf16 %v4055_v12, %v4053_v43  ;;  %5312 = vmatmul.mubr.bf16.gmra.mxu1 %v4858_v11 }
 0x494   : > { %4663 = vmatprep.mubr.bf16.mxu0 %v4123_v42  ;;  %v4928_v42 = vrot.slane %v4919_v18, %v10667_v33 }
 0x495   : > { %4664 = vmatmul.mubr.bf16.gmra.mxu0 %v4122_v22 }
 0x497   : > { %v4565_v40 = vpop.f32.mrf.mxu0 }
 0x498   : > { %v4566_v5 = vadd.f32 %v4565_v40, %v13000_v14 }
 0x499   : > { %v4567_v29 = vpop.f32.mrf.mxu0 }
 0x49a   : > { %v3917_v30 = vpop.f32.mrf.mxu1  ;;  %v4568_v21 = vadd.f32 %v4567_v29, %v12997_v63  ;;  %v4770_v38 = vmax.f32 %v4566_v5, 0.0 }
 0x49b   : > { %v4569_v36 = vpop.f32.mrf.mxu0  ;;  %v3918_v13 = vadd.f32 %v3917_v30, %v12662_v48  ;;  %v4924_v30 = vrot.slane %v4919_v18, %v10670_v34 }
 0x49c   : > { %v3919_v28 = vpop.f32.mrf.mxu1  ;;  %v4570_v8 = vadd.f32 %v4569_v36, %v13000_v14  ;;  %v4771_v59 = vmax.f32 %v4568_v21, 0.0 }
 0x49d   : > { %v4571_v19 = vpop.f32.mrf.mxu0  ;;  %v3920_v7 = vadd.f32 %v3919_v28, %v12595_v0  ;;  %v4056_v9 = vmax.f32 %v3918_v13, 0.0 }
 0x49e   : > { %v3921_v3 = vpop.f32.mrf.mxu1  ;;  %v4572_v26 = vadd.f32 %v4571_v19, %v12997_v63  ;;  %v4772_v57 = vmax.f32 %v4570_v8, 0.0 }
 0x49f   : > { %v3922_v51 = vadd.f32 %v3921_v3, %v12662_v48  ;;  %v4057_v23 = vmax.f32 %v3920_v7, 0.0  ;;  %v13136_v7 = vrot.slane %v4928_v42, %v10670_v34 }
 0x4a0   : > { %v3923_v24 = vpop.f32.mrf.mxu1  ;;  %v4773_v56 = vmax.f32 %v4572_v26, 0.0  ;;  %v4860_v16 = vpack.c.bf16 %v4772_v57, %v4770_v38  ;;  %v13139_v26 = vrot.slane %v4924_v30, %v10670_v34 }
 0x4a1   : > { %v3924_v17 = vadd.f32 %v3923_v24, %v12595_v0  ;;  %v4058_v41 = vmax.f32 %v3922_v51, 0.0 }
 0x4a2   : > { %v4861_v60 = vpack.c.bf16 %v4773_v56, %v4771_v59 }
 0x4a3   : > { %v4059_v10 = vmax.f32 %v3924_v17, 0.0  ;;  %v4124_v37 = vpack.c.bf16 %v4058_v41, %v4056_v9 }
 0x4a4   : > { %5321 = vmatprep.mubr.bf16.mxu1 %v4861_v60 }
 0x4a5   : > { %v4125_v62 = vpack.c.bf16 %v4059_v10, %v4057_v23  ;;  %5322 = vmatmul.mubr.bf16.gmra.mxu1 %v4860_v16 }
 0x4a7   : > { %4673 = vmatprep.mubr.bf16.mxu0 %v4125_v62  ;;  %v9966_v62 = vld [vmem:[#allocation4 + $0x60] ss:$8 sps:$4 sm:$0xff]  }
 0x4a8   : > { %4674 = vmatmul.mubr.bf16.gmra.mxu0 %v4124_v37  ;;  %v9968_v37 = vld [vmem:[#allocation4 + $0x64] ss:$8 sps:$4 sm:$0xff]  }
 0x4a9   : > { %7442 = vmatprep.subr.bf16.mxu1 %v9968_v37 }
 0x4aa   : > { %v4575_v52 = vpop.f32.mrf.mxu0  ;;  %7443 = vmatpush1.bf16.msra.mxu1 %v9966_v62 }
 0x4ab   : > { %v4576_v20 = vadd.f32 %v4575_v52, %v13000_v14 }
 0x4ac   : > { %v4577_v44 = vpop.f32.mrf.mxu0 }
 0x4ad   : > { %v3927_v15 = vpop.f32.mrf.mxu1  ;;  %v4578_v32 = vadd.f32 %v4577_v44, %v12997_v63  ;;  %v4774_v36 = vmax.f32 %v4576_v20, 0.0 }
 0x4ae   : > { %v4579_v45 = vpop.f32.mrf.mxu0  ;;  %v3928_v55 = vadd.f32 %v3927_v15, %v12662_v48 }
 0x4af   : > { %v3929_v47 = vpop.f32.mrf.mxu1  ;;  %v4580_v54 = vadd.f32 %v4579_v45, %v13000_v14  ;;  %v4775_v22 = vmax.f32 %v4578_v32, 0.0 }
 0x4b0   : > { %v4581_v31 = vpop.f32.mrf.mxu0  ;;  %v3930_v2 = vadd.f32 %v3929_v47, %v12595_v0  ;;  %v4060_v3 = vmax.f32 %v3928_v55, 0.0 }
 0x4b1   : > { %v3931_v4 = vpop.f32.mrf.mxu1  ;;  %v4582_v43 = vadd.f32 %v4581_v31, %v12997_v63  ;;  %v4776_v46 = vmax.f32 %v4580_v54, 0.0 }
 0x4b2   : > { %v3932_v12 = vadd.f32 %v3931_v4, %v12662_v48  ;;  %v4061_v21 = vmax.f32 %v3930_v2, 0.0 }
 0x4b3   : > { %v3933_v11 = vpop.f32.mrf.mxu1  ;;  %v4777_v40 = vmax.f32 %v4582_v43, 0.0  ;;  %v4862_v48 = vpack.c.bf16 %v4776_v46, %v4774_v36 }
 0x4b4   : > { %v3934_v29 = vadd.f32 %v3933_v11, %v12595_v0  ;;  %v4062_v28 = vmax.f32 %v3932_v12, 0.0 }
 0x4b5   : > { %v5133_v5 = vpop.f32.mrf.mxu1  ;;  %v4863_v19 = vpack.c.bf16 %v4777_v40, %v4775_v22 }
 0x4b6   : > { %v4063_v8 = vmax.f32 %v3934_v29, 0.0  ;;  %v4126_v13 = vpack.c.bf16 %v4062_v28, %v4060_v3  ;;  %v5134_v56 = vadd.f32 %v5133_v5, %v13139_v26 }
 0x4b7   : > { %v5135_v51 = vpop.f32.mrf.mxu1  ;;  %5331 = vmatprep.mubr.bf16.mxu1 %v4863_v19 }
 0x4b8   : > { %v4127_v0 = vpack.c.bf16 %v4063_v8, %v4061_v21  ;;  %5332 = vmatmul.mubr.bf16.gmra.mxu1 %v4862_v48  ;;  %v5136_v24 = vadd.f32 %v5135_v51, %v13136_v7  ;;  %v5452_v52 = vmax.f32 %v5134_v56, 0.0  ;;  %v9971_v56 = vld [vmem:[#allocation4 + $0x54] ss:$8 sps:$4 sm:$0xff]  }
 0x4b9   : > { %v5137_v57 = vpop.f32.mrf.mxu1  ;;  %7444 = vmatprep.subr.bf16.mxu1 %v9971_v56 }
 0x4ba   : > { %4683 = vmatprep.mubr.bf16.mxu0 %v4127_v0  ;;  %v5138_v59 = vadd.f32 %v5137_v57, %v13139_v26  ;;  %v5453_v60 = vmax.f32 %v5136_v24, 0.0 }
 0x4bb   : > { %4684 = vmatmul.mubr.bf16.gmra.mxu0 %v4126_v13  ;;  %v5139_v17 = vpop.f32.mrf.mxu1 }
 0x4bc   : > { %v5140_v38 = vadd.f32 %v5139_v17, %v13136_v7  ;;  %v5454_v23 = vmax.f32 %v5138_v59, 0.0  ;;  %v9969_v59 = vld [vmem:[#allocation4 + $0x50] ss:$8 sps:$4 sm:$0xff]  }
 0x4bd   : > { %v4585_v41 = vpop.f32.mrf.mxu0  ;;  %v5143_v10 = vpop.f32.mrf.mxu1  ;;  %7445 = vmatpush1.bf16.msra.mxu1 %v9969_v59 }
 0x4be   : > { %v5455_v9 = vmax.f32 %v5140_v38, 0.0  ;;  %v5580_v45 = vpack.c.bf16 %v5454_v23, %v5452_v52  ;;  %v4586_v18 = vadd.f32 %v4585_v41, %v13000_v14  ;;  %v5144_v49 = vadd.f32 %v5143_v10, %v13139_v26 }
 0x4bf   : > { %v4587_v16 = vpop.f32.mrf.mxu0  ;;  %v5145_v44 = vpop.f32.mrf.mxu1 }
 0x4c0   : > { %v5581_v58 = vpack.c.bf16 %v5455_v9, %v5453_v60  ;;  %v4588_v47 = vadd.f32 %v4587_v16, %v12997_v63  ;;  %v5146_v20 = vadd.f32 %v5145_v44, %v13136_v7  ;;  %v4778_v22 = vmax.f32 %v4586_v18, 0.0 }
 0x4c1   : > { %v4589_v15 = vpop.f32.mrf.mxu0  ;;  %v5147_v54 = vpop.f32.mrf.mxu1  ;;  %v5456_v30 = vmax.f32 %v5144_v49, 0.0 }
 0x4c2   : > { %v4590_v32 = vadd.f32 %v4589_v15, %v13000_v14  ;;  %v5148_v31 = vadd.f32 %v5147_v54, %v13139_v26  ;;  %6565 = vmatprep.mubr.bf16.mxu0 %v5581_v58  ;;  %v4779_v55 = vmax.f32 %v4588_v47, 0.0  ;;  %v5457_v40 = vmax.f32 %v5146_v20, 0.0 }
 0x4c3   : > { %v4591_v4 = vpop.f32.mrf.mxu0  ;;  %v5149_v2 = vpop.f32.mrf.mxu1  ;;  %6566 = vmatmul.mubr.bf16.vlgmr.msra.gmra.mxu0 %v5580_v45 }
 0x4c4   : > { %v4592_v27 = vadd.f32 %v4591_v4, %v12997_v63  ;;  %v4780_v43 = vmax.f32 %v4590_v32, 0.0  ;;  %v5150_v12 = vadd.f32 %v5149_v2, %v13136_v7  ;;  %v5458_v46 = vmax.f32 %v5148_v31, 0.0 }
 0x4c5   : > { %v5153_v42 = vpop.f32.mrf.mxu1 }
 0x4c6   : > { %v4781_v11 = vmax.f32 %v4592_v27, 0.0  ;;  %v5459_v29 = vmax.f32 %v5150_v12, 0.0  ;;  %v4864_v21 = vpack.c.bf16 %v4780_v43, %v4778_v22  ;;  %v5582_v5 = vpack.c.bf16 %v5458_v46, %v5456_v30 }
 0x4c7   : > { %v5155_v36 = vpop.f32.mrf.mxu1  ;;  %v5154_v51 = vadd.f32 %v5153_v42, %v13139_v26 }
 0x4c8   : > { %v4865_v28 = vpack.c.bf16 %v4781_v11, %v4779_v55  ;;  %v5583_v8 = vpack.c.bf16 %v5459_v29, %v5457_v40  ;;  %v5156_v3 = vadd.f32 %v5155_v36, %v13136_v7 }
 0x4c9   : > { %v5157_v19 = vpop.f32.mrf.mxu1  ;;  %v5460_v41 = vmax.f32 %v5154_v51, 0.0  ;;  %v9974_v51 = vld [vmem:[#allocation4 + $0x44] ss:$8 sps:$4 sm:$0xff]  }
 0x4ca   : > { %5341 = vmatprep.mubr.bf16.mxu1 %v4865_v28  ;;  %v5158_v48 = vadd.f32 %v5157_v19, %v13139_v26  ;;  %6575 = vmatprep.mubr.bf16.mxu0 %v5583_v8  ;;  %v5461_v17 = vmax.f32 %v5156_v3, 0.0 }
 0x4cb   : > { %5342 = vmatmul.mubr.bf16.gmra.mxu1 %v4864_v21  ;;  %v5159_v0 = vpop.f32.mrf.mxu1  ;;  %6576 = vmatmul.mubr.bf16.gmra.mxu0 %v5582_v5 }
 0x4cc   : > { %v5160_v13 = vadd.f32 %v5159_v0, %v13136_v7  ;;  %v5462_v57 = vmax.f32 %v5158_v48, 0.0  ;;  %v9972_v48 = vld [vmem:[#allocation4 + $0x40] ss:$8 sps:$4 sm:$0xff]   ;;  %7446 = vmatprep.subr.bf16.mxu1 %v9974_v51  ;;  %v9983_v51 = vld [vmem:[#allocation4 + $0x14] ss:$8 sps:$4 sm:$0xff]  }
 0x4cd   : > { %v5163_v24 = vpop.f32.mrf.mxu1  ;;  %7447 = vmatpush1.bf16.msra.mxu1 %v9972_v48  ;;  %v9981_v48 = vld [vmem:[#allocation4 + $0x10] ss:$8 sps:$4 sm:$0xff]  }
 0x4ce   : > { %v5463_v38 = vmax.f32 %v5160_v13, 0.0  ;;  %v5584_v9 = vpack.c.bf16 %v5462_v57, %v5460_v41  ;;  %v5164_v44 = vadd.f32 %v5163_v24, %v13139_v26 }
 0x4cf   : > { %v5165_v23 = vpop.f32.mrf.mxu1 }
 0x4d0   : > { %v4595_v10 = vpop.f32.mrf.mxu0  ;;  %v5585_v60 = vpack.c.bf16 %v5463_v38, %v5461_v17  ;;  %v5166_v37 = vadd.f32 %v5165_v23, %v13136_v7  ;;  %v5464_v27 = vmax.f32 %v5164_v44, 0.0 }
 0x4d1   : > { %v5167_v16 = vpop.f32.mrf.mxu1  ;;  %v4596_v4 = vadd.f32 %v4595_v10, %v13000_v14  ;;  %v9975_v10 = vld [vmem:[#allocation4 + $0x30] ss:$8 sps:$4 sm:$0xff]  }
 0x4d2   : > { %v4597_v62 = vpop.f32.mrf.mxu0  ;;  %v5168_v52 = vadd.f32 %v5167_v16, %v13139_v26  ;;  %6585 = vmatprep.mubr.bf16.mxu0 %v5585_v60  ;;  %v5465_v31 = vmax.f32 %v5166_v37, 0.0  ;;  %v9977_v60 = vld [vmem:[#allocation4 + $0x34] ss:$8 sps:$4 sm:$0xff]  }
 0x4d3   : > { %v5169_v15 = vpop.f32.mrf.mxu1  ;;  %6586 = vmatmul.mubr.bf16.gmra.mxu0 %v5584_v9  ;;  %v4598_v54 = vadd.f32 %v4597_v62, %v12997_v63  ;;  %v4782_v40 = vmax.f32 %v4596_v4, 0.0  ;;  %7448 = vmatprep.subr.bf16.mxu1 %v9977_v60 }
 0x4d4   : > { %v4599_v58 = vpop.f32.mrf.mxu0  ;;  %v5170_v45 = vadd.f32 %v5169_v15, %v13136_v7  ;;  %v5466_v32 = vmax.f32 %v5168_v52, 0.0  ;;  %7449 = vmatpush1.bf16.msra.mxu1 %v9975_v10  ;;  %v9989_v10 = vld [vmem:[#allocation4 + $0xf4] ss:$8 sps:$4 sm:$0xff]  }
 0x4d5   : > { %v4600_v47 = vadd.f32 %v4599_v58, %v13000_v14  ;;  %v5173_v18 = vpop.f32.mrf.mxu1  ;;  %v4783_v11 = vmax.f32 %v4598_v54, 0.0 }
 0x4d6   : > { %v4601_v20 = vpop.f32.mrf.mxu0  ;;  %v5467_v49 = vmax.f32 %v5170_v45, 0.0  ;;  %v5586_v46 = vpack.c.bf16 %v5466_v32, %v5464_v27  ;;  %v5174_v36 = vadd.f32 %v5173_v18, %v13139_v26 }
 0x4d7   : > { %v4602_v2 = vadd.f32 %v4601_v20, %v12997_v63  ;;  %v5175_v43 = vpop.f32.mrf.mxu1  ;;  %v4784_v12 = vmax.f32 %v4600_v47, 0.0 }
 0x4d8   : > { %v5587_v55 = vpack.c.bf16 %v5467_v49, %v5465_v31  ;;  %v5176_v29 = vadd.f32 %v5175_v43, %v13136_v7  ;;  %v5468_v57 = vmax.f32 %v5174_v36, 0.0 }
 0x4d9   : > { %v4785_v42 = vmax.f32 %v4602_v2, 0.0  ;;  %v5177_v22 = vpop.f32.mrf.mxu1  ;;  %v4866_v8 = vpack.c.bf16 %v4784_v12, %v4782_v40 }
 0x4da   : > { %v5178_v30 = vadd.f32 %v5177_v22, %v13139_v26  ;;  %6595 = vmatprep.mubr.bf16.mxu0 %v5587_v55  ;;  %v5469_v0 = vmax.f32 %v5176_v29, 0.0 }
 0x4db   : > { %v5179_v28 = vpop.f32.mrf.mxu1  ;;  %6596 = vmatmul.mubr.bf16.gmra.mxu0 %v5586_v46  ;;  %v4867_v21 = vpack.c.bf16 %v4785_v42, %v4783_v11  ;;  %v9978_v46 = vld [vmem:[#allocation4 + $0x20] ss:$8 sps:$4 sm:$0xff]   ;;  %v9980_v11 = vld [vmem:[#allocation4 + $0x24] ss:$8 sps:$4 sm:$0xff]  }
 0x4dc   : > { %v5180_v5 = vadd.f32 %v5179_v28, %v13136_v7  ;;  %v5470_v19 = vmax.f32 %v5178_v30, 0.0  ;;  %7450 = vmatprep.subr.bf16.mxu1 %v9980_v11 }
 0x4dd   : > { %v5183_v3 = vpop.f32.mrf.mxu1  ;;  %5351 = vmatprep.mubr.bf16.mxu1 %v4867_v21  ;;  %7451 = vmatpush1.bf16.msra.mxu1 %v9978_v46 }
 0x4de   : > { %v5471_v13 = vmax.f32 %v5180_v5, 0.0  ;;  %5352 = vmatmul.mubr.bf16.gmra.mxu1 %v4866_v8  ;;  %v5588_v56 = vpack.c.bf16 %v5470_v19, %v5468_v57  ;;  %v5184_v9 = vadd.f32 %v5183_v3, %v13139_v26  ;;  %7452 = vmatprep.subr.bf16.mxu1 %v9983_v51 }
 0x4df   : > { %v5185_v24 = vpop.f32.mrf.mxu1 }
 0x4e0   : > { %v5589_v59 = vpack.c.bf16 %v5471_v13, %v5469_v0  ;;  %v5186_v38 = vadd.f32 %v5185_v24, %v13136_v7  ;;  %v5472_v47 = vmax.f32 %v5184_v9, 0.0  ;;  %v9986_v24 = vld [vmem:[#allocation4 + $0x4] ss:$8 sps:$4 sm:$0xff]  }
 0x4e1   : > { %v5187_v17 = vpop.f32.mrf.mxu1  ;;  %7453 = vmatpush1.bf16.msra.mxu1 %v9981_v48 }
 0x4e2   : > { %v5188_v41 = vadd.f32 %v5187_v17, %v13139_v26  ;;  %6605 = vmatprep.mubr.bf16.mxu0 %v5589_v59  ;;  %v5473_v15 = vmax.f32 %v5186_v38, 0.0  ;;  %v9984_v17 = vld [vmem:[#allocation4] ss:$8 sps:$4 sm:$0xff]   ;;  %7454 = vmatprep.subr.bf16.mxu1 %v9986_v24 }
 0x4e3   : > { %v4605_v23 = vpop.f32.mrf.mxu0  ;;  %v5189_v16 = vpop.f32.mrf.mxu1  ;;  %6606 = vmatmul.mubr.bf16.gmra.mxu0 %v5588_v56 }
 0x4e4   : > { %v5190_v62 = vadd.f32 %v5189_v16, %v13136_v7  ;;  %v5474_v52 = vmax.f32 %v5188_v41, 0.0  ;;  %v4606_v20 = vadd.f32 %v4605_v23, %v13000_v14 }
 0x4e5   : > { %v4607_v37 = vpop.f32.mrf.mxu0  ;;  %v5193_v44 = vpop.f32.mrf.mxu1  ;;  %7455 = vmatpush1.bf16.msra.mxu1 %v9984_v17 }
 0x4e6   : > { %v5475_v58 = vmax.f32 %v5190_v62, 0.0  ;;  %v4608_v32 = vadd.f32 %v4607_v37, %v12997_v63  ;;  %v5590_v49 = vpack.c.bf16 %v5474_v52, %v5472_v47  ;;  %v5194_v22 = vadd.f32 %v5193_v44, %v13139_v26  ;;  %v9987_v37 = vld [vmem:[#allocation4 + $0xf0] ss:$8 sps:$4 sm:$0xff]   ;;  %7456 = vmatprep.subr.bf16.mxu1 %v9989_v10 }
 0x4e7   : > { %v4609_v45 = vpop.f32.mrf.mxu0  ;;  %v5195_v18 = vpop.f32.mrf.mxu1  ;;  %v4786_v30 = vmax.f32 %v4606_v20, 0.0 }
 0x4e8   : > { %v4610_v54 = vadd.f32 %v4609_v45, %v13000_v14  ;;  %v5591_v4 = vpack.c.bf16 %v5475_v58, %v5473_v15  ;;  %v5196_v12 = vadd.f32 %v5195_v18, %v13136_v7  ;;  %v4787_v42 = vmax.f32 %v4608_v32, 0.0  ;;  %v9992_v15 = vld [vmem:[#allocation4 + $0xe4] ss:$8 sps:$4 sm:$0xff]  }
 0x4e9   : > { %v4611_v31 = vpop.f32.mrf.mxu0  ;;  %v5197_v2 = vpop.f32.mrf.mxu1  ;;  %v5476_v0 = vmax.f32 %v5194_v22, 0.0  ;;  %7457 = vmatpush2.bf16.msra.mxu1 %v9987_v37 }
 0x4ea   : > { %v4612_v27 = vadd.f32 %v4611_v31, %v12997_v63  ;;  %v4788_v43 = vmax.f32 %v4610_v54, 0.0  ;;  %v5198_v55 = vadd.f32 %v5197_v2, %v13139_v26  ;;  %6615 = vmatprep.mubr.bf16.mxu0 %v5591_v4  ;;  %v5477_v19 = vmax.f32 %v5196_v12, 0.0  ;;  %v9990_v4 = vld [vmem:[#allocation4 + $0xe0] ss:$8 sps:$4 sm:$0xff]   ;;  %7458 = vmatprep.subr.bf16.mxu1 %v9992_v15 }
 0x4eb   : > { %v5199_v29 = vpop.f32.mrf.mxu1  ;;  %6616 = vmatmul.mubr.bf16.gmra.mxu0 %v5590_v49 }
 0x4ec   : > { %v4789_v40 = vmax.f32 %v4612_v27, 0.0  ;;  %v5200_v36 = vadd.f32 %v5199_v29, %v13136_v7  ;;  %v5478_v28 = vmax.f32 %v5198_v55, 0.0  ;;  %v4868_v5 = vpack.c.bf16 %v4788_v43, %v4786_v30 }
 0x4ed   : > { %v5203_v21 = vpop.f32.mrf.mxu1  ;;  %7459 = vmatpush2.bf16.msra.mxu1 %v9990_v4 }
 0x4ee   : > { %v4869_v8 = vpack.c.bf16 %v4789_v40, %v4787_v42  ;;  %v5479_v3 = vmax.f32 %v5200_v36, 0.0  ;;  %v5592_v59 = vpack.c.bf16 %v5478_v28, %v5476_v0  ;;  %v5204_v60 = vadd.f32 %v5203_v21, %v13139_v26  ;;  %v9993_v36 = vld [vmem:[#allocation4 + $0xd0] ss:$8 sps:$4 sm:$0xff]   ;;  %v9995_v28 = vld [vmem:[#allocation4 + $0xd4] ss:$8 sps:$4 sm:$0xff]  }
 0x4ef   : > { %v5205_v13 = vpop.f32.mrf.mxu1  ;;  %7460 = vmatprep.subr.bf16.mxu1 %v9995_v28 }
 0x4f0   : > { %5361 = vmatprep.mubr.bf16.mxu1 %v4869_v8  ;;  %v5593_v57 = vpack.c.bf16 %v5479_v3, %v5477_v19  ;;  %v5206_v41 = vadd.f32 %v5205_v13, %v13136_v7  ;;  %v5480_v32 = vmax.f32 %v5204_v60, 0.0 }
 0x4f1   : > { %5362 = vmatmul.mubr.bf16.gmra.mxu1 %v4868_v5  ;;  %v5207_v56 = vpop.f32.mrf.mxu1 }
 0x4f2   : > { %v5208_v38 = vadd.f32 %v5207_v56, %v13139_v26  ;;  %6625 = vmatprep.mubr.bf16.mxu0 %v5593_v57  ;;  %v5481_v58 = vmax.f32 %v5206_v41, 0.0  ;;  %7461 = vmatpush2.bf16.msra.mxu1 %v9993_v36  ;;  %v9996_v41 = vld [vmem:[#allocation4 + $0xc0] ss:$8 sps:$4 sm:$0xff]  }
 0x4f3   : > { %v5209_v23 = vpop.f32.mrf.mxu1  ;;  %6626 = vmatmul.mubr.bf16.gmra.mxu0 %v5592_v59 }
 0x4f4   : > { %v5210_v9 = vadd.f32 %v5209_v23, %v13136_v7  ;;  %v5482_v52 = vmax.f32 %v5208_v38, 0.0  ;;  %v9998_v23 = vld [vmem:[#allocation4 + $0xc4] ss:$8 sps:$4 sm:$0xff]  }
 0x4f5   : > { %v5213_v16 = vpop.f32.mrf.mxu1  ;;  %7462 = vmatprep.subr.bf16.mxu1 %v9998_v23 }
 0x4f6   : > { %v4615_v62 = vpop.f32.mrf.mxu0  ;;  %v5483_v44 = vmax.f32 %v5210_v9, 0.0  ;;  %v5594_v49 = vpack.c.bf16 %v5482_v52, %v5480_v32  ;;  %v5214_v11 = vadd.f32 %v5213_v16, %v13139_v26  ;;  %7463 = vmatpush2.bf16.msra.mxu1 %v9996_v41 }
 0x4f7   : > { %v5215_v45 = vpop.f32.mrf.mxu1  ;;  %v4616_v12 = vadd.f32 %v4615_v62, %v13000_v14 }
 0x4f8   : > { %v4617_v47 = vpop.f32.mrf.mxu0  ;;  %v5216_v54 = vadd.f32 %v5215_v45, %v13136_v7  ;;  %v5595_v31 = vpack.c.bf16 %v5483_v44, %v5481_v58  ;;  %v5484_v51 = vmax.f32 %v5214_v11, 0.0  ;;  %v9999_v45 = vld [vmem:[#allocation4 + $0xb0] ss:$8 sps:$4 sm:$0xff]  }
 0x4f9   : > { %v5217_v18 = vpop.f32.mrf.mxu1  ;;  %v4618_v27 = vadd.f32 %v4617_v47, %v12997_v63  ;;  %v4790_v3 = vmax.f32 %v4616_v12, 0.0  ;;  %v10001_v47 = vld [vmem:[#allocation4 + $0xb4] ss:$8 sps:$4 sm:$0xff]  }
 0x4fa   : > { %v4619_v20 = vpop.f32.mrf.mxu0  ;;  %v5218_v2 = vadd.f32 %v5217_v18, %v13139_v26  ;;  %6635 = vmatprep.mubr.bf16.mxu0 %v5595_v31  ;;  %v5485_v40 = vmax.f32 %v5216_v54, 0.0  ;;  %7464 = vmatprep.subr.bf16.mxu1 %v10001_v47 }
 0x4fb   : > { %v4620_v43 = vadd.f32 %v4619_v20, %v13000_v14  ;;  %v5219_v55 = vpop.f32.mrf.mxu1  ;;  %6636 = vmatmul.mubr.bf16.gmra.mxu0 %v5594_v49  ;;  %v4791_v21 = vmax.f32 %v4618_v27, 0.0  ;;  %7465 = vmatpush2.bf16.msra.mxu1 %v9999_v45 }
 0x4fc   : > { %v4621_v46 = vpop.f32.mrf.mxu0  ;;  %v5220_v42 = vadd.f32 %v5219_v55, %v13136_v7  ;;  %v5486_v8 = vmax.f32 %v5218_v2, 0.0 }
 0x4fd   : > { %v4622_v22 = vadd.f32 %v4621_v46, %v12997_v63  ;;  %v4792_v29 = vmax.f32 %v4620_v43, 0.0  ;;  %v5223_v30 = vpop.f32.mrf.mxu1 }
 0x4fe   : > { %v5487_v5 = vmax.f32 %v5220_v42, 0.0  ;;  %v5596_v59 = vpack.c.bf16 %v5486_v8, %v5484_v51  ;;  %v5224_v10 = vadd.f32 %v5223_v30, %v13139_v26  ;;  %v10004_v30 = vld [vmem:[#allocation4 + $0xa4] ss:$8 sps:$4 sm:$0xff]  }
 0x4ff   : > { %v4793_v19 = vmax.f32 %v4622_v22, 0.0  ;;  %v5225_v48 = vpop.f32.mrf.mxu1  ;;  %v4870_v57 = vpack.c.bf16 %v4792_v29, %v4790_v3  ;;  %v10002_v29 = vld [vmem:[#allocation4 + $0xa0] ss:$8 sps:$4 sm:$0xff]   ;;  %7466 = vmatprep.subr.bf16.mxu1 %v10004_v30 }
 0x500   : > { %v5597_v0 = vpack.c.bf16 %v5487_v5, %v5485_v40  ;;  %v5226_v56 = vadd.f32 %v5225_v48, %v13136_v7  ;;  %v5488_v44 = vmax.f32 %v5224_v10, 0.0  ;;  %7467 = vmatpush2.bf16.msra.mxu1 %v10002_v29 }
 0x501   : > { %v4871_v13 = vpack.c.bf16 %v4793_v19, %v4791_v21  ;;  %v5227_v24 = vpop.f32.mrf.mxu1  ;;  %v10007_v19 = vld [vmem:[#allocation4 + $0x94] ss:$8 sps:$4 sm:$0xff]  }
 0x502   : > { %v5228_v17 = vadd.f32 %v5227_v24, %v13139_v26  ;;  %6645 = vmatprep.mubr.bf16.mxu0 %v5597_v0  ;;  %v5489_v16 = vmax.f32 %v5226_v56, 0.0  ;;  %7468 = vmatprep.subr.bf16.mxu1 %v10007_v19 }
 0x503   : > { %5371 = vmatprep.mubr.bf16.mxu1 %v4871_v13  ;;  %v5229_v38 = vpop.f32.mrf.mxu1  ;;  %6646 = vmatmul.mubr.bf16.gmra.mxu0 %v5596_v59  ;;  %v10005_v13 = vld [vmem:[#allocation4 + $0x90] ss:$8 sps:$4 sm:$0xff]  }
 0x504   : > { %5372 = vmatmul.mubr.bf16.gmra.mxu1 %v4870_v57  ;;  %v5230_v60 = vadd.f32 %v5229_v38, %v13136_v7  ;;  %v5490_v62 = vmax.f32 %v5228_v17, 0.0 }
 0x505   : > { %v5233_v9 = vpop.f32.mrf.mxu1  ;;  %7469 = vmatpush2.bf16.msra.mxu1 %v10005_v13 }
 0x506   : > { %v5491_v37 = vmax.f32 %v5230_v60, 0.0  ;;  %v5598_v18 = vpack.c.bf16 %v5490_v62, %v5488_v44  ;;  %v5234_v49 = vadd.f32 %v5233_v9, %v13139_v26  ;;  %v10008_v62 = vld [vmem:[#allocation4 + $0x80] ss:$8 sps:$4 sm:$0xff]  }
 0x507   : > { %v5235_v52 = vpop.f32.mrf.mxu1 }
 0x508   : > { %v5599_v58 = vpack.c.bf16 %v5491_v37, %v5489_v16  ;;  %v5236_v32 = vadd.f32 %v5235_v52, %v13136_v7  ;;  %v5492_v21 = vmax.f32 %v5234_v49, 0.0  ;;  %v10010_v37 = vld [vmem:[#allocation4 + $0x84] ss:$8 sps:$4 sm:$0xff]  }
 0x509   : > { %v4625_v15 = vpop.f32.mrf.mxu0  ;;  %v5237_v54 = vpop.f32.mrf.mxu1  ;;  %7470 = vmatprep.subr.bf16.mxu1 %v10010_v37 }
 0x50a   : > { %v5238_v20 = vadd.f32 %v5237_v54, %v13139_v26  ;;  %6655 = vmatprep.mubr.bf16.mxu0 %v5599_v58  ;;  %v5493_v43 = vmax.f32 %v5236_v32, 0.0  ;;  %v4626_v11 = vadd.f32 %v4625_v15, %v13000_v14  ;;  %7471 = vmatpush2.bf16.msra.mxu1 %v10008_v62  ;;  %v15336_v54 = vmov 0  }
 0x50b   : > { %v4627_v31 = vpop.f32.mrf.mxu0  ;;  %v5239_v4 = vpop.f32.mrf.mxu1  ;;  %6656 = vmatmul.mubr.bf16.gmra.mxu0 %v5598_v18  ;;  %8877 = vmatprep.subr.bf16.mxu1 %v15336_v54 }
 0x50c   : > { %v5240_v27 = vadd.f32 %v5239_v4, %v13136_v7  ;;  %v4628_v12 = vadd.f32 %v4627_v31, %v12997_v63  ;;  %v5494_v42 = vmax.f32 %v5238_v20, 0.0  ;;  %v4794_v57 = vmax.f32 %v4626_v11, 0.0 }
 0x50d   : > { %v4629_v2 = vpop.f32.mrf.mxu0  ;;  %v5243_v46 = vpop.f32.mrf.mxu1 }
 0x50e   : > { %v4630_v55 = vadd.f32 %v4629_v2, %v13000_v14  ;;  %v5495_v22 = vmax.f32 %v5240_v27, 0.0  ;;  %v4795_v3 = vmax.f32 %v4628_v12, 0.0  ;;  %v5600_v24 = vpack.c.bf16 %v5494_v42, %v5492_v21 }
 0x50f   : > { %v4631_v40 = vpop.f32.mrf.mxu0  ;;  %v5245_v28 = vpop.f32.mrf.mxu1  ;;  %v5244_v41 = vadd.f32 %v5243_v46, %v13139_v26 }
 0x510   : > { %v4632_v36 = vadd.f32 %v4631_v40, %v12997_v63  ;;  %v4796_v8 = vmax.f32 %v4630_v55, 0.0  ;;  %v5601_v5 = vpack.c.bf16 %v5495_v22, %v5493_v43  ;;  %v5246_v51 = vadd.f32 %v5245_v28, %v13136_v7 }
 0x511   : > { %v5247_v0 = vpop.f32.mrf.mxu1  ;;  %v5496_v44 = vmax.f32 %v5244_v41, 0.0 }
 0x512   : > { %v4797_v48 = vmax.f32 %v4632_v36, 0.0  ;;  %v5248_v59 = vadd.f32 %v5247_v0, %v13139_v26  ;;  %6665 = vmatprep.mubr.bf16.mxu0 %v5601_v5  ;;  %v4872_v38 = vpack.c.bf16 %v4796_v8, %v4794_v57  ;;  %v5497_v10 = vmax.f32 %v5246_v51, 0.0 }
 0x513   : > { %v5249_v56 = vpop.f32.mrf.mxu1  ;;  %6666 = vmatmul.mubr.bf16.gmra.mxu0 %v5600_v24 }
 0x514   : > { %v4873_v17 = vpack.c.bf16 %v4797_v48, %v4795_v3  ;;  %v5250_v23 = vadd.f32 %v5249_v56, %v13136_v7  ;;  %v5498_v9 = vmax.f32 %v5248_v59, 0.0 }
 0x515   : > { %v5253_v60 = vpop.f32.mrf.mxu1 }
 0x516   : > { %5381 = vmatprep.mubr.bf16.mxu1 %v4873_v17  ;;  %v5499_v16 = vmax.f32 %v5250_v23, 0.0  ;;  %v5602_v45 = vpack.c.bf16 %v5498_v9, %v5496_v44  ;;  %v5254_v31 = vadd.f32 %v5253_v60, %v13139_v26 }
 0x517   : > { %5382 = vmatmul.mubr.bf16.gmra.mxu1 %v4872_v38  ;;  %v5255_v52 = vpop.f32.mrf.mxu1 }
 0x518   : > { %v5603_v15 = vpack.c.bf16 %v5499_v16, %v5497_v10  ;;  %v5256_v47 = vadd.f32 %v5255_v52, %v13136_v7  ;;  %v5500_v11 = vmax.f32 %v5254_v31, 0.0 }
 0x519   : > { %v5257_v58 = vpop.f32.mrf.mxu1 }
 0x51a   : > { %v5258_v32 = vadd.f32 %v5257_v58, %v13139_v26  ;;  %6675 = vmatprep.mubr.bf16.mxu0 %v5603_v15  ;;  %v5501_v2 = vmax.f32 %v5256_v47, 0.0 }
 0x51b   : > { %v5259_v18 = vpop.f32.mrf.mxu1  ;;  %6676 = vmatmul.mubr.bf16.gmra.mxu0 %v5602_v45 }
 0x51c   : > { %v4635_v20 = vpop.f32.mrf.mxu0  ;;  %v5260_v4 = vadd.f32 %v5259_v18, %v13136_v7  ;;  %v5502_v43 = vmax.f32 %v5258_v32, 0.0 }
 0x51d   : > { %v5263_v49 = vpop.f32.mrf.mxu1  ;;  %v4636_v29 = vadd.f32 %v4635_v20, %v13000_v14 }
 0x51e   : > { %v4637_v27 = vpop.f32.mrf.mxu0  ;;  %v5503_v12 = vmax.f32 %v5260_v4, 0.0  ;;  %v5604_v28 = vpack.c.bf16 %v5502_v43, %v5500_v11  ;;  %v5264_v48 = vadd.f32 %v5263_v49, %v13139_v26 }
 0x51f   : > { %v5265_v55 = vpop.f32.mrf.mxu1  ;;  %v4638_v42 = vadd.f32 %v4637_v27, %v12997_v63  ;;  %v4798_v57 = vmax.f32 %v4636_v29, 0.0 }
 0x520   : > { %v4639_v46 = vpop.f32.mrf.mxu0  ;;  %v5605_v40 = vpack.c.bf16 %v5503_v12, %v5501_v2  ;;  %v5266_v21 = vadd.f32 %v5265_v55, %v13136_v7  ;;  %v5504_v10 = vmax.f32 %v5264_v48, 0.0 }
 0x521   : > { %v4640_v22 = vadd.f32 %v4639_v46, %v13000_v14  ;;  %v5267_v30 = vpop.f32.mrf.mxu1  ;;  %v4799_v51 = vmax.f32 %v4638_v42, 0.0 }
 0x522   : > { %v4641_v36 = vpop.f32.mrf.mxu0  ;;  %v5268_v8 = vadd.f32 %v5267_v30, %v13139_v26  ;;  %6685 = vmatprep.mubr.bf16.mxu0 %v5605_v40  ;;  %v5505_v59 = vmax.f32 %v5266_v21, 0.0 }
 0x523   : > { %v4642_v5 = vadd.f32 %v4641_v36, %v12997_v63  ;;  %v4800_v19 = vmax.f32 %v4640_v22, 0.0  ;;  %v5269_v3 = vpop.f32.mrf.mxu1  ;;  %6686 = vmatmul.mubr.bf16.gmra.mxu0 %v5604_v28 }
 0x524   : > { %v5270_v13 = vadd.f32 %v5269_v3, %v13136_v7  ;;  %v5506_v56 = vmax.f32 %v5268_v8, 0.0 }
 0x525   : > { %v4801_v0 = vmax.f32 %v4642_v5, 0.0  ;;  %v5273_v24 = vpop.f32.mrf.mxu1  ;;  %v4874_v41 = vpack.c.bf16 %v4800_v19, %v4798_v57 }
 0x526   : > { %v5507_v17 = vmax.f32 %v5270_v13, 0.0  ;;  %v5606_v16 = vpack.c.bf16 %v5506_v56, %v5504_v10  ;;  %v5274_v44 = vadd.f32 %v5273_v24, %v13139_v26 }
 0x527   : > { %v4875_v38 = vpack.c.bf16 %v4801_v0, %v4799_v51  ;;  %v5275_v23 = vpop.f32.mrf.mxu1 }
 0x528   : > { %v5607_v60 = vpack.c.bf16 %v5507_v17, %v5505_v59  ;;  %v5276_v62 = vadd.f32 %v5275_v23, %v13136_v7  ;;  %v5508_v31 = vmax.f32 %v5274_v44, 0.0 }
 0x529   : > { %5391 = vmatprep.mubr.bf16.mxu1 %v4875_v38  ;;  %v5277_v9 = vpop.f32.mrf.mxu1 }
 0x52a   : > { %5392 = vmatmul.mubr.bf16.gmra.mxu1 %v4874_v41  ;;  %v5278_v37 = vadd.f32 %v5277_v9, %v13139_v26  ;;  %6695 = vmatprep.mubr.bf16.mxu0 %v5607_v60  ;;  %v5509_v45 = vmax.f32 %v5276_v62, 0.0 }
 0x52b   : > { %v5279_v52 = vpop.f32.mrf.mxu1  ;;  %6696 = vmatmul.mubr.bf16.gmra.mxu0 %v5606_v16 }
 0x52c   : > { %v5280_v15 = vadd.f32 %v5279_v52, %v13136_v7  ;;  %v5510_v47 = vmax.f32 %v5278_v37, 0.0 }
 0x52d   : > { %v5283_v58 = vpop.f32.mrf.mxu1 }
 0x52e   : > { %v5511_v32 = vmax.f32 %v5280_v15, 0.0  ;;  %v5608_v2 = vpack.c.bf16 %v5510_v47, %v5508_v31  ;;  %v5284_v22 = vadd.f32 %v5283_v58, %v13139_v26 }
 0x52f   : > { %v4645_v18 = vpop.f32.mrf.mxu0  ;;  %v5285_v20 = vpop.f32.mrf.mxu1 }
 0x530   : > { %v5609_v49 = vpack.c.bf16 %v5511_v32, %v5509_v45  ;;  %v5286_v43 = vadd.f32 %v5285_v20, %v13136_v7  ;;  %v4646_v40 = vadd.f32 %v4645_v18, %v13000_v14  ;;  %v5512_v0 = vmax.f32 %v5284_v22, 0.0 }
 0x531   : > { %v4647_v4 = vpop.f32.mrf.mxu0  ;;  %v5287_v27 = vpop.f32.mrf.mxu1 }
 0x532   : > { %v5288_v12 = vadd.f32 %v5287_v27, %v13139_v26  ;;  %6705 = vmatprep.mubr.bf16.mxu0 %v5609_v49  ;;  %v4648_v46 = vadd.f32 %v4647_v4, %v12997_v63  ;;  %v5513_v21 = vmax.f32 %v5286_v43, 0.0  ;;  %v4802_v13 = vmax.f32 %v4646_v40, 0.0 }
 0x533   : > { %v4649_v55 = vpop.f32.mrf.mxu0  ;;  %v5289_v42 = vpop.f32.mrf.mxu1  ;;  %6706 = vmatmul.mubr.bf16.gmra.mxu0 %v5608_v2 }
 0x534   : > { %v4650_v11 = vadd.f32 %v4649_v55, %v13000_v14  ;;  %v5290_v29 = vadd.f32 %v5289_v42, %v13136_v7  ;;  %v5514_v8 = vmax.f32 %v5288_v12, 0.0  ;;  %v4803_v3 = vmax.f32 %v4648_v46, 0.0 }
 0x535   : > { %v4651_v30 = vpop.f32.mrf.mxu0  ;;  %v5293_v28 = vpop.f32.mrf.mxu1 }
 0x536   : > { %v4652_v36 = vadd.f32 %v4651_v30, %v12997_v63  ;;  %v4804_v5 = vmax.f32 %v4650_v11, 0.0  ;;  %v5515_v19 = vmax.f32 %v5290_v29, 0.0  ;;  %v5610_v56 = vpack.c.bf16 %v5514_v8, %v5512_v0 }
 0x537   : > { %v5295_v51 = vpop.f32.mrf.mxu1  ;;  %v5294_v10 = vadd.f32 %v5293_v28, %v13139_v26 }
 0x538   : > { %v4805_v48 = vmax.f32 %v4652_v36, 0.0  ;;  %v5611_v57 = vpack.c.bf16 %v5515_v19, %v5513_v21  ;;  %v4876_v17 = vpack.c.bf16 %v4804_v5, %v4802_v13  ;;  %v5296_v38 = vadd.f32 %v5295_v51, %v13136_v7 }
 0x539   : > { %v5297_v24 = vpop.f32.mrf.mxu1  ;;  %v5516_v52 = vmax.f32 %v5294_v10, 0.0 }
 0x53a   : > { %v4877_v59 = vpack.c.bf16 %v4805_v48, %v4803_v3  ;;  %v5298_v41 = vadd.f32 %v5297_v24, %v13139_v26  ;;  %6715 = vmatprep.mubr.bf16.mxu0 %v5611_v57  ;;  %v5517_v9 = vmax.f32 %v5296_v38, 0.0  ;;  %v15337_v38 = vld [vmem:[#allocation9_spill] sm:$0xff] }
 0x53b   : > { %v5299_v23 = vpop.f32.mrf.mxu1  ;;  %6716 = vmatmul.mubr.bf16.gmra.mxu0 %v5610_v56 }
 0x53c   : > { %5401 = vmatprep.mubr.bf16.mxu1 %v4877_v59  ;;  %v5300_v60 = vadd.f32 %v5299_v23, %v13136_v7  ;;  %v5518_v16 = vmax.f32 %v5298_v41, 0.0  ;;  %v5843_v41 = vmul.f32 %v11857_v1, %v15337_v38  ;;  %v15338_v23 = vld [vmem:[#allocation10_spill] sm:$0xff] }
 0x53d   : > { %5402 = vmatmul.mubr.bf16.gmra.mxu1 %v4876_v17  ;;  %v13253_v10 = vmul.f32 %v11860_v6, %v15338_v23 }
 0x53e   : > { %v5519_v62 = vmax.f32 %v5300_v60, 0.0  ;;  %v5612_v45 = vpack.c.bf16 %v5518_v16, %v5516_v52  ;;  %v5844_v60 = vmul.f32 %v10480_v35, %v15337_v38 }
 0x53f   : > { %v5303_v37 = vpop.f32.mrf.mxu1 }
 0x540   : > { %v5613_v44 = vpack.c.bf16 %v5519_v62, %v5517_v9  ;;  %v5304_v31 = vadd.f32 %v5303_v37, %v13139_v26  ;;  %v13262_v37 = vmul.f32 %v11863_v25, %v15338_v23 }
 0x541   : > { %v5305_v15 = vpop.f32.mrf.mxu1 }
 0x542   : > { %v4655_v58 = vpop.f32.mrf.mxu0  ;;  %6725 = vmatprep.mubr.bf16.mxu0 %v5613_v44  ;;  %v5306_v18 = vadd.f32 %v5305_v15, %v13136_v7  ;;  %v5520_v40 = vmax.f32 %v5304_v31, 0.0  ;;  %v15340_v31 = vld [vmem:[#allocation12_spill] sm:$0xff] }
 0x543   : > { %v5307_v47 = vpop.f32.mrf.mxu1  ;;  %6726 = vmatmul.mubr.bf16.gmra.mxu0 %v5612_v45  ;;  %v4656_v12 = vadd.f32 %v4655_v58, %v13000_v14  ;;  %v15339_v58 = vld [vmem:[#allocation11_spill] sm:$0xff] }
 0x544   : > { %v4657_v32 = vpop.f32.mrf.mxu0  ;;  %v5308_v20 = vadd.f32 %v5307_v47, %v13139_v26  ;;  %v5521_v11 = vmax.f32 %v5306_v18, 0.0  ;;  %v5845_v45 = vmul.f32 %v11857_v1, %v15339_v58  ;;  %v5846_v47 = vmul.f32 %v10480_v35, %v15339_v58 }
 0x545   : > { %v5309_v4 = vpop.f32.mrf.mxu1  ;;  %v4658_v27 = vadd.f32 %v4657_v32, %v12997_v63  ;;  %v4806_v21 = vmax.f32 %v4656_v12, 0.0  ;;  %v6122_v12 = vmul.f32 %v11863_v25, %v15340_v31 }
 0x546   : > { %v4659_v49 = vpop.f32.mrf.mxu0  ;;  %v5310_v2 = vadd.f32 %v5309_v4, %v13136_v7  ;;  %v5522_v55 = vmax.f32 %v5308_v20, 0.0  ;;  %v6121_v4 = vmul.f32 %v11860_v6, %v15340_v31  ;;  %v15352_v31 = vld [vmem:[#allocation21_spill] sm:$0xff] }
 0x547   : > { %v4660_v43 = vadd.f32 %v4659_v49, %v13000_v14  ;;  %v4807_v30 = vmax.f32 %v4658_v27, 0.0 }
 0x548   : > { %v4661_v46 = vpop.f32.mrf.mxu0  ;;  %v5523_v42 = vmax.f32 %v5310_v2, 0.0  ;;  %v5614_v8 = vpack.c.bf16 %v5522_v55, %v5520_v40  ;;  %v15341_v2 = vld [vmem:[#allocation18_spill] sm:$0xff] }
 0x549   : > { %v4662_v22 = vadd.f32 %v4661_v46, %v12997_v63  ;;  %v4808_v29 = vmax.f32 %v4660_v43, 0.0  ;;  %v5847_v43 = vmul.f32 %v11857_v1, %v15341_v2 }
 0x54a   : > { %v5615_v28 = vpack.c.bf16 %v5523_v42, %v5521_v11  ;;  %v5848_v42 = vmul.f32 %v10480_v35, %v15341_v2 }
 0x54b   : > { %v4809_v36 = vmax.f32 %v4662_v22, 0.0  ;;  %v4878_v19 = vpack.c.bf16 %v4808_v29, %v4806_v21  ;;  %v15342_v29 = vld [vmem:[#allocation13_spill] sm:$0xff]  ;;  %v15343_v21 = vld [vmem:[#allocation14_spill] sm:$0xff] }
 0x54c   : > { %6735 = vmatprep.mubr.bf16.mxu0 %v5615_v28 }
 0x54d   : > { %v4879_v5 = vpack.c.bf16 %v4809_v36, %v4807_v30  ;;  %6736 = vmatmul.mubr.bf16.gmra.mxu0 %v5614_v8  ;;  %v13280_v30 = vmul.f32 %v11860_v6, %v15342_v29  ;;  %v13284_v36 = vmul.f32 %v11863_v25, %v15342_v29  ;;  %v6119_v8 = vmul.f32 %v11860_v6, %v15343_v21 }
 0x54f   : > { %5411 = vmatprep.mubr.bf16.mxu1 %v4879_v5  ;;  %v15344_v5 = vld [vmem:[#allocation16_spill] sm:$0xff] }
 0x550   : > { %5412 = vmatmul.mubr.bf16.gmra.mxu1 %v4878_v19  ;;  %v15345_v19 = vld [vmem:[#allocation129_spill] sm:$0xff] }
 0x552   : > { %v5313_v3 = vpop.f32.mrf.mxu1 }
 0x553   : > { %v5314_v59 = vadd.f32 %v5313_v3, %v13139_v26  ;;  %v5701_v3 = vmul.f32 %v15345_v19, %v15344_v5 }
 0x554   : > { %v5315_v48 = vpop.f32.mrf.mxu1 }
 0x555   : > { %v4665_v51 = vpop.f32.mrf.mxu0  ;;  %v5316_v57 = vadd.f32 %v5315_v48, %v13136_v7  ;;  %v5524_v49 = vmax.f32 %v5314_v59, 0.0  ;;  %v15346_v48 = vld [vmem:[#allocation128_spill] sm:$0xff]  ;;  %v6120_v59 = vmul.f32 %v11863_v25, %v15343_v21  ;;  %v5975_v23 = vadd.f32 %v5847_v43, %v5701_v3  ;;  %v15354_v3 = vld [vmem:[#allocation23_spill] sm:$0xff] }
 0x556   : > { %v5317_v0 = vpop.f32.mrf.mxu1  ;;  %v4666_v52 = vadd.f32 %v4665_v51, %v13000_v14  ;;  %v5702_v51 = vmul.f32 %v15346_v48, %v15344_v5 }
 0x557   : > { %v4667_v13 = vpop.f32.mrf.mxu0  ;;  %v5318_v24 = vadd.f32 %v5317_v0, %v13139_v26  ;;  %v5525_v32 = vmax.f32 %v5316_v57, 0.0  ;;  %v13334_v29 = vadd.f32 %v6121_v4, %v5975_v23  ;;  %v15356_v4 = vld [vmem:[#allocation30_spill] sm:$0xff] }
 0x558   : > { %v5319_v56 = vpop.f32.mrf.mxu1  ;;  %v4668_v9 = vadd.f32 %v4667_v13, %v12997_v63  ;;  %v4810_v22 = vmax.f32 %v4666_v52, 0.0  ;;  %v15347_v13 = vld [vmem:[#allocation25_spill] sm:$0xff] }
 0x559   : > { %v4669_v17 = vpop.f32.mrf.mxu0  ;;  %v5320_v16 = vadd.f32 %v5319_v56, %v13136_v7  ;;  %v5526_v44 = vmax.f32 %v5318_v24, 0.0  ;;  %v5697_v57 = vmul.f32 %v15345_v19, %v15347_v13  ;;  %v5698_v24 = vmul.f32 %v15346_v48, %v15347_v13  ;;  %v15348_v56 = vld [vmem:[#allocation26_spill] sm:$0xff]  ;;  %v15355_v13 = vld [vmem:[#allocation29_spill] sm:$0xff] }
 0x55a   : > { %v4670_v62 = vadd.f32 %v4669_v17, %v13000_v14  ;;  %v4811_v55 = vmax.f32 %v4668_v9, 0.0  ;;  %v5699_v17 = vmul.f32 %v15345_v19, %v15348_v56  ;;  %v5700_v38 = vmul.f32 %v15346_v48, %v15348_v56 }
 0x55b   : > { %v4671_v15 = vpop.f32.mrf.mxu0  ;;  %v5527_v18 = vmax.f32 %v5320_v16, 0.0  ;;  %v5616_v40 = vpack.c.bf16 %v5526_v44, %v5524_v49  ;;  %v5976_v9 = vadd.f32 %v5848_v42, %v5702_v51  ;;  %v15349_v16 = vld [vmem:[#allocation28_spill] sm:$0xff]  ;;  %v15350_v44 = vld [vmem:[#allocation15_spill] sm:$0xff]  ;;  %v13324_v49 = vmul.f32 %v11860_v6, %v15352_v31 }
 0x55c   : > { %v4672_v20 = vadd.f32 %v4671_v15, %v12997_v63  ;;  %v4812_v27 = vmax.f32 %v4670_v62, 0.0  ;;  %v5703_v62 = vmul.f32 %v15345_v19, %v15349_v16  ;;  %v5704_v52 = vmul.f32 %v15346_v48, %v15349_v16 }
 0x55d   : > { %v5617_v11 = vpack.c.bf16 %v5527_v18, %v5525_v32  ;;  %v13308_v15 = vmul.f32 %v11860_v6, %v15350_v44  ;;  %v13312_v58 = vmul.f32 %v11863_v25, %v15350_v44  ;;  %v15351_v32 = vld [vmem:[#allocation17_spill] sm:$0xff]  ;;  %v5971_v2 = vadd.f32 %v5843_v41, %v5697_v57  ;;  %v15357_v57 = vld [vmem:[#allocation31_spill] sm:$0xff] }
 0x55e   : > { %v4813_v46 = vmax.f32 %v4672_v20, 0.0  ;;  %v4880_v0 = vpack.c.bf16 %v4812_v27, %v4810_v22  ;;  %v13316_v18 = vmul.f32 %v11860_v6, %v15351_v32  ;;  %v13320_v20 = vmul.f32 %v11863_v25, %v15351_v32  ;;  %v15359_v32 = vld [vmem:[#allocation27_spill] sm:$0xff] }
 0x55f   : > { %6745 = vmatprep.mubr.bf16.mxu0 %v5617_v11  ;;  %v13328_v27 = vmul.f32 %v11863_v25, %v15352_v31  ;;  %v5972_v43 = vadd.f32 %v5844_v60, %v5698_v24  ;;  %v5973_v22 = vadd.f32 %v5845_v45, %v5699_v17  ;;  %v13340_v51 = vmul.f32 %v11860_v6, %v15354_v3 }
 0x560   : > { %v4881_v28 = vpack.c.bf16 %v4813_v46, %v4811_v55  ;;  %6746 = vmatmul.mubr.bf16.gmra.mxu0 %v5616_v40  ;;  %v15353_v55 = vld [vmem:[#allocation22_spill] sm:$0xff]  ;;  %v5974_v40 = vadd.f32 %v5846_v47, %v5700_v38  ;;  %v13344_v41 = vmul.f32 %v11863_v25, %v15354_v3  ;;  %v5851_v45 = vmul.f32 %v11857_v1, %v15355_v13  ;;  %v15358_v38 = vld [vmem:[#allocation24_spill] sm:$0xff] }
 0x561   : > { %v5849_v46 = vmul.f32 %v11857_v1, %v15353_v55  ;;  %v5850_v11 = vmul.f32 %v10480_v35, %v15353_v55  ;;  %v5852_v47 = vmul.f32 %v10480_v35, %v15355_v13  ;;  %v5853_v24 = vmul.f32 %v11857_v1, %v15357_v57 }
 0x562   : > { %5421 = vmatprep.mubr.bf16.mxu1 %v4881_v28  ;;  %v13336_v28 = vadd.f32 %v6122_v12, %v5976_v9  ;;  %v5707_v12 = vmul.f32 %v15345_v19, %v15356_v4  ;;  %v13355_v56 = vadd.f32 %v13253_v10, %v5971_v2  ;;  %v13358_v17 = vadd.f32 %v13262_v37, %v5972_v43 }
 0x563   : > { %5422 = vmatmul.mubr.bf16.gmra.mxu1 %v4880_v0  ;;  %v5977_v21 = vadd.f32 %v5849_v46, %v5703_v62  ;;  %v5978_v5 = vadd.f32 %v5850_v11, %v5704_v52  ;;  %v6123_v23 = vmul.f32 %v11860_v6, %v15358_v38  ;;  %v6124_v9 = vmul.f32 %v11863_v25, %v15358_v38 }
 0x564   : > { %v13364_v52 = vadd.f32 %v6119_v8, %v5973_v22  ;;  %v13366_v44 = vadd.f32 %v6120_v59, %v5974_v40  ;;  %v5705_v31 = vmul.f32 %v15345_v19, %v15359_v32  ;;  %v5706_v10 = vmul.f32 %v15346_v48, %v15359_v32 }
 0x565   : > { %v5323_v42 = vpop.f32.mrf.mxu1  ;;  %v13374_v43 = vadd.f32 %v6123_v23, %v5977_v21  ;;  %v13376_v55 = vadd.f32 %v6124_v9, %v5978_v5  ;;  %v5981_v40 = vadd.f32 %v5853_v24, %v5707_v12  ;;  %v15361_v9 = vld [vmem:[#allocation34_spill] sm:$0xff] }
 0x566   : > { %v5324_v46 = vadd.f32 %v5323_v42, %v13139_v26  ;;  %v5979_v59 = vadd.f32 %v5851_v45, %v5705_v31  ;;  %v5980_v22 = vadd.f32 %v5852_v47, %v5706_v10  ;;  %v5708_v42 = vmul.f32 %v15346_v48, %v15356_v4  ;;  %v15362_v10 = vld [vmem:[#allocation33_spill] sm:$0xff] }
 0x567   : > { %v5325_v60 = vpop.f32.mrf.mxu1  ;;  %v5854_v45 = vmul.f32 %v10480_v35, %v15357_v57  ;;  %v5856_v57 = vmul.f32 %v10480_v35, %v15361_v9 }
 0x568   : > { %v4675_v0 = vpop.f32.mrf.mxu0  ;;  %v5326_v37 = vadd.f32 %v5325_v60, %v13136_v7  ;;  %v15360_v60 = vld [vmem:[#allocation32_spill] sm:$0xff]  ;;  %v5528_v32 = vmax.f32 %v5324_v46, 0.0  ;;  %v13402_v46 = vadd.f32 %v13284_v36, %v5980_v22 }
 0x569   : > { %v5327_v16 = vpop.f32.mrf.mxu1  ;;  %v4676_v21 = vadd.f32 %v4675_v0, %v13000_v14  ;;  %v6128_v0 = vmul.f32 %v11863_v25, %v15360_v60 }
 0x56a   : > { %v4677_v62 = vpop.f32.mrf.mxu0  ;;  %v5328_v2 = vadd.f32 %v5327_v16, %v13139_v26  ;;  %v6127_v16 = vmul.f32 %v11860_v6, %v15360_v60  ;;  %v5529_v47 = vmax.f32 %v5326_v37, 0.0  ;;  %v5982_v60 = vadd.f32 %v5854_v45, %v5708_v42  ;;  %v15365_v45 = vld [vmem:[#allocation37_spill] sm:$0xff] }
 0x56b   : > { %v5329_v8 = vpop.f32.mrf.mxu1  ;;  %v4678_v3 = vadd.f32 %v4677_v62, %v12997_v63  ;;  %v5855_v62 = vmul.f32 %v11857_v1, %v15361_v9  ;;  %v4814_v37 = vmax.f32 %v4676_v21, 0.0 }
 0x56c   : > { %v4679_v11 = vpop.f32.mrf.mxu0  ;;  %v5330_v13 = vadd.f32 %v5329_v8, %v13136_v7  ;;  %v5530_v5 = vmax.f32 %v5328_v2, 0.0  ;;  %v5709_v2 = vmul.f32 %v15345_v19, %v15362_v10  ;;  %v13412_v36 = vadd.f32 %v6128_v0, %v5982_v60  ;;  %v15368_v0 = vld [vmem:[#allocation48_spill] sm:$0xff] }
 0x56d   : > { %v4680_v38 = vadd.f32 %v4679_v11, %v13000_v14  ;;  %v4815_v8 = vmax.f32 %v4678_v3, 0.0  ;;  %v5710_v3 = vmul.f32 %v15346_v48, %v15362_v10  ;;  %v13430_v10 = vmul.f32 %v15345_v19, %v15368_v0 }
 0x56e   : > { %v4681_v23 = vpop.f32.mrf.mxu0  ;;  %v5531_v12 = vmax.f32 %v5330_v13, 0.0  ;;  %v5618_v13 = vpack.c.bf16 %v5530_v5, %v5528_v32  ;;  %v5983_v50 = vadd.f32 %v5855_v62, %v5709_v2  ;;  %v15364_v5 = vld [vmem:[#allocation36_spill] sm:$0xff] }
 0x56f   : > { %v4682_v24 = vadd.f32 %v4681_v23, %v12997_v63  ;;  %v4816_v31 = vmax.f32 %v4680_v38, 0.0  ;;  %v13399_v23 = vadd.f32 %v13280_v30, %v5979_v59  ;;  %v5857_v30 = vmul.f32 %v11857_v1, %v15364_v5  ;;  %v15367_v32 = vld [vmem:[#allocation40_spill] sm:$0xff]  ;;  %15369 = vst [vmem:[#allocation162_spill] sm:$0xff] %v13430_v10 }
 0x570   : > { %v5619_v11 = vpack.c.bf16 %v5531_v12, %v5529_v47  ;;  %v13406_v47 = vadd.f32 %v6127_v16, %v5981_v40  ;;  %v15363_v12 = vld [vmem:[#allocation35_spill] sm:$0xff]  ;;  %v5984_v59 = vadd.f32 %v5856_v57, %v5710_v3  ;;  %v5858_v42 = vmul.f32 %v10480_v35, %v15364_v5 }
 0x571   : > { %v4817_v4 = vmax.f32 %v4682_v24, 0.0  ;;  %v4882_v24 = vpack.c.bf16 %v4816_v31, %v4814_v37  ;;  %v5711_v21 = vmul.f32 %v15345_v19, %v15363_v12  ;;  %v5712_v22 = vmul.f32 %v15346_v48, %v15363_v12  ;;  %v15366_v16 = vld [vmem:[#allocation39_spill] sm:$0xff]  ;;  %v15371_v37 = vld [vmem:[#allocation38_spill] sm:$0xff] }
 0x572   : > { %6755 = vmatprep.mubr.bf16.mxu0 %v5619_v11  ;;  %v6131_v40 = vmul.f32 %v11860_v6, %v15365_v45  ;;  %v5859_v9 = vmul.f32 %v11857_v1, %v15366_v16  ;;  %v5860_v62 = vmul.f32 %v10480_v35, %v15366_v16  ;;  %v13426_v31 = vmul.f32 %v15345_v19, %v15367_v32  ;;  %v15374_v12 = vld [vmem:[#allocation42_spill] sm:$0xff] }
 0x573   : > { %v4883_v38 = vpack.c.bf16 %v4817_v4, %v4815_v8  ;;  %6756 = vmatmul.mubr.bf16.gmra.mxu0 %v5618_v13  ;;  %v13433_v2 = vadd.f32 %v13308_v15, %v5983_v50  ;;  %v6132_v8 = vmul.f32 %v11863_v25, %v15365_v45  ;;  %v13439_v4 = vmul.f32 %v15346_v48, %v15367_v32  ;;  %v15372_v50 = vld [vmem:[#allocation51_spill] sm:$0xff]  ;;  %v15376_v32 = vld [vmem:[#allocation53_spill] sm:$0xff] }
 0x574   : > { %v13443_v11 = vmul.f32 %v15346_v48, %v15368_v0  ;;  %v5985_v57 = vadd.f32 %v5857_v30, %v5711_v21  ;;  %v5713_v13 = vmul.f32 %v15345_v19, %v15371_v37  ;;  %v13451_v15 = vmul.f32 %v15345_v19, %v15372_v50 }
 0x575   : > { %5431 = vmatprep.mubr.bf16.mxu1 %v4883_v38  ;;  %v5714_v38 = vmul.f32 %v15346_v48, %v15371_v37  ;;  %v13454_v3 = vadd.f32 %v13312_v58, %v5984_v59  ;;  %v13458_v5 = vmul.f32 %v15345_v19, %v15374_v12  ;;  %v13462_v21 = vmul.f32 %v15346_v48, %v15372_v50 }
 0x576   : > { %5432 = vmatmul.mubr.bf16.gmra.mxu1 %v4882_v24  ;;  %15370 = vst [vmem:[#allocation168_spill] sm:$0xff] %v13443_v11  ;;  %15373 = vst [vmem:[#allocation170_spill] sm:$0xff] %v13451_v15  ;;  %v5986_v24 = vadd.f32 %v5858_v42, %v5712_v22  ;;  %v13464_v30 = vadd.f32 %v6131_v40, %v5985_v57  ;;  %v5987_v45 = vadd.f32 %v5859_v9, %v5713_v13  ;;  %v15379_v42 = vld [vmem:[#allocation44_spill] sm:$0xff]  ;;  %v15384_v13 = vld [vmem:[#allocation55_spill] sm:$0xff] }
 0x577   : > { %15375 = vst [vmem:[#allocation178_spill] sm:$0xff] %v13462_v21  ;;  %v5988_v16 = vadd.f32 %v5860_v62, %v5714_v38  ;;  %v13468_v0 = vmul.f32 %v15345_v19, %v15376_v32  ;;  %v13474_v22 = vmul.f32 %v15346_v48, %v15374_v12  ;;  %v13478_v50 = vmul.f32 %v15345_v19, %v15379_v42  ;;  %v15381_v62 = vld [vmem:[#allocation46_spill] sm:$0xff]  ;;  %v15387_v12 = vld [vmem:[#allocation57_spill] sm:$0xff]  ;;  %v15396_v11 = vld [vmem:[#allocation43_spill] sm:$0xff] }
 0x578   : > { %v5333_v60 = vpop.f32.mrf.mxu1  ;;  %v13470_v59 = vadd.f32 %v6132_v8, %v5986_v24  ;;  %v13482_v40 = vmul.f32 %v15346_v48, %v15376_v32  ;;  %v13486_v9 = vmul.f32 %v15346_v48, %v15379_v42  ;;  %v13490_v8 = vmul.f32 %v15345_v19, %v15381_v62 }
 0x579   : > { %15377 = vst [vmem:[#allocation166_spill] sm:$0xff] %v13468_v0  ;;  %v13494_v57 = vmul.f32 %v15346_v48, %v15381_v62  ;;  %v13498_v38 = vmul.f32 %v15345_v19, %v15384_v13  ;;  %v13502_v24 = vmul.f32 %v15346_v48, %v15384_v13  ;;  %v13506_v32 = vmul.f32 %v15345_v19, %v15387_v12  ;;  %v6886_v62 = vld [vmem:[%s14855_s13] sm:$0x3] }
 0x57a   : > { %v5335_v37 = vpop.f32.mrf.mxu1  ;;  %15378 = vst [vmem:[#allocation174_spill] sm:$0xff] %v13470_v59  ;;  %15380 = vst [vmem:[#allocation175_spill] sm:$0xff] %v13482_v40  ;;  %v13510_v42 = vmul.f32 %v15346_v48, %v15387_v12  ;;  %v13518_v13 = vadd.f32 %v13316_v18, %v5987_v45  ;;  %v15394_v0 = vld [vmem:[#allocation41_spill] sm:$0xff]  ;;  %v6135_v10 = vmul.f32 %v11860_v6, %v15396_v11 }
 0x57b   : > { %v4685_v58 = vpop.f32.mrf.mxu0  ;;  %15382 = vst [vmem:[#allocation184_spill] sm:$0xff] %v13490_v8  ;;  %15383 = vst [vmem:[#allocation173_spill] sm:$0xff] %v13494_v57  ;;  %v5336_v61 = vadd.f32 %v5335_v37, %v13136_v7  ;;  %v5861_v21 = vmul.f32 %v11857_v1, %v15394_v0 }
 0x57c   : > { %15385 = vst [vmem:[#allocation182_spill] sm:$0xff] %v13498_v38  ;;  %15386 = vst [vmem:[#allocation183_spill] sm:$0xff] %v13502_v24  ;;  %v5337_v39 = vpop.f32.mrf.mxu1  ;;  %v13521_v24 = vadd.f32 %v13320_v20, %v5988_v16  ;;  %v6887_v16 = vunpack.c.l.bf16 %v6886_v62  ;;  %v10013_v62 = vld [vmem:[#allocation6 + $0x74] ss:$8 sps:$4 sm:$0xff]  }
 0x57d   : > { %15388 = vst [vmem:[#allocation179_spill] sm:$0xff] %v13506_v32  ;;  %15389 = vst [vmem:[#allocation185_spill] sm:$0xff] %v13510_v42  ;;  %v4687_v53 = vpop.f32.mrf.mxu0  ;;  %v5338_v54 = vadd.f32 %v5337_v39, %v13139_v26  ;;  %v15392_v32 = vld [vmem:[#allocation60_spill] sm:$0xff]  ;;  %v5334_v42 = vadd.f32 %v5333_v60, %v13139_v26  ;;  %v5862_v39 = vmul.f32 %v10480_v35, %v15394_v0  ;;  %8198 = vmatprep.subr.bf16.mxu0 %v10013_v62  ;;  %v15400_v62 = vld [vmem:[#allocation62_spill] sm:$0xff] }
 0x57e   : > { %15390 = vst [vmem:[#allocation9_spill] sm:$0xff] %v13518_v13  ;;  %15391 = vst [vmem:[#allocation10_spill] sm:$0xff] %v13521_v24  ;;  %v13525_v12 = vmul.f32 %v15345_v19, %v15392_v32  ;;  %v5339_v38 = vpop.f32.mrf.mxu1  ;;  %v4688_v18 = vadd.f32 %v4687_v53, %v12997_v63  ;;  %v13537_v37 = vmul.f32 %v15346_v48, %v15392_v32  ;;  %v5533_v13 = vmax.f32 %v5336_v61, 0.0  ;;  %v15397_v24 = vld [vmem:[#allocation47_spill] sm:$0xff] }
 0x57f   : > { %v4689_v40 = vpop.f32.mrf.mxu0  ;;  %v5340_v45 = vadd.f32 %v5339_v38, %v13136_v7  ;;  %v4686_v60 = vadd.f32 %v4685_v58, %v13000_v14  ;;  %v5863_v38 = vmul.f32 %v11857_v1, %v15397_v24  ;;  %v5532_v57 = vmax.f32 %v5334_v42, 0.0 }
 0x580   : > { %15393 = vst [vmem:[#allocation11_spill] sm:$0xff] %v13525_v12  ;;  %v4690_v20 = vadd.f32 %v4689_v40, %v13000_v14  ;;  %15395 = vst [vmem:[#allocation12_spill] sm:$0xff] %v13537_v37  ;;  %v5534_v12 = vmax.f32 %v5338_v54, 0.0  ;;  %v10011_v40 = vld [vmem:[#allocation6 + $0x70] ss:$8 sps:$4 sm:$0xff]   ;;  %v6896_v32 = vrot.slane %v6887_v16, %v10667_v33  ;;  %v5864_v14 = vmul.f32 %v10480_v35, %v15397_v24 }
 0x581   : > { %v4691_v15 = vpop.f32.mrf.mxu0  ;;  %v5535_v0 = vmax.f32 %v5340_v45, 0.0  ;;  %v4819_v54 = vmax.f32 %v4688_v18, 0.0  ;;  %v6892_v61 = vrot.slane %v6887_v16, %v10670_v34  ;;  %v5989_v59 = vadd.f32 %v5861_v21, %v13426_v31  ;;  %8199 = vmatpush1.bf16.msra.mxu0 %v10011_v40  ;;  %v15398_v18 = vld [vmem:[#allocation45_spill] sm:$0xff] }
 0x582   : > { %v4692_v53 = vadd.f32 %v4691_v15, %v12997_v63  ;;  %v4820_v8 = vmax.f32 %v4690_v20, 0.0  ;;  %v4818_v63 = vmax.f32 %v4686_v60, 0.0  ;;  %v5620_v15 = vpack.c.bf16 %v5534_v12, %v5532_v57 }
 0x583   : > { %v6567_v37 = vpop.f32.mrf.mxu0  ;;  %v5621_v45 = vpack.c.bf16 %v5535_v0, %v5533_v13  ;;  %v6136_v42 = vmul.f32 %v11863_v25, %v15396_v11  ;;  %v5990_v24 = vadd.f32 %v5862_v39, %v13439_v4  ;;  %v5718_v13 = vmul.f32 %v15346_v48, %v15398_v18 }
 0x584   : > { %v4821_v58 = vmax.f32 %v4692_v53, 0.0  ;;  %v5717_v53 = vmul.f32 %v15345_v19, %v15398_v18  ;;  %v4884_v16 = vpack.c.bf16 %v4820_v8, %v4818_v63  ;;  %v13559_v31 = vrot.slane %v6896_v32, %v10670_v34 }
 0x585   : > { %v6569_v20 = vpop.f32.mrf.mxu0  ;;  %6765 = vmatprep.mubr.bf16.mxu0 %v5621_v45  ;;  %v13561_v11 = vadd.f32 %v6135_v10, %v5989_v59  ;;  %v6568_v21 = vadd.f32 %v6567_v37, %v13355_v56  ;;  %v13565_v12 = vrot.slane %v6892_v61, %v10670_v34  ;;  %v5992_v60 = vadd.f32 %v5864_v14, %v5718_v13  ;;  %v15401_v37 = vld [vmem:[#allocation67_spill] sm:$0xff]  ;;  %v15402_v61 = vld [vmem:[#allocation50_spill] sm:$0xff] }
 0x586   : > { %v4885_v33 = vpack.c.bf16 %v4821_v58, %v4819_v54  ;;  %v6570_v57 = vadd.f32 %v6569_v20, %v13358_v17  ;;  %6766 = vmatmul.mubr.bf16.gmra.mxu0 %v5620_v15  ;;  %v5991_v39 = vadd.f32 %v5863_v38, %v5717_v53  ;;  %v13568_v8 = vadd.f32 %v6136_v42, %v5990_v24  ;;  %v15399_v17 = vld [vmem:[#allocation49_spill] sm:$0xff]  ;;  %v15403_v24 = vld [vmem:[#allocation72_spill] sm:$0xff] }
 0x587   : > { %v6571_v4 = vpop.f32.mrf.mxu0  ;;  %v5865_v40 = vmul.f32 %v11857_v1, %v15399_v17  ;;  %v13574_v10 = vmul.f32 %v11860_v6, %v15400_v62  ;;  %v5866_v59 = vmul.f32 %v10480_v35, %v15399_v17  ;;  %v13588_v38 = vmul.f32 %v11863_v25, %v15401_v37 }
 0x588   : > { %5441 = vmatprep.mubr.bf16.mxu1 %v4885_v33  ;;  %v6572_v0 = vadd.f32 %v6571_v4, %v13364_v52  ;;  %v13580_v33 = vmul.f32 %v11863_v25, %v15400_v62  ;;  %v13584_v52 = vmul.f32 %v11860_v6, %v15401_v37  ;;  %v6908_v32 = vadd.f32 %v13559_v31, %v6570_v57  ;;  %v15404_v4 = vld [vmem:[#allocation77_spill] sm:$0xff] }
 0x589   : > { %5442 = vmatmul.mubr.bf16.gmra.mxu1 %v4884_v16  ;;  %v6573_v56 = vpop.f32.mrf.mxu0  ;;  %v6139_v45 = vmul.f32 %v11860_v6, %v15402_v61  ;;  %v6907_v63 = vadd.f32 %v13565_v12, %v6568_v21  ;;  %v13597_v42 = vadd.f32 %v13324_v49, %v5991_v39  ;;  %v13600_v20 = vadd.f32 %v13328_v27, %v5992_v60 }
 0x58a   : > { %v6909_v14 = vadd.f32 %v13565_v12, %v6572_v0  ;;  %v6574_v54 = vadd.f32 %v6573_v56, %v13366_v44  ;;  %v13604_v18 = vmul.f32 %v11860_v6, %v15403_v24  ;;  %v5993_v13 = vadd.f32 %v5865_v40, %v13458_v5 }
 0x58b   : > { %v5343_v58 = vpop.f32.mrf.mxu1  ;;  %v6577_v15 = vpop.f32.mrf.mxu0  ;;  %v6140_v16 = vmul.f32 %v11863_v25, %v15402_v61  ;;  %v13612_v57 = vmul.f32 %v11863_v25, %v15403_v24  ;;  %v5994_v27 = vadd.f32 %v5866_v59, %v13474_v22  ;;  %v13617_v39 = vmul.f32 %v11860_v6, %v15404_v4  ;;  %v10016_v61 = vld [vmem:[#allocation6 + $0x64] ss:$8 sps:$4 sm:$0xff]  }
 0x58c   : > { %v6910_v53 = vadd.f32 %v13559_v31, %v6574_v54  ;;  %v7037_v49 = vmax.f32 %v6909_v14, 0.0  ;;  %v13621_v60 = vmul.f32 %v11863_v25, %v15404_v4  ;;  %v7036_v5 = vmax.f32 %v6908_v32, 0.0  ;;  %v10014_v54 = vld [vmem:[#allocation6 + $0x60] ss:$8 sps:$4 sm:$0xff]   ;;  %8200 = vmatprep.subr.bf16.mxu0 %v10016_v61 }
 0x58d   : > { %v5345_v44 = vpop.f32.mrf.mxu1  ;;  %v6579_v21 = vpop.f32.mrf.mxu0  ;;  %v13624_v62 = vadd.f32 %v6139_v45, %v5993_v13  ;;  %v7035_v56 = vmax.f32 %v6907_v63, 0.0  ;;  %v6578_v37 = vadd.f32 %v6577_v15, %v13334_v29  ;;  %v5344_v24 = vadd.f32 %v5343_v58, %v13139_v26  ;;  %v15405_v29 = vld [vmem:[#allocation52_spill] sm:$0xff]  ;;  %8201 = vmatpush1.bf16.msra.mxu0 %v10014_v54 }
 0x58e   : > { %v7038_v0 = vmax.f32 %v6910_v53, 0.0  ;;  %v6580_v17 = vadd.f32 %v6579_v21, %v13336_v28  ;;  %v5346_v22 = vadd.f32 %v5345_v44, %v13136_v7  ;;  %v13631_v28 = vadd.f32 %v6140_v16, %v5994_v27  ;;  %v15406_v44 = vld [vmem:[#allocation54_spill] sm:$0xff] }
 0x58f   : > { %v5347_v40 = vpop.f32.mrf.mxu1  ;;  %v6581_v14 = vpop.f32.mrf.mxu0  ;;  %v7163_v45 = vpack.c.bf16 %v7037_v49, %v7035_v56  ;;  %v5721_v15 = vmul.f32 %v15345_v19, %v15405_v29  ;;  %v5867_v21 = vmul.f32 %v11857_v1, %v15406_v44  ;;  %v6911_v16 = vadd.f32 %v13565_v12, %v6578_v37 }
 0x590   : > { %v5348_v59 = vadd.f32 %v5347_v40, %v13139_v26  ;;  %v6582_v32 = vadd.f32 %v6581_v14, %v13374_v43  ;;  %v7164_v4 = vpack.c.bf16 %v7038_v0, %v7036_v5  ;;  %v6912_v40 = vadd.f32 %v13559_v31, %v6580_v17  ;;  %v15407_v17 = vld [vmem:[#allocation82_spill] sm:$0xff] }
 0x591   : > { %v5349_v53 = vpop.f32.mrf.mxu1  ;;  %v6583_v13 = vpop.f32.mrf.mxu0  ;;  %v5537_v49 = vmax.f32 %v5346_v22, 0.0  ;;  %v5868_v56 = vmul.f32 %v10480_v35, %v15406_v44  ;;  %v5536_v14 = vmax.f32 %v5344_v24, 0.0 }
 0x592   : > { %v5350_v63 = vadd.f32 %v5349_v53, %v13136_v7  ;;  %v5538_v58 = vmax.f32 %v5348_v59, 0.0  ;;  %v6913_v43 = vadd.f32 %v13565_v12, %v6582_v32  ;;  %v6584_v5 = vadd.f32 %v6583_v13, %v13376_v55  ;;  %7472 = vmatprep.mubr.bf16.mxu1 %v7164_v4 }
 0x593   : > { %v6587_v0 = vpop.f32.mrf.mxu0  ;;  %7473 = vmatmul.mubr.bf16.vlgmr.msra.gmra.mxu1 %v7163_v45  ;;  %v13647_v59 = vmul.f32 %v11860_v6, %v15407_v17  ;;  %v13651_v55 = vmul.f32 %v11863_v25, %v15407_v17  ;;  %v5995_v32 = vadd.f32 %v5867_v21, %v5721_v15  ;;  %v5722_v53 = vmul.f32 %v15346_v48, %v15405_v29  ;;  %v15408_v17 = vld [vmem:[#allocation87_spill] sm:$0xff]  ;;  %v15409_v29 = vld [vmem:[#allocation56_spill] sm:$0xff] }
 0x594   : > { %v5539_v27 = vmax.f32 %v5350_v63, 0.0  ;;  %v6914_v61 = vadd.f32 %v13559_v31, %v6584_v5  ;;  %v7041_v54 = vmax.f32 %v6913_v43, 0.0  ;;  %v7040_v4 = vmax.f32 %v6912_v40, 0.0 }
 0x595   : > { %v6589_v37 = vpop.f32.mrf.mxu0  ;;  %v5622_v45 = vpack.c.bf16 %v5538_v58, %v5536_v14  ;;  %v7039_v13 = vmax.f32 %v6911_v16, 0.0  ;;  %v6588_v44 = vadd.f32 %v6587_v0, %v13399_v23  ;;  %v5996_v34 = vadd.f32 %v5868_v56, %v5722_v53 }
 0x596   : > { %v5623_v22 = vpack.c.bf16 %v5539_v27, %v5537_v49  ;;  %v7042_v24 = vmax.f32 %v6914_v61, 0.0  ;;  %v6590_v63 = vadd.f32 %v6589_v37, %v13402_v46  ;;  %v13659_v43 = vmul.f32 %v11860_v6, %v15408_v17  ;;  %v15411_v49 = vld [vmem:[#allocation61_spill] sm:$0xff] }
 0x597   : > { %v6591_v5 = vpop.f32.mrf.mxu0  ;;  %v5869_v40 = vmul.f32 %v11857_v1, %v15409_v29  ;;  %v13666_v46 = vmul.f32 %v11863_v25, %v15408_v17  ;;  %v7165_v58 = vpack.c.bf16 %v7041_v54, %v7039_v13  ;;  %v5870_v16 = vmul.f32 %v10480_v35, %v15409_v29  ;;  %v10017_v13 = vld [vmem:[#allocation6 + $0x50] ss:$8 sps:$4 sm:$0xff]  }
 0x598   : > { %6775 = vmatprep.mubr.bf16.mxu0 %v5623_v22  ;;  %v6592_v15 = vadd.f32 %v6591_v5, %v13406_v47  ;;  %v7166_v21 = vpack.c.bf16 %v7042_v24, %v7040_v4  ;;  %v5871_v27 = vmul.f32 %v11857_v1, %v15411_v49  ;;  %v5872_v47 = vmul.f32 %v10480_v35, %v15411_v49  ;;  %v15412_v22 = vld [vmem:[#allocation58_spill] sm:$0xff]  ;;  %v15413_v4 = vld [vmem:[#allocation59_spill] sm:$0xff] }
 0x599   : > { %6776 = vmatmul.mubr.bf16.gmra.mxu0 %v5622_v45  ;;  %15410 = vst [vmem:[#allocation18_spill] sm:$0xff] %v13666_v46  ;;  %v6593_v23 = vpop.f32.mrf.mxu0  ;;  %v6916_v0 = vadd.f32 %v13559_v31, %v6590_v63  ;;  %v13678_v61 = vadd.f32 %v13340_v51, %v5995_v32  ;;  %v6915_v54 = vadd.f32 %v13565_v12, %v6588_v44  ;;  %v10019_v44 = vld [vmem:[#allocation6 + $0x54] ss:$8 sps:$4 sm:$0xff]  }
 0x59a   : > { %v6917_v56 = vadd.f32 %v13565_v12, %v6592_v15  ;;  %v6594_v14 = vadd.f32 %v6593_v23, %v13412_v36  ;;  %7482 = vmatprep.mubr.bf16.mxu1 %v7166_v21  ;;  %v6143_v53 = vmul.f32 %v11860_v6, %v15412_v22  ;;  %v5725_v45 = vmul.f32 %v15345_v19, %v15413_v4 }
 0x59b   : > { %v6597_v37 = vpop.f32.mrf.mxu0  ;;  %7483 = vmatmul.mubr.bf16.gmra.mxu1 %v7165_v58  ;;  %v5726_v24 = vmul.f32 %v15346_v48, %v15413_v4  ;;  %v13689_v36 = vadd.f32 %v13344_v41, %v5996_v34  ;;  %v5997_v51 = vadd.f32 %v5869_v40, %v13478_v50  ;;  %v6144_v32 = vmul.f32 %v11863_v25, %v15412_v22  ;;  %v15414_v34 = vld [vmem:[#allocation63_spill] sm:$0xff] }
 0x59c   : > { %v6918_v63 = vadd.f32 %v13559_v31, %v6594_v14  ;;  %v7045_v5 = vmax.f32 %v6917_v56, 0.0  ;;  %v5998_v15 = vadd.f32 %v5870_v16, %v13486_v9  ;;  %v5999_v21 = vadd.f32 %v5871_v27, %v5725_v45  ;;  %8202 = vmatprep.subr.bf16.mxu0 %v10019_v44 }
 0x59d   : > { %v6599_v17 = vpop.f32.mrf.mxu0  ;;  %v6000_v29 = vadd.f32 %v5872_v47, %v5726_v24  ;;  %v7044_v58 = vmax.f32 %v6916_v0, 0.0  ;;  %v5873_v41 = vmul.f32 %v11857_v1, %v15414_v34  ;;  %v7043_v50 = vmax.f32 %v6915_v54, 0.0  ;;  %8203 = vmatpush1.bf16.msra.mxu0 %v10017_v13  ;;  %v15415_v0 = vld [vmem:[#allocation89_spill] sm:$0xff]  ;;  %v15419_v13 = vld [vmem:[#allocation184_spill] sm:$0xff] }
 0x59e   : > { %v7046_v23 = vmax.f32 %v6918_v63, 0.0  ;;  %v6600_v49 = vadd.f32 %v6599_v17, %v13454_v3  ;;  %v5353_v14 = vpop.f32.mrf.mxu1  ;;  %v6598_v40 = vadd.f32 %v6597_v37, %v13433_v2  ;;  %v13699_v4 = vadd.f32 %v6143_v53, %v5997_v51  ;;  %v15418_v63 = vld [vmem:[#allocation174_spill] sm:$0xff] }
 0x59f   : > { %v6601_v22 = vpop.f32.mrf.mxu0  ;;  %v5874_v9 = vmul.f32 %v10480_v35, %v15414_v34  ;;  %v13704_v3 = vadd.f32 %v6144_v32, %v5998_v15  ;;  %v13708_v56 = vmul.f32 %v11860_v6, %v15415_v0  ;;  %v7167_v54 = vpack.c.bf16 %v7045_v5, %v7043_v50  ;;  %v15420_v15 = vld [vmem:[#allocation173_spill] sm:$0xff] }
 0x5a0   : > { %v6602_v16 = vadd.f32 %v6601_v22, %v13464_v30  ;;  %v5355_v27 = vpop.f32.mrf.mxu1  ;;  %v7168_v47 = vpack.c.bf16 %v7046_v23, %v7044_v58  ;;  %v13711_v2 = vadd.f32 %v13574_v10, %v5999_v21  ;;  %v13714_v37 = vadd.f32 %v13580_v33, %v6000_v29 }
 0x5a1   : > { %15416 = vst [vmem:[#allocation13_spill] sm:$0xff] %v13708_v56  ;;  %v6603_v45 = vpop.f32.mrf.mxu0  ;;  %v13718_v53 = vmul.f32 %v11863_v25, %v15415_v0  ;;  %v6920_v30 = vadd.f32 %v13559_v31, %v6600_v49  ;;  %v6001_v44 = vadd.f32 %v5873_v41, %v15419_v13  ;;  %v6919_v10 = vadd.f32 %v13565_v12, %v6598_v40  ;;  %v15421_v49 = vld [vmem:[#allocation64_spill] sm:$0xff] }
 0x5a2   : > { %v6921_v24 = vadd.f32 %v13565_v12, %v6602_v16  ;;  %v6604_v51 = vadd.f32 %v6603_v45, %v15418_v63  ;;  %v5357_v32 = vpop.f32.mrf.mxu1  ;;  %7492 = vmatprep.mubr.bf16.mxu1 %v7168_v47  ;;  %v5356_v5 = vadd.f32 %v5355_v27, %v13136_v7  ;;  %v6002_v21 = vadd.f32 %v5874_v9, %v15420_v15  ;;  %v15422_v16 = vld [vmem:[#allocation66_spill] sm:$0xff] }
 0x5a3   : > { %15417 = vst [vmem:[#allocation14_spill] sm:$0xff] %v13718_v53  ;;  %v5358_v33 = vadd.f32 %v5357_v32, %v13139_v26  ;;  %v6607_v17 = vpop.f32.mrf.mxu0  ;;  %7493 = vmatmul.mubr.bf16.gmra.mxu1 %v7167_v54  ;;  %v5354_v29 = vadd.f32 %v5353_v14, %v13139_v26  ;;  %v6147_v34 = vmul.f32 %v11860_v6, %v15421_v49  ;;  %v7048_v14 = vmax.f32 %v6920_v30, 0.0  ;;  %v15423_v54 = vld [vmem:[#allocation10_spill] sm:$0xff]  ;;  %v15424_v32 = vld [vmem:[#allocation9_spill] sm:$0xff] }
 0x5a4   : > { %v6922_v58 = vadd.f32 %v13559_v31, %v6604_v51  ;;  %v5359_v23 = vpop.f32.mrf.mxu1  ;;  %v6148_v41 = vmul.f32 %v11863_v25, %v15421_v49  ;;  %v7049_v50 = vmax.f32 %v6921_v24, 0.0  ;;  %v5875_v27 = vmul.f32 %v11857_v1, %v15422_v16  ;;  %v15425_v49 = vld [vmem:[#allocation102_spill] sm:$0xff] }
 0x5a5   : > { %v5360_v40 = vadd.f32 %v5359_v23, %v13136_v7  ;;  %v6609_v22 = vpop.f32.mrf.mxu0  ;;  %v5876_v9 = vmul.f32 %v10480_v35, %v15422_v16  ;;  %v5542_v0 = vmax.f32 %v5358_v33, 0.0  ;;  %v7047_v63 = vmax.f32 %v6919_v10, 0.0  ;;  %v15426_v33 = vld [vmem:[#allocation65_spill] sm:$0xff] }
 0x5a6   : > { %v7050_v47 = vmax.f32 %v6922_v58, 0.0  ;;  %v6610_v45 = vadd.f32 %v6609_v22, %v15423_v54  ;;  %v5541_v51 = vmax.f32 %v5356_v5, 0.0  ;;  %v6608_v13 = vadd.f32 %v6607_v17, %v15424_v32 }
 0x5a7   : > { %v5543_v15 = vmax.f32 %v5360_v40, 0.0  ;;  %v6611_v24 = vpop.f32.mrf.mxu0  ;;  %v13743_v23 = vmul.f32 %v15345_v19, %v15425_v49  ;;  %v5540_v53 = vmax.f32 %v5354_v29, 0.0  ;;  %v7169_v16 = vpack.c.bf16 %v7049_v50, %v7047_v63  ;;  %v10022_v63 = vld [vmem:[#allocation6 + $0x44] ss:$8 sps:$4 sm:$0xff]  }
 0x5a8   : > { %v6612_v56 = vadd.f32 %v6611_v24, %v13561_v11  ;;  %v7170_v46 = vpack.c.bf16 %v7050_v47, %v7048_v14  ;;  %v5729_v22 = vmul.f32 %v15345_v19, %v15426_v33  ;;  %v5730_v10 = vmul.f32 %v15346_v48, %v15426_v33  ;;  %v10020_v47 = vld [vmem:[#allocation6 + $0x40] ss:$8 sps:$4 sm:$0xff]   ;;  %8204 = vmatprep.subr.bf16.mxu0 %v10022_v63 }
 0x5a9   : > { %v6613_v30 = vpop.f32.mrf.mxu0  ;;  %v5625_v58 = vpack.c.bf16 %v5543_v15, %v5541_v51  ;;  %v5624_v5 = vpack.c.bf16 %v5542_v0, %v5540_v53  ;;  %v6924_v17 = vadd.f32 %v13559_v31, %v6610_v45  ;;  %v6923_v11 = vadd.f32 %v13565_v12, %v6608_v13  ;;  %v15427_v45 = vld [vmem:[#allocation68_spill] sm:$0xff]  ;;  %8205 = vmatpush1.bf16.msra.mxu0 %v10020_v47 }
 0x5aa   : > { %v6925_v40 = vadd.f32 %v13565_v12, %v6612_v56  ;;  %v6614_v54 = vadd.f32 %v6613_v30, %v13568_v8  ;;  %7502 = vmatprep.mubr.bf16.mxu1 %v7170_v46  ;;  %v6003_v50 = vadd.f32 %v5875_v27, %v5729_v22  ;;  %v6004_v14 = vadd.f32 %v5876_v9, %v5730_v10  ;;  %v15428_v9 = vld [vmem:[#allocation91_spill] sm:$0xff] }
 0x5ab   : > { %v6617_v29 = vpop.f32.mrf.mxu0  ;;  %6785 = vmatprep.mubr.bf16.mxu0 %v5625_v58  ;;  %7503 = vmatmul.mubr.bf16.gmra.mxu1 %v7169_v16  ;;  %v13756_v51 = vmul.f32 %v15346_v48, %v15425_v49  ;;  %v13759_v56 = vadd.f32 %v6147_v34, %v6001_v44  ;;  %v13761_v8 = vadd.f32 %v6148_v41, %v6002_v21  ;;  %v7052_v15 = vmax.f32 %v6924_v17, 0.0  ;;  %v15429_v58 = vld [vmem:[#allocation107_spill] sm:$0xff] }
 0x5ac   : > { %v6926_v53 = vadd.f32 %v13559_v31, %v6614_v54  ;;  %6786 = vmatmul.mubr.bf16.gmra.mxu0 %v5624_v5  ;;  %v7053_v46 = vmax.f32 %v6925_v40, 0.0  ;;  %v5877_v32 = vmul.f32 %v11857_v1, %v15427_v45  ;;  %v5878_v27 = vmul.f32 %v10480_v35, %v15427_v45  ;;  %v15430_v5 = vld [vmem:[#allocation69_spill] sm:$0xff]  ;;  %v10023_v40 = vld [vmem:[#allocation6 + $0x30] ss:$8 sps:$4 sm:$0xff]  }
 0x5ad   : > { %v6619_v0 = vpop.f32.mrf.mxu0  ;;  %v13769_v13 = vmul.f32 %v11860_v6, %v15428_v9  ;;  %v13774_v21 = vmul.f32 %v11863_v25, %v15428_v9  ;;  %v7051_v34 = vmax.f32 %v6923_v11, 0.0  ;;  %v6618_v41 = vadd.f32 %v6617_v29, %v13597_v42  ;;  %v10025_v42 = vld [vmem:[#allocation6 + $0x34] ss:$8 sps:$4 sm:$0xff]   ;;  %v15432_v11 = vld [vmem:[#allocation162_spill] sm:$0xff] }
 0x5ae   : > { %v7054_v24 = vmax.f32 %v6926_v53, 0.0  ;;  %v6620_v44 = vadd.f32 %v6619_v0, %v13600_v20  ;;  %v13778_v16 = vadd.f32 %v13584_v52, %v6003_v50  ;;  %v13781_v30 = vadd.f32 %v13588_v38, %v6004_v14  ;;  %v15433_v50 = vld [vmem:[#allocation168_spill] sm:$0xff]  ;;  %8206 = vmatprep.subr.bf16.mxu0 %v10025_v42  ;;  %v15434_v9 = vld [vmem:[#allocation71_spill] sm:$0xff] }
 0x5af   : > { %v6621_v49 = vpop.f32.mrf.mxu0  ;;  %v13785_v33 = vmul.f32 %v15345_v19, %v15429_v58  ;;  %v6151_v17 = vmul.f32 %v11860_v6, %v15430_v5  ;;  %v13792_v52 = vmul.f32 %v15346_v48, %v15429_v58  ;;  %v7171_v54 = vpack.c.bf16 %v7053_v46, %v7051_v34  ;;  %8207 = vmatpush1.bf16.msra.mxu0 %v10023_v40 }
 0x5b0   : > { %v6622_v20 = vadd.f32 %v6621_v49, %v13624_v62  ;;  %v7172_v10 = vpack.c.bf16 %v7054_v24, %v7052_v15  ;;  %v6005_v29 = vadd.f32 %v5877_v32, %v15432_v11  ;;  %v6006_v14 = vadd.f32 %v5878_v27, %v15433_v50 }
 0x5b1   : > { %v5363_v22 = vpop.f32.mrf.mxu1  ;;  %15431 = vst [vmem:[#allocation16_spill] sm:$0xff] %v13792_v52  ;;  %v6623_v38 = vpop.f32.mrf.mxu0  ;;  %v6928_v47 = vadd.f32 %v13559_v31, %v6620_v44  ;;  %v6927_v0 = vadd.f32 %v13565_v12, %v6618_v41  ;;  %v6152_v46 = vmul.f32 %v11863_v25, %v15430_v5  ;;  %v5879_v32 = vmul.f32 %v11857_v1, %v15434_v9 }
 0x5b2   : > { %v6929_v62 = vadd.f32 %v13565_v12, %v6622_v20  ;;  %v6624_v63 = vadd.f32 %v6623_v38, %v13631_v28  ;;  %7512 = vmatprep.mubr.bf16.mxu1 %v7172_v10  ;;  %v13805_v24 = vadd.f32 %v6151_v17, %v6005_v29  ;;  %v15435_v28 = vld [vmem:[#allocation70_spill] sm:$0xff]  ;;  %v5880_v34 = vmul.f32 %v10480_v35, %v15434_v9 }
 0x5b3   : > { %v5365_v53 = vpop.f32.mrf.mxu1  ;;  %v6627_v45 = vpop.f32.mrf.mxu0  ;;  %7513 = vmatmul.mubr.bf16.gmra.mxu1 %v7171_v54  ;;  %v5733_v44 = vmul.f32 %v15345_v19, %v15435_v28  ;;  %v5734_v10 = vmul.f32 %v15346_v48, %v15435_v28  ;;  %v7056_v5 = vmax.f32 %v6928_v47, 0.0  ;;  %v5364_v40 = vadd.f32 %v5363_v22, %v13139_v26 }
 0x5b4   : > { %v6930_v27 = vadd.f32 %v13559_v31, %v6624_v63  ;;  %v7057_v41 = vmax.f32 %v6929_v62, 0.0  ;;  %v5366_v49 = vadd.f32 %v5365_v53, %v13136_v7  ;;  %v7055_v38 = vmax.f32 %v6927_v0, 0.0 }
 0x5b5   : > { %v5367_v15 = vpop.f32.mrf.mxu1  ;;  %v6629_v20 = vpop.f32.mrf.mxu0  ;;  %v6628_v11 = vadd.f32 %v6627_v45, %v13678_v61  ;;  %v6007_v62 = vadd.f32 %v5879_v32, %v5733_v44  ;;  %v10026_v32 = vld [vmem:[#allocation6 + $0x20] ss:$8 sps:$4 sm:$0xff]   ;;  %v10028_v44 = vld [vmem:[#allocation6 + $0x24] ss:$8 sps:$4 sm:$0xff]  }
 0x5b6   : > { %v5368_v58 = vadd.f32 %v5367_v15, %v13139_v26  ;;  %v7058_v17 = vmax.f32 %v6930_v27, 0.0  ;;  %v6630_v42 = vadd.f32 %v6629_v20, %v13689_v36  ;;  %v6008_v15 = vadd.f32 %v5880_v34, %v5734_v10  ;;  %8208 = vmatprep.subr.bf16.mxu0 %v10028_v44 }
 0x5b7   : > { %v5369_v54 = vpop.f32.mrf.mxu1  ;;  %v6631_v50 = vpop.f32.mrf.mxu0  ;;  %v7173_v28 = vpack.c.bf16 %v7057_v41, %v7055_v38  ;;  %v5545_v47 = vmax.f32 %v5366_v49, 0.0  ;;  %v13820_v27 = vadd.f32 %v6152_v46, %v6006_v14  ;;  %v5544_v36 = vmax.f32 %v5364_v40, 0.0  ;;  %v15436_v41 = vld [vmem:[#allocation93_spill] sm:$0xff]  ;;  %8209 = vmatpush1.bf16.msra.mxu0 %v10026_v32  ;;  %v15439_v38 = vld [vmem:[#allocation112_spill] sm:$0xff] }
 0x5b8   : > { %v5370_v29 = vadd.f32 %v5369_v54, %v13136_v7  ;;  %v5546_v63 = vmax.f32 %v5368_v58, 0.0  ;;  %v6632_v53 = vadd.f32 %v6631_v50, %v13699_v4  ;;  %v7174_v9 = vpack.c.bf16 %v7058_v17, %v7056_v5  ;;  %v15437_v5 = vld [vmem:[#allocation73_spill] sm:$0xff] }
 0x5b9   : > { %v6633_v22 = vpop.f32.mrf.mxu0  ;;  %v6932_v0 = vadd.f32 %v13559_v31, %v6630_v42  ;;  %v6931_v4 = vadd.f32 %v13565_v12, %v6628_v11  ;;  %v13828_v49 = vmul.f32 %v11860_v6, %v15436_v41  ;;  %v13832_v14 = vmul.f32 %v11863_v25, %v15436_v41  ;;  %v15438_v42 = vld [vmem:[#allocation76_spill] sm:$0xff] }
 0x5ba   : > { %v5547_v52 = vmax.f32 %v5370_v29, 0.0  ;;  %v6933_v61 = vadd.f32 %v13565_v12, %v6632_v53  ;;  %v6634_v45 = vadd.f32 %v6633_v22, %v13704_v3  ;;  %7522 = vmatprep.mubr.bf16.mxu1 %v7174_v9  ;;  %v5626_v46 = vpack.c.bf16 %v5546_v63, %v5544_v36  ;;  %v10031_v63 = vld [vmem:[#allocation6 + $0x14] ss:$8 sps:$4 sm:$0xff]   ;;  %v10034_v36 = vld [vmem:[#allocation6 + $0x4] ss:$8 sps:$4 sm:$0xff]  }
 0x5bb   : > { %7523 = vmatmul.mubr.bf16.gmra.mxu1 %v7173_v28  ;;  %v6637_v20 = vpop.f32.mrf.mxu0  ;;  %v13836_v3 = vadd.f32 %v13604_v18, %v6007_v62  ;;  %v13839_v10 = vadd.f32 %v13612_v57, %v6008_v15  ;;  %v5881_v40 = vmul.f32 %v11857_v1, %v15437_v5  ;;  %v5882_v17 = vmul.f32 %v10480_v35, %v15437_v5  ;;  %v10029_v62 = vld [vmem:[#allocation6 + $0x10] ss:$8 sps:$4 sm:$0xff]   ;;  %v15440_v15 = vld [vmem:[#allocation74_spill] sm:$0xff] }
 0x5bc   : > { %v5627_v34 = vpack.c.bf16 %v5547_v52, %v5545_v47  ;;  %v6934_v58 = vadd.f32 %v13559_v31, %v6634_v45  ;;  %v7061_v52 = vmax.f32 %v6933_v61, 0.0  ;;  %v5883_v54 = vmul.f32 %v11857_v1, %v15438_v42  ;;  %v15441_v47 = vld [vmem:[#allocation75_spill] sm:$0xff]  ;;  %8210 = vmatprep.subr.bf16.mxu0 %v10031_v63 }
 0x5bd   : > { %v13849_v18 = vmul.f32 %v15345_v19, %v15439_v38  ;;  %v7060_v11 = vmax.f32 %v6932_v0, 0.0  ;;  %v6639_v29 = vpop.f32.mrf.mxu0  ;;  %v5884_v50 = vmul.f32 %v10480_v35, %v15438_v42  ;;  %v7059_v53 = vmax.f32 %v6931_v4, 0.0  ;;  %8211 = vmatpush1.bf16.msra.mxu0 %v10029_v62 }
 0x5be   : > { %6795 = vmatprep.mubr.bf16.mxu0 %v5627_v34  ;;  %v7062_v57 = vmax.f32 %v6934_v58, 0.0  ;;  %v6640_v9 = vadd.f32 %v6639_v29, %v13714_v37  ;;  %v6155_v28 = vmul.f32 %v11860_v6, %v15440_v15  ;;  %v5737_v22 = vmul.f32 %v15345_v19, %v15441_v47  ;;  %v15442_v34 = vld [vmem:[#allocation170_spill] sm:$0xff]  ;;  %8212 = vmatprep.subr.bf16.mxu0 %v10034_v36  ;;  %v10037_v29 = vld [vmem:[#allocation6 + $0xf4] ss:$8 sps:$4 sm:$0xff]  }
 0x5bf   : > { %6796 = vmatmul.mubr.bf16.gmra.mxu0 %v5626_v46  ;;  %v6638_v0 = vadd.f32 %v6637_v20, %v13711_v2  ;;  %v6641_v61 = vpop.f32.mrf.mxu0  ;;  %v6156_v32 = vmul.f32 %v11863_v25, %v15440_v15  ;;  %v5738_v44 = vmul.f32 %v15346_v48, %v15441_v47  ;;  %v7175_v4 = vpack.c.bf16 %v7061_v52, %v7059_v53  ;;  %v10032_v58 = vld [vmem:[#allocation6] ss:$8 sps:$4 sm:$0xff]   ;;  %v15445_v36 = vld [vmem:[#allocation95_spill] sm:$0xff] }
 0x5c0   : > { %v7176_v45 = vpack.c.bf16 %v7062_v57, %v7060_v11  ;;  %v6642_v37 = vadd.f32 %v6641_v61, %v13759_v56  ;;  %v6009_v41 = vadd.f32 %v5881_v40, %v15442_v34  ;;  %v6011_v46 = vadd.f32 %v5883_v54, %v5737_v22  ;;  %v15443_v2 = vld [vmem:[#allocation178_spill] sm:$0xff] }
 0x5c1   : > { %v6643_v5 = vpop.f32.mrf.mxu0  ;;  %v6010_v20 = vadd.f32 %v5882_v17, %v15443_v2  ;;  %v6012_v42 = vadd.f32 %v5884_v50, %v5738_v44  ;;  %v15444_v11 = vld [vmem:[#allocation78_spill] sm:$0xff]  ;;  %v6936_v63 = vadd.f32 %v13559_v31, %v6640_v9  ;;  %v13875_v17 = vmul.f32 %v15346_v48, %v15439_v38  ;;  %8213 = vmatpush1.bf16.msra.mxu0 %v10032_v58  ;;  %v10035_v38 = vld [vmem:[#allocation6 + $0xf0] ss:$8 sps:$4 sm:$0xff]  }
 0x5c2   : > { %7532 = vmatprep.mubr.bf16.mxu1 %v7176_v45  ;;  %v5885_v57 = vmul.f32 %v11857_v1, %v15444_v11  ;;  %v6937_v52 = vadd.f32 %v13565_v12, %v6642_v37  ;;  %v6644_v56 = vadd.f32 %v6643_v5, %v13761_v8  ;;  %v5886_v54 = vmul.f32 %v10480_v35, %v15444_v11  ;;  %v10040_v37 = vld [vmem:[#allocation6 + $0xe4] ss:$8 sps:$4 sm:$0xff]   ;;  %v15448_v5 = vld [vmem:[#allocation175_spill] sm:$0xff] }
 0x5c3   : > { %7533 = vmatmul.mubr.bf16.gmra.mxu1 %v7175_v4  ;;  %v6935_v50 = vadd.f32 %v13565_v12, %v6638_v0  ;;  %v6647_v62 = vpop.f32.mrf.mxu0  ;;  %v13878_v53 = vadd.f32 %v6155_v28, %v6009_v41  ;;  %v13880_v15 = vadd.f32 %v6156_v32, %v6010_v20  ;;  %v13885_v22 = vadd.f32 %v13617_v39, %v6011_v46  ;;  %v15446_v32 = vld [vmem:[#allocation166_spill] sm:$0xff]  ;;  %v15447_v4 = vld [vmem:[#allocation79_spill] sm:$0xff] }
 0x5c4   : > { %v5373_v40 = vpop.f32.mrf.mxu1  ;;  %v6938_v9 = vadd.f32 %v13559_v31, %v6644_v56  ;;  %v6648_v8 = vadd.f32 %v6647_v62, %v13778_v16  ;;  %v13889_v61 = vmul.f32 %v11860_v6, %v15445_v36  ;;  %v7065_v0 = vmax.f32 %v6937_v52, 0.0  ;;  %8214 = vmatprep.subr.bf16.mxu0 %v10037_v29  ;;  %v10038_v56 = vld [vmem:[#allocation6 + $0xe0] ss:$8 sps:$4 sm:$0xff]  }
 0x5c5   : > { %v6649_v45 = vpop.f32.mrf.mxu0  ;;  %v13892_v28 = vadd.f32 %v13621_v60, %v6012_v42  ;;  %v6013_v44 = vadd.f32 %v5885_v57, %v15446_v32  ;;  %v6159_v16 = vmul.f32 %v11860_v6, %v15447_v4  ;;  %v7064_v39 = vmax.f32 %v6936_v63, 0.0  ;;  %8215 = vmatpush2.bf16.msra.mxu0 %v10035_v38 }
 0x5c6   : > { %v5375_v47 = vpop.f32.mrf.mxu1  ;;  %v7066_v34 = vmax.f32 %v6938_v9, 0.0  ;;  %v6650_v41 = vadd.f32 %v6649_v45, %v13781_v30  ;;  %v6014_v58 = vadd.f32 %v5886_v54, %v15448_v5  ;;  %v7063_v2 = vmax.f32 %v6935_v50, 0.0  ;;  %v15449_v9 = vld [vmem:[#allocation81_spill] sm:$0xff]  ;;  %8216 = vmatprep.subr.bf16.mxu0 %v10040_v37 }
 0x5c7   : > { %v5374_v20 = vadd.f32 %v5373_v40, %v13139_v26  ;;  %v5376_v60 = vadd.f32 %v5375_v47, %v13136_v7  ;;  %v6651_v42 = vpop.f32.mrf.mxu0  ;;  %v6939_v57 = vadd.f32 %v13565_v12, %v6648_v8  ;;  %v6160_v30 = vmul.f32 %v11863_v25, %v15447_v4 }
 0x5c8   : > { %v5377_v46 = vpop.f32.mrf.mxu1  ;;  %v6652_v29 = vadd.f32 %v6651_v42, %v13805_v24  ;;  %v7178_v63 = vpack.c.bf16 %v7066_v34, %v7064_v39  ;;  %v7177_v54 = vpack.c.bf16 %v7065_v0, %v7063_v2  ;;  %v13907_v62 = vadd.f32 %v6159_v16, %v6013_v44 }
 0x5c9   : > { %v5378_v11 = vadd.f32 %v5377_v46, %v13139_v26  ;;  %v6653_v50 = vpop.f32.mrf.mxu0  ;;  %v5887_v47 = vmul.f32 %v11857_v1, %v15449_v9  ;;  %v6940_v8 = vadd.f32 %v13559_v31, %v6650_v41  ;;  %v5548_v38 = vmax.f32 %v5374_v20, 0.0  ;;  %8217 = vmatpush2.bf16.msra.mxu0 %v10038_v56  ;;  %v10043_v46 = vld [vmem:[#allocation6 + $0xd4] ss:$8 sps:$4 sm:$0xff]  }
 0x5ca   : > { %v5379_v52 = vpop.f32.mrf.mxu1  ;;  %v6941_v24 = vadd.f32 %v13565_v12, %v6652_v29  ;;  %v6654_v32 = vadd.f32 %v6653_v50, %v13820_v27  ;;  %7542 = vmatprep.mubr.bf16.mxu1 %v7178_v63  ;;  %v5549_v4 = vmax.f32 %v5376_v60, 0.0  ;;  %v5888_v44 = vmul.f32 %v10480_v35, %v15449_v9  ;;  %v15450_v20 = vld [vmem:[#allocation80_spill] sm:$0xff]  ;;  %8218 = vmatprep.subr.bf16.mxu0 %v10043_v46  ;;  %v15451_v50 = vld [vmem:[#allocation86_spill] sm:$0xff] }
 0x5cb   : > { %v5380_v40 = vadd.f32 %v5379_v52, %v13136_v7  ;;  %v5550_v45 = vmax.f32 %v5378_v11, 0.0  ;;  %v6657_v39 = vpop.f32.mrf.mxu0  ;;  %7543 = vmatmul.mubr.bf16.gmra.mxu1 %v7177_v54  ;;  %v7067_v16 = vmax.f32 %v6939_v57, 0.0  ;;  %v13918_v27 = vadd.f32 %v6160_v30, %v6014_v58  ;;  %v10041_v11 = vld [vmem:[#allocation6 + $0xd0] ss:$8 sps:$4 sm:$0xff]  }
 0x5cc   : > { %v7069_v34 = vmax.f32 %v6941_v24, 0.0  ;;  %v6942_v37 = vadd.f32 %v13559_v31, %v6654_v32  ;;  %v6658_v41 = vadd.f32 %v6657_v39, %v13836_v3  ;;  %v5741_v60 = vmul.f32 %v15345_v19, %v15450_v20 }
 0x5cd   : > { %v5551_v0 = vmax.f32 %v5380_v40, 0.0  ;;  %v6659_v5 = vpop.f32.mrf.mxu0  ;;  %v5742_v42 = vmul.f32 %v15346_v48, %v15450_v20  ;;  %v7068_v29 = vmax.f32 %v6940_v8, 0.0  ;;  %v5628_v52 = vpack.c.bf16 %v5550_v45, %v5548_v38  ;;  %v10046_v45 = vld [vmem:[#allocation6 + $0xc4] ss:$8 sps:$4 sm:$0xff]   ;;  %v15452_v38 = vld [vmem:[#allocation83_spill] sm:$0xff]  ;;  %8219 = vmatpush2.bf16.msra.mxu0 %v10041_v11 }
 0x5ce   : > { %v7179_v57 = vpack.c.bf16 %v7069_v34, %v7067_v16  ;;  %v7070_v63 = vmax.f32 %v6942_v37, 0.0  ;;  %v6660_v3 = vadd.f32 %v6659_v5, %v13839_v10  ;;  %v6015_v54 = vadd.f32 %v5887_v47, %v5741_v60  ;;  %v10044_v16 = vld [vmem:[#allocation6 + $0xc0] ss:$8 sps:$4 sm:$0xff]   ;;  %v15454_v34 = vld [vmem:[#allocation84_spill] sm:$0xff]  ;;  %8220 = vmatprep.subr.bf16.mxu0 %v10046_v45 }
 0x5cf   : > { %v5629_v2 = vpack.c.bf16 %v5551_v0, %v5549_v4  ;;  %v6661_v56 = vpop.f32.mrf.mxu0  ;;  %v5891_v58 = vmul.f32 %v11857_v1, %v15451_v50  ;;  %v5892_v30 = vmul.f32 %v10480_v35, %v15451_v50  ;;  %v6943_v40 = vadd.f32 %v13565_v12, %v6658_v41  ;;  %v15453_v4 = vld [vmem:[#allocation85_spill] sm:$0xff]  ;;  %v10049_v41 = vld [vmem:[#allocation6 + $0xb4] ss:$8 sps:$4 sm:$0xff]   ;;  %v15455_v50 = vld [vmem:[#allocation182_spill] sm:$0xff] }
 0x5d0   : > { %v6662_v9 = vadd.f32 %v6661_v56, %v13878_v53  ;;  %v7180_v8 = vpack.c.bf16 %v7070_v63, %v7068_v29  ;;  %v6016_v24 = vadd.f32 %v5888_v44, %v5742_v42  ;;  %v5889_v10 = vmul.f32 %v11857_v1, %v15452_v38 }
 0x5d1   : > { %6805 = vmatprep.mubr.bf16.mxu0 %v5629_v2  ;;  %v6663_v32 = vpop.f32.mrf.mxu0  ;;  %v5890_v47 = vmul.f32 %v10480_v35, %v15452_v38  ;;  %v5745_v0 = vmul.f32 %v15345_v19, %v15453_v4  ;;  %v5746_v39 = vmul.f32 %v15346_v48, %v15453_v4  ;;  %v6163_v37 = vmul.f32 %v11860_v6, %v15454_v34 }
 0x5d2   : > { %6806 = vmatmul.mubr.bf16.gmra.mxu0 %v5628_v52  ;;  %v6945_v53 = vadd.f32 %v13565_v12, %v6662_v9  ;;  %v6664_v44 = vadd.f32 %v6663_v32, %v13880_v15  ;;  %7552 = vmatprep.mubr.bf16.mxu1 %v7180_v8  ;;  %v6944_v46 = vadd.f32 %v13559_v31, %v6660_v3  ;;  %v7071_v42 = vmax.f32 %v6943_v40, 0.0  ;;  %v15456_v3 = vld [vmem:[#allocation183_spill] sm:$0xff] }
 0x5d3   : > { %v6667_v5 = vpop.f32.mrf.mxu0  ;;  %7553 = vmatmul.mubr.bf16.gmra.mxu1 %v7179_v57  ;;  %v6164_v2 = vmul.f32 %v11863_v25, %v15454_v34  ;;  %v6019_v20 = vadd.f32 %v5891_v58, %v5745_v0  ;;  %v6020_v60 = vadd.f32 %v5892_v30, %v5746_v39  ;;  %v6289_v56 = vadd.f32 %v13647_v59, %v6015_v54  ;;  %v15457_v57 = vld [vmem:[#allocation88_spill] sm:$0xff]  ;;  %v10052_v0 = vld [vmem:[#allocation6 + $0xa4] ss:$8 sps:$4 sm:$0xff]  }
 0x5d4   : > { %v7073_v11 = vmax.f32 %v6945_v53, 0.0  ;;  %v6946_v29 = vadd.f32 %v13559_v31, %v6664_v44  ;;  %v6668_v15 = vadd.f32 %v6667_v5, %v13885_v22  ;;  %v6017_v9 = vadd.f32 %v5889_v10, %v15455_v50  ;;  %8221 = vmatpush2.bf16.msra.mxu0 %v10044_v16  ;;  %v10047_v58 = vld [vmem:[#allocation6 + $0xb0] ss:$8 sps:$4 sm:$0xff]  }
 0x5d5   : > { %v6669_v52 = vpop.f32.mrf.mxu0  ;;  %v6018_v8 = vadd.f32 %v5890_v47, %v15456_v3  ;;  %v5893_v45 = vmul.f32 %v11857_v1, %v15457_v57  ;;  %v5894_v22 = vmul.f32 %v10480_v35, %v15457_v57  ;;  %8222 = vmatprep.subr.bf16.mxu0 %v10049_v41  ;;  %v7072_v38 = vmax.f32 %v6944_v46, 0.0 }
 0x5d6   : > { %v7181_v30 = vpack.c.bf16 %v7073_v11, %v7071_v42  ;;  %v7074_v40 = vmax.f32 %v6946_v29, 0.0  ;;  %v6670_v32 = vadd.f32 %v6669_v52, %v13892_v28  ;;  %v6947_v59 = vadd.f32 %v13565_v12, %v6668_v15  ;;  %v15458_v28 = vld [vmem:[#allocation18_spill] sm:$0xff]  ;;  %v15459_v42 = vld [vmem:[#allocation179_spill] sm:$0xff] }
 0x5d7   : > { %v5383_v63 = vpop.f32.mrf.mxu1  ;;  %v6671_v54 = vpop.f32.mrf.mxu0  ;;  %v6290_v47 = vadd.f32 %v13651_v55, %v6016_v24  ;;  %v6291_v4 = vadd.f32 %v6163_v37, %v6017_v9  ;;  %v6292_v16 = vadd.f32 %v6164_v2, %v6018_v8  ;;  %v13960_v53 = vadd.f32 %v13659_v43, %v6019_v20  ;;  %v15460_v29 = vld [vmem:[#allocation90_spill] sm:$0xff]  ;;  %v15461_v2 = vld [vmem:[#allocation185_spill] sm:$0xff] }
 0x5d8   : > { %v6672_v39 = vadd.f32 %v6671_v54, %v13907_v62  ;;  %v13963_v44 = vadd.f32 %v15458_v28, %v6020_v60  ;;  %v6948_v34 = vadd.f32 %v13559_v31, %v6670_v32  ;;  %v7182_v46 = vpack.c.bf16 %v7074_v40, %v7072_v38  ;;  %8223 = vmatpush2.bf16.msra.mxu0 %v10047_v58  ;;  %v10050_v24 = vld [vmem:[#allocation6 + $0xa0] ss:$8 sps:$4 sm:$0xff]   ;;  %v10055_v58 = vld [vmem:[#allocation6 + $0x94] ss:$8 sps:$4 sm:$0xff]   ;;  %v10053_v54 = vld [vmem:[#allocation6 + $0x90] ss:$8 sps:$4 sm:$0xff]  }
 0x5d9   : > { %v5385_v10 = vpop.f32.mrf.mxu1  ;;  %v6673_v41 = vpop.f32.mrf.mxu0  ;;  %v6021_v11 = vadd.f32 %v5893_v45, %v15459_v42  ;;  %v6167_v55 = vmul.f32 %v11860_v6, %v15460_v29  ;;  %v13973_v20 = vadd.f32 %v5894_v22, %v15461_v2  ;;  %8224 = vmatprep.subr.bf16.mxu0 %v10052_v0  ;;  %v7075_v60 = vmax.f32 %v6947_v59, 0.0  ;;  %v15462_v22 = vld [vmem:[#allocation94_spill] sm:$0xff] }
 0x5da   : > { %v6949_v62 = vadd.f32 %v13565_v12, %v6672_v39  ;;  %v5386_v43 = vadd.f32 %v5385_v10, %v13136_v7  ;;  %v6674_v37 = vadd.f32 %v6673_v41, %v13918_v27  ;;  %v5384_v15 = vadd.f32 %v5383_v63, %v13139_v26  ;;  %7562 = vmatprep.mubr.bf16.mxu1 %v7182_v46  ;;  %v15463_v46 = vld [vmem:[#allocation92_spill] sm:$0xff] }
 0x5db   : > { %v5387_v5 = vpop.f32.mrf.mxu1  ;;  %v6677_v50 = vpop.f32.mrf.mxu0  ;;  %v13979_v3 = vmul.f32 %v11863_v25, %v15460_v29  ;;  %7563 = vmatmul.mubr.bf16.gmra.mxu1 %v7181_v30  ;;  %v7076_v40 = vmax.f32 %v6948_v34, 0.0  ;;  %v5895_v38 = vmul.f32 %v11857_v1, %v15462_v22  ;;  %v5896_v59 = vmul.f32 %v10480_v35, %v15462_v22 }
 0x5dc   : > { %v5388_v52 = vadd.f32 %v5387_v5, %v13139_v26  ;;  %v7077_v8 = vmax.f32 %v6949_v62, 0.0  ;;  %v6950_v57 = vadd.f32 %v13559_v31, %v6674_v37  ;;  %v6678_v27 = vadd.f32 %v6677_v50, %v6289_v56  ;;  %8225 = vmatpush2.bf16.msra.mxu0 %v10050_v24 }
 0x5dd   : > { %v5389_v9 = vpop.f32.mrf.mxu1  ;;  %v6679_v63 = vpop.f32.mrf.mxu0  ;;  %v5553_v0 = vmax.f32 %v5386_v43, 0.0  ;;  %8226 = vmatprep.subr.bf16.mxu0 %v10055_v58  ;;  %v5552_v56 = vmax.f32 %v5384_v15, 0.0  ;;  %v5749_v34 = vmul.f32 %v15345_v19, %v15463_v46  ;;  %v5750_v5 = vmul.f32 %v15346_v48, %v15463_v46 }
 0x5de   : > { %v5390_v45 = vadd.f32 %v5389_v9, %v13136_v7  ;;  %v5554_v32 = vmax.f32 %v5388_v52, 0.0  ;;  %v7183_v10 = vpack.c.bf16 %v7077_v8, %v7075_v60  ;;  %v7078_v39 = vmax.f32 %v6950_v57, 0.0  ;;  %v10056_v9 = vld [vmem:[#allocation6 + $0x80] ss:$8 sps:$4 sm:$0xff]   ;;  %v10058_v8 = vld [vmem:[#allocation6 + $0x84] ss:$8 sps:$4 sm:$0xff]  }
 0x5df   : > { %v6680_v30 = vadd.f32 %v6679_v63, %v6290_v47  ;;  %v6681_v41 = vpop.f32.mrf.mxu0  ;;  %v6951_v42 = vadd.f32 %v13565_v12, %v6678_v27  ;;  %v6295_v43 = vadd.f32 %v6167_v55, %v6021_v11  ;;  %v6023_v60 = vadd.f32 %v5895_v38, %v5749_v34  ;;  %v15465_v55 = vld [vmem:[#allocation101_spill] sm:$0xff]  ;;  %v15468_v34 = vld [vmem:[#allocation11_spill] sm:$0xff] }
 0x5e0   : > { %v5555_v28 = vmax.f32 %v5390_v45, 0.0  ;;  %v6682_v29 = vadd.f32 %v6681_v41, %v6291_v4  ;;  %v7184_v62 = vpack.c.bf16 %v7078_v39, %v7076_v40  ;;  %v5630_v37 = vpack.c.bf16 %v5554_v32, %v5552_v56  ;;  %8227 = vmatpush2.bf16.msra.mxu0 %v10053_v54  ;;  %v15464_v4 = vld [vmem:[#allocation96_spill] sm:$0xff]  ;;  %v15466_v38 = vld [vmem:[#allocation97_spill] sm:$0xff] }
 0x5e1   : > { %v6683_v2 = vpop.f32.mrf.mxu0  ;;  %v6024_v52 = vadd.f32 %v5896_v59, %v5750_v5  ;;  %v6952_v47 = vadd.f32 %v13559_v31, %v6680_v30  ;;  %v5897_v27 = vmul.f32 %v11857_v1, %v15464_v4  ;;  %v5898_v11 = vmul.f32 %v10480_v35, %v15464_v4  ;;  %8228 = vmatprep.subr.bf16.mxu0 %v10058_v8 }
 0x5e2   : > { %v5631_v24 = vpack.c.bf16 %v5555_v28, %v5553_v0  ;;  %v6953_v15 = vadd.f32 %v13565_v12, %v6682_v29  ;;  %v6684_v50 = vadd.f32 %v6683_v2, %v6292_v16  ;;  %7572 = vmatprep.mubr.bf16.mxu1 %v7184_v62  ;;  %v5899_v45 = vmul.f32 %v11857_v1, %v15465_v55  ;;  %v15467_v0 = vld [vmem:[#allocation99_spill] sm:$0xff] }
 0x5e3   : > { %v6687_v57 = vpop.f32.mrf.mxu0  ;;  %v5900_v58 = vmul.f32 %v10480_v35, %v15465_v55  ;;  %v7079_v40 = vmax.f32 %v6951_v42, 0.0  ;;  %7573 = vmatmul.mubr.bf16.gmra.mxu1 %v7183_v10  ;;  %v6171_v59 = vmul.f32 %v11860_v6, %v15466_v38  ;;  %v6172_v54 = vmul.f32 %v11863_v25, %v15466_v38 }
 0x5e4   : > { %6815 = vmatprep.mubr.bf16.mxu0 %v5631_v24  ;;  %v7081_v16 = vmax.f32 %v6953_v15, 0.0  ;;  %v6954_v32 = vadd.f32 %v13559_v31, %v6684_v50  ;;  %v6688_v63 = vadd.f32 %v6687_v57, %v13960_v53  ;;  %v5753_v39 = vmul.f32 %v15345_v19, %v15467_v0  ;;  %8229 = vmatpush2.bf16.msra.mxu0 %v10056_v9  ;;  %v15469_v15 = vld [vmem:[#allocation12_spill] sm:$0xff]  ;;  %v15470_v9 = vld [vmem:[#allocation13_spill] sm:$0xff]  ;;  %v15471_v57 = vld [vmem:[#allocation14_spill] sm:$0xff] }
 0x5e5   : > { %6816 = vmatmul.mubr.bf16.gmra.mxu0 %v5630_v37  ;;  %v6689_v22 = vpop.f32.mrf.mxu0  ;;  %v5754_v28 = vmul.f32 %v15346_v48, %v15467_v0  ;;  %v7080_v56 = vmax.f32 %v6952_v47, 0.0  ;;  %v6296_v46 = vadd.f32 %v13979_v3, %v13973_v20  ;;  %v6025_v5 = vadd.f32 %v5897_v27, %v15468_v34  ;;  %v15473_v0 = vld [vmem:[#allocation104_spill] sm:$0xff] }
 0x5e6   : > { %v7185_v30 = vpack.c.bf16 %v7081_v16, %v7079_v40  ;;  %v7082_v41 = vmax.f32 %v6954_v32, 0.0  ;;  %v6690_v53 = vadd.f32 %v6689_v22, %v13963_v44  ;;  %v6027_v42 = vadd.f32 %v5899_v45, %v5753_v39  ;;  %v15472_v40 = vld [vmem:[#allocation103_spill] sm:$0xff] }
 0x5e7   : > { %v6691_v10 = vpop.f32.mrf.mxu0  ;;  %v6028_v29 = vadd.f32 %v5900_v58, %v5754_v28  ;;  %v6955_v62 = vadd.f32 %v13565_v12, %v6688_v63  ;;  %v6026_v50 = vadd.f32 %v5898_v11, %v15469_v15  ;;  %v6297_v8 = vadd.f32 %v15470_v9, %v6023_v60  ;;  %v15474_v9 = vld [vmem:[#allocation106_spill] sm:$0xff] }
 0x5e8   : > { %v6692_v24 = vadd.f32 %v6691_v10, %v6295_v43  ;;  %v7186_v2 = vpack.c.bf16 %v7082_v41, %v7080_v56  ;;  %v6298_v44 = vadd.f32 %v15471_v57, %v6024_v52  ;;  %v6299_v4 = vadd.f32 %v6171_v59, %v6025_v5 }
 0x5e9   : > { %v6693_v47 = vpop.f32.mrf.mxu0  ;;  %v14022_v20 = vmul.f32 %v11863_v25, %v15445_v36  ;;  %v6956_v3 = vadd.f32 %v13559_v31, %v6690_v53  ;;  %v6300_v45 = vadd.f32 %v6172_v54, %v6026_v50  ;;  %v6301_v11 = vadd.f32 %v13769_v13, %v6027_v42 }
 0x5ea   : > { %v5393_v37 = vpop.f32.mrf.mxu1  ;;  %v6957_v27 = vadd.f32 %v13565_v12, %v6692_v24  ;;  %v6694_v55 = vadd.f32 %v6693_v47, %v6296_v46  ;;  %7582 = vmatprep.mubr.bf16.mxu1 %v7186_v2  ;;  %v6302_v60 = vadd.f32 %v13774_v21, %v6028_v29  ;;  %v5901_v52 = vmul.f32 %v11857_v1, %v15472_v40 }
 0x5eb   : > { %v6697_v58 = vpop.f32.mrf.mxu0  ;;  %v5902_v36 = vmul.f32 %v10480_v35, %v15472_v40  ;;  %v7083_v16 = vmax.f32 %v6955_v62, 0.0  ;;  %7583 = vmatmul.mubr.bf16.gmra.mxu1 %v7185_v30  ;;  %v5394_v59 = vadd.f32 %v5393_v37, %v13139_v26  ;;  %v6175_v39 = vmul.f32 %v11860_v6, %v15473_v0 }
 0x5ec   : > { %v5395_v43 = vpop.f32.mrf.mxu1  ;;  %v7085_v32 = vmax.f32 %v6957_v27, 0.0  ;;  %v6958_v63 = vadd.f32 %v13559_v31, %v6694_v55  ;;  %v6698_v22 = vadd.f32 %v6697_v58, %v6297_v8  ;;  %v7084_v28 = vmax.f32 %v6956_v3, 0.0  ;;  %v15475_v55 = vld [vmem:[#allocation105_spill] sm:$0xff] }
 0x5ed   : > { %v5396_v54 = vadd.f32 %v5395_v43, %v13136_v7  ;;  %v6699_v13 = vpop.f32.mrf.mxu0  ;;  %v6029_v5 = vadd.f32 %v5901_v52, %v13743_v23  ;;  %v6030_v42 = vadd.f32 %v5902_v36, %v13756_v51  ;;  %v6176_v37 = vmul.f32 %v11863_v25, %v15473_v0 }
 0x5ee   : > { %v5397_v38 = vpop.f32.mrf.mxu1  ;;  %v7187_v56 = vpack.c.bf16 %v7085_v32, %v7083_v16  ;;  %v7086_v41 = vmax.f32 %v6958_v63, 0.0  ;;  %v6700_v53 = vadd.f32 %v6699_v13, %v6298_v44  ;;  %v6959_v46 = vadd.f32 %v13565_v12, %v6698_v22 }
 0x5ef   : > { %v5398_v21 = vadd.f32 %v5397_v38, %v13139_v26  ;;  %v6701_v34 = vpop.f32.mrf.mxu0  ;;  %v5557_v2 = vmax.f32 %v5396_v54, 0.0  ;;  %v6303_v47 = vadd.f32 %v6175_v39, %v6029_v5  ;;  %v5903_v8 = vmul.f32 %v11857_v1, %v15474_v9  ;;  %v15476_v38 = vld [vmem:[#allocation111_spill] sm:$0xff] }
 0x5f0   : > { %v5399_v10 = vpop.f32.mrf.mxu1  ;;  %v6702_v62 = vadd.f32 %v6701_v34, %v6299_v4  ;;  %v7188_v24 = vpack.c.bf16 %v7086_v41, %v7084_v28  ;;  %v5556_v57 = vmax.f32 %v5394_v59, 0.0  ;;  %v6960_v44 = vadd.f32 %v13559_v31, %v6700_v53  ;;  %v15477_v41 = vld [vmem:[#allocation108_spill] sm:$0xff] }
 0x5f1   : > { %v5400_v30 = vadd.f32 %v5399_v10, %v13136_v7  ;;  %v5558_v29 = vmax.f32 %v5398_v21, 0.0  ;;  %v6703_v50 = vpop.f32.mrf.mxu0  ;;  %v7087_v51 = vmax.f32 %v6959_v46, 0.0  ;;  %v5757_v43 = vmul.f32 %v15345_v19, %v15475_v55 }
 0x5f2   : > { %v6961_v23 = vadd.f32 %v13565_v12, %v6702_v62  ;;  %v6704_v3 = vadd.f32 %v6703_v50, %v6300_v45  ;;  %7592 = vmatprep.mubr.bf16.mxu1 %v7188_v24  ;;  %v5904_v58 = vmul.f32 %v10480_v35, %v15474_v9  ;;  %v6304_v63 = vadd.f32 %v6176_v37, %v6030_v42 }
 0x5f3   : > { %v5559_v15 = vmax.f32 %v5400_v30, 0.0  ;;  %v6707_v4 = vpop.f32.mrf.mxu0  ;;  %v5632_v40 = vpack.c.bf16 %v5558_v29, %v5556_v57  ;;  %7593 = vmatmul.mubr.bf16.gmra.mxu1 %v7187_v56  ;;  %v6031_v45 = vadd.f32 %v5903_v8, %v5757_v43  ;;  %v5758_v22 = vmul.f32 %v15346_v48, %v15475_v55  ;;  %v15478_v30 = vld [vmem:[#allocation110_spill] sm:$0xff]  ;;  %v15479_v29 = vld [vmem:[#allocation109_spill] sm:$0xff] }
 0x5f4   : > { %v7089_v52 = vmax.f32 %v6961_v23, 0.0  ;;  %v6962_v36 = vadd.f32 %v13559_v31, %v6704_v3  ;;  %v6708_v16 = vadd.f32 %v6707_v4, %v6301_v11  ;;  %v5907_v59 = vmul.f32 %v11857_v1, %v15476_v38 }
 0x5f5   : > { %v5633_v27 = vpack.c.bf16 %v5559_v15, %v5557_v2  ;;  %v6709_v32 = vpop.f32.mrf.mxu0  ;;  %v7088_v54 = vmax.f32 %v6960_v44, 0.0  ;;  %v6032_v28 = vadd.f32 %v5904_v58, %v5758_v22  ;;  %v5905_v11 = vmul.f32 %v11857_v1, %v15477_v41  ;;  %v15480_v44 = vld [vmem:[#allocation16_spill] sm:$0xff] }
 0x5f6   : > { %v7189_v13 = vpack.c.bf16 %v7089_v52, %v7087_v51  ;;  %v7090_v21 = vmax.f32 %v6962_v36, 0.0  ;;  %v6710_v0 = vadd.f32 %v6709_v32, %v6302_v60  ;;  %v5906_v56 = vmul.f32 %v10480_v35, %v15477_v41  ;;  %v15481_v36 = vld [vmem:[#allocation113_spill] sm:$0xff] }
 0x5f7   : > { %6825 = vmatprep.mubr.bf16.mxu0 %v5633_v27  ;;  %v6711_v39 = vpop.f32.mrf.mxu0  ;;  %v5908_v53 = vmul.f32 %v10480_v35, %v15476_v38  ;;  %v6963_v10 = vadd.f32 %v13565_v12, %v6708_v16  ;;  %v5761_v5 = vmul.f32 %v15345_v19, %v15478_v30  ;;  %v6305_v42 = vadd.f32 %v13828_v49, %v6031_v45 }
 0x5f8   : > { %6826 = vmatmul.mubr.bf16.gmra.mxu0 %v5632_v40  ;;  %v6712_v46 = vadd.f32 %v6711_v39, %v6303_v47  ;;  %v7190_v34 = vpack.c.bf16 %v7090_v21, %v7088_v54  ;;  %v6179_v62 = vmul.f32 %v11860_v6, %v15479_v29  ;;  %v6180_v24 = vmul.f32 %v11863_v25, %v15479_v29  ;;  %v15482_v21 = vld [vmem:[#allocation114_spill] sm:$0xff] }
 0x5f9   : > { %v6713_v60 = vpop.f32.mrf.mxu0  ;;  %v5762_v37 = vmul.f32 %v15346_v48, %v15478_v30  ;;  %v6964_v2 = vadd.f32 %v13559_v31, %v6710_v0  ;;  %v6035_v47 = vadd.f32 %v5907_v59, %v5761_v5  ;;  %v6306_v49 = vadd.f32 %v13832_v14, %v6032_v28 }
 0x5fa   : > { %v6965_v15 = vadd.f32 %v13565_v12, %v6712_v46  ;;  %v6714_v50 = vadd.f32 %v6713_v60, %v6304_v63  ;;  %7602 = vmatprep.mubr.bf16.mxu1 %v7190_v34  ;;  %v6033_v57 = vadd.f32 %v5905_v11, %v13785_v33  ;;  %v6034_v23 = vadd.f32 %v5906_v56, %v15480_v44 }
 0x5fb   : > { %v6717_v9 = vpop.f32.mrf.mxu0  ;;  %v6036_v3 = vadd.f32 %v5908_v53, %v5762_v37  ;;  %v7091_v51 = vmax.f32 %v6963_v10, 0.0  ;;  %7603 = vmatmul.mubr.bf16.gmra.mxu1 %v7189_v13  ;;  %v5909_v16 = vmul.f32 %v11857_v1, %v15481_v36  ;;  %v5910_v14 = vmul.f32 %v10480_v35, %v15481_v36  ;;  %v15483_v37 = vld [vmem:[#allocation117_spill] sm:$0xff] }
 0x5fc   : > { %v7093_v4 = vmax.f32 %v6965_v15, 0.0  ;;  %v6966_v27 = vadd.f32 %v13559_v31, %v6714_v50  ;;  %v6718_v55 = vadd.f32 %v6717_v9, %v6305_v42  ;;  %v6307_v40 = vadd.f32 %v6179_v62, %v6033_v57 }
 0x5fd   : > { %v5403_v8 = vpop.f32.mrf.mxu1  ;;  %v6719_v43 = vpop.f32.mrf.mxu0  ;;  %v6308_v52 = vadd.f32 %v6180_v24, %v6034_v23  ;;  %v7092_v33 = vmax.f32 %v6964_v2, 0.0  ;;  %v6309_v45 = vadd.f32 %v13889_v61, %v6035_v47  ;;  %v6310_v13 = vadd.f32 %v14022_v20, %v6036_v3 }
 0x5fe   : > { %v7191_v32 = vpack.c.bf16 %v7093_v4, %v7091_v51  ;;  %v7094_v63 = vmax.f32 %v6966_v27, 0.0  ;;  %v6967_v22 = vadd.f32 %v13565_v12, %v6718_v55  ;;  %v6720_v38 = vadd.f32 %v6719_v43, %v6306_v49  ;;  %v15484_v4 = vld [vmem:[#allocation116_spill] sm:$0xff] }
 0x5ff   : > { %v5405_v58 = vpop.f32.mrf.mxu1  ;;  %v6721_v59 = vpop.f32.mrf.mxu0  ;;  %v6183_v0 = vmul.f32 %v11860_v6, %v15482_v21  ;;  %v5404_v56 = vadd.f32 %v5403_v8, %v13139_v26  ;;  %v6037_v46 = vadd.f32 %v5909_v16, %v13849_v18  ;;  %v6038_v34 = vadd.f32 %v5910_v14, %v13875_v17 }
 0x600   : > { %v5406_v39 = vadd.f32 %v5405_v58, %v13136_v7  ;;  %v6722_v28 = vadd.f32 %v6721_v59, %v6307_v40  ;;  %v7192_v11 = vpack.c.bf16 %v7094_v63, %v7092_v33  ;;  %v6968_v61 = vadd.f32 %v13559_v31, %v6720_v38  ;;  %v15485_v40 = vld [vmem:[#allocation115_spill] sm:$0xff]  ;;  %v15486_v63 = vld [vmem:[#allocation98_spill] sm:$0xff] }
 0x601   : > { %v5407_v54 = vpop.f32.mrf.mxu1  ;;  %v6723_v53 = vpop.f32.mrf.mxu0  ;;  %v6184_v60 = vmul.f32 %v11863_v25, %v15482_v21  ;;  %v7095_v42 = vmax.f32 %v6967_v22, 0.0  ;;  %v6311_v24 = vadd.f32 %v6183_v0, %v6037_v46  ;;  %v5911_v2 = vmul.f32 %v11857_v1, %v15483_v37  ;;  %v15487_v59 = vld [vmem:[#allocation119_spill] sm:$0xff] }
 0x602   : > { %v5408_v41 = vadd.f32 %v5407_v54, %v13139_v26  ;;  %v6969_v20 = vadd.f32 %v13565_v12, %v6722_v28  ;;  %v6724_v30 = vadd.f32 %v6723_v53, %v6308_v52  ;;  %7612 = vmatprep.mubr.bf16.mxu1 %v7192_v11  ;;  %v5561_v15 = vmax.f32 %v5406_v39, 0.0 }
 0x603   : > { %v5409_v10 = vpop.f32.mrf.mxu1  ;;  %v6727_v62 = vpop.f32.mrf.mxu0  ;;  %7613 = vmatmul.mubr.bf16.gmra.mxu1 %v7191_v32  ;;  %v5560_v47 = vmax.f32 %v5404_v56, 0.0  ;;  %v7096_v9 = vmax.f32 %v6968_v61, 0.0  ;;  %v5912_v57 = vmul.f32 %v10480_v35, %v15483_v37  ;;  %v5767_v27 = vmul.f32 %v15345_v19, %v15484_v4 }
 0x604   : > { %v5410_v5 = vadd.f32 %v5409_v10, %v13136_v7  ;;  %v5562_v29 = vmax.f32 %v5408_v41, 0.0  ;;  %v7097_v18 = vmax.f32 %v6969_v20, 0.0  ;;  %v6970_v17 = vadd.f32 %v13559_v31, %v6724_v30  ;;  %v15488_v41 = vld [vmem:[#allocation120_spill] sm:$0xff] }
 0x605   : > { %v6728_v8 = vadd.f32 %v6727_v62, %v6309_v45  ;;  %v6729_v49 = vpop.f32.mrf.mxu0  ;;  %v6312_v58 = vadd.f32 %v6184_v60, %v6038_v34  ;;  %v5766_v52 = vmul.f32 %v15346_v48, %v15485_v40  ;;  %v5765_v33 = vmul.f32 %v15345_v19, %v15485_v40 }
 0x606   : > { %v5563_v50 = vmax.f32 %v5410_v5, 0.0  ;;  %v7193_v44 = vpack.c.bf16 %v7097_v18, %v7095_v42  ;;  %v7098_v23 = vmax.f32 %v6970_v17, 0.0  ;;  %v6730_v3 = vadd.f32 %v6729_v49, %v6310_v13 }
 0x607   : > { %v5634_v55 = vpack.c.bf16 %v5562_v29, %v5560_v47  ;;  %v6731_v43 = vpop.f32.mrf.mxu0  ;;  %v6971_v36 = vadd.f32 %v13565_v12, %v6728_v8  ;;  %v6185_v45 = vmul.f32 %v11860_v6, %v15486_v63  ;;  %v6040_v22 = vadd.f32 %v5912_v57, %v5766_v52 }
 0x608   : > { %v5635_v51 = vpack.c.bf16 %v5563_v50, %v5561_v15  ;;  %v6732_v16 = vadd.f32 %v6731_v43, %v6311_v24  ;;  %v7194_v14 = vpack.c.bf16 %v7098_v23, %v7096_v9  ;;  %v6186_v38 = vmul.f32 %v11863_v25, %v15486_v63 }
 0x609   : > { %v6733_v32 = vpop.f32.mrf.mxu0  ;;  %v5913_v54 = vmul.f32 %v11857_v1, %v15487_v59  ;;  %v6972_v13 = vadd.f32 %v13559_v31, %v6730_v3  ;;  %v6039_v39 = vadd.f32 %v5911_v2, %v5765_v33  ;;  %v5768_v28 = vmul.f32 %v15346_v48, %v15484_v4 }
 0x60a   : > { %6835 = vmatprep.mubr.bf16.mxu0 %v5635_v51  ;;  %v6973_v21 = vadd.f32 %v13565_v12, %v6732_v16  ;;  %v6734_v0 = vadd.f32 %v6733_v32, %v6312_v58  ;;  %7622 = vmatprep.mubr.bf16.mxu1 %v7194_v14  ;;  %v6187_v11 = vmul.f32 %v11860_v6, %v15488_v41  ;;  %v7099_v61 = vmax.f32 %v6971_v36, 0.0 }
 0x60b   : > { %6836 = vmatmul.mubr.bf16.gmra.mxu0 %v5634_v55  ;;  %v5914_v56 = vmul.f32 %v10480_v35, %v15487_v59  ;;  %7623 = vmatmul.mubr.bf16.gmra.mxu1 %v7193_v44  ;;  %v6314_v34 = vadd.f32 %v6186_v38, %v6040_v22  ;;  %v6041_v20 = vadd.f32 %v5913_v54, %v5767_v27  ;;  %v7100_v5 = vmax.f32 %v6972_v13, 0.0  ;;  %v15489_v22 = vld [vmem:[#allocation122_spill] sm:$0xff] }
 0x60c   : > { %v7101_v53 = vmax.f32 %v6973_v21, 0.0  ;;  %v6974_v10 = vadd.f32 %v13559_v31, %v6734_v0  ;;  %v6188_v30 = vmul.f32 %v11863_v25, %v15488_v41  ;;  %v6313_v29 = vadd.f32 %v6185_v45, %v6039_v39  ;;  %v15490_v39 = vld [vmem:[#allocation121_spill] sm:$0xff]  ;;  %v15491_v41 = vld [vmem:[#allocation118_spill] sm:$0xff] }
 0x60d   : > { %v6737_v46 = vpop.f32.mrf.mxu0  ;;  %v6315_v2 = vadd.f32 %v6187_v11, %v6041_v20  ;;  %v6042_v15 = vadd.f32 %v5914_v56, %v5768_v28  ;;  %v5916_v38 = vmul.f32 %v10480_v35, %v15489_v22  ;;  %v5915_v13 = vmul.f32 %v11857_v1, %v15489_v22 }
 0x60e   : > { %v7195_v60 = vpack.c.bf16 %v7101_v53, %v7099_v61  ;;  %v7102_v42 = vmax.f32 %v6974_v10, 0.0  ;;  %v6738_v18 = vadd.f32 %v6737_v46, %v6313_v29  ;;  %v5770_v28 = vmul.f32 %v15346_v48, %v15490_v39  ;;  %v15492_v53 = vld [vmem:[#allocation100_spill] sm:$0xff]  ;;  %v15493_v46 = vld [vmem:[#allocation123_spill] sm:$0xff] }
 0x60f   : > { %v6739_v62 = vpop.f32.mrf.mxu0  ;;  %v6316_v8 = vadd.f32 %v6188_v30, %v6042_v15  ;;  %v5771_v11 = vmul.f32 %v15345_v19, %v15491_v41  ;;  %v5769_v56 = vmul.f32 %v15345_v19, %v15490_v39  ;;  %v6190_v10 = vmul.f32 %v11863_v25, %v15492_v53 }
 0x610   : > { %v5413_v24 = vpop.f32.mrf.mxu1  ;;  %v6740_v37 = vadd.f32 %v6739_v62, %v6314_v34  ;;  %v7196_v47 = vpack.c.bf16 %v7102_v42, %v7100_v5  ;;  %v6975_v27 = vadd.f32 %v13565_v12, %v6738_v18  ;;  %v6044_v61 = vadd.f32 %v5916_v38, %v5770_v28 }
 0x611   : > { %v6741_v17 = vpop.f32.mrf.mxu0  ;;  %v5414_v55 = vadd.f32 %v5413_v24, %v13139_v26  ;;  %v5917_v34 = vmul.f32 %v11857_v1, %v15493_v46  ;;  %v6043_v20 = vadd.f32 %v5915_v13, %v5769_v56  ;;  %v6189_v30 = vmul.f32 %v11860_v6, %v15492_v53  ;;  %v15497_v56 = vld [vmem:[#allocation127_spill] sm:$0xff] }
 0x612   : > { %v5415_v50 = vpop.f32.mrf.mxu1  ;;  %v6742_v9 = vadd.f32 %v6741_v17, %v6315_v2  ;;  %v6976_v49 = vadd.f32 %v13559_v31, %v6740_v37  ;;  %7632 = vmatprep.mubr.bf16.mxu1 %v7196_v47  ;;  %v7103_v63 = vmax.f32 %v6975_v27, 0.0  ;;  %v5772_v5 = vmul.f32 %v15346_v48, %v15491_v41 }
 0x613   : > { %v6743_v57 = vpop.f32.mrf.mxu0  ;;  %v5416_v3 = vadd.f32 %v5415_v50, %v13136_v7  ;;  %7633 = vmatmul.mubr.bf16.gmra.mxu1 %v7195_v60  ;;  %v5564_v45 = vmax.f32 %v5414_v55, 0.0  ;;  %v15494_v60 = vld [vmem:[#allocation124_spill] sm:$0xff]  ;;  %v5918_v29 = vmul.f32 %v10480_v35, %v15493_v46  ;;  %v6318_v24 = vadd.f32 %v6190_v10, %v6044_v61 }
 0x614   : > { %v5417_v44 = vpop.f32.mrf.mxu1  ;;  %v6977_v23 = vadd.f32 %v13565_v12, %v6742_v9  ;;  %v6744_v51 = vadd.f32 %v6743_v57, %v6316_v8  ;;  %v7104_v16 = vmax.f32 %v6976_v49, 0.0  ;;  %v6191_v42 = vmul.f32 %v11860_v6, %v15494_v60 }
 0x615   : > { %v5418_v4 = vadd.f32 %v5417_v44, %v13139_v26  ;;  %v5565_v14 = vmax.f32 %v5416_v3, 0.0  ;;  %v6045_v37 = vadd.f32 %v5917_v34, %v5771_v11  ;;  %v6192_v2 = vmul.f32 %v11863_v25, %v15494_v60 }
 0x616   : > { %v5419_v43 = vpop.f32.mrf.mxu1  ;;  %v6978_v58 = vadd.f32 %v13559_v31, %v6744_v51  ;;  %v7105_v52 = vmax.f32 %v6977_v23, 0.0  ;;  %v6317_v15 = vadd.f32 %v6189_v30, %v6043_v20  ;;  %v6046_v9 = vadd.f32 %v5918_v29, %v5772_v5 }
 0x617   : > { %v5420_v40 = vadd.f32 %v5419_v43, %v13136_v7  ;;  %v5566_v36 = vmax.f32 %v5418_v4, 0.0  ;;  %v6319_v47 = vadd.f32 %v6191_v42, %v6045_v37  ;;  %v6193_v61 = vmul.f32 %v11860_v6, %v15497_v56 }
 0x618   : > { %v7106_v33 = vmax.f32 %v6978_v58, 0.0  ;;  %v7197_v21 = vpack.c.bf16 %v7105_v52, %v7103_v63  ;;  %v6320_v23 = vadd.f32 %v6192_v2, %v6046_v9  ;;  %v15495_v63 = vld [vmem:[#allocation126_spill] sm:$0xff]  ;;  %v15499_v9 = vld [vmem:[#allocation131_spill] sm:$0xff] }
 0x619   : > { %v5567_v32 = vmax.f32 %v5420_v40, 0.0  ;;  %v5636_v0 = vpack.c.bf16 %v5566_v36, %v5564_v45  ;;  %v5919_v45 = vmul.f32 %v11857_v1, %v15495_v63  ;;  %v5920_v28 = vmul.f32 %v10480_v35, %v15495_v63  ;;  %v15500_v63 = vld [vmem:[#allocation132_spill] sm:$0xff] }
 0x61a   : > { %v7198_v59 = vpack.c.bf16 %v7106_v33, %v7104_v16 }
 0x61b   : > { %v5637_v54 = vpack.c.bf16 %v5567_v32, %v5565_v14 }
 0x61c   : > { %7642 = vmatprep.mubr.bf16.mxu1 %v7198_v59 }
 0x61d   : > { %6845 = vmatprep.mubr.bf16.mxu0 %v5637_v54  ;;  %7643 = vmatmul.mubr.bf16.gmra.mxu1 %v7197_v21 }
 0x61e   : > { %6846 = vmatmul.mubr.bf16.gmra.mxu0 %v5636_v0  ;;  %v15496_v0 = vld [vmem:[#allocation125_spill] sm:$0xff] }
 0x61f   : > { %v5773_v39 = vmul.f32 %v15345_v19, %v15496_v0  ;;  %v5774_v46 = vmul.f32 %v15346_v48, %v15496_v0  ;;  %v6194_v19 = vmul.f32 %v11863_v25, %v15497_v56  ;;  %v15498_v48 = vld [vmem:[#allocation130_spill] sm:$0xff] }
 0x620   : > { %v6747_v62 = vpop.f32.mrf.mxu0 }
 0x621   : > { %v6748_v8 = vadd.f32 %v6747_v62, %v6317_v15  ;;  %v6047_v1 = vadd.f32 %v5919_v45, %v5773_v39  ;;  %v6048_v34 = vadd.f32 %v5920_v28, %v5774_v46  ;;  %v15502_v28 = vld [vmem:[#allocation134_spill] sm:$0xff]  ;;  %v15503_v46 = vld [vmem:[#allocation135_spill] sm:$0xff] }
 0x622   : > { %v6749_v18 = vpop.f32.mrf.mxu0 }
 0x623   : > { %v5423_v17 = vpop.f32.mrf.mxu1  ;;  %v6750_v50 = vadd.f32 %v6749_v18, %v6318_v24  ;;  %v6979_v40 = vadd.f32 %v13565_v12, %v6748_v8  ;;  %v6321_v35 = vadd.f32 %v6193_v61, %v6047_v1  ;;  %v6322_v5 = vadd.f32 %v6194_v19, %v6048_v34 }
 0x624   : > { %v6751_v49 = vpop.f32.mrf.mxu0  ;;  %v5424_v52 = vadd.f32 %v5423_v17, %v13139_v26 }
 0x625   : > { %v5425_v57 = vpop.f32.mrf.mxu1  ;;  %v6752_v44 = vadd.f32 %v6751_v49, %v6319_v47  ;;  %v6980_v3 = vadd.f32 %v13559_v31, %v6750_v50  ;;  %v7107_v13 = vmax.f32 %v6979_v40, 0.0 }
 0x626   : > { %v6753_v51 = vpop.f32.mrf.mxu0  ;;  %v5426_v55 = vadd.f32 %v5425_v57, %v13136_v7  ;;  %v5568_v21 = vmax.f32 %v5424_v52, 0.0 }
 0x627   : > { %v5427_v4 = vpop.f32.mrf.mxu1  ;;  %v6981_v27 = vadd.f32 %v13565_v12, %v6752_v44  ;;  %v6754_v43 = vadd.f32 %v6753_v51, %v6320_v23  ;;  %v7108_v22 = vmax.f32 %v6980_v3, 0.0 }
 0x628   : > { %v5428_v58 = vadd.f32 %v5427_v4, %v13139_v26  ;;  %v5569_v38 = vmax.f32 %v5426_v55, 0.0 }
 0x629   : > { %v5429_v36 = vpop.f32.mrf.mxu1  ;;  %v6982_v16 = vadd.f32 %v13559_v31, %v6754_v43  ;;  %v7109_v33 = vmax.f32 %v6981_v27, 0.0 }
 0x62a   : > { %v5430_v14 = vadd.f32 %v5429_v36, %v13136_v7  ;;  %v5570_v32 = vmax.f32 %v5428_v58, 0.0 }
 0x62b   : > { %v7110_v59 = vmax.f32 %v6982_v16, 0.0  ;;  %v7199_v53 = vpack.c.bf16 %v7109_v33, %v7107_v13  ;;  %v7259_v13 = vld [vmem:[%s14857_s15] sm:$0x3] }
 0x62c   : > { %v5571_v54 = vmax.f32 %v5430_v14, 0.0  ;;  %v5638_v10 = vpack.c.bf16 %v5570_v32, %v5568_v21 }
 0x62d   : > { %v7200_v41 = vpack.c.bf16 %v7110_v59, %v7108_v22  ;;  %v15501_v59 = vld [vmem:[#allocation133_spill] sm:$0xff] }
 0x62e   : > { %v5639_v11 = vpack.c.bf16 %v5571_v54, %v5569_v38 }
 0x62f   : > { %7652 = vmatprep.mubr.bf16.mxu1 %v7200_v41 }
 0x630   : > { %6855 = vmatprep.mubr.bf16.mxu0 %v5639_v11  ;;  %7653 = vmatmul.mubr.bf16.gmra.mxu1 %v7199_v53  ;;  %v7260_v53 = vunpack.c.l.bf16 %v7259_v13  ;;  %v15509_v13 = vld [vmem:[#allocation138_spill] sm:$0xff] }
 0x631   : > { %6856 = vmatmul.mubr.bf16.gmra.mxu0 %v5638_v10 }
 0x633   : > { %v6757_v20 = vpop.f32.mrf.mxu0 }
 0x634   : > { %v6758_v30 = vadd.f32 %v6757_v20, %v6321_v35 }
 0x635   : > { %v6759_v60 = vpop.f32.mrf.mxu0 }
 0x636   : > { %v5433_v42 = vpop.f32.mrf.mxu1  ;;  %v6760_v29 = vadd.f32 %v6759_v60, %v6322_v5  ;;  %v6983_v37 = vadd.f32 %v13565_v12, %v6758_v30 }
 0x637   : > { %v6761_v62 = vpop.f32.mrf.mxu0  ;;  %v5434_v57 = vadd.f32 %v5433_v42, %v13139_v26 }
 0x638   : > { %v5435_v24 = vpop.f32.mrf.mxu1  ;;  %v6762_v2 = vadd.f32 %v6761_v62, %v15498_v48  ;;  %v6984_v15 = vadd.f32 %v13559_v31, %v6760_v29  ;;  %v7111_v23 = vmax.f32 %v6983_v37, 0.0  ;;  %v15505_v48 = vld [vmem:[#allocation19_spill] sm:$0xff] }
 0x639   : > { %v6763_v18 = vpop.f32.mrf.mxu0  ;;  %v5436_v47 = vadd.f32 %v5435_v24, %v13136_v7  ;;  %v5572_v36 = vmax.f32 %v5434_v57, 0.0  ;;  %v15504_v24 = vld [vmem:[#allocation20_spill] sm:$0xff] }
 0x63a   : > { %v5437_v17 = vpop.f32.mrf.mxu1  ;;  %v6985_v50 = vadd.f32 %v13565_v12, %v6762_v2  ;;  %v6764_v8 = vadd.f32 %v6763_v18, %v15499_v9  ;;  %v7112_v27 = vmax.f32 %v6984_v15, 0.0  ;;  %v7265_v37 = vrot.slane %v7260_v53, %v15504_v24  ;;  %v10059_v15 = vld [vmem:[%s14860_s18 + $0x38] sm:$0xff]  }
 0x63b   : > { %v5438_v49 = vadd.f32 %v5437_v17, %v13139_v26  ;;  %v5573_v58 = vmax.f32 %v5436_v47, 0.0  ;;  %v7269_v2 = vrot.slane %v7260_v53, %v15505_v48  ;;  %8878 = vmatpush1.bf16.msra.mxu1 %v10059_v15  ;;  %v15510_v53 = vld [vmem:[#allocation139_spill] sm:$0xff] }
 0x63c   : > { %v5439_v44 = vpop.f32.mrf.mxu1  ;;  %v7113_v3 = vmax.f32 %v6985_v50, 0.0  ;;  %v6986_v51 = vadd.f32 %v13559_v31, %v6764_v8 }
 0x63d   : > { %v5440_v4 = vadd.f32 %v5439_v44, %v13136_v7  ;;  %v5574_v55 = vmax.f32 %v5438_v49, 0.0  ;;  %v14211_v44 = vrot.slane %v7269_v2, %v15504_v24 }
 0x63e   : > { %v7201_v43 = vpack.c.bf16 %v7113_v3, %v7111_v23  ;;  %v7114_v40 = vmax.f32 %v6986_v51, 0.0  ;;  %v14214_v23 = vrot.slane %v7265_v37, %v15504_v24 }
 0x63f   : > { %v5575_v52 = vmax.f32 %v5440_v4, 0.0  ;;  %v5640_v33 = vpack.c.bf16 %v5574_v55, %v5572_v36 }
 0x640   : > { %v7202_v16 = vpack.c.bf16 %v7114_v40, %v7112_v27 }
 0x641   : > { %v5641_v14 = vpack.c.bf16 %v5575_v52, %v5573_v58  ;;  %v15507_v58 = vld [vmem:[#allocation136_spill] sm:$0xff] }
 0x642   : > { %7662 = vmatprep.mubr.bf16.mxu1 %v7202_v16 }
 0x643   : > { %6865 = vmatprep.mubr.bf16.mxu0 %v5641_v14  ;;  %7663 = vmatmul.mubr.bf16.gmra.mxu1 %v7201_v43 }
 0x644   : > { %6866 = vmatmul.mubr.bf16.gmra.mxu0 %v5640_v33  ;;  %v15508_v33 = vld [vmem:[#allocation137_spill] sm:$0xff] }
 0x646   : > { %v6767_v32 = vpop.f32.mrf.mxu0 }
 0x647   : > { %v6768_v45 = vadd.f32 %v6767_v32, %v15500_v63 }
 0x648   : > { %v6769_v22 = vpop.f32.mrf.mxu0 }
 0x649   : > { %v5443_v38 = vpop.f32.mrf.mxu1  ;;  %v6770_v54 = vadd.f32 %v6769_v22, %v15501_v59  ;;  %v6987_v39 = vadd.f32 %v13565_v12, %v6768_v45 }
 0x64a   : > { %v6771_v21 = vpop.f32.mrf.mxu0  ;;  %v5444_v35 = vadd.f32 %v5443_v38, %v13139_v26 }
 0x64b   : > { %v5445_v0 = vpop.f32.mrf.mxu1  ;;  %v6772_v41 = vadd.f32 %v6771_v21, %v15502_v28  ;;  %v6988_v11 = vadd.f32 %v13559_v31, %v6770_v54  ;;  %v7115_v30 = vmax.f32 %v6987_v39, 0.0 }
 0x64c   : > { %v6773_v56 = vpop.f32.mrf.mxu0  ;;  %v5446_v1 = vadd.f32 %v5445_v0, %v13136_v7  ;;  %v5576_v47 = vmax.f32 %v5444_v35, 0.0 }
 0x64d   : > { %v5447_v61 = vpop.f32.mrf.mxu1  ;;  %v6989_v10 = vadd.f32 %v13565_v12, %v6772_v41  ;;  %v6774_v34 = vadd.f32 %v6773_v56, %v15503_v46  ;;  %v7116_v29 = vmax.f32 %v6988_v11, 0.0  ;;  %v10060_v41 = vld [vmem:[%s14860_s18 + $0x30] sm:$0xff]  }
 0x64e   : > { %v5448_v19 = vadd.f32 %v5447_v61, %v13139_v26  ;;  %v5577_v17 = vmax.f32 %v5446_v1, 0.0 }
 0x64f   : > { %v5449_v20 = vpop.f32.mrf.mxu1  ;;  %v7117_v5 = vmax.f32 %v6989_v10, 0.0  ;;  %v6990_v60 = vadd.f32 %v13559_v31, %v6774_v34 }
 0x650   : > { %v5450_v42 = vadd.f32 %v5449_v20, %v13136_v7  ;;  %v5578_v62 = vmax.f32 %v5448_v19, 0.0  ;;  %v15506_v7 = vmov 0  }
 0x651   : > { %v7203_v18 = vpack.c.bf16 %v7117_v5, %v7115_v30  ;;  %v7118_v26 = vmax.f32 %v6990_v60, 0.0  ;;  %8879 = vmatprep.subr.bf16.mxu1 %v15506_v7 }
 0x652   : > { %v5579_v50 = vmax.f32 %v5450_v42, 0.0  ;;  %v5642_v57 = vpack.c.bf16 %v5578_v62, %v5576_v47  ;;  %8880 = vmatpush1.bf16.msra.mxu1 %v10060_v41 }
 0x653   : > { %v7474_v9 = vpop.f32.mrf.mxu1  ;;  %v7204_v8 = vpack.c.bf16 %v7118_v26, %v7116_v29  ;;  %8881 = vmatprep.subr.bf16.mxu1 %v15506_v7 }
 0x654   : > { %v5643_v49 = vpack.c.bf16 %v5579_v50, %v5577_v17  ;;  %v7475_v43 = vadd.f32 %v7474_v9, %v14214_v23 }
 0x655   : > { %v7476_v3 = vpop.f32.mrf.mxu1  ;;  %7672 = vmatprep.mubr.bf16.mxu1 %v7204_v8 }
 0x656   : > { %6875 = vmatprep.mubr.bf16.mxu0 %v5643_v49  ;;  %7673 = vmatmul.mubr.bf16.gmra.mxu1 %v7203_v18  ;;  %v7477_v4 = vadd.f32 %v7476_v3, %v14211_v44  ;;  %v7793_v59 = vmax.f32 %v7475_v43, 0.0 }
 0x657   : > { %6876 = vmatmul.mubr.bf16.gmra.mxu0 %v5642_v57  ;;  %v7478_v51 = vpop.f32.mrf.mxu1 }
 0x658   : > { %v7479_v27 = vadd.f32 %v7478_v51, %v14214_v23  ;;  %v7794_v45 = vmax.f32 %v7477_v4, 0.0 }
 0x659   : > { %v6777_v55 = vpop.f32.mrf.mxu0  ;;  %v7480_v52 = vpop.f32.mrf.mxu1 }
 0x65a   : > { %v6778_v40 = vadd.f32 %v6777_v55, %v15507_v58  ;;  %v7481_v36 = vadd.f32 %v7480_v52, %v14211_v44  ;;  %v7795_v14 = vmax.f32 %v7479_v27, 0.0  ;;  %v10061_v52 = vld [vmem:[%s14860_s18 + $0x28] sm:$0xff]  }
 0x65b   : > { %v6779_v16 = vpop.f32.mrf.mxu0  ;;  %v7484_v63 = vpop.f32.mrf.mxu1  ;;  %8882 = vmatpush1.bf16.msra.mxu1 %v10061_v52 }
 0x65c   : > { %v6780_v32 = vadd.f32 %v6779_v16, %v15508_v33  ;;  %v7796_v22 = vmax.f32 %v7481_v36, 0.0  ;;  %v6991_v54 = vadd.f32 %v13565_v12, %v6778_v40  ;;  %v7921_v11 = vpack.c.bf16 %v7795_v14, %v7793_v59  ;;  %v15511_v16 = vld [vmem:[#allocation140_spill] sm:$0xff]  ;;  %8883 = vmatprep.subr.bf16.mxu1 %v15506_v7 }
 0x65d   : > { %v6781_v38 = vpop.f32.mrf.mxu0  ;;  %v7486_v0 = vpop.f32.mrf.mxu1  ;;  %v7485_v35 = vadd.f32 %v7484_v63, %v14214_v23 }
 0x65e   : > { %v6782_v21 = vadd.f32 %v6781_v38, %v15509_v13  ;;  %v7922_v28 = vpack.c.bf16 %v7796_v22, %v7794_v45  ;;  %v6992_v56 = vadd.f32 %v13559_v31, %v6780_v32  ;;  %v7487_v46 = vadd.f32 %v7486_v0, %v14211_v44  ;;  %v15512_v22 = vld [vmem:[#allocation141_spill] sm:$0xff] }
 0x65f   : > { %v6783_v39 = vpop.f32.mrf.mxu0  ;;  %v7488_v1 = vpop.f32.mrf.mxu1  ;;  %v7119_v19 = vmax.f32 %v6991_v54, 0.0  ;;  %v7797_v17 = vmax.f32 %v7485_v35, 0.0 }
 0x660   : > { %v6993_v61 = vadd.f32 %v13565_v12, %v6782_v21  ;;  %v6784_v10 = vadd.f32 %v6783_v39, %v15510_v53  ;;  %v7489_v34 = vadd.f32 %v7488_v1, %v14214_v23  ;;  %8230 = vmatprep.mubr.bf16.mxu0 %v7922_v28  ;;  %v7120_v42 = vmax.f32 %v6992_v56, 0.0  ;;  %v15513_v28 = vld [vmem:[#allocation142_spill] sm:$0xff] }
 0x661   : > { %v7490_v5 = vpop.f32.mrf.mxu1  ;;  %8231 = vmatmul.mubr.bf16.vlgmr.msra.gmra.mxu0 %v7921_v11  ;;  %v7798_v15 = vmax.f32 %v7487_v46, 0.0  ;;  %v15514_v46 = vld [vmem:[#allocation143_spill] sm:$0xff] }
 0x662   : > { %v7121_v20 = vmax.f32 %v6993_v61, 0.0  ;;  %v6994_v30 = vadd.f32 %v13559_v31, %v6784_v10  ;;  %v7491_v60 = vadd.f32 %v7490_v5, %v14211_v44  ;;  %v7799_v37 = vmax.f32 %v7489_v34, 0.0 }
 0x663   : > { %v7494_v2 = vpop.f32.mrf.mxu1 }
 0x664   : > { %v7205_v29 = vpack.c.bf16 %v7121_v20, %v7119_v19  ;;  %v7122_v62 = vmax.f32 %v6994_v30, 0.0  ;;  %v7800_v18 = vmax.f32 %v7491_v60, 0.0  ;;  %v7923_v9 = vpack.c.bf16 %v7799_v37, %v7797_v17 }
 0x665   : > { %v7496_v26 = vpop.f32.mrf.mxu1  ;;  %v7495_v3 = vadd.f32 %v7494_v2, %v14214_v23 }
 0x666   : > { %v7206_v50 = vpack.c.bf16 %v7122_v62, %v7120_v42  ;;  %v7924_v47 = vpack.c.bf16 %v7800_v18, %v7798_v15  ;;  %v7497_v49 = vadd.f32 %v7496_v26, %v14211_v44 }
 0x667   : > { %v7498_v8 = vpop.f32.mrf.mxu1  ;;  %v7801_v36 = vmax.f32 %v7495_v3, 0.0 }
 0x668   : > { %7682 = vmatprep.mubr.bf16.mxu1 %v7206_v50  ;;  %v7499_v57 = vadd.f32 %v7498_v8, %v14214_v23  ;;  %8240 = vmatprep.mubr.bf16.mxu0 %v7924_v47  ;;  %v7802_v43 = vmax.f32 %v7497_v49, 0.0 }
 0x669   : > { %7683 = vmatmul.mubr.bf16.gmra.mxu1 %v7205_v29  ;;  %v7500_v51 = vpop.f32.mrf.mxu1  ;;  %8241 = vmatmul.mubr.bf16.gmra.mxu0 %v7923_v9 }
 0x66a   : > { %v7501_v4 = vadd.f32 %v7500_v51, %v14211_v44  ;;  %v7803_v27 = vmax.f32 %v7499_v57, 0.0 }
 0x66b   : > { %v7504_v55 = vpop.f32.mrf.mxu1 }
 0x66c   : > { %v7804_v58 = vmax.f32 %v7501_v4, 0.0  ;;  %v6787_v40 = vpop.f32.mrf.mxu0  ;;  %v7925_v45 = vpack.c.bf16 %v7803_v27, %v7801_v36  ;;  %v7505_v0 = vadd.f32 %v7504_v55, %v14214_v23  ;;  %v10062_v27 = vld [vmem:[%s14860_s18 + $0x20] sm:$0xff]   ;;  %v15515_v36 = vld [vmem:[#allocation144_spill] sm:$0xff] }
 0x66d   : > { %v6788_v14 = vadd.f32 %v6787_v40, %v15511_v16  ;;  %v7506_v33 = vpop.f32.mrf.mxu1  ;;  %8884 = vmatpush1.bf16.msra.mxu1 %v10062_v27 }
 0x66e   : > { %v6789_v32 = vpop.f32.mrf.mxu0  ;;  %v7926_v63 = vpack.c.bf16 %v7804_v58, %v7802_v43  ;;  %v7507_v54 = vadd.f32 %v7506_v33, %v14211_v44  ;;  %v7805_v30 = vmax.f32 %v7505_v0, 0.0  ;;  %8885 = vmatprep.subr.bf16.mxu1 %v15506_v7  ;;  %v10063_v33 = vld [vmem:[%s14860_s18 + $0x18] sm:$0xff]  }
 0x66f   : > { %v6790_v38 = vadd.f32 %v6789_v32, %v15512_v22  ;;  %v7508_v59 = vpop.f32.mrf.mxu1  ;;  %v6995_v39 = vadd.f32 %v13565_v12, %v6788_v14 }
 0x670   : > { %v7509_v13 = vadd.f32 %v7508_v59, %v14214_v23  ;;  %v6791_v21 = vpop.f32.mrf.mxu0  ;;  %8250 = vmatprep.mubr.bf16.mxu0 %v7926_v63  ;;  %v7806_v35 = vmax.f32 %v7507_v54, 0.0 }
 0x671   : > { %v6792_v41 = vadd.f32 %v6791_v21, %v15513_v28  ;;  %v7510_v11 = vpop.f32.mrf.mxu1  ;;  %8251 = vmatmul.mubr.bf16.gmra.mxu0 %v7925_v45  ;;  %v6996_v53 = vadd.f32 %v13559_v31, %v6790_v38  ;;  %v7123_v5 = vmax.f32 %v6995_v39, 0.0  ;;  %v15516_v38 = vld [vmem:[#allocation145_spill] sm:$0xff]  ;;  %8886 = vmatpush1.bf16.msra.mxu1 %v10063_v33  ;;  %v15517_v28 = vld [vmem:[#allocation147_spill] sm:$0xff] }
 0x672   : > { %v7511_v56 = vadd.f32 %v7510_v11, %v14211_v44  ;;  %v6793_v61 = vpop.f32.mrf.mxu0  ;;  %v7807_v10 = vmax.f32 %v7509_v13, 0.0  ;;  %8887 = vmatprep.subr.bf16.mxu1 %v15506_v7 }
 0x673   : > { %v6997_v1 = vadd.f32 %v13565_v12, %v6792_v41  ;;  %v6794_v34 = vadd.f32 %v6793_v61, %v15514_v46  ;;  %v7514_v19 = vpop.f32.mrf.mxu1  ;;  %v7124_v37 = vmax.f32 %v6996_v53, 0.0 }
 0x674   : > { %v7808_v20 = vmax.f32 %v7511_v56, 0.0  ;;  %v7927_v2 = vpack.c.bf16 %v7807_v10, %v7805_v30  ;;  %v7515_v47 = vadd.f32 %v7514_v19, %v14214_v23 }
 0x675   : > { %v7125_v60 = vmax.f32 %v6997_v1, 0.0  ;;  %v6998_v42 = vadd.f32 %v13559_v31, %v6794_v34  ;;  %v7516_v29 = vpop.f32.mrf.mxu1  ;;  %v15518_v34 = vld [vmem:[#allocation148_spill] sm:$0xff] }
 0x676   : > { %v7928_v62 = vpack.c.bf16 %v7808_v20, %v7806_v35  ;;  %v7517_v26 = vadd.f32 %v7516_v29, %v14211_v44  ;;  %v7809_v55 = vmax.f32 %v7515_v47, 0.0 }
 0x677   : > { %v7207_v15 = vpack.c.bf16 %v7125_v60, %v7123_v5  ;;  %v7126_v18 = vmax.f32 %v6998_v42, 0.0  ;;  %v7518_v17 = vpop.f32.mrf.mxu1 }
 0x678   : > { %v7519_v50 = vadd.f32 %v7518_v17, %v14214_v23  ;;  %8260 = vmatprep.mubr.bf16.mxu0 %v7928_v62  ;;  %v7810_v51 = vmax.f32 %v7517_v26, 0.0 }
 0x679   : > { %v7520_v9 = vpop.f32.mrf.mxu1  ;;  %8261 = vmatmul.mubr.bf16.gmra.mxu0 %v7927_v2  ;;  %v7208_v8 = vpack.c.bf16 %v7126_v18, %v7124_v37  ;;  %v10064_v2 = vld [vmem:[%s14860_s18 + $0x10] sm:$0xff]  }
 0x67a   : > { %v7521_v49 = vadd.f32 %v7520_v9, %v14211_v44  ;;  %v7811_v57 = vmax.f32 %v7519_v50, 0.0  ;;  %8888 = vmatpush1.bf16.msra.mxu1 %v10064_v2 }
 0x67b   : > { %v7524_v3 = vpop.f32.mrf.mxu1  ;;  %7692 = vmatprep.mubr.bf16.mxu1 %v7208_v8  ;;  %8889 = vmatprep.subr.bf16.mxu1 %v15506_v7 }
 0x67c   : > { %v7812_v4 = vmax.f32 %v7521_v49, 0.0  ;;  %7693 = vmatmul.mubr.bf16.gmra.mxu1 %v7207_v15  ;;  %v7929_v52 = vpack.c.bf16 %v7811_v57, %v7809_v55  ;;  %v7525_v22 = vadd.f32 %v7524_v3, %v14214_v23 }
 0x67d   : > { %v7526_v43 = vpop.f32.mrf.mxu1 }
 0x67e   : > { %v7930_v40 = vpack.c.bf16 %v7812_v4, %v7810_v51  ;;  %v7527_v32 = vadd.f32 %v7526_v43, %v14211_v44  ;;  %v7813_v10 = vmax.f32 %v7525_v22, 0.0  ;;  %v10065_v43 = vld [vmem:[%s14860_s18 + $0x8] sm:$0xff]  }
 0x67f   : > { %v6797_v58 = vpop.f32.mrf.mxu0  ;;  %v7528_v14 = vpop.f32.mrf.mxu1  ;;  %8890 = vmatpush1.bf16.msra.mxu1 %v10065_v43 }
 0x680   : > { %v6798_v16 = vadd.f32 %v6797_v58, %v15515_v36  ;;  %v7529_v63 = vadd.f32 %v7528_v14, %v14214_v23  ;;  %8270 = vmatprep.mubr.bf16.mxu0 %v7930_v40  ;;  %v7814_v56 = vmax.f32 %v7527_v32, 0.0  ;;  %v15519_v32 = vld [vmem:[#allocation149_spill] sm:$0xff]  ;;  %8891 = vmatprep.subr.bf16.mxu1 %v15506_v7 }
 0x681   : > { %v6799_v45 = vpop.f32.mrf.mxu0  ;;  %v7530_v54 = vpop.f32.mrf.mxu1  ;;  %8271 = vmatmul.mubr.bf16.gmra.mxu0 %v7929_v52 }
 0x682   : > { %v6800_v59 = vadd.f32 %v6799_v45, %v15516_v38  ;;  %v7531_v13 = vadd.f32 %v7530_v54, %v14211_v44  ;;  %v6999_v0 = vadd.f32 %v13565_v12, %v6798_v16  ;;  %v7815_v39 = vmax.f32 %v7529_v63, 0.0  ;;  %v10066_v16 = vld [vmem:[%s14860_s18] sm:$0xff]   ;;  %v15520_v54 = vld [vmem:[#allocation150_spill] sm:$0xff] }
 0x683   : > { %v6801_v21 = vpop.f32.mrf.mxu0  ;;  %v7534_v11 = vpop.f32.mrf.mxu1  ;;  %8892 = vmatpush1.bf16.msra.mxu1 %v10066_v16 }
 0x684   : > { %v6802_v41 = vadd.f32 %v6801_v21, %v15517_v28  ;;  %v7816_v61 = vmax.f32 %v7531_v13, 0.0  ;;  %v7000_v1 = vadd.f32 %v13559_v31, %v6800_v59  ;;  %v7127_v30 = vmax.f32 %v6999_v0, 0.0  ;;  %v10067_v28 = vld [vmem:[%s14860_s18 + $0x78] sm:$0xff]   ;;  %8893 = vmatprep.subr.bf16.mxu1 %v15506_v7 }
 0x685   : > { %v6803_v53 = vpop.f32.mrf.mxu0  ;;  %v7536_v35 = vpop.f32.mrf.mxu1  ;;  %v7931_v5 = vpack.c.bf16 %v7815_v39, %v7813_v10  ;;  %v7535_v17 = vadd.f32 %v7534_v11, %v14214_v23 }
 0x686   : > { %v7001_v46 = vadd.f32 %v13565_v12, %v6802_v41  ;;  %v6804_v19 = vadd.f32 %v6803_v53, %v15518_v34  ;;  %v7932_v20 = vpack.c.bf16 %v7816_v61, %v7814_v56  ;;  %v7537_v62 = vadd.f32 %v7536_v35, %v14211_v44  ;;  %v15521_v61 = vld [vmem:[#allocation151_spill] sm:$0xff] }
 0x687   : > { %v7538_v29 = vpop.f32.mrf.mxu1  ;;  %v7128_v15 = vmax.f32 %v7000_v1, 0.0  ;;  %v7817_v51 = vmax.f32 %v7535_v17, 0.0  ;;  %8894 = vmatpush2.bf16.msra.mxu1 %v10067_v28 }
 0x688   : > { %v7129_v60 = vmax.f32 %v7001_v46, 0.0  ;;  %v7002_v42 = vadd.f32 %v13559_v31, %v6804_v19  ;;  %v7539_v37 = vadd.f32 %v7538_v29, %v14214_v23  ;;  %8280 = vmatprep.mubr.bf16.mxu0 %v7932_v20  ;;  %v7818_v49 = vmax.f32 %v7537_v62, 0.0  ;;  %v15522_v20 = vld [vmem:[#allocation152_spill] sm:$0xff]  ;;  %8895 = vmatprep.subr.bf16.mxu1 %v15506_v7 }
 0x689   : > { %v7540_v50 = vpop.f32.mrf.mxu1  ;;  %8281 = vmatmul.mubr.bf16.gmra.mxu0 %v7931_v5 }
 0x68a   : > { %v7209_v18 = vpack.c.bf16 %v7129_v60, %v7127_v30  ;;  %v7130_v26 = vmax.f32 %v7002_v42, 0.0  ;;  %v7541_v47 = vadd.f32 %v7540_v50, %v14211_v44  ;;  %v7819_v9 = vmax.f32 %v7539_v37, 0.0  ;;  %v10068_v42 = vld [vmem:[%s14860_s18 + $0x70] sm:$0xff]  }
 0x68b   : > { %v7544_v3 = vpop.f32.mrf.mxu1  ;;  %8896 = vmatpush2.bf16.msra.mxu1 %v10068_v42  ;;  %v15526_v42 = vld [vmem:[#allocation156_spill] sm:$0xff] }
 0x68c   : > { %v7210_v8 = vpack.c.bf16 %v7130_v26, %v7128_v15  ;;  %v7820_v57 = vmax.f32 %v7541_v47, 0.0  ;;  %v7933_v55 = vpack.c.bf16 %v7819_v9, %v7817_v51  ;;  %v7545_v14 = vadd.f32 %v7544_v3, %v14214_v23  ;;  %8897 = vmatprep.subr.bf16.mxu1 %v15506_v7  ;;  %v10069_v51 = vld [vmem:[%s14860_s18 + $0x68] sm:$0xff]  }
 0x68d   : > { %v7546_v4 = vpop.f32.mrf.mxu1 }
 0x68e   : > { %7702 = vmatprep.mubr.bf16.mxu1 %v7210_v8  ;;  %v7934_v27 = vpack.c.bf16 %v7820_v57, %v7818_v49  ;;  %v7547_v40 = vadd.f32 %v7546_v4, %v14211_v44  ;;  %v7821_v41 = vmax.f32 %v7545_v14, 0.0 }
 0x68f   : > { %7703 = vmatmul.mubr.bf16.gmra.mxu1 %v7209_v18  ;;  %v7548_v58 = vpop.f32.mrf.mxu1 }
 0x690   : > { %8290 = vmatprep.mubr.bf16.mxu0 %v7934_v27  ;;  %v7549_v52 = vadd.f32 %v7548_v58, %v14214_v23  ;;  %v7822_v21 = vmax.f32 %v7547_v40, 0.0  ;;  %8898 = vmatpush2.bf16.msra.mxu1 %v10069_v51 }
 0x691   : > { %8291 = vmatmul.mubr.bf16.gmra.mxu0 %v7933_v55  ;;  %v7550_v33 = vpop.f32.mrf.mxu1  ;;  %8899 = vmatprep.subr.bf16.mxu1 %v15506_v7 }
 0x692   : > { %v6807_v36 = vpop.f32.mrf.mxu0  ;;  %v7551_v45 = vadd.f32 %v7550_v33, %v14211_v44  ;;  %v7823_v38 = vmax.f32 %v7549_v52, 0.0  ;;  %v10070_v52 = vld [vmem:[%s14860_s18 + $0x60] sm:$0xff]  }
 0x693   : > { %v6808_v63 = vadd.f32 %v6807_v36, %v15519_v32  ;;  %v7554_v59 = vpop.f32.mrf.mxu1 }
 0x694   : > { %v6809_v22 = vpop.f32.mrf.mxu0  ;;  %v7824_v0 = vmax.f32 %v7551_v45, 0.0  ;;  %v7935_v46 = vpack.c.bf16 %v7823_v38, %v7821_v41  ;;  %v7555_v62 = vadd.f32 %v7554_v59, %v14214_v23  ;;  %v15523_v45 = vld [vmem:[#allocation153_spill] sm:$0xff]  ;;  %8900 = vmatpush2.bf16.msra.mxu1 %v10070_v52 }
 0x695   : > { %v6810_v13 = vadd.f32 %v6809_v22, %v15520_v54  ;;  %v7003_v11 = vadd.f32 %v13565_v12, %v6808_v63  ;;  %v7556_v56 = vpop.f32.mrf.mxu1  ;;  %8901 = vmatprep.subr.bf16.mxu1 %v15506_v7 }
 0x696   : > { %v6811_v39 = vpop.f32.mrf.mxu0  ;;  %v7936_v1 = vpack.c.bf16 %v7824_v0, %v7822_v21  ;;  %v7557_v5 = vadd.f32 %v7556_v56, %v14211_v44  ;;  %v7825_v57 = vmax.f32 %v7555_v62, 0.0 }
 0x697   : > { %v6812_v53 = vadd.f32 %v6811_v39, %v15521_v61  ;;  %v7004_v34 = vadd.f32 %v13559_v31, %v6810_v13  ;;  %v7558_v35 = vpop.f32.mrf.mxu1  ;;  %v7131_v29 = vmax.f32 %v7003_v11, 0.0  ;;  %v10071_v13 = vld [vmem:[%s14860_s18 + $0x58] sm:$0xff]   ;;  %v15524_v39 = vld [vmem:[#allocation154_spill] sm:$0xff] }
 0x698   : > { %v6813_v10 = vpop.f32.mrf.mxu0  ;;  %v7559_v60 = vadd.f32 %v7558_v35, %v14214_v23  ;;  %8300 = vmatprep.mubr.bf16.mxu0 %v7936_v1  ;;  %v7826_v9 = vmax.f32 %v7557_v5, 0.0  ;;  %8902 = vmatpush2.bf16.msra.mxu1 %v10071_v13  ;;  %v15528_v13 = vld [vmem:[#allocation157_spill] sm:$0xff] }
 0x699   : > { %v7005_v19 = vadd.f32 %v13565_v12, %v6812_v53  ;;  %v6814_v30 = vadd.f32 %v6813_v10, %v15522_v20  ;;  %v7560_v15 = vpop.f32.mrf.mxu1  ;;  %8301 = vmatmul.mubr.bf16.gmra.mxu0 %v7935_v46  ;;  %v7132_v17 = vmax.f32 %v7004_v34, 0.0  ;;  %v15525_v10 = vld [vmem:[#allocation155_spill] sm:$0xff]  ;;  %8903 = vmatprep.subr.bf16.mxu1 %v15506_v7 }
 0x69a   : > { %v7561_v18 = vadd.f32 %v7560_v15, %v14211_v44  ;;  %v7827_v50 = vmax.f32 %v7559_v60, 0.0  ;;  %v10072_v20 = vld [vmem:[%s14860_s18 + $0x50] sm:$0xff]  }
 0x69b   : > { %v7133_v37 = vmax.f32 %v7005_v19, 0.0  ;;  %v7006_v2 = vadd.f32 %v13559_v31, %v6814_v30  ;;  %v7564_v49 = vpop.f32.mrf.mxu1 }
 0x69c   : > { %v7828_v8 = vmax.f32 %v7561_v18, 0.0  ;;  %v7937_v55 = vpack.c.bf16 %v7827_v50, %v7825_v57  ;;  %v7565_v36 = vadd.f32 %v7564_v49, %v14214_v23  ;;  %8904 = vmatpush2.bf16.msra.mxu1 %v10072_v20 }
 0x69d   : > { %v7211_v26 = vpack.c.bf16 %v7133_v37, %v7131_v29  ;;  %v7134_v47 = vmax.f32 %v7006_v2, 0.0  ;;  %v7566_v4 = vpop.f32.mrf.mxu1  ;;  %8905 = vmatprep.subr.bf16.mxu1 %v15506_v7 }
 0x69e   : > { %v7938_v27 = vpack.c.bf16 %v7828_v8, %v7826_v9  ;;  %v7567_v58 = vadd.f32 %v7566_v4, %v14211_v44  ;;  %v7829_v21 = vmax.f32 %v7565_v36, 0.0 }
 0x69f   : > { %v7212_v3 = vpack.c.bf16 %v7134_v47, %v7132_v17  ;;  %v7568_v43 = vpop.f32.mrf.mxu1  ;;  %v10073_v47 = vld [vmem:[%s14860_s18 + $0x48] sm:$0xff]  }
 0x6a0   : > { %8310 = vmatprep.mubr.bf16.mxu0 %v7938_v27  ;;  %v7569_v40 = vadd.f32 %v7568_v43, %v14214_v23  ;;  %v7830_v38 = vmax.f32 %v7567_v58, 0.0  ;;  %8906 = vmatpush2.bf16.msra.mxu1 %v10073_v47 }
 0x6a1   : > { %7712 = vmatprep.mubr.bf16.mxu1 %v7212_v3  ;;  %8311 = vmatmul.mubr.bf16.gmra.mxu0 %v7937_v55  ;;  %v7570_v16 = vpop.f32.mrf.mxu1 }
 0x6a2   : > { %7713 = vmatmul.mubr.bf16.gmra.mxu1 %v7211_v26  ;;  %v7571_v14 = vadd.f32 %v7570_v16, %v14211_v44  ;;  %v7831_v32 = vmax.f32 %v7569_v40, 0.0  ;;  %v10074_v40 = vld [vmem:[%s14860_s18 + $0x40] sm:$0xff]   ;;  %v15527_v16 = vld [vmem:[#allocation146_spill] sm:$0xff]  ;;  %8907 = vmatprep.subr.bf16.mxu1 %v15506_v7 }
 0x6a3   : > { %v7574_v63 = vpop.f32.mrf.mxu1 }
 0x6a4   : > { %v7832_v59 = vmax.f32 %v7571_v14, 0.0  ;;  %v7939_v56 = vpack.c.bf16 %v7831_v32, %v7829_v21  ;;  %v7575_v46 = vadd.f32 %v7574_v63, %v14214_v23  ;;  %v6221_v14 = vmul.f32 %v11860_v6, %v15527_v16  ;;  %8908 = vmatpush2.bf16.msra.mxu1 %v10074_v40 }
 0x6a5   : > { %v6817_v33 = vpop.f32.mrf.mxu0  ;;  %v7576_v0 = vpop.f32.mrf.mxu1 }
 0x6a6   : > { %v6818_v22 = vadd.f32 %v6817_v33, %v15523_v45  ;;  %v7940_v41 = vpack.c.bf16 %v7832_v59, %v7830_v38  ;;  %v7577_v34 = vadd.f32 %v7576_v0, %v14211_v44  ;;  %v7833_v9 = vmax.f32 %v7575_v46, 0.0 }
 0x6a7   : > { %v6819_v54 = vpop.f32.mrf.mxu0  ;;  %v7578_v53 = vpop.f32.mrf.mxu1  ;;  %v6222_v45 = vmul.f32 %v11863_v25, %v15527_v16  ;;  %v6349_v21 = vadd.f32 %v6221_v14, %v15528_v13 }
 0x6a8   : > { %v6820_v28 = vadd.f32 %v6819_v54, %v15524_v39  ;;  %v7007_v61 = vadd.f32 %v13565_v12, %v6818_v22  ;;  %v7579_v19 = vadd.f32 %v7578_v53, %v14214_v23  ;;  %8320 = vmatprep.mubr.bf16.mxu0 %v7940_v41  ;;  %v7834_v26 = vmax.f32 %v7577_v34, 0.0 }
 0x6a9   : > { %v6821_v11 = vpop.f32.mrf.mxu0  ;;  %v7580_v60 = vpop.f32.mrf.mxu1  ;;  %8321 = vmatmul.mubr.bf16.gmra.mxu0 %v7939_v56 }
 0x6aa   : > { %v6822_v1 = vadd.f32 %v6821_v11, %v15525_v10  ;;  %v7008_v30 = vadd.f32 %v13559_v31, %v6820_v28  ;;  %v7581_v62 = vadd.f32 %v7580_v60, %v14211_v44  ;;  %v7135_v37 = vmax.f32 %v7007_v61, 0.0  ;;  %v15529_v11 = vld [vmem:[#allocation158_spill] sm:$0xff] }
 0x6ab   : > { %v6823_v35 = vpop.f32.mrf.mxu0  ;;  %v7835_v2 = vmax.f32 %v7579_v19, 0.0  ;;  %v7584_v17 = vpop.f32.mrf.mxu1  ;;  %v6350_v56 = vadd.f32 %v6222_v45, %v15529_v11 }
 0x6ac   : > { %v7009_v5 = vadd.f32 %v13565_v12, %v6822_v1  ;;  %v6824_v29 = vadd.f32 %v6823_v35, %v15526_v42  ;;  %v7836_v50 = vmax.f32 %v7581_v62, 0.0  ;;  %v7136_v8 = vmax.f32 %v7008_v30, 0.0  ;;  %v15530_v30 = vld [vmem:[#allocation159_spill] sm:$0xff] }
 0x6ad   : > { %v7586_v3 = vpop.f32.mrf.mxu1  ;;  %v7941_v4 = vpack.c.bf16 %v7835_v2, %v7833_v9  ;;  %v7585_v52 = vadd.f32 %v7584_v17, %v14214_v23 }
 0x6ae   : > { %v7137_v15 = vmax.f32 %v7009_v5, 0.0  ;;  %v7010_v18 = vadd.f32 %v13559_v31, %v6824_v29  ;;  %v7942_v51 = vpack.c.bf16 %v7836_v50, %v7834_v26  ;;  %v7587_v43 = vadd.f32 %v7586_v3, %v14211_v44 }
 0x6af   : > { %v7588_v27 = vpop.f32.mrf.mxu1  ;;  %v7837_v59 = vmax.f32 %v7585_v52, 0.0 }
 0x6b0   : > { %v7213_v49 = vpack.c.bf16 %v7137_v15, %v7135_v37  ;;  %v7138_v57 = vmax.f32 %v7010_v18, 0.0  ;;  %v7589_v58 = vadd.f32 %v7588_v27, %v14214_v23  ;;  %8330 = vmatprep.mubr.bf16.mxu0 %v7942_v51  ;;  %v7838_v22 = vmax.f32 %v7587_v43, 0.0  ;;  %v15531_v18 = vld [vmem:[#allocation160_spill] sm:$0xff] }
 0x6b1   : > { %v7590_v36 = vpop.f32.mrf.mxu1  ;;  %8331 = vmatmul.mubr.bf16.gmra.mxu0 %v7941_v4 }
 0x6b2   : > { %v7214_v55 = vpack.c.bf16 %v7138_v57, %v7136_v8  ;;  %v7591_v33 = vadd.f32 %v7590_v36, %v14211_v44  ;;  %v7839_v32 = vmax.f32 %v7589_v58, 0.0 }
 0x6b3   : > { %v7594_v63 = vpop.f32.mrf.mxu1 }
 0x6b4   : > { %7722 = vmatprep.mubr.bf16.mxu1 %v7214_v55  ;;  %v7840_v38 = vmax.f32 %v7591_v33, 0.0  ;;  %v7943_v6 = vpack.c.bf16 %v7839_v32, %v7837_v59  ;;  %v7595_v25 = vadd.f32 %v7594_v63, %v14214_v23 }
 0x6b5   : > { %7723 = vmatmul.mubr.bf16.gmra.mxu1 %v7213_v49  ;;  %v7596_v54 = vpop.f32.mrf.mxu1 }
 0x6b6   : > { %v7944_v39 = vpack.c.bf16 %v7840_v38, %v7838_v22  ;;  %v7597_v61 = vadd.f32 %v7596_v54, %v14211_v44  ;;  %v7841_v62 = vmax.f32 %v7595_v25, 0.0 }
 0x6b7   : > { %v7598_v28 = vpop.f32.mrf.mxu1 }
 0x6b8   : > { %v6827_v0 = vpop.f32.mrf.mxu0  ;;  %v7599_v53 = vadd.f32 %v7598_v28, %v14214_v23  ;;  %8340 = vmatprep.mubr.bf16.mxu0 %v7944_v39  ;;  %v7842_v42 = vmax.f32 %v7597_v61, 0.0 }
 0x6b9   : > { %v6828_v41 = vadd.f32 %v6827_v0, %v6349_v21  ;;  %v7600_v10 = vpop.f32.mrf.mxu1  ;;  %8341 = vmatmul.mubr.bf16.gmra.mxu0 %v7943_v6  ;;  %v15532_v0 = vld [vmem:[#allocation161_spill] sm:$0xff] }
 0x6ba   : > { %v6829_v7 = vpop.f32.mrf.mxu0  ;;  %v7601_v34 = vadd.f32 %v7600_v10, %v14211_v44  ;;  %v7843_v19 = vmax.f32 %v7599_v53, 0.0 }
 0x6bb   : > { %v6830_v1 = vadd.f32 %v6829_v7, %v6350_v56  ;;  %v7011_v35 = vadd.f32 %v13565_v12, %v6828_v41  ;;  %v7604_v20 = vpop.f32.mrf.mxu1  ;;  %v15533_v56 = vld [vmem:[#allocation163_spill] sm:$0xff] }
 0x6bc   : > { %v6831_v46 = vpop.f32.mrf.mxu0  ;;  %v7844_v29 = vmax.f32 %v7601_v34, 0.0  ;;  %v7945_v50 = vpack.c.bf16 %v7843_v19, %v7841_v62  ;;  %v7605_v4 = vadd.f32 %v7604_v20, %v14214_v23  ;;  %v15534_v34 = vld [vmem:[#allocation164_spill] sm:$0xff] }
 0x6bd   : > { %v6832_v5 = vadd.f32 %v6831_v46, %v15530_v30  ;;  %v7012_v37 = vadd.f32 %v13559_v31, %v6830_v1  ;;  %v7606_v15 = vpop.f32.mrf.mxu1  ;;  %v7139_v47 = vmax.f32 %v7011_v35, 0.0 }
 0x6be   : > { %v6833_v60 = vpop.f32.mrf.mxu0  ;;  %v7946_v26 = vpack.c.bf16 %v7844_v29, %v7842_v42  ;;  %v7607_v57 = vadd.f32 %v7606_v15, %v14211_v44  ;;  %v7845_v33 = vmax.f32 %v7605_v4, 0.0  ;;  %v15535_v29 = vld [vmem:[#allocation165_spill] sm:$0xff] }
 0x6bf   : > { %v7013_v2 = vadd.f32 %v13565_v12, %v6832_v5  ;;  %v6834_v17 = vadd.f32 %v6833_v60, %v15531_v18  ;;  %v7608_v49 = vpop.f32.mrf.mxu1  ;;  %v7140_v51 = vmax.f32 %v7012_v37, 0.0 }
 0x6c0   : > { %v7609_v3 = vadd.f32 %v7608_v49, %v14214_v23  ;;  %8350 = vmatprep.mubr.bf16.mxu0 %v7946_v26  ;;  %v7846_v16 = vmax.f32 %v7607_v57, 0.0 }
 0x6c1   : > { %v7141_v9 = vmax.f32 %v7013_v2, 0.0  ;;  %v7014_v8 = vadd.f32 %v13559_v31, %v6834_v17  ;;  %v7610_v43 = vpop.f32.mrf.mxu1  ;;  %8351 = vmatmul.mubr.bf16.gmra.mxu0 %v7945_v50 }
 0x6c2   : > { %v7611_v58 = vadd.f32 %v7610_v43, %v14211_v44  ;;  %v7847_v40 = vmax.f32 %v7609_v3, 0.0 }
 0x6c3   : > { %v7215_v27 = vpack.c.bf16 %v7141_v9, %v7139_v47  ;;  %v7142_v55 = vmax.f32 %v7014_v8, 0.0  ;;  %v7614_v52 = vpop.f32.mrf.mxu1 }
 0x6c4   : > { %v7848_v14 = vmax.f32 %v7611_v58, 0.0  ;;  %v7947_v45 = vpack.c.bf16 %v7847_v40, %v7845_v33  ;;  %v7615_v13 = vadd.f32 %v7614_v52, %v14214_v23 }
 0x6c5   : > { %v7216_v36 = vpack.c.bf16 %v7142_v55, %v7140_v51  ;;  %v7616_v32 = vpop.f32.mrf.mxu1 }
 0x6c6   : > { %v7948_v63 = vpack.c.bf16 %v7848_v14, %v7846_v16  ;;  %v7617_v38 = vadd.f32 %v7616_v32, %v14211_v44  ;;  %v7849_v10 = vmax.f32 %v7615_v13, 0.0 }
 0x6c7   : > { %7732 = vmatprep.mubr.bf16.mxu1 %v7216_v36  ;;  %v7618_v22 = vpop.f32.mrf.mxu1 }
 0x6c8   : > { %7733 = vmatmul.mubr.bf16.gmra.mxu1 %v7215_v27  ;;  %v7619_v59 = vadd.f32 %v7618_v22, %v14214_v23  ;;  %8360 = vmatprep.mubr.bf16.mxu0 %v7948_v63  ;;  %v7850_v61 = vmax.f32 %v7617_v38, 0.0 }
 0x6c9   : > { %v7620_v21 = vpop.f32.mrf.mxu1  ;;  %8361 = vmatmul.mubr.bf16.gmra.mxu0 %v7947_v45 }
 0x6ca   : > { %v7621_v6 = vadd.f32 %v7620_v21, %v14211_v44  ;;  %v7851_v41 = vmax.f32 %v7619_v59, 0.0 }
 0x6cb   : > { %v6837_v54 = vpop.f32.mrf.mxu0  ;;  %v7624_v11 = vpop.f32.mrf.mxu1 }
 0x6cc   : > { %v6838_v39 = vadd.f32 %v6837_v54, %v15532_v0  ;;  %v7852_v53 = vmax.f32 %v7621_v6, 0.0  ;;  %v7949_v30 = vpack.c.bf16 %v7851_v41, %v7849_v10  ;;  %v7625_v18 = vadd.f32 %v7624_v11, %v14214_v23  ;;  %v15536_v54 = vld [vmem:[#allocation167_spill] sm:$0xff]  ;;  %v15537_v6 = vld [vmem:[#allocation169_spill] sm:$0xff] }
 0x6cd   : > { %v6839_v28 = vpop.f32.mrf.mxu0  ;;  %v7626_v46 = vpop.f32.mrf.mxu1  ;;  %v15538_v10 = vld [vmem:[#allocation171_spill] sm:$0xff] }
 0x6ce   : > { %v6840_v7 = vadd.f32 %v6839_v28, %v15533_v56  ;;  %v7015_v1 = vadd.f32 %v13565_v12, %v6838_v39  ;;  %v7950_v35 = vpack.c.bf16 %v7852_v53, %v7850_v61  ;;  %v7627_v37 = vadd.f32 %v7626_v46, %v14211_v44 }
 0x6cf   : > { %v6841_v25 = vpop.f32.mrf.mxu0  ;;  %v7628_v42 = vpop.f32.mrf.mxu1  ;;  %v7853_v27 = vmax.f32 %v7625_v18, 0.0 }
 0x6d0   : > { %v6842_v19 = vadd.f32 %v6841_v25, %v15534_v34  ;;  %v7016_v5 = vadd.f32 %v13559_v31, %v6840_v7  ;;  %v7629_v2 = vadd.f32 %v7628_v42, %v14214_v23  ;;  %8370 = vmatprep.mubr.bf16.mxu0 %v7950_v35  ;;  %v7143_v15 = vmax.f32 %v7015_v1, 0.0 }
 0x6d1   : > { %v6843_v20 = vpop.f32.mrf.mxu0  ;;  %v7630_v50 = vpop.f32.mrf.mxu1  ;;  %8371 = vmatmul.mubr.bf16.gmra.mxu0 %v7949_v30  ;;  %v7854_v51 = vmax.f32 %v7627_v37, 0.0  ;;  %v15539_v30 = vld [vmem:[#allocation172_spill] sm:$0xff] }
 0x6d2   : > { %v7017_v60 = vadd.f32 %v13565_v12, %v6842_v19  ;;  %v6844_v62 = vadd.f32 %v6843_v20, %v15535_v29  ;;  %v7631_v47 = vadd.f32 %v7630_v50, %v14211_v44  ;;  %v7144_v9 = vmax.f32 %v7016_v5, 0.0 }
 0x6d3   : > { %v7855_v49 = vmax.f32 %v7629_v2, 0.0  ;;  %v7634_v3 = vpop.f32.mrf.mxu1 }
 0x6d4   : > { %v7145_v17 = vmax.f32 %v7017_v60, 0.0  ;;  %v7018_v26 = vadd.f32 %v13559_v31, %v6844_v62  ;;  %v7856_v4 = vmax.f32 %v7631_v47, 0.0  ;;  %v7635_v33 = vadd.f32 %v7634_v3, %v14214_v23  ;;  %v15540_v3 = vld [vmem:[#allocation176_spill] sm:$0xff] }
 0x6d5   : > { %v7636_v55 = vpop.f32.mrf.mxu1  ;;  %v7951_v40 = vpack.c.bf16 %v7855_v49, %v7853_v27 }
 0x6d6   : > { %v7217_v8 = vpack.c.bf16 %v7145_v17, %v7143_v15  ;;  %v7146_v57 = vmax.f32 %v7018_v26, 0.0  ;;  %v7952_v58 = vpack.c.bf16 %v7856_v4, %v7854_v51  ;;  %v7637_v16 = vadd.f32 %v7636_v55, %v14211_v44  ;;  %v15541_v55 = vld [vmem:[#allocation177_spill] sm:$0xff] }
 0x6d7   : > { %v7638_v52 = vpop.f32.mrf.mxu1  ;;  %v7857_v39 = vmax.f32 %v7635_v33, 0.0  ;;  %v15542_v33 = vld [vmem:[#allocation180_spill] sm:$0xff] }
 0x6d8   : > { %v7218_v43 = vpack.c.bf16 %v7146_v57, %v7144_v9  ;;  %v7639_v36 = vadd.f32 %v7638_v52, %v14214_v23  ;;  %8380 = vmatprep.mubr.bf16.mxu0 %v7952_v58  ;;  %v7858_v59 = vmax.f32 %v7637_v16, 0.0 }
 0x6d9   : > { %v7640_v14 = vpop.f32.mrf.mxu1  ;;  %8381 = vmatmul.mubr.bf16.gmra.mxu0 %v7951_v40 }
 0x6da   : > { %7742 = vmatprep.mubr.bf16.mxu1 %v7218_v43  ;;  %v7641_v32 = vadd.f32 %v7640_v14, %v14211_v44  ;;  %v7859_v22 = vmax.f32 %v7639_v36, 0.0 }
 0x6db   : > { %7743 = vmatmul.mubr.bf16.gmra.mxu1 %v7217_v8 }
 0x6dc   : > { %v7860_v38 = vmax.f32 %v7641_v32, 0.0  ;;  %v7953_v7 = vpack.c.bf16 %v7859_v22, %v7857_v39 }
 0x6dd   : > { %v7644_v63 = vpop.f32.mrf.mxu1 }
 0x6de   : > { %v6847_v45 = vpop.f32.mrf.mxu0  ;;  %v7954_v41 = vpack.c.bf16 %v7860_v38, %v7858_v59  ;;  %v7645_v19 = vadd.f32 %v7644_v63, %v14214_v23  ;;  %v15543_v59 = vld [vmem:[#allocation181_spill] sm:$0xff] }
 0x6df   : > { %v6848_v13 = vadd.f32 %v6847_v45, %v15536_v54  ;;  %v7646_v21 = vpop.f32.mrf.mxu1 }
 0x6e0   : > { %v6849_v0 = vpop.f32.mrf.mxu0  ;;  %v7647_v61 = vadd.f32 %v7646_v21, %v14211_v44  ;;  %8390 = vmatprep.mubr.bf16.mxu0 %v7954_v41  ;;  %v7861_v18 = vmax.f32 %v7645_v19, 0.0 }
 0x6e1   : > { %v6850_v28 = vadd.f32 %v6849_v0, %v15537_v6  ;;  %v7648_v11 = vpop.f32.mrf.mxu1  ;;  %v7019_v25 = vadd.f32 %v13565_v12, %v6848_v13  ;;  %8391 = vmatmul.mubr.bf16.gmra.mxu0 %v7953_v7 }
 0x6e2   : > { %v6851_v56 = vpop.f32.mrf.mxu0  ;;  %v7649_v53 = vadd.f32 %v7648_v11, %v14214_v23  ;;  %v7862_v42 = vmax.f32 %v7647_v61, 0.0 }
 0x6e3   : > { %v6852_v1 = vadd.f32 %v6851_v56, %v15538_v10  ;;  %v7650_v46 = vpop.f32.mrf.mxu1  ;;  %v7020_v35 = vadd.f32 %v13559_v31, %v6850_v28  ;;  %v7147_v2 = vmax.f32 %v7019_v25, 0.0 }
 0x6e4   : > { %v6853_v34 = vpop.f32.mrf.mxu0  ;;  %v7651_v20 = vadd.f32 %v7650_v46, %v14211_v44  ;;  %v7863_v29 = vmax.f32 %v7649_v53, 0.0 }
 0x6e5   : > { %v6854_v5 = vadd.f32 %v6853_v34, %v15539_v30  ;;  %v7021_v60 = vadd.f32 %v13565_v12, %v6852_v1  ;;  %v7148_v17 = vmax.f32 %v7020_v35, 0.0  ;;  %v15544_v34 = vld [vmem:[#allocation186_spill] sm:$0xff]  ;;  %v15545_v30 = vld [vmem:[#allocation187_spill] sm:$0xff] }
 0x6e6   : > { %v7864_v62 = vmax.f32 %v7651_v20, 0.0  ;;  %v7955_v9 = vpack.c.bf16 %v7863_v29, %v7861_v18 }
 0x6e7   : > { %v7022_v37 = vadd.f32 %v13559_v31, %v6854_v5  ;;  %v7149_v15 = vmax.f32 %v7021_v60, 0.0 }
 0x6e8   : > { %v7956_v50 = vpack.c.bf16 %v7864_v62, %v7862_v42 }
 0x6e9   : > { %v7150_v26 = vmax.f32 %v7022_v37, 0.0  ;;  %v7219_v47 = vpack.c.bf16 %v7149_v15, %v7147_v2  ;;  %v15546_v15 = vld [vmem:[#allocation188_spill] sm:$0xff] }
 0x6ea   : > { %8400 = vmatprep.mubr.bf16.mxu0 %v7956_v50 }
 0x6eb   : > { %v7220_v8 = vpack.c.bf16 %v7150_v26, %v7148_v17  ;;  %8401 = vmatmul.mubr.bf16.gmra.mxu0 %v7955_v9  ;;  %v15547_v9 = vld [vmem:[#allocation189_spill] sm:$0xff] }
 0x6ed   : > { %7752 = vmatprep.mubr.bf16.mxu1 %v7220_v8 }
 0x6ee   : > { %7753 = vmatmul.mubr.bf16.gmra.mxu1 %v7219_v47 }
 0x6f0   : > { %v7654_v49 = vpop.f32.mrf.mxu1 }
 0x6f1   : > { %v6857_v57 = vpop.f32.mrf.mxu0  ;;  %v7655_v16 = vadd.f32 %v7654_v49, %v14214_v23 }
 0x6f2   : > { %v6858_v51 = vadd.f32 %v6857_v57, %v15540_v3  ;;  %v7656_v4 = vpop.f32.mrf.mxu1 }
 0x6f3   : > { %v6859_v27 = vpop.f32.mrf.mxu0  ;;  %v7657_v52 = vadd.f32 %v7656_v4, %v14211_v44  ;;  %v7865_v28 = vmax.f32 %v7655_v16, 0.0 }
 0x6f4   : > { %v6860_v43 = vadd.f32 %v6859_v27, %v15541_v55  ;;  %v7658_v58 = vpop.f32.mrf.mxu1  ;;  %v7023_v14 = vadd.f32 %v13565_v12, %v6858_v51 }
 0x6f5   : > { %v6861_v40 = vpop.f32.mrf.mxu0  ;;  %v7659_v36 = vadd.f32 %v7658_v58, %v14214_v23  ;;  %v7866_v0 = vmax.f32 %v7657_v52, 0.0 }
 0x6f6   : > { %v6862_v32 = vadd.f32 %v6861_v40, %v15542_v33  ;;  %v7660_v63 = vpop.f32.mrf.mxu1  ;;  %v7024_v22 = vadd.f32 %v13559_v31, %v6860_v43  ;;  %v7151_v41 = vmax.f32 %v7023_v14, 0.0 }
 0x6f7   : > { %v6863_v45 = vpop.f32.mrf.mxu0  ;;  %v7661_v38 = vadd.f32 %v7660_v63, %v14211_v44  ;;  %v7867_v13 = vmax.f32 %v7659_v36, 0.0  ;;  %v15548_v63 = vld [vmem:[#allocation190_spill] sm:$0xff] }
 0x6f8   : > { %v6864_v54 = vadd.f32 %v6863_v45, %v15543_v59  ;;  %v7025_v21 = vadd.f32 %v13565_v12, %v6862_v32  ;;  %v7152_v56 = vmax.f32 %v7024_v22, 0.0  ;;  %v8017_v59 = vld [vmem:[%s14859_s17] sm:$0x3] }
 0x6f9   : > { %v7868_v39 = vmax.f32 %v7661_v38, 0.0  ;;  %v7957_v53 = vpack.c.bf16 %v7867_v13, %v7865_v28  ;;  %v8018_v28 = vunpack.c.l.bf16 %v8017_v59 }
 0x6fa   : > { %v7026_v6 = vadd.f32 %v13559_v31, %v6864_v54  ;;  %v7153_v11 = vmax.f32 %v7025_v21, 0.0  ;;  %v15549_v54 = vld [vmem:[#allocation191_spill] sm:$0xff] }
 0x6fb   : > { %v7958_v61 = vpack.c.bf16 %v7868_v39, %v7866_v0 }
 0x6fc   : > { %v7154_v7 = vmax.f32 %v7026_v6, 0.0  ;;  %v7221_v25 = vpack.c.bf16 %v7153_v11, %v7151_v41 }
 0x6fd   : > { %8410 = vmatprep.mubr.bf16.mxu0 %v7958_v61 }
 0x6fe   : > { %v7222_v10 = vpack.c.bf16 %v7154_v7, %v7152_v56  ;;  %8411 = vmatmul.mubr.bf16.gmra.mxu0 %v7957_v53  ;;  %v15550_v56 = vld [vmem:[#allocation192_spill] sm:$0xff] }
 0x700   : > { %7762 = vmatprep.mubr.bf16.mxu1 %v7222_v10 }
 0x701   : > { %7763 = vmatmul.mubr.bf16.gmra.mxu1 %v7221_v25 }
 0x703   : > { %v7664_v1 = vpop.f32.mrf.mxu1 }
 0x704   : > { %v6867_v46 = vpop.f32.mrf.mxu0  ;;  %v7665_v37 = vadd.f32 %v7664_v1, %v14214_v23  ;;  %v15551_v1 = vld [vmem:[#allocation193_spill] sm:$0xff] }
 0x705   : > { %v6868_v19 = vadd.f32 %v6867_v46, %v15544_v34  ;;  %v7666_v35 = vpop.f32.mrf.mxu1 }
 0x706   : > { %v6869_v20 = vpop.f32.mrf.mxu0  ;;  %v7667_v29 = vadd.f32 %v7666_v35, %v14211_v44  ;;  %v7869_v27 = vmax.f32 %v7665_v37, 0.0  ;;  %v8027_v35 = vrot.slane %v8018_v28, %v15505_v48 }
 0x707   : > { %v6870_v5 = vadd.f32 %v6869_v20, %v15545_v30  ;;  %v7668_v60 = vpop.f32.mrf.mxu1  ;;  %v7027_v2 = vadd.f32 %v13565_v12, %v6868_v19 }
 0x708   : > { %v6871_v42 = vpop.f32.mrf.mxu0  ;;  %v7669_v62 = vadd.f32 %v7668_v60, %v14214_v23  ;;  %v7870_v3 = vmax.f32 %v7667_v29, 0.0  ;;  %v8023_v60 = vrot.slane %v8018_v28, %v15504_v24 }
 0x709   : > { %v6872_v18 = vadd.f32 %v6871_v42, %v15546_v15  ;;  %v7670_v17 = vpop.f32.mrf.mxu1  ;;  %v7028_v50 = vadd.f32 %v13559_v31, %v6870_v5  ;;  %v7155_v55 = vmax.f32 %v7027_v2, 0.0 }
 0x70a   : > { %v6873_v26 = vpop.f32.mrf.mxu0  ;;  %v7671_v47 = vadd.f32 %v7670_v17, %v14211_v44  ;;  %v7871_v49 = vmax.f32 %v7669_v62, 0.0 }
 0x70b   : > { %v6874_v8 = vadd.f32 %v6873_v26, %v15547_v9  ;;  %v7029_v57 = vadd.f32 %v13565_v12, %v6872_v18  ;;  %v7156_v58 = vmax.f32 %v7028_v50, 0.0  ;;  %v14457_v50 = vrot.slane %v8027_v35, %v15504_v24 }
 0x70c   : > { %v7872_v51 = vmax.f32 %v7671_v47, 0.0  ;;  %v7959_v36 = vpack.c.bf16 %v7871_v49, %v7869_v27 }
 0x70d   : > { %v7030_v4 = vadd.f32 %v13559_v31, %v6874_v8  ;;  %v7157_v43 = vmax.f32 %v7029_v57, 0.0 }
 0x70e   : > { %v7960_v52 = vpack.c.bf16 %v7872_v51, %v7870_v3 }
 0x70f   : > { %v7158_v40 = vmax.f32 %v7030_v4, 0.0  ;;  %v7223_v16 = vpack.c.bf16 %v7157_v43, %v7155_v55 }
 0x710   : > { %8420 = vmatprep.mubr.bf16.mxu0 %v7960_v52 }
 0x711   : > { %v7224_v14 = vpack.c.bf16 %v7158_v40, %v7156_v58  ;;  %8421 = vmatmul.mubr.bf16.gmra.mxu0 %v7959_v36 }
 0x713   : > { %7772 = vmatprep.mubr.bf16.mxu1 %v7224_v14 }
 0x714   : > { %7773 = vmatmul.mubr.bf16.gmra.mxu1 %v7223_v16 }
 0x716   : > { %v7674_v33 = vpop.f32.mrf.mxu1 }
 0x717   : > { %v6877_v32 = vpop.f32.mrf.mxu0  ;;  %v7675_v41 = vadd.f32 %v7674_v33, %v14214_v23 }
 0x718   : > { %v6878_v45 = vadd.f32 %v6877_v32, %v15548_v63  ;;  %v7676_v22 = vpop.f32.mrf.mxu1 }
 0x719   : > { %v6879_v38 = vpop.f32.mrf.mxu0  ;;  %v7677_v39 = vadd.f32 %v7676_v22, %v14211_v44  ;;  %v7873_v42 = vmax.f32 %v7675_v41, 0.0 }
 0x71a   : > { %v6880_v13 = vadd.f32 %v6879_v38, %v15549_v54  ;;  %v7678_v21 = vpop.f32.mrf.mxu1  ;;  %v7031_v11 = vadd.f32 %v13565_v12, %v6878_v45 }
 0x71b   : > { %v6881_v0 = vpop.f32.mrf.mxu0  ;;  %v7679_v6 = vadd.f32 %v7678_v21, %v14214_v23  ;;  %v7874_v20 = vmax.f32 %v7677_v39, 0.0 }
 0x71c   : > { %v6882_v7 = vadd.f32 %v6881_v0, %v15550_v56  ;;  %v7680_v61 = vpop.f32.mrf.mxu1  ;;  %v7032_v25 = vadd.f32 %v13559_v31, %v6880_v13  ;;  %v7159_v29 = vmax.f32 %v7031_v11, 0.0 }
 0x71d   : > { %v6883_v53 = vpop.f32.mrf.mxu0  ;;  %v7681_v10 = vadd.f32 %v7680_v61, %v14211_v44  ;;  %v7875_v34 = vmax.f32 %v7679_v6, 0.0 }
 0x71e   : > { %v6884_v46 = vadd.f32 %v6883_v53, %v15551_v1  ;;  %v7033_v19 = vadd.f32 %v13565_v12, %v6882_v7  ;;  %v7160_v37 = vmax.f32 %v7032_v25, 0.0  ;;  %v14460_v12 = vrot.slane %v8023_v60, %v15504_v24 }
 0x71f   : > { %v7876_v30 = vmax.f32 %v7681_v10, 0.0  ;;  %v7961_v17 = vpack.c.bf16 %v7875_v34, %v7873_v42 }
 0x720   : > { %v7034_v5 = vadd.f32 %v13559_v31, %v6884_v46  ;;  %v7161_v62 = vmax.f32 %v7033_v19, 0.0 }
 0x721   : > { %v8232_v15 = vpop.f32.mrf.mxu0  ;;  %v7962_v18 = vpack.c.bf16 %v7876_v30, %v7874_v20 }
 0x722   : > { %v7162_v2 = vmax.f32 %v7034_v5, 0.0  ;;  %v7225_v26 = vpack.c.bf16 %v7161_v62, %v7159_v29  ;;  %v8233_v49 = vadd.f32 %v8232_v15, %v14460_v12 }
 0x723   : > { %v8234_v48 = vpop.f32.mrf.mxu0  ;;  %8430 = vmatprep.mubr.bf16.mxu0 %v7962_v18 }
 0x724   : > { %v7226_v31 = vpack.c.bf16 %v7162_v2, %v7160_v37  ;;  %8431 = vmatmul.mubr.bf16.gmra.mxu0 %v7961_v17  ;;  %v8235_v9 = vadd.f32 %v8234_v48, %v14457_v50  ;;  %v8551_v40 = vmax.f32 %v8233_v49, 0.0 }
 0x725   : > { %v8236_v47 = vpop.f32.mrf.mxu0 }
 0x726   : > { %7782 = vmatprep.mubr.bf16.mxu1 %v7226_v31  ;;  %v8237_v8 = vadd.f32 %v8236_v47, %v14460_v12  ;;  %v8552_v55 = vmax.f32 %v8235_v9, 0.0 }
 0x727   : > { %7783 = vmatmul.mubr.bf16.gmra.mxu1 %v7225_v26  ;;  %v8238_v57 = vpop.f32.mrf.mxu0 }
 0x728   : > { %v8239_v3 = vadd.f32 %v8238_v57, %v14457_v50  ;;  %v8553_v4 = vmax.f32 %v8237_v8, 0.0 }
 0x729   : > { %v7684_v51 = vpop.f32.mrf.mxu1  ;;  %v8242_v27 = vpop.f32.mrf.mxu0 }
 0x72a   : > { %v8554_v43 = vmax.f32 %v8239_v3, 0.0  ;;  %v8679_v14 = vpack.c.bf16 %v8553_v4, %v8551_v40  ;;  %v7685_v45 = vadd.f32 %v7684_v51, %v14214_v23  ;;  %v8243_v54 = vadd.f32 %v8242_v27, %v14460_v12 }
 0x72b   : > { %v7686_v58 = vpop.f32.mrf.mxu1  ;;  %v8244_v52 = vpop.f32.mrf.mxu0 }
 0x72c   : > { %v8680_v16 = vpack.c.bf16 %v8554_v43, %v8552_v55  ;;  %v7687_v33 = vadd.f32 %v7686_v58, %v14211_v44  ;;  %v8245_v22 = vadd.f32 %v8244_v52, %v14457_v50  ;;  %v7877_v56 = vmax.f32 %v7685_v45, 0.0 }
 0x72d   : > { %v7688_v36 = vpop.f32.mrf.mxu1  ;;  %v8246_v63 = vpop.f32.mrf.mxu0  ;;  %v8555_v53 = vmax.f32 %v8243_v54, 0.0 }
 0x72e   : > { %v7689_v32 = vadd.f32 %v7688_v36, %v14214_v23  ;;  %v8247_v38 = vadd.f32 %v8246_v63, %v14460_v12  ;;  %8909 = vmatprep.mubr.bf16.mxu1 %v8680_v16  ;;  %v7878_v6 = vmax.f32 %v7687_v33, 0.0  ;;  %v8556_v7 = vmax.f32 %v8245_v22, 0.0 }
 0x72f   : > { %v7690_v59 = vpop.f32.mrf.mxu1  ;;  %v8248_v21 = vpop.f32.mrf.mxu0  ;;  %8910 = vmatmul.mubr.bf16.vlgmr.msra.gmra.mxu1 %v8679_v14 }
 0x730   : > { %v7691_v13 = vadd.f32 %v7690_v59, %v14211_v44  ;;  %v7879_v0 = vmax.f32 %v7689_v32, 0.0  ;;  %v8249_v39 = vadd.f32 %v8248_v21, %v14457_v50  ;;  %v8557_v28 = vmax.f32 %v8247_v38, 0.0 }
 0x731   : > { %v8252_v11 = vpop.f32.mrf.mxu0 }
 0x732   : > { %v7880_v41 = vmax.f32 %v7691_v13, 0.0  ;;  %v8558_v61 = vmax.f32 %v8249_v39, 0.0  ;;  %v7963_v1 = vpack.c.bf16 %v7879_v0, %v7877_v56  ;;  %v8681_v34 = vpack.c.bf16 %v8557_v28, %v8555_v53 }
 0x733   : > { %v8254_v25 = vpop.f32.mrf.mxu0  ;;  %v8253_v30 = vadd.f32 %v8252_v11, %v14460_v12 }
 0x734   : > { %v7964_v10 = vpack.c.bf16 %v7880_v41, %v7878_v6  ;;  %v8682_v46 = vpack.c.bf16 %v8558_v61, %v8556_v7  ;;  %v8255_v35 = vadd.f32 %v8254_v25, %v14457_v50 }
 0x735   : > { %v8256_v19 = vpop.f32.mrf.mxu0  ;;  %v8559_v2 = vmax.f32 %v8253_v30, 0.0 }
 0x736   : > { %8440 = vmatprep.mubr.bf16.mxu0 %v7964_v10  ;;  %v8257_v20 = vadd.f32 %v8256_v19, %v14460_v12  ;;  %8917 = vmatprep.mubr.bf16.mxu1 %v8682_v46  ;;  %v8560_v62 = vmax.f32 %v8255_v35, 0.0 }
 0x737   : > { %8441 = vmatmul.mubr.bf16.gmra.mxu0 %v7963_v1  ;;  %v8258_v5 = vpop.f32.mrf.mxu0  ;;  %8918 = vmatmul.mubr.bf16.gmra.mxu1 %v8681_v34 }
 0x738   : > { %v8259_v60 = vadd.f32 %v8258_v5, %v14457_v50  ;;  %v8561_v42 = vmax.f32 %v8257_v20, 0.0 }
 0x739   : > { %v8262_v29 = vpop.f32.mrf.mxu0 }
 0x73a   : > { %v8562_v37 = vmax.f32 %v8259_v60, 0.0  ;;  %v8683_v26 = vpack.c.bf16 %v8561_v42, %v8559_v2  ;;  %v8263_v8 = vadd.f32 %v8262_v29, %v14460_v12 }
 0x73b   : > { %v8264_v15 = vpop.f32.mrf.mxu0 }
 0x73c   : > { %v7694_v18 = vpop.f32.mrf.mxu1  ;;  %v8684_v17 = vpack.c.bf16 %v8562_v37, %v8560_v62  ;;  %v8265_v31 = vadd.f32 %v8264_v15, %v14457_v50  ;;  %v8563_v36 = vmax.f32 %v8263_v8, 0.0 }
 0x73d   : > { %v8266_v48 = vpop.f32.mrf.mxu0  ;;  %v7695_v58 = vadd.f32 %v7694_v18, %v14214_v23 }
 0x73e   : > { %v8267_v47 = vadd.f32 %v8266_v48, %v14460_v12  ;;  %v7696_v9 = vpop.f32.mrf.mxu1  ;;  %8925 = vmatprep.mubr.bf16.mxu1 %v8684_v17  ;;  %v8564_v43 = vmax.f32 %v8265_v31, 0.0 }
 0x73f   : > { %v8268_v49 = vpop.f32.mrf.mxu0  ;;  %8926 = vmatmul.mubr.bf16.gmra.mxu1 %v8683_v26  ;;  %v7697_v4 = vadd.f32 %v7696_v9, %v14211_v44  ;;  %v7881_v59 = vmax.f32 %v7695_v58, 0.0 }
 0x740   : > { %v8269_v57 = vadd.f32 %v8268_v49, %v14457_v50  ;;  %v7698_v3 = vpop.f32.mrf.mxu1  ;;  %v8565_v51 = vmax.f32 %v8267_v47, 0.0 }
 0x741   : > { %v7699_v27 = vadd.f32 %v7698_v3, %v14214_v23  ;;  %v8272_v55 = vpop.f32.mrf.mxu0  ;;  %v7882_v45 = vmax.f32 %v7697_v4, 0.0 }
 0x742   : > { %v8566_v40 = vmax.f32 %v8269_v57, 0.0  ;;  %v7700_v52 = vpop.f32.mrf.mxu1  ;;  %v8685_v63 = vpack.c.bf16 %v8565_v51, %v8563_v36  ;;  %v8273_v21 = vadd.f32 %v8272_v55, %v14460_v12 }
 0x743   : > { %v7701_v16 = vadd.f32 %v7700_v52, %v14211_v44  ;;  %v8274_v14 = vpop.f32.mrf.mxu0  ;;  %v7883_v33 = vmax.f32 %v7699_v27, 0.0 }
 0x744   : > { %v8686_v32 = vpack.c.bf16 %v8566_v40, %v8564_v43  ;;  %v8275_v54 = vadd.f32 %v8274_v14, %v14457_v50  ;;  %v8567_v61 = vmax.f32 %v8273_v21, 0.0 }
 0x745   : > { %v7884_v22 = vmax.f32 %v7701_v16, 0.0  ;;  %v8276_v38 = vpop.f32.mrf.mxu0  ;;  %v7965_v6 = vpack.c.bf16 %v7883_v33, %v7881_v59 }
 0x746   : > { %v8277_v13 = vadd.f32 %v8276_v38, %v14460_v12  ;;  %8933 = vmatprep.mubr.bf16.mxu1 %v8686_v32  ;;  %v8568_v56 = vmax.f32 %v8275_v54, 0.0 }
 0x747   : > { %v8278_v0 = vpop.f32.mrf.mxu0  ;;  %8934 = vmatmul.mubr.bf16.gmra.mxu1 %v8685_v63  ;;  %v7966_v39 = vpack.c.bf16 %v7884_v22, %v7882_v45 }
 0x748   : > { %v8279_v28 = vadd.f32 %v8278_v0, %v14457_v50  ;;  %v8569_v41 = vmax.f32 %v8277_v13, 0.0 }
 0x749   : > { %v8282_v11 = vpop.f32.mrf.mxu0  ;;  %8450 = vmatprep.mubr.bf16.mxu0 %v7966_v39 }
 0x74a   : > { %v8570_v7 = vmax.f32 %v8279_v28, 0.0  ;;  %8451 = vmatmul.mubr.bf16.gmra.mxu0 %v7965_v6  ;;  %v8687_v10 = vpack.c.bf16 %v8569_v41, %v8567_v61  ;;  %v8283_v35 = vadd.f32 %v8282_v11, %v14460_v12 }
 0x74b   : > { %v8284_v53 = vpop.f32.mrf.mxu0 }
 0x74c   : > { %v8688_v25 = vpack.c.bf16 %v8570_v7, %v8568_v56  ;;  %v8285_v46 = vadd.f32 %v8284_v53, %v14457_v50  ;;  %v8571_v2 = vmax.f32 %v8283_v35, 0.0 }
 0x74d   : > { %v8286_v1 = vpop.f32.mrf.mxu0 }
 0x74e   : > { %v8287_v34 = vadd.f32 %v8286_v1, %v14460_v12  ;;  %8941 = vmatprep.mubr.bf16.mxu1 %v8688_v25  ;;  %v8572_v29 = vmax.f32 %v8285_v46, 0.0 }
 0x74f   : > { %v7704_v19 = vpop.f32.mrf.mxu1  ;;  %v8288_v20 = vpop.f32.mrf.mxu0  ;;  %8942 = vmatmul.mubr.bf16.gmra.mxu1 %v8687_v10 }
 0x750   : > { %v8289_v30 = vadd.f32 %v8288_v20, %v14457_v50  ;;  %v8573_v60 = vmax.f32 %v8287_v34, 0.0  ;;  %v7705_v26 = vadd.f32 %v7704_v19, %v14214_v23 }
 0x751   : > { %v7706_v5 = vpop.f32.mrf.mxu1  ;;  %v8292_v42 = vpop.f32.mrf.mxu0 }
 0x752   : > { %v8574_v62 = vmax.f32 %v8289_v30, 0.0  ;;  %v7707_v15 = vadd.f32 %v7706_v5, %v14211_v44  ;;  %v8689_v47 = vpack.c.bf16 %v8573_v60, %v8571_v2  ;;  %v8293_v4 = vadd.f32 %v8292_v42, %v14460_v12 }
 0x753   : > { %v7708_v37 = vpop.f32.mrf.mxu1  ;;  %v8294_v17 = vpop.f32.mrf.mxu0  ;;  %v7885_v43 = vmax.f32 %v7705_v26, 0.0 }
 0x754   : > { %v7709_v18 = vadd.f32 %v7708_v37, %v14214_v23  ;;  %v8690_v48 = vpack.c.bf16 %v8574_v62, %v8572_v29  ;;  %v8295_v57 = vadd.f32 %v8294_v17, %v14457_v50  ;;  %v7886_v51 = vmax.f32 %v7707_v15, 0.0 }
 0x755   : > { %v7710_v31 = vpop.f32.mrf.mxu1  ;;  %v8296_v8 = vpop.f32.mrf.mxu0  ;;  %v8575_v32 = vmax.f32 %v8293_v4, 0.0 }
 0x756   : > { %v7711_v9 = vadd.f32 %v7710_v31, %v14211_v44  ;;  %v7887_v49 = vmax.f32 %v7709_v18, 0.0  ;;  %v8297_v3 = vadd.f32 %v8296_v8, %v14460_v12  ;;  %8949 = vmatprep.mubr.bf16.mxu1 %v8690_v48  ;;  %v8576_v16 = vmax.f32 %v8295_v57, 0.0 }
 0x757   : > { %v8298_v55 = vpop.f32.mrf.mxu0  ;;  %8950 = vmatmul.mubr.bf16.gmra.mxu1 %v8689_v47 }
 0x758   : > { %v7888_v27 = vmax.f32 %v7711_v9, 0.0  ;;  %v8299_v58 = vadd.f32 %v8298_v55, %v14457_v50  ;;  %v8577_v40 = vmax.f32 %v8297_v3, 0.0  ;;  %v7967_v36 = vpack.c.bf16 %v7887_v49, %v7885_v43 }
 0x759   : > { %v8302_v33 = vpop.f32.mrf.mxu0 }
 0x75a   : > { %v7968_v52 = vpack.c.bf16 %v7888_v27, %v7886_v51  ;;  %v8578_v14 = vmax.f32 %v8299_v58, 0.0  ;;  %v8691_v22 = vpack.c.bf16 %v8577_v40, %v8575_v32  ;;  %v8303_v13 = vadd.f32 %v8302_v33, %v14460_v12 }
 0x75b   : > { %v8304_v45 = vpop.f32.mrf.mxu0 }
 0x75c   : > { %8460 = vmatprep.mubr.bf16.mxu0 %v7968_v52  ;;  %v8692_v63 = vpack.c.bf16 %v8578_v14, %v8576_v16  ;;  %v8305_v59 = vadd.f32 %v8304_v45, %v14457_v50  ;;  %v8579_v7 = vmax.f32 %v8303_v13, 0.0 }
 0x75d   : > { %8461 = vmatmul.mubr.bf16.gmra.mxu0 %v7967_v36  ;;  %v8306_v38 = vpop.f32.mrf.mxu0 }
 0x75e   : > { %8957 = vmatprep.mubr.bf16.mxu1 %v8692_v63  ;;  %v8307_v54 = vadd.f32 %v8306_v38, %v14460_v12  ;;  %v8580_v41 = vmax.f32 %v8305_v59, 0.0 }
 0x75f   : > { %8958 = vmatmul.mubr.bf16.gmra.mxu1 %v8691_v22  ;;  %v8308_v21 = vpop.f32.mrf.mxu0 }
 0x760   : > { %v8309_v0 = vadd.f32 %v8308_v21, %v14457_v50  ;;  %v8581_v6 = vmax.f32 %v8307_v54, 0.0 }
 0x761   : > { %v8312_v28 = vpop.f32.mrf.mxu0 }
 0x762   : > { %v7714_v39 = vpop.f32.mrf.mxu1  ;;  %v8582_v11 = vmax.f32 %v8309_v0, 0.0  ;;  %v8693_v10 = vpack.c.bf16 %v8581_v6, %v8579_v7  ;;  %v8313_v5 = vadd.f32 %v8312_v28, %v14460_v12 }
 0x763   : > { %v8314_v61 = vpop.f32.mrf.mxu0  ;;  %v7715_v19 = vadd.f32 %v7714_v39, %v14214_v23 }
 0x764   : > { %v7716_v56 = vpop.f32.mrf.mxu1  ;;  %v8694_v53 = vpack.c.bf16 %v8582_v11, %v8580_v41  ;;  %v8315_v35 = vadd.f32 %v8314_v61, %v14457_v50  ;;  %v8583_v31 = vmax.f32 %v8313_v5, 0.0 }
 0x765   : > { %v7717_v1 = vadd.f32 %v7716_v56, %v14211_v44  ;;  %v8316_v46 = vpop.f32.mrf.mxu0  ;;  %v7889_v18 = vmax.f32 %v7715_v19, 0.0 }
 0x766   : > { %v7718_v25 = vpop.f32.mrf.mxu1  ;;  %v8317_v20 = vadd.f32 %v8316_v46, %v14460_v12  ;;  %8965 = vmatprep.mubr.bf16.mxu1 %v8694_v53  ;;  %v8584_v17 = vmax.f32 %v8315_v35, 0.0 }
 0x767   : > { %v7719_v34 = vadd.f32 %v7718_v25, %v14214_v23  ;;  %v8318_v60 = vpop.f32.mrf.mxu0  ;;  %8966 = vmatmul.mubr.bf16.gmra.mxu1 %v8693_v10  ;;  %v7890_v37 = vmax.f32 %v7717_v1, 0.0 }
 0x768   : > { %v7720_v30 = vpop.f32.mrf.mxu1  ;;  %v8319_v62 = vadd.f32 %v8318_v60, %v14457_v50  ;;  %v8585_v2 = vmax.f32 %v8317_v20, 0.0 }
 0x769   : > { %v7721_v42 = vadd.f32 %v7720_v30, %v14211_v44  ;;  %v7891_v29 = vmax.f32 %v7719_v34, 0.0  ;;  %v8322_v48 = vpop.f32.mrf.mxu0 }
 0x76a   : > { %v8586_v26 = vmax.f32 %v8319_v62, 0.0  ;;  %v8695_v57 = vpack.c.bf16 %v8585_v2, %v8583_v31  ;;  %v8323_v27 = vadd.f32 %v8322_v48, %v14460_v12 }
 0x76b   : > { %v7892_v15 = vmax.f32 %v7721_v42, 0.0  ;;  %v7969_v9 = vpack.c.bf16 %v7891_v29, %v7889_v18  ;;  %v8324_v49 = vpop.f32.mrf.mxu0 }
 0x76c   : > { %v8696_v8 = vpack.c.bf16 %v8586_v26, %v8584_v17  ;;  %v8325_v51 = vadd.f32 %v8324_v49, %v14457_v50  ;;  %v8587_v14 = vmax.f32 %v8323_v27, 0.0 }
 0x76d   : > { %v7970_v47 = vpack.c.bf16 %v7892_v15, %v7890_v37  ;;  %v8326_v3 = vpop.f32.mrf.mxu0 }
 0x76e   : > { %8973 = vmatprep.mubr.bf16.mxu1 %v8696_v8  ;;  %v8327_v4 = vadd.f32 %v8326_v3, %v14460_v12  ;;  %v8588_v52 = vmax.f32 %v8325_v51, 0.0 }
 0x76f   : > { %8470 = vmatprep.mubr.bf16.mxu0 %v7970_v47  ;;  %8974 = vmatmul.mubr.bf16.gmra.mxu1 %v8695_v57  ;;  %v8328_v55 = vpop.f32.mrf.mxu0 }
 0x770   : > { %8471 = vmatmul.mubr.bf16.gmra.mxu0 %v7969_v9  ;;  %v8329_v43 = vadd.f32 %v8328_v55, %v14457_v50  ;;  %v8589_v58 = vmax.f32 %v8327_v4, 0.0 }
 0x771   : > { %v8332_v40 = vpop.f32.mrf.mxu0 }
 0x772   : > { %v8590_v36 = vmax.f32 %v8329_v43, 0.0  ;;  %v8697_v45 = vpack.c.bf16 %v8589_v58, %v8587_v14  ;;  %v8333_v13 = vadd.f32 %v8332_v40, %v14460_v12 }
 0x773   : > { %v8334_v33 = vpop.f32.mrf.mxu0 }
 0x774   : > { %v8698_v32 = vpack.c.bf16 %v8590_v36, %v8588_v52  ;;  %v8335_v38 = vadd.f32 %v8334_v33, %v14457_v50  ;;  %v8591_v10 = vmax.f32 %v8333_v13, 0.0 }
 0x775   : > { %v7724_v16 = vpop.f32.mrf.mxu1  ;;  %v8336_v22 = vpop.f32.mrf.mxu0 }
 0x776   : > { %v8337_v59 = vadd.f32 %v8336_v22, %v14460_v12  ;;  %8981 = vmatprep.mubr.bf16.mxu1 %v8698_v32  ;;  %v7725_v6 = vadd.f32 %v7724_v16, %v14214_v23  ;;  %v8592_v61 = vmax.f32 %v8335_v38, 0.0 }
 0x777   : > { %v7726_v63 = vpop.f32.mrf.mxu1  ;;  %v8338_v0 = vpop.f32.mrf.mxu0  ;;  %8982 = vmatmul.mubr.bf16.gmra.mxu1 %v8697_v45 }
 0x778   : > { %v7727_v21 = vadd.f32 %v7726_v63, %v14211_v44  ;;  %v8339_v28 = vadd.f32 %v8338_v0, %v14457_v50  ;;  %v8593_v11 = vmax.f32 %v8337_v59, 0.0  ;;  %v7893_v19 = vmax.f32 %v7725_v6, 0.0 }
 0x779   : > { %v7728_v54 = vpop.f32.mrf.mxu1  ;;  %v8342_v56 = vpop.f32.mrf.mxu0 }
 0x77a   : > { %v7729_v39 = vadd.f32 %v7728_v54, %v14214_v23  ;;  %v8594_v53 = vmax.f32 %v8339_v28, 0.0  ;;  %v7894_v1 = vmax.f32 %v7727_v21, 0.0  ;;  %v8699_v20 = vpack.c.bf16 %v8593_v11, %v8591_v10 }
 0x77b   : > { %v7730_v41 = vpop.f32.mrf.mxu1  ;;  %v8344_v34 = vpop.f32.mrf.mxu0  ;;  %v8343_v62 = vadd.f32 %v8342_v56, %v14460_v12 }
 0x77c   : > { %v7731_v7 = vadd.f32 %v7730_v41, %v14211_v44  ;;  %v7895_v25 = vmax.f32 %v7729_v39, 0.0  ;;  %v8700_v35 = vpack.c.bf16 %v8594_v53, %v8592_v61  ;;  %v8345_v42 = vadd.f32 %v8344_v34, %v14457_v50 }
 0x77d   : > { %v8346_v30 = vpop.f32.mrf.mxu0  ;;  %v8595_v48 = vmax.f32 %v8343_v62, 0.0 }
 0x77e   : > { %v7896_v46 = vmax.f32 %v7731_v7, 0.0  ;;  %v7971_v60 = vpack.c.bf16 %v7895_v25, %v7893_v19  ;;  %v8347_v29 = vadd.f32 %v8346_v30, %v14460_v12  ;;  %8989 = vmatprep.mubr.bf16.mxu1 %v8700_v35  ;;  %v8596_v17 = vmax.f32 %v8345_v42, 0.0 }
 0x77f   : > { %v8348_v37 = vpop.f32.mrf.mxu0  ;;  %8990 = vmatmul.mubr.bf16.gmra.mxu1 %v8699_v20 }
 0x780   : > { %v7972_v5 = vpack.c.bf16 %v7896_v46, %v7894_v1  ;;  %v8349_v2 = vadd.f32 %v8348_v37, %v14457_v50  ;;  %v8597_v15 = vmax.f32 %v8347_v29, 0.0 }
 0x781   : > { %v8352_v18 = vpop.f32.mrf.mxu0 }
 0x782   : > { %8480 = vmatprep.mubr.bf16.mxu0 %v7972_v5  ;;  %v8598_v26 = vmax.f32 %v8349_v2, 0.0  ;;  %v8701_v9 = vpack.c.bf16 %v8597_v15, %v8595_v48  ;;  %v8353_v51 = vadd.f32 %v8352_v18, %v14460_v12 }
 0x783   : > { %8481 = vmatmul.mubr.bf16.gmra.mxu0 %v7971_v60  ;;  %v8354_v31 = vpop.f32.mrf.mxu0 }
 0x784   : > { %v8702_v47 = vpack.c.bf16 %v8598_v26, %v8596_v17  ;;  %v8355_v49 = vadd.f32 %v8354_v31, %v14457_v50  ;;  %v8599_v16 = vmax.f32 %v8353_v51, 0.0 }
 0x785   : > { %v8356_v8 = vpop.f32.mrf.mxu0 }
 0x786   : > { %v8357_v57 = vadd.f32 %v8356_v8, %v14460_v12  ;;  %8997 = vmatprep.mubr.bf16.mxu1 %v8702_v47  ;;  %v8600_v40 = vmax.f32 %v8355_v49, 0.0 }
 0x787   : > { %v8358_v4 = vpop.f32.mrf.mxu0  ;;  %8998 = vmatmul.mubr.bf16.gmra.mxu1 %v8701_v9 }
 0x788   : > { %v7734_v3 = vpop.f32.mrf.mxu1  ;;  %v8359_v27 = vadd.f32 %v8358_v4, %v14457_v50  ;;  %v8601_v43 = vmax.f32 %v8357_v57, 0.0 }
 0x789   : > { %v8362_v58 = vpop.f32.mrf.mxu0  ;;  %v7735_v45 = vadd.f32 %v7734_v3, %v14214_v23 }
 0x78a   : > { %v7736_v55 = vpop.f32.mrf.mxu1  ;;  %v8602_v52 = vmax.f32 %v8359_v27, 0.0  ;;  %v8703_v38 = vpack.c.bf16 %v8601_v43, %v8599_v16  ;;  %v8363_v39 = vadd.f32 %v8362_v58, %v14460_v12 }
 0x78b   : > { %v7737_v14 = vadd.f32 %v7736_v55, %v14211_v44  ;;  %v8364_v33 = vpop.f32.mrf.mxu0  ;;  %v7897_v11 = vmax.f32 %v7735_v45, 0.0 }
 0x78c   : > { %v7738_v36 = vpop.f32.mrf.mxu1  ;;  %v8704_v63 = vpack.c.bf16 %v8602_v52, %v8600_v40  ;;  %v8365_v13 = vadd.f32 %v8364_v33, %v14457_v50  ;;  %v8603_v46 = vmax.f32 %v8363_v39, 0.0 }
 0x78d   : > { %v7739_v32 = vadd.f32 %v7738_v36, %v14214_v23  ;;  %v8366_v59 = vpop.f32.mrf.mxu0  ;;  %v7898_v6 = vmax.f32 %v7737_v14, 0.0 }
 0x78e   : > { %v7740_v22 = vpop.f32.mrf.mxu1  ;;  %v8367_v0 = vadd.f32 %v8366_v59, %v14460_v12  ;;  %9005 = vmatprep.mubr.bf16.mxu1 %v8704_v63  ;;  %v8604_v25 = vmax.f32 %v8365_v13, 0.0 }
 0x78f   : > { %v7741_v54 = vadd.f32 %v7740_v22, %v14211_v44  ;;  %v7899_v21 = vmax.f32 %v7739_v32, 0.0  ;;  %v8368_v41 = vpop.f32.mrf.mxu0  ;;  %9006 = vmatmul.mubr.bf16.gmra.mxu1 %v8703_v38 }
 0x790   : > { %v8369_v56 = vadd.f32 %v8368_v41, %v14457_v50  ;;  %v8605_v7 = vmax.f32 %v8367_v0, 0.0 }
 0x791   : > { %v7900_v28 = vmax.f32 %v7741_v54, 0.0  ;;  %v8372_v61 = vpop.f32.mrf.mxu0  ;;  %v7973_v10 = vpack.c.bf16 %v7899_v21, %v7897_v11 }
 0x792   : > { %v8606_v1 = vmax.f32 %v8369_v56, 0.0  ;;  %v8705_v35 = vpack.c.bf16 %v8605_v7, %v8603_v46  ;;  %v8373_v60 = vadd.f32 %v8372_v61, %v14460_v12 }
 0x793   : > { %v7974_v53 = vpack.c.bf16 %v7900_v28, %v7898_v6  ;;  %v8374_v34 = vpop.f32.mrf.mxu0 }
 0x794   : > { %v8706_v19 = vpack.c.bf16 %v8606_v1, %v8604_v25  ;;  %v8375_v30 = vadd.f32 %v8374_v34, %v14457_v50  ;;  %v8607_v26 = vmax.f32 %v8373_v60, 0.0 }
 0x795   : > { %8490 = vmatprep.mubr.bf16.mxu0 %v7974_v53  ;;  %v8376_v20 = vpop.f32.mrf.mxu0 }
 0x796   : > { %8491 = vmatmul.mubr.bf16.gmra.mxu0 %v7973_v10  ;;  %v8377_v5 = vadd.f32 %v8376_v20, %v14460_v12  ;;  %9013 = vmatprep.mubr.bf16.mxu1 %v8706_v19  ;;  %v8608_v15 = vmax.f32 %v8375_v30, 0.0 }
 0x797   : > { %v8378_v42 = vpop.f32.mrf.mxu0  ;;  %9014 = vmatmul.mubr.bf16.gmra.mxu1 %v8705_v35 }
 0x798   : > { %v8379_v29 = vadd.f32 %v8378_v42, %v14457_v50  ;;  %v8609_v37 = vmax.f32 %v8377_v5, 0.0 }
 0x799   : > { %v8382_v2 = vpop.f32.mrf.mxu0 }
 0x79a   : > { %v8610_v18 = vmax.f32 %v8379_v29, 0.0  ;;  %v8707_v9 = vpack.c.bf16 %v8609_v37, %v8607_v26  ;;  %v8383_v55 = vadd.f32 %v8382_v2, %v14460_v12 }
 0x79b   : > { %v7744_v62 = vpop.f32.mrf.mxu1  ;;  %v8384_v48 = vpop.f32.mrf.mxu0 }
 0x79c   : > { %v8708_v31 = vpack.c.bf16 %v8610_v18, %v8608_v15  ;;  %v7745_v3 = vadd.f32 %v7744_v62, %v14214_v23  ;;  %v8385_v51 = vadd.f32 %v8384_v48, %v14457_v50  ;;  %v8611_v22 = vmax.f32 %v8383_v55, 0.0 }
 0x79d   : > { %v7746_v17 = vpop.f32.mrf.mxu1  ;;  %v8386_v49 = vpop.f32.mrf.mxu0 }
 0x79e   : > { %v7747_v8 = vadd.f32 %v7746_v17, %v14211_v44  ;;  %v8387_v4 = vadd.f32 %v8386_v49, %v14460_v12  ;;  %9021 = vmatprep.mubr.bf16.mxu1 %v8708_v31  ;;  %v7901_v33 = vmax.f32 %v7745_v3, 0.0  ;;  %v8612_v32 = vmax.f32 %v8385_v51, 0.0 }
 0x79f   : > { %v7748_v47 = vpop.f32.mrf.mxu1  ;;  %v8388_v43 = vpop.f32.mrf.mxu0  ;;  %9022 = vmatmul.mubr.bf16.gmra.mxu1 %v8707_v9 }
 0x7a0   : > { %v7749_v57 = vadd.f32 %v7748_v47, %v14214_v23  ;;  %v8389_v52 = vadd.f32 %v8388_v43, %v14457_v50  ;;  %v7902_v36 = vmax.f32 %v7747_v8, 0.0  ;;  %v8613_v16 = vmax.f32 %v8387_v4, 0.0 }
 0x7a1   : > { %v7750_v27 = vpop.f32.mrf.mxu1  ;;  %v8392_v45 = vpop.f32.mrf.mxu0 }
 0x7a2   : > { %v7751_v58 = vadd.f32 %v7750_v27, %v14211_v44  ;;  %v7903_v40 = vmax.f32 %v7749_v57, 0.0  ;;  %v8614_v63 = vmax.f32 %v8389_v52, 0.0  ;;  %v8709_v21 = vpack.c.bf16 %v8613_v16, %v8611_v22 }
 0x7a3   : > { %v8394_v13 = vpop.f32.mrf.mxu0  ;;  %v8393_v28 = vadd.f32 %v8392_v45, %v14460_v12 }
 0x7a4   : > { %v7904_v14 = vmax.f32 %v7751_v58, 0.0  ;;  %v7975_v59 = vpack.c.bf16 %v7903_v40, %v7901_v33  ;;  %v8710_v54 = vpack.c.bf16 %v8614_v63, %v8612_v32  ;;  %v8395_v39 = vadd.f32 %v8394_v13, %v14457_v50 }
 0x7a5   : > { %v8396_v0 = vpop.f32.mrf.mxu0  ;;  %v8615_v10 = vmax.f32 %v8393_v28, 0.0 }
 0x7a6   : > { %v7976_v38 = vpack.c.bf16 %v7904_v14, %v7902_v36  ;;  %9029 = vmatprep.mubr.bf16.mxu1 %v8710_v54  ;;  %v8397_v6 = vadd.f32 %v8396_v0, %v14460_v12  ;;  %v8616_v61 = vmax.f32 %v8395_v39, 0.0 }
 0x7a7   : > { %9030 = vmatmul.mubr.bf16.gmra.mxu1 %v8709_v21  ;;  %v8398_v41 = vpop.f32.mrf.mxu0 }
 0x7a8   : > { %8500 = vmatprep.mubr.bf16.mxu0 %v7976_v38  ;;  %v8399_v11 = vadd.f32 %v8398_v41, %v14457_v50  ;;  %v8617_v56 = vmax.f32 %v8397_v6, 0.0 }
 0x7a9   : > { %8501 = vmatmul.mubr.bf16.gmra.mxu0 %v7975_v59 }
 0x7aa   : > { %v8618_v53 = vmax.f32 %v8399_v11, 0.0  ;;  %v8711_v19 = vpack.c.bf16 %v8617_v56, %v8615_v10 }
 0x7ab   : > { %v8402_v7 = vpop.f32.mrf.mxu0 }
 0x7ac   : > { %v8712_v46 = vpack.c.bf16 %v8618_v53, %v8616_v61  ;;  %v8403_v60 = vadd.f32 %v8402_v7, %v14460_v12 }
 0x7ad   : > { %v8404_v1 = vpop.f32.mrf.mxu0 }
 0x7ae   : > { %v7754_v25 = vpop.f32.mrf.mxu1  ;;  %v8405_v20 = vadd.f32 %v8404_v1, %v14457_v50  ;;  %9037 = vmatprep.mubr.bf16.mxu1 %v8712_v46  ;;  %v8619_v47 = vmax.f32 %v8403_v60, 0.0 }
 0x7af   : > { %v8406_v35 = vpop.f32.mrf.mxu0  ;;  %9038 = vmatmul.mubr.bf16.gmra.mxu1 %v8711_v19  ;;  %v7755_v37 = vadd.f32 %v7754_v25, %v14214_v23 }
 0x7b0   : > { %v7756_v34 = vpop.f32.mrf.mxu1  ;;  %v8407_v30 = vadd.f32 %v8406_v35, %v14460_v12  ;;  %v8620_v26 = vmax.f32 %v8405_v20, 0.0 }
 0x7b1   : > { %v7757_v42 = vadd.f32 %v7756_v34, %v14211_v44  ;;  %v8408_v29 = vpop.f32.mrf.mxu0  ;;  %v7905_v49 = vmax.f32 %v7755_v37, 0.0 }
 0x7b2   : > { %v7758_v5 = vpop.f32.mrf.mxu1  ;;  %v8409_v2 = vadd.f32 %v8408_v29, %v14457_v50  ;;  %v8621_v18 = vmax.f32 %v8407_v30, 0.0 }
 0x7b3   : > { %v7759_v62 = vadd.f32 %v7758_v5, %v14214_v23  ;;  %v7906_v9 = vmax.f32 %v7757_v42, 0.0 }
 0x7b4   : > { %v7760_v15 = vpop.f32.mrf.mxu1  ;;  %v8622_v48 = vmax.f32 %v8409_v2, 0.0  ;;  %v8713_v3 = vpack.c.bf16 %v8621_v18, %v8619_v47 }
 0x7b5   : > { %v7761_v17 = vadd.f32 %v7760_v15, %v14211_v44  ;;  %v7907_v31 = vmax.f32 %v7759_v62, 0.0 }
 0x7b6   : > { %v8714_v57 = vpack.c.bf16 %v8622_v48, %v8620_v26 }
 0x7b7   : > { %v7908_v8 = vmax.f32 %v7761_v17, 0.0  ;;  %v7977_v4 = vpack.c.bf16 %v7907_v31, %v7905_v49 }
 0x7b8   : > { %9045 = vmatprep.mubr.bf16.mxu1 %v8714_v57 }
 0x7b9   : > { %v7978_v51 = vpack.c.bf16 %v7908_v8, %v7906_v9  ;;  %9046 = vmatmul.mubr.bf16.gmra.mxu1 %v8713_v3 }
 0x7bb   : > { %8510 = vmatprep.mubr.bf16.mxu0 %v7978_v51  ;;  %v8775_v51 = vld [vmem:[%s14861_s19] sm:$0x1] }
 0x7bc   : > { %8511 = vmatmul.mubr.bf16.gmra.mxu0 %v7977_v4 }
 0x7be   : > { %v8412_v27 = vpop.f32.mrf.mxu0 }
 0x7bf   : > { %v8413_v16 = vadd.f32 %v8412_v27, %v14460_v12 }
 0x7c0   : > { %v8414_v55 = vpop.f32.mrf.mxu0 }
 0x7c1   : > { %v7764_v43 = vpop.f32.mrf.mxu1  ;;  %v8415_v52 = vadd.f32 %v8414_v55, %v14457_v50  ;;  %v8623_v0 = vmax.f32 %v8413_v16, 0.0 }
 0x7c2   : > { %v8416_v58 = vpop.f32.mrf.mxu0  ;;  %v7765_v22 = vadd.f32 %v7764_v43, %v14214_v23 }
 0x7c3   : > { %v7766_v40 = vpop.f32.mrf.mxu1  ;;  %v8417_v36 = vadd.f32 %v8416_v58, %v14460_v12  ;;  %v8624_v54 = vmax.f32 %v8415_v52, 0.0  ;;  %v8776_v58 = vunpack.c.l.bf16 %v8775_v51 }
 0x7c4   : > { %v8418_v14 = vpop.f32.mrf.mxu0  ;;  %v7767_v32 = vadd.f32 %v7766_v40, %v14211_v44  ;;  %v7909_v11 = vmax.f32 %v7765_v22, 0.0 }
 0x7c5   : > { %v7768_v33 = vpop.f32.mrf.mxu1  ;;  %v8419_v63 = vadd.f32 %v8418_v14, %v14457_v50  ;;  %v8625_v38 = vmax.f32 %v8417_v36, 0.0 }
 0x7c6   : > { %v7769_v45 = vadd.f32 %v7768_v33, %v14214_v23  ;;  %v7910_v6 = vmax.f32 %v7767_v32, 0.0 }
 0x7c7   : > { %v7770_v59 = vpop.f32.mrf.mxu1  ;;  %v8626_v13 = vmax.f32 %v8419_v63, 0.0  ;;  %v8715_v56 = vpack.c.bf16 %v8625_v38, %v8623_v0 }
 0x7c8   : > { %v7771_v21 = vadd.f32 %v7770_v59, %v14211_v44  ;;  %v7911_v39 = vmax.f32 %v7769_v45, 0.0  ;;  %v14593_v59 = vrot.slane %v8776_v58, %v15504_v24 }
 0x7c9   : > { %v8716_v28 = vpack.c.bf16 %v8626_v13, %v8624_v54 }
 0x7ca   : > { %v7912_v41 = vmax.f32 %v7771_v21, 0.0  ;;  %v7979_v61 = vpack.c.bf16 %v7911_v39, %v7909_v11 }
 0x7cb   : > { %9053 = vmatprep.mubr.bf16.mxu1 %v8716_v28 }
 0x7cc   : > { %v7980_v7 = vpack.c.bf16 %v7912_v41, %v7910_v6  ;;  %9054 = vmatmul.mubr.bf16.gmra.mxu1 %v8715_v56 }
 0x7ce   : > { %8520 = vmatprep.mubr.bf16.mxu0 %v7980_v7 }
 0x7cf   : > { %8521 = vmatmul.mubr.bf16.gmra.mxu0 %v7979_v61 }
 0x7d1   : > { %v8422_v53 = vpop.f32.mrf.mxu0 }
 0x7d2   : > { %v8423_v35 = vadd.f32 %v8422_v53, %v14460_v12 }
 0x7d3   : > { %v8424_v25 = vpop.f32.mrf.mxu0 }
 0x7d4   : > { %v7774_v10 = vpop.f32.mrf.mxu1  ;;  %v8425_v34 = vadd.f32 %v8424_v25, %v14457_v50  ;;  %v8627_v17 = vmax.f32 %v8423_v35, 0.0 }
 0x7d5   : > { %v8426_v1 = vpop.f32.mrf.mxu0  ;;  %v7775_v29 = vadd.f32 %v7774_v10, %v14214_v23 }
 0x7d6   : > { %v7776_v46 = vpop.f32.mrf.mxu1  ;;  %v8427_v19 = vadd.f32 %v8426_v1, %v14460_v12  ;;  %v8628_v2 = vmax.f32 %v8425_v34, 0.0 }
 0x7d7   : > { %v8428_v20 = vpop.f32.mrf.mxu0  ;;  %v7777_v5 = vadd.f32 %v7776_v46, %v14211_v44  ;;  %v7913_v9 = vmax.f32 %v7775_v29, 0.0 }
 0x7d8   : > { %v7778_v30 = vpop.f32.mrf.mxu1  ;;  %v8429_v60 = vadd.f32 %v8428_v20, %v14457_v50  ;;  %v8629_v62 = vmax.f32 %v8427_v19, 0.0 }
 0x7d9   : > { %v7779_v42 = vadd.f32 %v7778_v30, %v14214_v23  ;;  %v7914_v48 = vmax.f32 %v7777_v5, 0.0 }
 0x7da   : > { %v7780_v37 = vpop.f32.mrf.mxu1  ;;  %v8630_v15 = vmax.f32 %v8429_v60, 0.0  ;;  %v8717_v8 = vpack.c.bf16 %v8629_v62, %v8627_v17 }
 0x7db   : > { %v7781_v18 = vadd.f32 %v7780_v37, %v14211_v44  ;;  %v7915_v26 = vmax.f32 %v7779_v42, 0.0 }
 0x7dc   : > { %v8718_v31 = vpack.c.bf16 %v8630_v15, %v8628_v2 }
 0x7dd   : > { %v7916_v47 = vmax.f32 %v7781_v18, 0.0  ;;  %v7981_v57 = vpack.c.bf16 %v7915_v26, %v7913_v9 }
 0x7de   : > { %9061 = vmatprep.mubr.bf16.mxu1 %v8718_v31 }
 0x7df   : > { %v7982_v49 = vpack.c.bf16 %v7916_v47, %v7914_v48  ;;  %9062 = vmatmul.mubr.bf16.gmra.mxu1 %v8717_v8 }
 0x7e1   : > { %8530 = vmatprep.mubr.bf16.mxu0 %v7982_v49 }
 0x7e2   : > { %8531 = vmatmul.mubr.bf16.gmra.mxu0 %v7981_v57 }
 0x7e4   : > { %v8432_v3 = vpop.f32.mrf.mxu0 }
 0x7e5   : > { %v8433_v36 = vadd.f32 %v8432_v3, %v14460_v12 }
 0x7e6   : > { %v8434_v4 = vpop.f32.mrf.mxu0 }
 0x7e7   : > { %v7784_v27 = vpop.f32.mrf.mxu1  ;;  %v8435_v40 = vadd.f32 %v8434_v4, %v14457_v50  ;;  %v8631_v0 = vmax.f32 %v8433_v36, 0.0 }
 0x7e8   : > { %v8436_v55 = vpop.f32.mrf.mxu0  ;;  %v7785_v45 = vadd.f32 %v7784_v27, %v14214_v23 }
 0x7e9   : > { %v7786_v43 = vpop.f32.mrf.mxu1  ;;  %v8437_v52 = vadd.f32 %v8436_v55, %v14460_v12  ;;  %v8632_v54 = vmax.f32 %v8435_v40, 0.0 }
 0x7ea   : > { %v8438_v16 = vpop.f32.mrf.mxu0  ;;  %v7787_v33 = vadd.f32 %v7786_v43, %v14211_v44  ;;  %v7917_v24 = vmax.f32 %v7785_v45, 0.0 }
 0x7eb   : > { %v7788_v14 = vpop.f32.mrf.mxu1  ;;  %v8439_v32 = vadd.f32 %v8438_v16, %v14457_v50  ;;  %v8633_v22 = vmax.f32 %v8437_v52, 0.0 }
 0x7ec   : > { %v7789_v63 = vadd.f32 %v7788_v14, %v14214_v23  ;;  %v7918_v6 = vmax.f32 %v7787_v33, 0.0 }
 0x7ed   : > { %v7790_v38 = vpop.f32.mrf.mxu1  ;;  %v8634_v13 = vmax.f32 %v8439_v32, 0.0  ;;  %v8719_v11 = vpack.c.bf16 %v8633_v22, %v8631_v0 }
 0x7ee   : > { %v7791_v21 = vadd.f32 %v7790_v38, %v14211_v44  ;;  %v7919_v39 = vmax.f32 %v7789_v63, 0.0 }
 0x7ef   : > { %v8720_v28 = vpack.c.bf16 %v8634_v13, %v8632_v54  ;;  %v8911_v23 = vpop.f32.mrf.mxu1 }
 0x7f0   : > { %v7920_v41 = vmax.f32 %v7791_v21, 0.0  ;;  %v8912_v56 = vadd.f32 %v8911_v23, %v14593_v59  ;;  %v7983_v61 = vpack.c.bf16 %v7919_v39, %v7917_v24 }
 0x7f1   : > { %v8913_v44 = vpop.f32.mrf.mxu1  ;;  %9069 = vmatprep.mubr.bf16.mxu1 %v8720_v28 }
 0x7f2   : > { %v7984_v7 = vpack.c.bf16 %v7920_v41, %v7918_v6  ;;  %9167 = vst.msk [vmem:[%s14601_s28] sm:$0xff] %vm9166_vm0, %v8912_v56  ;;  %9070 = vmatmul.mubr.bf16.gmra.mxu1 %v8719_v11 }
 0x7f3   : > { %v8914_v53 = vpop.f32.mrf.mxu1 }
 0x7f4   : > { %8540 = vmatprep.mubr.bf16.mxu0 %v7984_v7  ;;  %v8915_v25 = vadd.f32 %v8914_v53, %v14593_v59 }
 0x7f5   : > { %8541 = vmatmul.mubr.bf16.gmra.mxu0 %v7983_v61  ;;  %v8916_v10 = vpop.f32.mrf.mxu1 }
 0x7f6   : > { %9168 = vst.msk [vmem:[%s14601_s28 + $0x8] sm:$0xff] %vm9166_vm0, %v8915_v25 }
 0x7f7   : > { %v8442_v1 = vpop.f32.mrf.mxu0  ;;  %v8919_v46 = vpop.f32.mrf.mxu1 }
 0x7f8   : > { %v8920_v34 = vadd.f32 %v8919_v46, %v14593_v59  ;;  %v8443_v42 = vadd.f32 %v8442_v1, %v14460_v12 }
 0x7f9   : > { %v8444_v19 = vpop.f32.mrf.mxu0  ;;  %v8921_v35 = vpop.f32.mrf.mxu1 }
 0x7fa   : > { %9169 = vst.msk [vmem:[%s14601_s28 + $0x10] sm:$0xff] %vm9166_vm0, %v8920_v34  ;;  %v8445_v30 = vadd.f32 %v8444_v19, %v14457_v50  ;;  %v8635_v48 = vmax.f32 %v8443_v42, 0.0 }
 0x7fb   : > { %v8446_v20 = vpop.f32.mrf.mxu0  ;;  %v8922_v60 = vpop.f32.mrf.mxu1 }
 0x7fc   : > { %v8447_v5 = vadd.f32 %v8446_v20, %v14460_v12  ;;  %v8923_v29 = vadd.f32 %v8922_v60, %v14593_v59  ;;  %v8636_v18 = vmax.f32 %v8445_v30, 0.0 }
 0x7fd   : > { %v8448_v62 = vpop.f32.mrf.mxu0  ;;  %v8924_v2 = vpop.f32.mrf.mxu1 }
 0x7fe   : > { %v8449_v37 = vadd.f32 %v8448_v62, %v14457_v50  ;;  %v8637_v15 = vmax.f32 %v8447_v5, 0.0  ;;  %9170 = vst.msk [vmem:[%s14601_s28 + $0x18] sm:$0xff] %vm9166_vm0, %v8923_v29 }
 0x7ff   : > { %v8927_v26 = vpop.f32.mrf.mxu1 }
 0x800   : > { %v8638_v17 = vmax.f32 %v8449_v37, 0.0  ;;  %v8928_v31 = vadd.f32 %v8927_v26, %v14593_v59  ;;  %v8721_v8 = vpack.c.bf16 %v8637_v15, %v8635_v48 }
 0x801   : > { %v8929_v9 = vpop.f32.mrf.mxu1 }
 0x802   : > { %v8722_v47 = vpack.c.bf16 %v8638_v17, %v8636_v18  ;;  %9171 = vst.msk [vmem:[%s14601_s28 + $0x20] sm:$0xff] %vm9166_vm0, %v8928_v31 }
 0x803   : > { %v8930_v49 = vpop.f32.mrf.mxu1 }
 0x804   : > { %9077 = vmatprep.mubr.bf16.mxu1 %v8722_v47  ;;  %v8931_v57 = vadd.f32 %v8930_v49, %v14593_v59 }
 0x805   : > { %9078 = vmatmul.mubr.bf16.gmra.mxu1 %v8721_v8  ;;  %v8932_v3 = vpop.f32.mrf.mxu1 }
 0x806   : > { %9172 = vst.msk [vmem:[%s14601_s28 + $0x28] sm:$0xff] %vm9166_vm0, %v8931_v57 }
 0x807   : > { %v8935_v51 = vpop.f32.mrf.mxu1 }
 0x808   : > { %v8936_v4 = vadd.f32 %v8935_v51, %v14593_v59 }
 0x809   : > { %v8937_v27 = vpop.f32.mrf.mxu1 }
 0x80a   : > { %9173 = vst.msk [vmem:[%s14601_s28 + $0x30] sm:$0xff] %vm9166_vm0, %v8936_v4  ;;  %v8452_v55 = vpop.f32.mrf.mxu0 }
 0x80b   : > { %v8938_v43 = vpop.f32.mrf.mxu1  ;;  %v8453_v32 = vadd.f32 %v8452_v55, %v14460_v12 }
 0x80c   : > { %v8939_v58 = vadd.f32 %v8938_v43, %v14593_v59  ;;  %v8454_v40 = vpop.f32.mrf.mxu0 }
 0x80d   : > { %v8940_v52 = vpop.f32.mrf.mxu1  ;;  %v8455_v16 = vadd.f32 %v8454_v40, %v14457_v50  ;;  %v8639_v39 = vmax.f32 %v8453_v32, 0.0 }
 0x80e   : > { %9174 = vst.msk [vmem:[%s14601_s28 + $0x38] sm:$0xff] %vm9166_vm0, %v8939_v58  ;;  %v8456_v36 = vpop.f32.mrf.mxu0 }
 0x80f   : > { %v8457_v14 = vadd.f32 %v8456_v36, %v14460_v12  ;;  %v8943_v33 = vpop.f32.mrf.mxu1  ;;  %v8640_v13 = vmax.f32 %v8455_v16, 0.0 }
 0x810   : > { %v8944_v63 = vadd.f32 %v8943_v33, %v14593_v59  ;;  %v8458_v45 = vpop.f32.mrf.mxu0 }
 0x811   : > { %v8459_v22 = vadd.f32 %v8458_v45, %v14457_v50  ;;  %v8945_v38 = vpop.f32.mrf.mxu1  ;;  %v8641_v54 = vmax.f32 %v8457_v14, 0.0 }
 0x812   : > { %9175 = vst.msk [vmem:[%s14601_s28 + $0x40] sm:$0xff] %vm9166_vm0, %v8944_v63 }
 0x813   : > { %v8642_v21 = vmax.f32 %v8459_v22, 0.0  ;;  %v8946_v0 = vpop.f32.mrf.mxu1  ;;  %v8723_v23 = vpack.c.bf16 %v8641_v54, %v8639_v39 }
 0x814   : > { %v8947_v6 = vadd.f32 %v8946_v0, %v14593_v59 }
 0x815   : > { %v8724_v28 = vpack.c.bf16 %v8642_v21, %v8640_v13  ;;  %v8948_v41 = vpop.f32.mrf.mxu1 }
 0x816   : > { %9176 = vst.msk [vmem:[%s14601_s28 + $0x48] sm:$0xff] %vm9166_vm0, %v8947_v6 }
 0x817   : > { %v8951_v24 = vpop.f32.mrf.mxu1  ;;  %9085 = vmatprep.mubr.bf16.mxu1 %v8724_v28 }
 0x818   : > { %v8952_v11 = vadd.f32 %v8951_v24, %v14593_v59  ;;  %9086 = vmatmul.mubr.bf16.gmra.mxu1 %v8723_v23 }
 0x819   : > { %v8953_v56 = vpop.f32.mrf.mxu1 }
 0x81a   : > { %9177 = vst.msk [vmem:[%s14601_s28 + $0x50] sm:$0xff] %vm9166_vm0, %v8952_v11 }
 0x81b   : > { %v8954_v44 = vpop.f32.mrf.mxu1 }
 0x81c   : > { %v8955_v7 = vadd.f32 %v8954_v44, %v14593_v59 }
 0x81d   : > { %v8462_v61 = vpop.f32.mrf.mxu0  ;;  %v8956_v53 = vpop.f32.mrf.mxu1 }
 0x81e   : > { %9178 = vst.msk [vmem:[%s14601_s28 + $0x58] sm:$0xff] %vm9166_vm0, %v8955_v7  ;;  %v8463_v20 = vadd.f32 %v8462_v61, %v14460_v12 }
 0x81f   : > { %v8464_v25 = vpop.f32.mrf.mxu0  ;;  %v8959_v10 = vpop.f32.mrf.mxu1 }
 0x820   : > { %v8960_v1 = vadd.f32 %v8959_v10, %v14593_v59  ;;  %v8465_v34 = vadd.f32 %v8464_v25, %v14457_v50  ;;  %v8643_v15 = vmax.f32 %v8463_v20, 0.0 }
 0x821   : > { %v8466_v46 = vpop.f32.mrf.mxu0  ;;  %v8961_v35 = vpop.f32.mrf.mxu1 }
 0x822   : > { %v8467_v19 = vadd.f32 %v8466_v46, %v14460_v12  ;;  %9179 = vst.msk [vmem:[%s14601_s28 + $0x60] sm:$0xff] %vm9166_vm0, %v8960_v1  ;;  %v8644_v62 = vmax.f32 %v8465_v34, 0.0 }
 0x823   : > { %v8468_v30 = vpop.f32.mrf.mxu0  ;;  %v8962_v60 = vpop.f32.mrf.mxu1 }
 0x824   : > { %v8469_v5 = vadd.f32 %v8468_v30, %v14457_v50  ;;  %v8645_v42 = vmax.f32 %v8467_v19, 0.0  ;;  %v8963_v29 = vadd.f32 %v8962_v60, %v14593_v59 }
 0x825   : > { %v8964_v2 = vpop.f32.mrf.mxu1 }
 0x826   : > { %v8646_v37 = vmax.f32 %v8469_v5, 0.0  ;;  %9180 = vst.msk [vmem:[%s14601_s28 + $0x68] sm:$0xff] %vm9166_vm0, %v8963_v29  ;;  %v8725_v17 = vpack.c.bf16 %v8645_v42, %v8643_v15 }
 0x827   : > { %v8967_v26 = vpop.f32.mrf.mxu1 }
 0x828   : > { %v8726_v18 = vpack.c.bf16 %v8646_v37, %v8644_v62  ;;  %v8968_v48 = vadd.f32 %v8967_v26, %v14593_v59 }
 0x829   : > { %v8969_v31 = vpop.f32.mrf.mxu1 }
 0x82a   : > { %9093 = vmatprep.mubr.bf16.mxu1 %v8726_v18  ;;  %9181 = vst.msk [vmem:[%s14601_s28 + $0x70] sm:$0xff] %vm9166_vm0, %v8968_v48 }
 0x82b   : > { %9094 = vmatmul.mubr.bf16.gmra.mxu1 %v8725_v17  ;;  %v8970_v47 = vpop.f32.mrf.mxu1 }
 0x82c   : > { %v8971_v9 = vadd.f32 %v8970_v47, %v14593_v59 }
 0x82d   : > { %v8972_v8 = vpop.f32.mrf.mxu1 }
 0x82e   : > { %9182 = vst.msk [vmem:[%s14601_s28 + $0x78] sm:$0xff] %vm9166_vm0, %v8971_v9 }
 0x82f   : > { %v8975_v57 = vpop.f32.mrf.mxu1 }
 0x830   : > { %v8472_v49 = vpop.f32.mrf.mxu0  ;;  %v8976_v3 = vadd.f32 %v8975_v57, %v14593_v59 }
 0x831   : > { %v8977_v4 = vpop.f32.mrf.mxu1  ;;  %v8473_v40 = vadd.f32 %v8472_v49, %v14460_v12 }
 0x832   : > { %v8474_v51 = vpop.f32.mrf.mxu0  ;;  %9183 = vst.msk [vmem:[%s14601_s28 + $0x80] sm:$0xff] %vm9166_vm0, %v8976_v3 }
 0x833   : > { %v8475_v55 = vadd.f32 %v8474_v51, %v14457_v50  ;;  %v8978_v43 = vpop.f32.mrf.mxu1  ;;  %v8647_v45 = vmax.f32 %v8473_v40, 0.0 }
 0x834   : > { %v8476_v27 = vpop.f32.mrf.mxu0  ;;  %v8979_v52 = vadd.f32 %v8978_v43, %v14593_v59 }
 0x835   : > { %v8477_v58 = vadd.f32 %v8476_v27, %v14460_v12  ;;  %v8980_v16 = vpop.f32.mrf.mxu1  ;;  %v8648_v32 = vmax.f32 %v8475_v55, 0.0 }
 0x836   : > { %v8478_v36 = vpop.f32.mrf.mxu0  ;;  %9184 = vst.msk [vmem:[%s14601_s28 + $0x88] sm:$0xff] %vm9166_vm0, %v8979_v52 }
 0x837   : > { %v8479_v14 = vadd.f32 %v8478_v36, %v14457_v50  ;;  %v8649_v33 = vmax.f32 %v8477_v58, 0.0  ;;  %v8983_v22 = vpop.f32.mrf.mxu1 }
 0x838   : > { %v8984_v54 = vadd.f32 %v8983_v22, %v14593_v59 }
 0x839   : > { %v8650_v63 = vmax.f32 %v8479_v14, 0.0  ;;  %v8727_v13 = vpack.c.bf16 %v8649_v33, %v8647_v45  ;;  %v8985_v21 = vpop.f32.mrf.mxu1 }
 0x83a   : > { %9185 = vst.msk [vmem:[%s14601_s28 + $0x90] sm:$0xff] %vm9166_vm0, %v8984_v54 }
 0x83b   : > { %v8728_v38 = vpack.c.bf16 %v8650_v63, %v8648_v32  ;;  %v8986_v0 = vpop.f32.mrf.mxu1 }
 0x83c   : > { %v8987_v39 = vadd.f32 %v8986_v0, %v14593_v59 }
 0x83d   : > { %9101 = vmatprep.mubr.bf16.mxu1 %v8728_v38  ;;  %v8988_v6 = vpop.f32.mrf.mxu1 }
 0x83e   : > { %9102 = vmatmul.mubr.bf16.gmra.mxu1 %v8727_v13  ;;  %9186 = vst.msk [vmem:[%s14601_s28 + $0x98] sm:$0xff] %vm9166_vm0, %v8987_v39 }
 0x83f   : > { %v8991_v28 = vpop.f32.mrf.mxu1 }
 0x840   : > { %v8992_v41 = vadd.f32 %v8991_v28, %v14593_v59 }
 0x841   : > { %v8993_v24 = vpop.f32.mrf.mxu1 }
 0x842   : > { %9187 = vst.msk [vmem:[%s14601_s28 + $0xa0] sm:$0xff] %vm9166_vm0, %v8992_v41 }
 0x843   : > { %v8482_v23 = vpop.f32.mrf.mxu0  ;;  %v8994_v56 = vpop.f32.mrf.mxu1 }
 0x844   : > { %v8995_v44 = vadd.f32 %v8994_v56, %v14593_v59  ;;  %v8483_v10 = vadd.f32 %v8482_v23, %v14460_v12 }
 0x845   : > { %v8484_v11 = vpop.f32.mrf.mxu0  ;;  %v8996_v53 = vpop.f32.mrf.mxu1 }
 0x846   : > { %v8485_v61 = vadd.f32 %v8484_v11, %v14457_v50  ;;  %9188 = vst.msk [vmem:[%s14601_s28 + $0xa8] sm:$0xff] %vm9166_vm0, %v8995_v44  ;;  %v8651_v60 = vmax.f32 %v8483_v10, 0.0 }
 0x847   : > { %v8486_v7 = vpop.f32.mrf.mxu0  ;;  %v8999_v46 = vpop.f32.mrf.mxu1 }
 0x848   : > { %v8487_v25 = vadd.f32 %v8486_v7, %v14460_v12  ;;  %v9000_v35 = vadd.f32 %v8999_v46, %v14593_v59  ;;  %v8652_v20 = vmax.f32 %v8485_v61, 0.0 }
 0x849   : > { %v8488_v1 = vpop.f32.mrf.mxu0  ;;  %v9001_v5 = vpop.f32.mrf.mxu1 }
 0x84a   : > { %v8489_v34 = vadd.f32 %v8488_v1, %v14457_v50  ;;  %v8653_v19 = vmax.f32 %v8487_v25, 0.0  ;;  %9189 = vst.msk [vmem:[%s14601_s28 + $0xb0] sm:$0xff] %vm9166_vm0, %v9000_v35 }
 0x84b   : > { %v9002_v29 = vpop.f32.mrf.mxu1 }
 0x84c   : > { %v8654_v30 = vmax.f32 %v8489_v34, 0.0  ;;  %v8729_v62 = vpack.c.bf16 %v8653_v19, %v8651_v60  ;;  %v9003_v37 = vadd.f32 %v9002_v29, %v14593_v59 }
 0x84d   : > { %v9004_v2 = vpop.f32.mrf.mxu1 }
 0x84e   : > { %v8730_v42 = vpack.c.bf16 %v8654_v30, %v8652_v20  ;;  %9190 = vst.msk [vmem:[%s14601_s28 + $0xb8] sm:$0xff] %vm9166_vm0, %v9003_v37 }
 0x84f   : > { %v9007_v15 = vpop.f32.mrf.mxu1 }
 0x850   : > { %9109 = vmatprep.mubr.bf16.mxu1 %v8730_v42  ;;  %v9008_v18 = vadd.f32 %v9007_v15, %v14593_v59 }
 0x851   : > { %9110 = vmatmul.mubr.bf16.gmra.mxu1 %v8729_v62  ;;  %v9009_v17 = vpop.f32.mrf.mxu1 }
 0x852   : > { %9191 = vst.msk [vmem:[%s14601_s28 + $0xc0] sm:$0xff] %vm9166_vm0, %v9008_v18 }
 0x853   : > { %v9010_v26 = vpop.f32.mrf.mxu1 }
 0x854   : > { %v9011_v48 = vadd.f32 %v9010_v26, %v14593_v59 }
 0x855   : > { %v9012_v47 = vpop.f32.mrf.mxu1 }
 0x856   : > { %v8492_v31 = vpop.f32.mrf.mxu0  ;;  %9192 = vst.msk [vmem:[%s14601_s28 + $0xc8] sm:$0xff] %vm9166_vm0, %v9011_v48 }
 0x857   : > { %v9015_v8 = vpop.f32.mrf.mxu1  ;;  %v8493_v27 = vadd.f32 %v8492_v31, %v14460_v12 }
 0x858   : > { %v8494_v9 = vpop.f32.mrf.mxu0  ;;  %v9016_v49 = vadd.f32 %v9015_v8, %v14593_v59 }
 0x859   : > { %v8495_v3 = vadd.f32 %v8494_v9, %v14457_v50  ;;  %v9017_v51 = vpop.f32.mrf.mxu1  ;;  %v8655_v33 = vmax.f32 %v8493_v27, 0.0 }
 0x85a   : > { %v8496_v57 = vpop.f32.mrf.mxu0  ;;  %9193 = vst.msk [vmem:[%s14601_s28 + $0xd0] sm:$0xff] %vm9166_vm0, %v9016_v49 }
 0x85b   : > { %v8497_v4 = vadd.f32 %v8496_v57, %v14460_v12  ;;  %v9018_v43 = vpop.f32.mrf.mxu1  ;;  %v8656_v36 = vmax.f32 %v8495_v3, 0.0 }
 0x85c   : > { %v8498_v55 = vpop.f32.mrf.mxu0  ;;  %v9019_v52 = vadd.f32 %v9018_v43, %v14593_v59 }
 0x85d   : > { %v8499_v58 = vadd.f32 %v8498_v55, %v14457_v50  ;;  %v8657_v40 = vmax.f32 %v8497_v4, 0.0  ;;  %v9020_v14 = vpop.f32.mrf.mxu1 }
 0x85e   : > { %9194 = vst.msk [vmem:[%s14601_s28 + $0xd8] sm:$0xff] %vm9166_vm0, %v9019_v52 }
 0x85f   : > { %v8658_v16 = vmax.f32 %v8499_v58, 0.0  ;;  %v9023_v63 = vpop.f32.mrf.mxu1  ;;  %v8731_v45 = vpack.c.bf16 %v8657_v40, %v8655_v33 }
 0x860   : > { %v9024_v22 = vadd.f32 %v9023_v63, %v14593_v59 }
 0x861   : > { %v8732_v32 = vpack.c.bf16 %v8658_v16, %v8656_v36  ;;  %v9025_v38 = vpop.f32.mrf.mxu1 }
 0x862   : > { %9195 = vst.msk [vmem:[%s14601_s28 + $0xe0] sm:$0xff] %vm9166_vm0, %v9024_v22 }
 0x863   : > { %9117 = vmatprep.mubr.bf16.mxu1 %v8732_v32  ;;  %v9026_v54 = vpop.f32.mrf.mxu1 }
 0x864   : > { %9118 = vmatmul.mubr.bf16.gmra.mxu1 %v8731_v45  ;;  %v9027_v13 = vadd.f32 %v9026_v54, %v14593_v59 }
 0x865   : > { %v9028_v21 = vpop.f32.mrf.mxu1 }
 0x866   : > { %9196 = vst.msk [vmem:[%s14601_s28 + $0xe8] sm:$0xff] %vm9166_vm0, %v9027_v13 }
 0x867   : > { %v9031_v39 = vpop.f32.mrf.mxu1 }
 0x868   : > { %v9032_v6 = vadd.f32 %v9031_v39, %v14593_v59 }
 0x869   : > { %v8502_v0 = vpop.f32.mrf.mxu0  ;;  %v9033_v41 = vpop.f32.mrf.mxu1 }
 0x86a   : > { %9197 = vst.msk [vmem:[%s14601_s28 + $0xf0] sm:$0xff] %vm9166_vm0, %v9032_v6  ;;  %v8503_v44 = vadd.f32 %v8502_v0, %v14460_v12 }
 0x86b   : > { %v8504_v28 = vpop.f32.mrf.mxu0  ;;  %v9034_v11 = vpop.f32.mrf.mxu1 }
 0x86c   : > { %v8505_v24 = vadd.f32 %v8504_v28, %v14457_v50  ;;  %v9035_v7 = vadd.f32 %v9034_v11, %v14593_v59  ;;  %v8659_v34 = vmax.f32 %v8503_v44, 0.0 }
 0x86d   : > { %v8506_v23 = vpop.f32.mrf.mxu0  ;;  %v9036_v53 = vpop.f32.mrf.mxu1 }
 0x86e   : > { %v8507_v56 = vadd.f32 %v8506_v23, %v14460_v12  ;;  %9198 = vst.msk [vmem:[%s14601_s28 + $0xf8] sm:$0xff] %vm9166_vm0, %v9035_v7  ;;  %v8660_v1 = vmax.f32 %v8505_v24, 0.0 }
 0x86f   : > { %v8508_v61 = vpop.f32.mrf.mxu0  ;;  %v9039_v19 = vpop.f32.mrf.mxu1 }
 0x870   : > { %v8509_v25 = vadd.f32 %v8508_v61, %v14457_v50  ;;  %v8661_v10 = vmax.f32 %v8507_v56, 0.0  ;;  %v9040_v20 = vadd.f32 %v9039_v19, %v14593_v59 }
 0x871   : > { %v9041_v5 = vpop.f32.mrf.mxu1 }
 0x872   : > { %v8662_v46 = vmax.f32 %v8509_v25, 0.0  ;;  %v8733_v30 = vpack.c.bf16 %v8661_v10, %v8659_v34  ;;  %9199 = vst.msk [vmem:[%s14601_s28 + $0x100] sm:$0xff] %vm9166_vm0, %v9040_v20 }
 0x873   : > { %v9042_v60 = vpop.f32.mrf.mxu1 }
 0x874   : > { %v8734_v35 = vpack.c.bf16 %v8662_v46, %v8660_v1  ;;  %v9043_v42 = vadd.f32 %v9042_v60, %v14593_v59 }
 0x875   : > { %v9044_v29 = vpop.f32.mrf.mxu1 }
 0x876   : > { %9125 = vmatprep.mubr.bf16.mxu1 %v8734_v35  ;;  %9200 = vst.msk [vmem:[%s14601_s28 + $0x108] sm:$0xff] %vm9166_vm0, %v9043_v42 }
 0x877   : > { %9126 = vmatmul.mubr.bf16.gmra.mxu1 %v8733_v30 }
 0x879   : > { %v9047_v62 = vpop.f32.mrf.mxu1 }
 0x87a   : > { %v9048_v37 = vadd.f32 %v9047_v62, %v14593_v59 }
 0x87b   : > { %v9049_v15 = vpop.f32.mrf.mxu1 }
 0x87c   : > { %v8512_v2 = vpop.f32.mrf.mxu0  ;;  %9201 = vst.msk [vmem:[%s14601_s28 + $0x110] sm:$0xff] %vm9166_vm0, %v9048_v37 }
 0x87d   : > { %v9050_v17 = vpop.f32.mrf.mxu1  ;;  %v8513_v8 = vadd.f32 %v8512_v2, %v14460_v12 }
 0x87e   : > { %v8514_v18 = vpop.f32.mrf.mxu0  ;;  %v9051_v26 = vadd.f32 %v9050_v17, %v14593_v59 }
 0x87f   : > { %v8515_v31 = vadd.f32 %v8514_v18, %v14457_v50  ;;  %v9052_v47 = vpop.f32.mrf.mxu1  ;;  %v8663_v27 = vmax.f32 %v8513_v8, 0.0 }
 0x880   : > { %v8516_v48 = vpop.f32.mrf.mxu0  ;;  %9202 = vst.msk [vmem:[%s14601_s28 + $0x118] sm:$0xff] %vm9166_vm0, %v9051_v26 }
 0x881   : > { %v8517_v9 = vadd.f32 %v8516_v48, %v14460_v12  ;;  %v8664_v51 = vmax.f32 %v8515_v31, 0.0 }
 0x882   : > { %v8518_v49 = vpop.f32.mrf.mxu0 }
 0x883   : > { %v8519_v57 = vadd.f32 %v8518_v49, %v14457_v50  ;;  %v8665_v3 = vmax.f32 %v8517_v9, 0.0 }
 0x885   : > { %v8666_v4 = vmax.f32 %v8519_v57, 0.0  ;;  %v8735_v43 = vpack.c.bf16 %v8665_v3, %v8663_v27 }
 0x887   : > { %v8736_v55 = vpack.c.bf16 %v8666_v4, %v8664_v51 }
 0x889   : > { %9133 = vmatprep.mubr.bf16.mxu1 %v8736_v55 }
 0x88a   : > { %9134 = vmatmul.mubr.bf16.gmra.mxu1 %v8735_v43 }
 0x88c   : > { %v9055_v58 = vpop.f32.mrf.mxu1 }
 0x88d   : > { %v9056_v40 = vadd.f32 %v9055_v58, %v14593_v59 }
 0x88e   : > { %v9057_v52 = vpop.f32.mrf.mxu1 }
 0x88f   : > { %v8522_v36 = vpop.f32.mrf.mxu0  ;;  %9203 = vst.msk [vmem:[%s14601_s28 + $0x120] sm:$0xff] %vm9166_vm0, %v9056_v40 }
 0x890   : > { %v9058_v16 = vpop.f32.mrf.mxu1  ;;  %v8523_v38 = vadd.f32 %v8522_v36, %v14460_v12 }
 0x891   : > { %v8524_v14 = vpop.f32.mrf.mxu0  ;;  %v9059_v33 = vadd.f32 %v9058_v16, %v14593_v59 }
 0x892   : > { %v9060_v32 = vpop.f32.mrf.mxu1  ;;  %v8525_v45 = vadd.f32 %v8524_v14, %v14457_v50  ;;  %v8667_v6 = vmax.f32 %v8523_v38, 0.0 }
 0x893   : > { %v8526_v63 = vpop.f32.mrf.mxu0  ;;  %9204 = vst.msk [vmem:[%s14601_s28 + $0x128] sm:$0xff] %vm9166_vm0, %v9059_v33 }
 0x894   : > { %v8527_v22 = vadd.f32 %v8526_v63, %v14460_v12  ;;  %v8668_v0 = vmax.f32 %v8525_v45, 0.0 }
 0x895   : > { %v8528_v54 = vpop.f32.mrf.mxu0 }
 0x896   : > { %v8529_v13 = vadd.f32 %v8528_v54, %v14457_v50  ;;  %v8669_v21 = vmax.f32 %v8527_v22, 0.0 }
 0x898   : > { %v8670_v39 = vmax.f32 %v8529_v13, 0.0  ;;  %v8737_v41 = vpack.c.bf16 %v8669_v21, %v8667_v6 }
 0x89a   : > { %v8738_v28 = vpack.c.bf16 %v8670_v39, %v8668_v0 }
 0x89c   : > { %9141 = vmatprep.mubr.bf16.mxu1 %v8738_v28 }
 0x89d   : > { %9142 = vmatmul.mubr.bf16.gmra.mxu1 %v8737_v41 }
 0x89f   : > { %v9063_v23 = vpop.f32.mrf.mxu1 }
 0x8a0   : > { %v9064_v24 = vadd.f32 %v9063_v23, %v14593_v59 }
 0x8a1   : > { %v9065_v11 = vpop.f32.mrf.mxu1 }
 0x8a2   : > { %v8532_v56 = vpop.f32.mrf.mxu0  ;;  %9205 = vst.msk [vmem:[%s14601_s28 + $0x130] sm:$0xff] %vm9166_vm0, %v9064_v24 }
 0x8a3   : > { %v9066_v44 = vpop.f32.mrf.mxu1  ;;  %v8533_v46 = vadd.f32 %v8532_v56, %v14460_v12 }
 0x8a4   : > { %v8534_v7 = vpop.f32.mrf.mxu0  ;;  %v9067_v61 = vadd.f32 %v9066_v44, %v14593_v59 }
 0x8a5   : > { %v9068_v53 = vpop.f32.mrf.mxu1  ;;  %v8535_v10 = vadd.f32 %v8534_v7, %v14457_v50  ;;  %v8671_v5 = vmax.f32 %v8533_v46, 0.0 }
 0x8a6   : > { %v8536_v25 = vpop.f32.mrf.mxu0  ;;  %9206 = vst.msk [vmem:[%s14601_s28 + $0x138] sm:$0xff] %vm9166_vm0, %v9067_v61 }
 0x8a7   : > { %v8537_v1 = vadd.f32 %v8536_v25, %v14460_v12  ;;  %v8672_v20 = vmax.f32 %v8535_v10, 0.0 }
 0x8a8   : > { %v8538_v34 = vpop.f32.mrf.mxu0 }
 0x8a9   : > { %v8539_v19 = vadd.f32 %v8538_v34, %v14457_v50  ;;  %v8673_v35 = vmax.f32 %v8537_v1, 0.0 }
 0x8ab   : > { %v8674_v30 = vmax.f32 %v8539_v19, 0.0  ;;  %v8739_v42 = vpack.c.bf16 %v8673_v35, %v8671_v5 }
 0x8ad   : > { %v8740_v60 = vpack.c.bf16 %v8674_v30, %v8672_v20 }
 0x8af   : > { %9149 = vmatprep.mubr.bf16.mxu1 %v8740_v60 }
 0x8b0   : > { %9150 = vmatmul.mubr.bf16.gmra.mxu1 %v8739_v42 }
 0x8b2   : > { %v9071_v29 = vpop.f32.mrf.mxu1 }
 0x8b3   : > { %v9072_v62 = vadd.f32 %v9071_v29, %v14593_v59 }
 0x8b4   : > { %v9073_v37 = vpop.f32.mrf.mxu1 }
 0x8b5   : > { %v8542_v2 = vpop.f32.mrf.mxu0  ;;  %9207 = vst.msk [vmem:[%s14601_s28 + $0x140] sm:$0xff] %vm9166_vm0, %v9072_v62 }
 0x8b6   : > { %v9074_v15 = vpop.f32.mrf.mxu1  ;;  %v8543_v9 = vadd.f32 %v8542_v2, %v14460_v12 }
 0x8b7   : > { %v8544_v18 = vpop.f32.mrf.mxu0  ;;  %v9075_v17 = vadd.f32 %v9074_v15, %v14593_v59 }
 0x8b8   : > { %v9076_v26 = vpop.f32.mrf.mxu1  ;;  %v8545_v31 = vadd.f32 %v8544_v18, %v14457_v50  ;;  %v8675_v4 = vmax.f32 %v8543_v9, 0.0 }
 0x8b9   : > { %v8546_v48 = vpop.f32.mrf.mxu0  ;;  %9208 = vst.msk [vmem:[%s14601_s28 + $0x148] sm:$0xff] %vm9166_vm0, %v9075_v17 }
 0x8ba   : > { %v8547_v47 = vadd.f32 %v8546_v48, %v14460_v12  ;;  %v8676_v3 = vmax.f32 %v8545_v31, 0.0 }
 0x8bb   : > { %v8548_v8 = vpop.f32.mrf.mxu0 }
 0x8bc   : > { %v8549_v49 = vadd.f32 %v8548_v8, %v14457_v50  ;;  %v8677_v57 = vmax.f32 %v8547_v47, 0.0 }
 0x8be   : > { %v8678_v51 = vmax.f32 %v8549_v49, 0.0  ;;  %v8741_v55 = vpack.c.bf16 %v8677_v57, %v8675_v4 }
 0x8c0   : > { %v8742_v27 = vpack.c.bf16 %v8678_v51, %v8676_v3 }
 0x8c2   : > { %9157 = vmatprep.mubr.bf16.mxu1 %v8742_v27 }
 0x8c3   : > { %9158 = vmatmul.mubr.bf16.gmra.mxu1 %v8741_v55 }
 0x8c5   : > { %v9079_v43 = vpop.f32.mrf.mxu1 }
 0x8c6   : > { %v9080_v58 = vadd.f32 %v9079_v43, %v14593_v59 }
 0x8c7   : > { %v9081_v40 = vpop.f32.mrf.mxu1 }
 0x8c8   : > { %9209 = vst.msk [vmem:[%s14601_s28 + $0x150] sm:$0xff] %vm9166_vm0, %v9080_v58 }
 0x8c9   : > { %v9082_v12 = vpop.f32.mrf.mxu1 }
 0x8ca   : > { %v9083_v50 = vadd.f32 %v9082_v12, %v14593_v59 }
 0x8cb   : > { %v9084_v52 = vpop.f32.mrf.mxu1 }
 0x8cc   : > { %9210 = vst.msk [vmem:[%s14601_s28 + $0x158] sm:$0xff] %vm9166_vm0, %v9083_v50 }
 0x8d8   : > { %v9087_v36 = vpop.f32.mrf.mxu1 }
 0x8d9   : > { %v9088_v16 = vadd.f32 %v9087_v36, %v14593_v59 }
 0x8da   : > { %v9089_v14 = vpop.f32.mrf.mxu1 }
 0x8db   : > { %9211 = vst.msk [vmem:[%s14601_s28 + $0x160] sm:$0xff] %vm9166_vm0, %v9088_v16 }
 0x8dc   : > { %v9090_v33 = vpop.f32.mrf.mxu1 }
 0x8dd   : > { %v9091_v32 = vadd.f32 %v9090_v33, %v14593_v59 }
 0x8de   : > { %v9092_v63 = vpop.f32.mrf.mxu1 }
 0x8df   : > { %9212 = vst.msk [vmem:[%s14601_s28 + $0x168] sm:$0xff] %vm9166_vm0, %v9091_v32 }
 0x8eb   : > { %v9095_v45 = vpop.f32.mrf.mxu1 }
 0x8ec   : > { %v9096_v22 = vadd.f32 %v9095_v45, %v14593_v59 }
 0x8ed   : > { %v9097_v38 = vpop.f32.mrf.mxu1 }
 0x8ee   : > { %9213 = vst.msk [vmem:[%s14601_s28 + $0x170] sm:$0xff] %vm9166_vm0, %v9096_v22 }
 0x8ef   : > { %v9098_v54 = vpop.f32.mrf.mxu1 }
 0x8f0   : > { %v9099_v13 = vadd.f32 %v9098_v54, %v14593_v59 }
 0x8f1   : > { %v9100_v21 = vpop.f32.mrf.mxu1 }
 0x8f2   : > { %9214 = vst.msk [vmem:[%s14601_s28 + $0x178] sm:$0xff] %vm9166_vm0, %v9099_v13 }
 0x8fe   : > { %v9103_v0 = vpop.f32.mrf.mxu1 }
 0x8ff   : > { %v9104_v39 = vadd.f32 %v9103_v0, %v14593_v59 }
 0x900   : > { %v9105_v6 = vpop.f32.mrf.mxu1 }
 0x901   : > { %9215 = vst.msk [vmem:[%s14601_s28 + $0x180] sm:$0xff] %vm9166_vm0, %v9104_v39 }
 0x902   : > { %v9106_v28 = vpop.f32.mrf.mxu1 }
 0x903   : > { %v9107_v41 = vadd.f32 %v9106_v28, %v14593_v59 }
 0x904   : > { %v9108_v23 = vpop.f32.mrf.mxu1 }
 0x905   : > { %9216 = vst.msk [vmem:[%s14601_s28 + $0x188] sm:$0xff] %vm9166_vm0, %v9107_v41 }
 0x911   : > { %v9111_v24 = vpop.f32.mrf.mxu1 }
 0x912   : > { %v9112_v11 = vadd.f32 %v9111_v24, %v14593_v59 }
 0x913   : > { %v9113_v56 = vpop.f32.mrf.mxu1 }
 0x914   : > { %9217 = vst.msk [vmem:[%s14601_s28 + $0x190] sm:$0xff] %vm9166_vm0, %v9112_v11 }
 0x915   : > { %v9114_v44 = vpop.f32.mrf.mxu1 }
 0x916   : > { %v9115_v7 = vadd.f32 %v9114_v44, %v14593_v59 }
 0x917   : > { %v9116_v61 = vpop.f32.mrf.mxu1 }
 0x918   : > { %9218 = vst.msk [vmem:[%s14601_s28 + $0x198] sm:$0xff] %vm9166_vm0, %v9115_v7 }
 0x924   : > { %v9119_v53 = vpop.f32.mrf.mxu1 }
 0x925   : > { %v9120_v25 = vadd.f32 %v9119_v53, %v14593_v59 }
 0x926   : > { %v9121_v10 = vpop.f32.mrf.mxu1 }
 0x927   : > { %9219 = vst.msk [vmem:[%s14601_s28 + $0x1a0] sm:$0xff] %vm9166_vm0, %v9120_v25 }
 0x928   : > { %v9122_v1 = vpop.f32.mrf.mxu1 }
 0x929   : > { %v9123_v46 = vadd.f32 %v9122_v1, %v14593_v59 }
 0x92a   : > { %v9124_v34 = vpop.f32.mrf.mxu1 }
 0x92b   : > { %9220 = vst.msk [vmem:[%s14601_s28 + $0x1a8] sm:$0xff] %vm9166_vm0, %v9123_v46 }
 0x937   : > { %v9127_v19 = vpop.f32.mrf.mxu1 }
 0x938   : > { %v9128_v35 = vadd.f32 %v9127_v19, %v14593_v59 }
 0x939   : > { %v9129_v20 = vpop.f32.mrf.mxu1 }
 0x93a   : > { %9221 = vst.msk [vmem:[%s14601_s28 + $0x1b0] sm:$0xff] %vm9166_vm0, %v9128_v35 }
 0x93b   : > { %v9130_v30 = vpop.f32.mrf.mxu1 }
 0x93c   : > { %v9131_v5 = vadd.f32 %v9130_v30, %v14593_v59 }
 0x93d   : > { %v9132_v60 = vpop.f32.mrf.mxu1 }
 0x93e   : > { %9222 = vst.msk [vmem:[%s14601_s28 + $0x1b8] sm:$0xff] %vm9166_vm0, %v9131_v5 }
 0x94a   : > { %v9135_v42 = vpop.f32.mrf.mxu1 }
 0x94b   : > { %v9136_v29 = vadd.f32 %v9135_v42, %v14593_v59 }
 0x94c   : > { %v9137_v62 = vpop.f32.mrf.mxu1 }
 0x94d   : > { %9223 = vst.msk [vmem:[%s14601_s28 + $0x1c0] sm:$0xff] %vm9166_vm0, %v9136_v29 }
 0x94e   : > { %v9138_v37 = vpop.f32.mrf.mxu1 }
 0x94f   : > { %v9139_v2 = vadd.f32 %v9138_v37, %v14593_v59 }
 0x950   : > { %v9140_v15 = vpop.f32.mrf.mxu1 }
 0x951   : > { %9224 = vst.msk [vmem:[%s14601_s28 + $0x1c8] sm:$0xff] %vm9166_vm0, %v9139_v2 }
 0x95d   : > { %v9143_v18 = vpop.f32.mrf.mxu1 }
 0x95e   : > { %v9144_v17 = vadd.f32 %v9143_v18, %v14593_v59 }
 0x95f   : > { %v9145_v26 = vpop.f32.mrf.mxu1 }
 0x960   : > { %9225 = vst.msk [vmem:[%s14601_s28 + $0x1d0] sm:$0xff] %vm9166_vm0, %v9144_v17 }
 0x961   : > { %v9146_v48 = vpop.f32.mrf.mxu1 }
 0x962   : > { %v9147_v31 = vadd.f32 %v9146_v48, %v14593_v59 }
 0x963   : > { %v9148_v47 = vpop.f32.mrf.mxu1 }
 0x964   : > { %9226 = vst.msk [vmem:[%s14601_s28 + $0x1d8] sm:$0xff] %vm9166_vm0, %v9147_v31 }
 0x970   : > { %v9151_v9 = vpop.f32.mrf.mxu1 }
 0x971   : > { %v9152_v8 = vadd.f32 %v9151_v9, %v14593_v59 }
 0x972   : > { %v9153_v49 = vpop.f32.mrf.mxu1 }
 0x973   : > { %9227 = vst.msk [vmem:[%s14601_s28 + $0x1e0] sm:$0xff] %vm9166_vm0, %v9152_v8 }
 0x974   : > { %v9154_v57 = vpop.f32.mrf.mxu1 }
 0x975   : > { %v9155_v3 = vadd.f32 %v9154_v57, %v14593_v59 }
 0x976   : > { %v9156_v51 = vpop.f32.mrf.mxu1 }
 0x977   : > { %9228 = vst.msk [vmem:[%s14601_s28 + $0x1e8] sm:$0xff] %vm9166_vm0, %v9155_v3 }
 0x983   : > { %v9159_v4 = vpop.f32.mrf.mxu1 }
 0x984   : > { %v9160_v27 = vadd.f32 %v9159_v4, %v14593_v59 }
 0x985   : > { %v9161_v55 = vpop.f32.mrf.mxu1 }
 0x986   : > { %9229 = vst.msk [vmem:[%s14601_s28 + $0x1f0] sm:$0xff] %vm9166_vm0, %v9160_v27 }
 0x987   : > { %v9162_v43 = vpop.f32.mrf.mxu1 }
 0x988   : > { %v9163_v58 = vadd.f32 %v9162_v43, %v14593_v59 }
 0x989   : > { %v9164_v40 = vpop.f32.mrf.mxu1 }
 0x98a   : > { %9230 = vst.msk [vmem:[%s14601_s28 + $0x1f8] sm:$0xff] %vm9166_vm0, %v9163_v58 }
 0x98b PF: > { %s32_s1 = sadd.s32 1, %s10186_s1  }
 0x98c   : > { %p29_p2 = scmp.ge.s32.totalorder %s32_s1, 4  }
 0x98e   :  { %31 = sbr.rel (!%p29_p2) target bundleno = 8 (0x8), region = 143 }
 0x993   :  { %9253 = vsyncpa [#allocation3], 1 }
 0x994   :  { %9255 = vsyncpa [#allocation3 + $0x1], 1 }
 0x995   :  { %9256 = vsyncpa [#allocation5], 1 }

</bundles_post_ra>
